<compile_context>
chip_gen: v7x
topology: tpu7x:2x2x1
jax: 0.10.0
libtpu: 0.0.40
codegen_flags: <defaults>
</compile_context>

<pallas_src>
import jax
import jax.numpy as jnp
from jax.experimental import pallas as pl
from jax.experimental.pallas import tpu as pltpu


def _sigmoid(x):
    # Exact identity: sigmoid(x) = 0.5 * (tanh(x/2) + 1).  Keeps the per-step
    # transcendental count to a single EUP op per gate.
    return 0.5 * (jnp.tanh(0.5 * x) + 1.0)


# ------------------------------ fused kernel ---------------------------------
def _make_pred_kernel(meta, num_layer, T, B, H, H2):
    """All LSTM layers + folded dense head, feature-major recurrence."""

    def kernel(x_ref, w_ref, out_ref, seq_ref):
        # Static slices of the single packed weight slab (one DMA for all
        # parameters); every row offset is a multiple of 8 (sublane tile).
        def blk(name):
            off, (r, c) = meta[name]
            return w_ref[off:off + r, 0:c]

        # Folded dense head, hoisted loads + hoisted bias broadcast
        # (JAX does not CSE broadcast_in_dim, so broadcast exactly once).
        w_head = blk("w_head")                                   # (H2, H)
        b_head = jnp.broadcast_to(blk("b_head"), (H2, B))        # (H2, B)

        for layer in range(num_layer):
            is_last = layer == num_layer - 1
            # Hoist weight loads and the bias broadcast out of the time loop.
            w_ih = blk(f"wih{layer}")                            # (4H, d_in)
            w_hh = blk(f"whh{layer}")                            # (4H, H)
            b = jnp.broadcast_to(blk(f"b{layer}"), (4 * H, B))   # (4H, B)

            h_t = jnp.zeros((H, B), jnp.float32)
            c_t = jnp.zeros((H, B), jnp.float32)

            # Fully unrolled recurrence.  Per step there is exactly ONE MXU
            # push on the serial chain (the fused-gate recurrent matmul); the
            # input projection is independent of h and schedulable early.
            for t in range(T):
                inp_t = x_ref[t] if layer == 0 else seq_ref[t]   # (d_in, B)
                z = (jnp.dot(w_ih, inp_t, preferred_element_type=jnp.float32)
                     + b
                     + jnp.dot(w_hh, h_t, preferred_element_type=jnp.float32))
                # PyTorch gate order i, f, g, o; sublane-tile-aligned slices.
                i_g = _sigmoid(z[0 * H:1 * H])
                f_g = _sigmoid(z[1 * H:2 * H])
                g_g = jnp.tanh(z[2 * H:3 * H])
                o_g = _sigmoid(z[3 * H:4 * H])
                c_t = f_g * c_t + i_g * g_g
                h_t = o_g * jnp.tanh(c_t)

                if is_last:
                    # Folded head applied directly to the vreg-resident h_t;
                    # each per-t store targets its own (H2, B) tile.
                    out_ref[t] = (
                        jnp.dot(w_head, h_t, preferred_element_type=jnp.float32)
                        + b_head
                    ).astype(out_ref.dtype)
                else:
                    # Inter-layer hand-off: disjoint (H, B) tile per t, so no
                    # masked RMW stores and no false deps between steps.
                    seq_ref[t] = h_t

    return kernel


# ------------------------------ host-side prep --------------------------------
def prepare_params(params, hidden_LSTM, num_layer):
    """Pack every weight/bias (feature-major) into ONE f32 slab (one-time prep).

    Returns (packed, meta) where meta[name] = (row_offset, (rows, cols)) for
    static in-kernel slicing.  dense_1/dense_2 are folded into a single
    (H2, H) matmul + bias -- valid only because there is no nonlinearity
    between them.
    """
    H = hidden_LSTM
    widths = [w_ih.shape[1] for (w_ih, _, _) in params["lstm"]] + [H, 1]
    packw = max(widths)

    blocks, meta = [], {}
    row = 0

    def add(name, arr):
        nonlocal row
        arr = jnp.asarray(arr, jnp.float32)
        r, c = arr.shape
        rp = -(-r // 8) * 8                      # pad rows to sublane tile
        block = jnp.zeros((rp, packw), jnp.float32).at[:r, :c].set(arr)
        blocks.append(block)
        meta[name] = (row, (r, c))
        row += rp

    for l, (w_ih, w_hh, b) in enumerate(params["lstm"]):
        add(f"wih{l}", w_ih)                     # (4H, d_in)  feature-major as stored
        add(f"whh{l}", w_hh)                     # (4H, H)
        add(f"b{l}", b.reshape(4 * H, 1))        # (4H, 1) = (b_ih + b_hh)^T
    # Folded head:  out = h @ (w2 @ w1)^T + (b1 @ w2^T + b2 + bias)
    w_head = params["w2"] @ params["w1"]                                       # (H2, H)
    b_head = params["b1"] @ params["w2"].T + params["b2"] + params["bias"]     # (1, H2)
    add("w_head", w_head)
    add("b_head", b_head.reshape(-1, 1))         # (H2, 1)

    return jnp.concatenate(blocks, axis=0), meta


def pred_forward(x, packed, meta, *, num_layer, hidden_LSTM, hidden_size_2):
    """x: (T, B, input_dim) time-major (torch.nn.LSTM batch_first=False)."""
    T, B, D = x.shape
    H, H2 = hidden_LSTM, hidden_size_2
    # Per-step feature-major layout (T, D, B): each time step is its own tile
    # group -> leading-axis indexing in-kernel, no sub-vreg slicing anywhere.
    x_fm = jnp.transpose(x, (0, 2, 1))

    kernel = _make_pred_kernel(meta, num_layer, T, B, H, H2)
    out_fm = pl.pallas_call(
        kernel,
        out_shape=jax.ShapeDtypeStruct((T, H2, B), jnp.float32),
        in_specs=[pl.BlockSpec(memory_space=pltpu.MemorySpace.VMEM),   # x (one DMA)
                  pl.BlockSpec(memory_space=pltpu.MemorySpace.VMEM)],  # packed weights (one DMA)
        out_specs=pl.BlockSpec(memory_space=pltpu.MemorySpace.VMEM),
        scratch_shapes=[pltpu.VMEM((T, H, B), jnp.float32)],           # inter-layer hidden seq
    )(x_fm, packed)
    # (T, H2, B) -> (T*B, H2): time-major flatten matching `.view(-1, hidden_LSTM)`.
    # Tiny layout plumbing done outside the kernel (one fused XLA transpose).
    return jnp.transpose(out_fm, (0, 2, 1)).reshape(T * B, H2)


# ------------------------------ pure-JAX reference ----------------------------
def pred_reference(x, params):
    h = x
    for (w_ih, w_hh, b) in params["lstm"]:
        T, B, _ = h.shape
        H = w_hh.shape[1]
        hs = []
        h_t = jnp.zeros((B, H), jnp.float32)
        c_t = jnp.zeros((B, H), jnp.float32)
        for t in range(T):
            gates = h[t] @ w_ih.T + h_t @ w_hh.T + b
            i = jax.nn.sigmoid(gates[:, 0 * H:1 * H])
            f = jax.nn.sigmoid(gates[:, 1 * H:2 * H])
            g = jnp.tanh(gates[:, 2 * H:3 * H])
            o = jax.nn.sigmoid(gates[:, 3 * H:4 * H])
            c_t = f * c_t + i * g
            h_t = o * jnp.tanh(c_t)
            hs.append(h_t)
        h = jnp.stack(hs, axis=0)
    h_flat = h.reshape(-1, h.shape[-1])
    d1 = h_flat @ params["w1"].T + params["b1"]
    return d1 @ params["w2"].T + params["b2"] + params["bias"]


# ----------------------------------- main --------------------------------------
if __name__ == "__main__":
    # Model config (small, consistent with Pred.__init__)
    input_dim = 4
    hidden_LSTM = 32
    hidden_size_1 = 32
    hidden_size_2 = 16
    num_layer = 2
    B, T = 2, 8

    key = jax.random.PRNGKey(0)
    keys = jax.random.split(key, 4 * num_layer + 6)
    ki = iter(keys)

    def init(k, shape, scale=0.1):
        return (scale * jax.random.normal(k, shape)).astype(jnp.float32)

    lstm_params = []
    for layer in range(num_layer):
        d_in = input_dim if layer == 0 else hidden_LSTM
        w_ih = init(next(ki), (4 * hidden_LSTM, d_in))
        w_hh = init(next(ki), (4 * hidden_LSTM, hidden_LSTM))
        # b = b_ih + b_hh folded into one (1, 4H) row vector
        b = init(next(ki), (1, 4 * hidden_LSTM)) + init(next(ki), (1, 4 * hidden_LSTM))
        lstm_params.append((w_ih, w_hh, b))

    params = {
        "lstm": lstm_params,
        "w1": init(next(ki), (hidden_size_1, hidden_LSTM)),
        "b1": init(next(ki), (1, hidden_size_1)),
        "w2": init(next(ki), (hidden_size_2, hidden_size_1)),
        "b2": init(next(ki), (1, hidden_size_2)),
        # self.bias ~ Normal(0, 1), shape (hidden_size_2,) — kept 2D for layout
        "bias": jax.random.normal(next(ki), (1, hidden_size_2)).astype(jnp.float32),
    }

    # x is (T, B, input_dim), time-major
    x = jax.random.normal(next(ki), (T, B, input_dim)).astype(jnp.float32)

    packed, meta = prepare_params(params, hidden_LSTM, num_layer)   # one-time prep
    out = jax.block_until_ready(
        pred_forward(x, packed, meta,
                     num_layer=num_layer,
                     hidden_LSTM=hidden_LSTM,
                     hidden_size_2=hidden_size_2))
    ref = pred_reference(x, params)
    assert out.shape == (T * B, hidden_size_2)
    assert jnp.allclose(out, ref, atol=1e-3, rtol=1e-3), float(jnp.abs(out - ref).max())
    print("KERNEL_OK")
</pallas_src>

<mosaic_0001>
module attributes {stable_mosaic.version = 11 : i64} {
  func.func @kernel(%arg0: memref<8x4x2xf32, #tpu.memory_space<vmem>>, %arg1: memref<800x32xf32, #tpu.memory_space<vmem>>, %arg2: memref<8x16x2xf32, #tpu.memory_space<vmem>>, %arg3: memref<8x32x2xf32, #tpu.memory_space<vmem>>) attributes {dimension_semantics = [], scalar_prefetch = 0 : i64, scratch_operands = 1 : i64, tpu.core_type = #tpu.core_type<tc>} {
    %c768 = arith.constant 768 : index
    %c0 = arith.constant 0 : index
    %0 = vector.load %arg1[%c768, %c0] : memref<800x32xf32, #tpu.memory_space<vmem>>, vector<16x32xf32>
    %c784 = arith.constant 784 : index
    %c0_0 = arith.constant 0 : index
    %1 = vector.load %arg1[%c784, %c0_0] : memref<800x32xf32, #tpu.memory_space<vmem>>, vector<16x1xf32>
    %2 = vector.shape_cast %1 : vector<16x1xf32> to vector<16x1xf32>
    %3 = vector.broadcast %2 : vector<16x1xf32> to vector<16x2xf32>
    %c0_1 = arith.constant 0 : index
    %c0_2 = arith.constant 0 : index
    %4 = vector.load %arg1[%c0_1, %c0_2] : memref<800x32xf32, #tpu.memory_space<vmem>>, vector<128x4xf32>
    %c128 = arith.constant 128 : index
    %c0_3 = arith.constant 0 : index
    %5 = vector.load %arg1[%c128, %c0_3] : memref<800x32xf32, #tpu.memory_space<vmem>>, vector<128x32xf32>
    %c256 = arith.constant 256 : index
    %c0_4 = arith.constant 0 : index
    %6 = vector.load %arg1[%c256, %c0_4] : memref<800x32xf32, #tpu.memory_space<vmem>>, vector<128x1xf32>
    %7 = vector.shape_cast %6 : vector<128x1xf32> to vector<128x1xf32>
    %8 = vector.broadcast %7 : vector<128x1xf32> to vector<128x2xf32>
    %cst = arith.constant 0.000000e+00 : f32
    %9 = vector.broadcast %cst : f32 to vector<32x2xf32>
    %cst_5 = arith.constant 0.000000e+00 : f32
    %10 = vector.broadcast %cst_5 : f32 to vector<32x2xf32>
    %c0_6 = arith.constant 0 : index
    %c0_7 = arith.constant 0 : index
    %c0_8 = arith.constant 0 : index
    %11 = vector.load %arg0[%c0_6, %c0_7, %c0_8] : memref<8x4x2xf32, #tpu.memory_space<vmem>>, vector<1x4x2xf32>
    %12 = vector.shape_cast %11 : vector<1x4x2xf32> to vector<4x2xf32>
    %cst_9 = arith.constant dense<0.000000e+00> : vector<128x2xf32>
    %13 = tpu.matmul %4, %12, %cst_9 {dimension_numbers = #tpu.dot_dimension_numbers<[1], [0], [0], [1], [0, 0, 1, 1], [], []>} : vector<128x4xf32>, vector<4x2xf32>, vector<128x2xf32> -> vector<128x2xf32>
    %14 = arith.addf %13, %8 : vector<128x2xf32>
    %cst_10 = arith.constant dense<0.000000e+00> : vector<128x2xf32>
    %15 = tpu.matmul %5, %9, %cst_10 {dimension_numbers = #tpu.dot_dimension_numbers<[1], [0], [0], [1], [0, 0, 1, 1], [], []>} : vector<128x32xf32>, vector<32x2xf32>, vector<128x2xf32> -> vector<128x2xf32>
    %16 = arith.addf %14, %15 : vector<128x2xf32>
    %17 = vector.extract_strided_slice %16 {offsets = [0, 0], sizes = [32, 2], strides = [1, 1]} : vector<128x2xf32> to vector<32x2xf32>
    %cst_11 = arith.constant 5.000000e-01 : f32
    %18 = vector.broadcast %cst_11 : f32 to vector<32x2xf32>
    %19 = arith.mulf %18, %17 : vector<32x2xf32>
    %20 = math.tanh %19 : vector<32x2xf32>
    %cst_12 = arith.constant 1.000000e+00 : f32
    %21 = vector.broadcast %cst_12 : f32 to vector<32x2xf32>
    %22 = arith.addf %20, %21 : vector<32x2xf32>
    %cst_13 = arith.constant 5.000000e-01 : f32
    %23 = vector.broadcast %cst_13 : f32 to vector<32x2xf32>
    %24 = arith.mulf %23, %22 : vector<32x2xf32>
    %25 = vector.extract_strided_slice %16 {offsets = [32, 0], sizes = [32, 2], strides = [1, 1]} : vector<128x2xf32> to vector<32x2xf32>
    %cst_14 = arith.constant 5.000000e-01 : f32
    %26 = vector.broadcast %cst_14 : f32 to vector<32x2xf32>
    %27 = arith.mulf %26, %25 : vector<32x2xf32>
    %28 = math.tanh %27 : vector<32x2xf32>
    %cst_15 = arith.constant 1.000000e+00 : f32
    %29 = vector.broadcast %cst_15 : f32 to vector<32x2xf32>
    %30 = arith.addf %28, %29 : vector<32x2xf32>
    %cst_16 = arith.constant 5.000000e-01 : f32
    %31 = vector.broadcast %cst_16 : f32 to vector<32x2xf32>
    %32 = arith.mulf %31, %30 : vector<32x2xf32>
    %33 = vector.extract_strided_slice %16 {offsets = [64, 0], sizes = [32, 2], strides = [1, 1]} : vector<128x2xf32> to vector<32x2xf32>
    %34 = math.tanh %33 : vector<32x2xf32>
    %35 = vector.extract_strided_slice %16 {offsets = [96, 0], sizes = [32, 2], strides = [1, 1]} : vector<128x2xf32> to vector<32x2xf32>
    %cst_17 = arith.constant 5.000000e-01 : f32
    %36 = vector.broadcast %cst_17 : f32 to vector<32x2xf32>
    %37 = arith.mulf %36, %35 : vector<32x2xf32>
    %38 = math.tanh %37 : vector<32x2xf32>
    %cst_18 = arith.constant 1.000000e+00 : f32
    %39 = vector.broadcast %cst_18 : f32 to vector<32x2xf32>
    %40 = arith.addf %38, %39 : vector<32x2xf32>
    %cst_19 = arith.constant 5.000000e-01 : f32
    %41 = vector.broadcast %cst_19 : f32 to vector<32x2xf32>
    %42 = arith.mulf %41, %40 : vector<32x2xf32>
    %43 = arith.mulf %32, %10 : vector<32x2xf32>
    %44 = arith.mulf %24, %34 : vector<32x2xf32>
    %45 = arith.addf %43, %44 : vector<32x2xf32>
    %46 = math.tanh %45 : vector<32x2xf32>
    %47 = arith.mulf %42, %46 : vector<32x2xf32>
    %c0_20 = arith.constant 0 : index
    %c0_21 = arith.constant 0 : index
    %c0_22 = arith.constant 0 : index
    %48 = vector.load %arg3[%c0_20, %c0_21, %c0_22] : memref<8x32x2xf32, #tpu.memory_space<vmem>>, vector<1x32x2xf32>
    %49 = vector.shape_cast %48 : vector<1x32x2xf32> to vector<32x2xf32>
    %50 = vector.shape_cast %47 : vector<32x2xf32> to vector<1x32x2xf32>
    tpu.vector_store %arg3[%c0_20, %c0_21, %c0_22], %50 {strides = array<i32>} : memref<8x32x2xf32, #tpu.memory_space<vmem>>, vector<1x32x2xf32>,
    %c1 = arith.constant 1 : index
    %c0_23 = arith.constant 0 : index
    %c0_24 = arith.constant 0 : index
    %51 = vector.load %arg0[%c1, %c0_23, %c0_24] : memref<8x4x2xf32, #tpu.memory_space<vmem>>, vector<1x4x2xf32>
    %52 = vector.shape_cast %51 : vector<1x4x2xf32> to vector<4x2xf32>
    %cst_25 = arith.constant dense<0.000000e+00> : vector<128x2xf32>
    %53 = tpu.matmul %4, %52, %cst_25 {dimension_numbers = #tpu.dot_dimension_numbers<[1], [0], [0], [1], [0, 0, 1, 1], [], []>} : vector<128x4xf32>, vector<4x2xf32>, vector<128x2xf32> -> vector<128x2xf32>
    %54 = arith.addf %53, %8 : vector<128x2xf32>
    %cst_26 = arith.constant dense<0.000000e+00> : vector<128x2xf32>
    %55 = tpu.matmul %5, %47, %cst_26 {dimension_numbers = #tpu.dot_dimension_numbers<[1], [0], [0], [1], [0, 0, 1, 1], [], []>} : vector<128x32xf32>, vector<32x2xf32>, vector<128x2xf32> -> vector<128x2xf32>
    %56 = arith.addf %54, %55 : vector<128x2xf32>
    %57 = vector.extract_strided_slice %56 {offsets = [0, 0], sizes = [32, 2], strides = [1, 1]} : vector<128x2xf32> to vector<32x2xf32>
    %cst_27 = arith.constant 5.000000e-01 : f32
    %58 = vector.broadcast %cst_27 : f32 to vector<32x2xf32>
    %59 = arith.mulf %58, %57 : vector<32x2xf32>
    %60 = math.tanh %59 : vector<32x2xf32>
    %cst_28 = arith.constant 1.000000e+00 : f32
    %61 = vector.broadcast %cst_28 : f32 to vector<32x2xf32>
    %62 = arith.addf %60, %61 : vector<32x2xf32>
    %cst_29 = arith.constant 5.000000e-01 : f32
    %63 = vector.broadcast %cst_29 : f32 to vector<32x2xf32>
    %64 = arith.mulf %63, %62 : vector<32x2xf32>
    %65 = vector.extract_strided_slice %56 {offsets = [32, 0], sizes = [32, 2], strides = [1, 1]} : vector<128x2xf32> to vector<32x2xf32>
    %cst_30 = arith.constant 5.000000e-01 : f32
    %66 = vector.broadcast %cst_30 : f32 to vector<32x2xf32>
    %67 = arith.mulf %66, %65 : vector<32x2xf32>
    %68 = math.tanh %67 : vector<32x2xf32>
    %cst_31 = arith.constant 1.000000e+00 : f32
    %69 = vector.broadcast %cst_31 : f32 to vector<32x2xf32>
    %70 = arith.addf %68, %69 : vector<32x2xf32>
    %cst_32 = arith.constant 5.000000e-01 : f32
    %71 = vector.broadcast %cst_32 : f32 to vector<32x2xf32>
    %72 = arith.mulf %71, %70 : vector<32x2xf32>
    %73 = vector.extract_strided_slice %56 {offsets = [64, 0], sizes = [32, 2], strides = [1, 1]} : vector<128x2xf32> to vector<32x2xf32>
    %74 = math.tanh %73 : vector<32x2xf32>
    %75 = vector.extract_strided_slice %56 {offsets = [96, 0], sizes = [32, 2], strides = [1, 1]} : vector<128x2xf32> to vector<32x2xf32>
    %cst_33 = arith.constant 5.000000e-01 : f32
    %76 = vector.broadcast %cst_33 : f32 to vector<32x2xf32>
    %77 = arith.mulf %76, %75 : vector<32x2xf32>
    %78 = math.tanh %77 : vector<32x2xf32>
    %cst_34 = arith.constant 1.000000e+00 : f32
    %79 = vector.broadcast %cst_34 : f32 to vector<32x2xf32>
    %80 = arith.addf %78, %79 : vector<32x2xf32>
    %cst_35 = arith.constant 5.000000e-01 : f32
    %81 = vector.broadcast %cst_35 : f32 to vector<32x2xf32>
    %82 = arith.mulf %81, %80 : vector<32x2xf32>
    %83 = arith.mulf %72, %45 : vector<32x2xf32>
    %84 = arith.mulf %64, %74 : vector<32x2xf32>
    %85 = arith.addf %83, %84 : vector<32x2xf32>
    %86 = math.tanh %85 : vector<32x2xf32>
    %87 = arith.mulf %82, %86 : vector<32x2xf32>
    %c1_36 = arith.constant 1 : index
    %c0_37 = arith.constant 0 : index
    %c0_38 = arith.constant 0 : index
    %88 = vector.load %arg3[%c1_36, %c0_37, %c0_38] : memref<8x32x2xf32, #tpu.memory_space<vmem>>, vector<1x32x2xf32>
    %89 = vector.shape_cast %88 : vector<1x32x2xf32> to vector<32x2xf32>
    %90 = vector.shape_cast %87 : vector<32x2xf32> to vector<1x32x2xf32>
    tpu.vector_store %arg3[%c1_36, %c0_37, %c0_38], %90 {strides = array<i32>} : memref<8x32x2xf32, #tpu.memory_space<vmem>>, vector<1x32x2xf32>,
    %c2 = arith.constant 2 : index
    %c0_39 = arith.constant 0 : index
    %c0_40 = arith.constant 0 : index
    %91 = vector.load %arg0[%c2, %c0_39, %c0_40] : memref<8x4x2xf32, #tpu.memory_space<vmem>>, vector<1x4x2xf32>
    %92 = vector.shape_cast %91 : vector<1x4x2xf32> to vector<4x2xf32>
    %cst_41 = arith.constant dense<0.000000e+00> : vector<128x2xf32>
    %93 = tpu.matmul %4, %92, %cst_41 {dimension_numbers = #tpu.dot_dimension_numbers<[1], [0], [0], [1], [0, 0, 1, 1], [], []>} : vector<128x4xf32>, vector<4x2xf32>, vector<128x2xf32> -> vector<128x2xf32>
    %94 = arith.addf %93, %8 : vector<128x2xf32>
    %cst_42 = arith.constant dense<0.000000e+00> : vector<128x2xf32>
    %95 = tpu.matmul %5, %87, %cst_42 {dimension_numbers = #tpu.dot_dimension_numbers<[1], [0], [0], [1], [0, 0, 1, 1], [], []>} : vector<128x32xf32>, vector<32x2xf32>, vector<128x2xf32> -> vector<128x2xf32>
    %96 = arith.addf %94, %95 : vector<128x2xf32>
    %97 = vector.extract_strided_slice %96 {offsets = [0, 0], sizes = [32, 2], strides = [1, 1]} : vector<128x2xf32> to vector<32x2xf32>
    %cst_43 = arith.constant 5.000000e-01 : f32
    %98 = vector.broadcast %cst_43 : f32 to vector<32x2xf32>
    %99 = arith.mulf %98, %97 : vector<32x2xf32>
    %100 = math.tanh %99 : vector<32x2xf32>
    %cst_44 = arith.constant 1.000000e+00 : f32
    %101 = vector.broadcast %cst_44 : f32 to vector<32x2xf32>
    %102 = arith.addf %100, %101 : vector<32x2xf32>
    %cst_45 = arith.constant 5.000000e-01 : f32
    %103 = vector.broadcast %cst_45 : f32 to vector<32x2xf32>
    %104 = arith.mulf %103, %102 : vector<32x2xf32>
    %105 = vector.extract_strided_slice %96 {offsets = [32, 0], sizes = [32, 2], strides = [1, 1]} : vector<128x2xf32> to vector<32x2xf32>
    %cst_46 = arith.constant 5.000000e-01 : f32
    %106 = vector.broadcast %cst_46 : f32 to vector<32x2xf32>
    %107 = arith.mulf %106, %105 : vector<32x2xf32>
    %108 = math.tanh %107 : vector<32x2xf32>
    %cst_47 = arith.constant 1.000000e+00 : f32
    %109 = vector.broadcast %cst_47 : f32 to vector<32x2xf32>
    %110 = arith.addf %108, %109 : vector<32x2xf32>
    %cst_48 = arith.constant 5.000000e-01 : f32
    %111 = vector.broadcast %cst_48 : f32 to vector<32x2xf32>
    %112 = arith.mulf %111, %110 : vector<32x2xf32>
    %113 = vector.extract_strided_slice %96 {offsets = [64, 0], sizes = [32, 2], strides = [1, 1]} : vector<128x2xf32> to vector<32x2xf32>
    %114 = math.tanh %113 : vector<32x2xf32>
    %115 = vector.extract_strided_slice %96 {offsets = [96, 0], sizes = [32, 2], strides = [1, 1]} : vector<128x2xf32> to vector<32x2xf32>
    %cst_49 = arith.constant 5.000000e-01 : f32
    %116 = vector.broadcast %cst_49 : f32 to vector<32x2xf32>
    %117 = arith.mulf %116, %115 : vector<32x2xf32>
    %118 = math.tanh %117 : vector<32x2xf32>
    %cst_50 = arith.constant 1.000000e+00 : f32
    %119 = vector.broadcast %cst_50 : f32 to vector<32x2xf32>
    %120 = arith.addf %118, %119 : vector<32x2xf32>
    %cst_51 = arith.constant 5.000000e-01 : f32
    %121 = vector.broadcast %cst_51 : f32 to vector<32x2xf32>
    %122 = arith.mulf %121, %120 : vector<32x2xf32>
    %123 = arith.mulf %112, %85 : vector<32x2xf32>
    %124 = arith.mulf %104, %114 : vector<32x2xf32>
    %125 = arith.addf %123, %124 : vector<32x2xf32>
    %126 = math.tanh %125 : vector<32x2xf32>
    %127 = arith.mulf %122, %126 : vector<32x2xf32>
    %c2_52 = arith.constant 2 : index
    %c0_53 = arith.constant 0 : index
    %c0_54 = arith.constant 0 : index
    %128 = vector.load %arg3[%c2_52, %c0_53, %c0_54] : memref<8x32x2xf32, #tpu.memory_space<vmem>>, vector<1x32x2xf32>
    %129 = vector.shape_cast %128 : vector<1x32x2xf32> to vector<32x2xf32>
    %130 = vector.shape_cast %127 : vector<32x2xf32> to vector<1x32x2xf32>
    tpu.vector_store %arg3[%c2_52, %c0_53, %c0_54], %130 {strides = array<i32>} : memref<8x32x2xf32, #tpu.memory_space<vmem>>, vector<1x32x2xf32>,
    %c3 = arith.constant 3 : index
    %c0_55 = arith.constant 0 : index
    %c0_56 = arith.constant 0 : index
    %131 = vector.load %arg0[%c3, %c0_55, %c0_56] : memref<8x4x2xf32, #tpu.memory_space<vmem>>, vector<1x4x2xf32>
    %132 = vector.shape_cast %131 : vector<1x4x2xf32> to vector<4x2xf32>
    %cst_57 = arith.constant dense<0.000000e+00> : vector<128x2xf32>
    %133 = tpu.matmul %4, %132, %cst_57 {dimension_numbers = #tpu.dot_dimension_numbers<[1], [0], [0], [1], [0, 0, 1, 1], [], []>} : vector<128x4xf32>, vector<4x2xf32>, vector<128x2xf32> -> vector<128x2xf32>
    %134 = arith.addf %133, %8 : vector<128x2xf32>
    %cst_58 = arith.constant dense<0.000000e+00> : vector<128x2xf32>
    %135 = tpu.matmul %5, %127, %cst_58 {dimension_numbers = #tpu.dot_dimension_numbers<[1], [0], [0], [1], [0, 0, 1, 1], [], []>} : vector<128x32xf32>, vector<32x2xf32>, vector<128x2xf32> -> vector<128x2xf32>
    %136 = arith.addf %134, %135 : vector<128x2xf32>
    %137 = vector.extract_strided_slice %136 {offsets = [0, 0], sizes = [32, 2], strides = [1, 1]} : vector<128x2xf32> to vector<32x2xf32>
    %cst_59 = arith.constant 5.000000e-01 : f32
    %138 = vector.broadcast %cst_59 : f32 to vector<32x2xf32>
    %139 = arith.mulf %138, %137 : vector<32x2xf32>
    %140 = math.tanh %139 : vector<32x2xf32>
    %cst_60 = arith.constant 1.000000e+00 : f32
    %141 = vector.broadcast %cst_60 : f32 to vector<32x2xf32>
    %142 = arith.addf %140, %141 : vector<32x2xf32>
    %cst_61 = arith.constant 5.000000e-01 : f32
    %143 = vector.broadcast %cst_61 : f32 to vector<32x2xf32>
    %144 = arith.mulf %143, %142 : vector<32x2xf32>
    %145 = vector.extract_strided_slice %136 {offsets = [32, 0], sizes = [32, 2], strides = [1, 1]} : vector<128x2xf32> to vector<32x2xf32>
    %cst_62 = arith.constant 5.000000e-01 : f32
    %146 = vector.broadcast %cst_62 : f32 to vector<32x2xf32>
    %147 = arith.mulf %146, %145 : vector<32x2xf32>
    %148 = math.tanh %147 : vector<32x2xf32>
    %cst_63 = arith.constant 1.000000e+00 : f32
    %149 = vector.broadcast %cst_63 : f32 to vector<32x2xf32>
    %150 = arith.addf %148, %149 : vector<32x2xf32>
    %cst_64 = arith.constant 5.000000e-01 : f32
    %151 = vector.broadcast %cst_64 : f32 to vector<32x2xf32>
    %152 = arith.mulf %151, %150 : vector<32x2xf32>
    %153 = vector.extract_strided_slice %136 {offsets = [64, 0], sizes = [32, 2], strides = [1, 1]} : vector<128x2xf32> to vector<32x2xf32>
    %154 = math.tanh %153 : vector<32x2xf32>
    %155 = vector.extract_strided_slice %136 {offsets = [96, 0], sizes = [32, 2], strides = [1, 1]} : vector<128x2xf32> to vector<32x2xf32>
    %cst_65 = arith.constant 5.000000e-01 : f32
    %156 = vector.broadcast %cst_65 : f32 to vector<32x2xf32>
    %157 = arith.mulf %156, %155 : vector<32x2xf32>
    %158 = math.tanh %157 : vector<32x2xf32>
    %cst_66 = arith.constant 1.000000e+00 : f32
    %159 = vector.broadcast %cst_66 : f32 to vector<32x2xf32>
    %160 = arith.addf %158, %159 : vector<32x2xf32>
    %cst_67 = arith.constant 5.000000e-01 : f32
    %161 = vector.broadcast %cst_67 : f32 to vector<32x2xf32>
    %162 = arith.mulf %161, %160 : vector<32x2xf32>
    %163 = arith.mulf %152, %125 : vector<32x2xf32>
    %164 = arith.mulf %144, %154 : vector<32x2xf32>
    %165 = arith.addf %163, %164 : vector<32x2xf32>
    %166 = math.tanh %165 : vector<32x2xf32>
    %167 = arith.mulf %162, %166 : vector<32x2xf32>
    %c3_68 = arith.constant 3 : index
    %c0_69 = arith.constant 0 : index
    %c0_70 = arith.constant 0 : index
    %168 = vector.load %arg3[%c3_68, %c0_69, %c0_70] : memref<8x32x2xf32, #tpu.memory_space<vmem>>, vector<1x32x2xf32>
    %169 = vector.shape_cast %168 : vector<1x32x2xf32> to vector<32x2xf32>
    %170 = vector.shape_cast %167 : vector<32x2xf32> to vector<1x32x2xf32>
    tpu.vector_store %arg3[%c3_68, %c0_69, %c0_70], %170 {strides = array<i32>} : memref<8x32x2xf32, #tpu.memory_space<vmem>>, vector<1x32x2xf32>,
    %c4 = arith.constant 4 : index
    %c0_71 = arith.constant 0 : index
    %c0_72 = arith.constant 0 : index
    %171 = vector.load %arg0[%c4, %c0_71, %c0_72] : memref<8x4x2xf32, #tpu.memory_space<vmem>>, vector<1x4x2xf32>
    %172 = vector.shape_cast %171 : vector<1x4x2xf32> to vector<4x2xf32>
    %cst_73 = arith.constant dense<0.000000e+00> : vector<128x2xf32>
    %173 = tpu.matmul %4, %172, %cst_73 {dimension_numbers = #tpu.dot_dimension_numbers<[1], [0], [0], [1], [0, 0, 1, 1], [], []>} : vector<128x4xf32>, vector<4x2xf32>, vector<128x2xf32> -> vector<128x2xf32>
    %174 = arith.addf %173, %8 : vector<128x2xf32>
    %cst_74 = arith.constant dense<0.000000e+00> : vector<128x2xf32>
    %175 = tpu.matmul %5, %167, %cst_74 {dimension_numbers = #tpu.dot_dimension_numbers<[1], [0], [0], [1], [0, 0, 1, 1], [], []>} : vector<128x32xf32>, vector<32x2xf32>, vector<128x2xf32> -> vector<128x2xf32>
    %176 = arith.addf %174, %175 : vector<128x2xf32>
    %177 = vector.extract_strided_slice %176 {offsets = [0, 0], sizes = [32, 2], strides = [1, 1]} : vector<128x2xf32> to vector<32x2xf32>
    %cst_75 = arith.constant 5.000000e-01 : f32
    %178 = vector.broadcast %cst_75 : f32 to vector<32x2xf32>
    %179 = arith.mulf %178, %177 : vector<32x2xf32>
    %180 = math.tanh %179 : vector<32x2xf32>
    %cst_76 = arith.constant 1.000000e+00 : f32
    %181 = vector.broadcast %cst_76 : f32 to vector<32x2xf32>
    %182 = arith.addf %180, %181 : vector<32x2xf32>
    %cst_77 = arith.constant 5.000000e-01 : f32
    %183 = vector.broadcast %cst_77 : f32 to vector<32x2xf32>
    %184 = arith.mulf %183, %182 : vector<32x2xf32>
    %185 = vector.extract_strided_slice %176 {offsets = [32, 0], sizes = [32, 2], strides = [1, 1]} : vector<128x2xf32> to vector<32x2xf32>
    %cst_78 = arith.constant 5.000000e-01 : f32
    %186 = vector.broadcast %cst_78 : f32 to vector<32x2xf32>
    %187 = arith.mulf %186, %185 : vector<32x2xf32>
    %188 = math.tanh %187 : vector<32x2xf32>
    %cst_79 = arith.constant 1.000000e+00 : f32
    %189 = vector.broadcast %cst_79 : f32 to vector<32x2xf32>
    %190 = arith.addf %188, %189 : vector<32x2xf32>
    %cst_80 = arith.constant 5.000000e-01 : f32
    %191 = vector.broadcast %cst_80 : f32 to vector<32x2xf32>
    %192 = arith.mulf %191, %190 : vector<32x2xf32>
    %193 = vector.extract_strided_slice %176 {offsets = [64, 0], sizes = [32, 2], strides = [1, 1]} : vector<128x2xf32> to vector<32x2xf32>
    %194 = math.tanh %193 : vector<32x2xf32>
    %195 = vector.extract_strided_slice %176 {offsets = [96, 0], sizes = [32, 2], strides = [1, 1]} : vector<128x2xf32> to vector<32x2xf32>
    %cst_81 = arith.constant 5.000000e-01 : f32
    %196 = vector.broadcast %cst_81 : f32 to vector<32x2xf32>
    %197 = arith.mulf %196, %195 : vector<32x2xf32>
    %198 = math.tanh %197 : vector<32x2xf32>
    %cst_82 = arith.constant 1.000000e+00 : f32
    %199 = vector.broadcast %cst_82 : f32 to vector<32x2xf32>
    %200 = arith.addf %198, %199 : vector<32x2xf32>
    %cst_83 = arith.constant 5.000000e-01 : f32
    %201 = vector.broadcast %cst_83 : f32 to vector<32x2xf32>
    %202 = arith.mulf %201, %200 : vector<32x2xf32>
    %203 = arith.mulf %192, %165 : vector<32x2xf32>
    %204 = arith.mulf %184, %194 : vector<32x2xf32>
    %205 = arith.addf %203, %204 : vector<32x2xf32>
    %206 = math.tanh %205 : vector<32x2xf32>
    %207 = arith.mulf %202, %206 : vector<32x2xf32>
    %c4_84 = arith.constant 4 : index
    %c0_85 = arith.constant 0 : index
    %c0_86 = arith.constant 0 : index
    %208 = vector.load %arg3[%c4_84, %c0_85, %c0_86] : memref<8x32x2xf32, #tpu.memory_space<vmem>>, vector<1x32x2xf32>
    %209 = vector.shape_cast %208 : vector<1x32x2xf32> to vector<32x2xf32>
    %210 = vector.shape_cast %207 : vector<32x2xf32> to vector<1x32x2xf32>
    tpu.vector_store %arg3[%c4_84, %c0_85, %c0_86], %210 {strides = array<i32>} : memref<8x32x2xf32, #tpu.memory_space<vmem>>, vector<1x32x2xf32>,
    %c5 = arith.constant 5 : index
    %c0_87 = arith.constant 0 : index
    %c0_88 = arith.constant 0 : index
    %211 = vector.load %arg0[%c5, %c0_87, %c0_88] : memref<8x4x2xf32, #tpu.memory_space<vmem>>, vector<1x4x2xf32>
    %212 = vector.shape_cast %211 : vector<1x4x2xf32> to vector<4x2xf32>
    %cst_89 = arith.constant dense<0.000000e+00> : vector<128x2xf32>
    %213 = tpu.matmul %4, %212, %cst_89 {dimension_numbers = #tpu.dot_dimension_numbers<[1], [0], [0], [1], [0, 0, 1, 1], [], []>} : vector<128x4xf32>, vector<4x2xf32>, vector<128x2xf32> -> vector<128x2xf32>
    %214 = arith.addf %213, %8 : vector<128x2xf32>
    %cst_90 = arith.constant dense<0.000000e+00> : vector<128x2xf32>
    %215 = tpu.matmul %5, %207, %cst_90 {dimension_numbers = #tpu.dot_dimension_numbers<[1], [0], [0], [1], [0, 0, 1, 1], [], []>} : vector<128x32xf32>, vector<32x2xf32>, vector<128x2xf32> -> vector<128x2xf32>
    %216 = arith.addf %214, %215 : vector<128x2xf32>
    %217 = vector.extract_strided_slice %216 {offsets = [0, 0], sizes = [32, 2], strides = [1, 1]} : vector<128x2xf32> to vector<32x2xf32>
    %cst_91 = arith.constant 5.000000e-01 : f32
    %218 = vector.broadcast %cst_91 : f32 to vector<32x2xf32>
    %219 = arith.mulf %218, %217 : vector<32x2xf32>
    %220 = math.tanh %219 : vector<32x2xf32>
    %cst_92 = arith.constant 1.000000e+00 : f32
    %221 = vector.broadcast %cst_92 : f32 to vector<32x2xf32>
    %222 = arith.addf %220, %221 : vector<32x2xf32>
    %cst_93 = arith.constant 5.000000e-01 : f32
    %223 = vector.broadcast %cst_93 : f32 to vector<32x2xf32>
    %224 = arith.mulf %223, %222 : vector<32x2xf32>
    %225 = vector.extract_strided_slice %216 {offsets = [32, 0], sizes = [32, 2], strides = [1, 1]} : vector<128x2xf32> to vector<32x2xf32>
    %cst_94 = arith.constant 5.000000e-01 : f32
    %226 = vector.broadcast %cst_94 : f32 to vector<32x2xf32>
    %227 = arith.mulf %226, %225 : vector<32x2xf32>
    %228 = math.tanh %227 : vector<32x2xf32>
    %cst_95 = arith.constant 1.000000e+00 : f32
    %229 = vector.broadcast %cst_95 : f32 to vector<32x2xf32>
    %230 = arith.addf %228, %229 : vector<32x2xf32>
    %cst_96 = arith.constant 5.000000e-01 : f32
    %231 = vector.broadcast %cst_96 : f32 to vector<32x2xf32>
    %232 = arith.mulf %231, %230 : vector<32x2xf32>
    %233 = vector.extract_strided_slice %216 {offsets = [64, 0], sizes = [32, 2], strides = [1, 1]} : vector<128x2xf32> to vector<32x2xf32>
    %234 = math.tanh %233 : vector<32x2xf32>
    %235 = vector.extract_strided_slice %216 {offsets = [96, 0], sizes = [32, 2], strides = [1, 1]} : vector<128x2xf32> to vector<32x2xf32>
    %cst_97 = arith.constant 5.000000e-01 : f32
    %236 = vector.broadcast %cst_97 : f32 to vector<32x2xf32>
    %237 = arith.mulf %236, %235 : vector<32x2xf32>
    %238 = math.tanh %237 : vector<32x2xf32>
    %cst_98 = arith.constant 1.000000e+00 : f32
    %239 = vector.broadcast %cst_98 : f32 to vector<32x2xf32>
    %240 = arith.addf %238, %239 : vector<32x2xf32>
    %cst_99 = arith.constant 5.000000e-01 : f32
    %241 = vector.broadcast %cst_99 : f32 to vector<32x2xf32>
    %242 = arith.mulf %241, %240 : vector<32x2xf32>
    %243 = arith.mulf %232, %205 : vector<32x2xf32>
    %244 = arith.mulf %224, %234 : vector<32x2xf32>
    %245 = arith.addf %243, %244 : vector<32x2xf32>
    %246 = math.tanh %245 : vector<32x2xf32>
    %247 = arith.mulf %242, %246 : vector<32x2xf32>
    %c5_100 = arith.constant 5 : index
    %c0_101 = arith.constant 0 : index
    %c0_102 = arith.constant 0 : index
    %248 = vector.load %arg3[%c5_100, %c0_101, %c0_102] : memref<8x32x2xf32, #tpu.memory_space<vmem>>, vector<1x32x2xf32>
    %249 = vector.shape_cast %248 : vector<1x32x2xf32> to vector<32x2xf32>
    %250 = vector.shape_cast %247 : vector<32x2xf32> to vector<1x32x2xf32>
    tpu.vector_store %arg3[%c5_100, %c0_101, %c0_102], %250 {strides = array<i32>} : memref<8x32x2xf32, #tpu.memory_space<vmem>>, vector<1x32x2xf32>,
    %c6 = arith.constant 6 : index
    %c0_103 = arith.constant 0 : index
    %c0_104 = arith.constant 0 : index
    %251 = vector.load %arg0[%c6, %c0_103, %c0_104] : memref<8x4x2xf32, #tpu.memory_space<vmem>>, vector<1x4x2xf32>
    %252 = vector.shape_cast %251 : vector<1x4x2xf32> to vector<4x2xf32>
    %cst_105 = arith.constant dense<0.000000e+00> : vector<128x2xf32>
    %253 = tpu.matmul %4, %252, %cst_105 {dimension_numbers = #tpu.dot_dimension_numbers<[1], [0], [0], [1], [0, 0, 1, 1], [], []>} : vector<128x4xf32>, vector<4x2xf32>, vector<128x2xf32> -> vector<128x2xf32>
    %254 = arith.addf %253, %8 : vector<128x2xf32>
    %cst_106 = arith.constant dense<0.000000e+00> : vector<128x2xf32>
    %255 = tpu.matmul %5, %247, %cst_106 {dimension_numbers = #tpu.dot_dimension_numbers<[1], [0], [0], [1], [0, 0, 1, 1], [], []>} : vector<128x32xf32>, vector<32x2xf32>, vector<128x2xf32> -> vector<128x2xf32>
    %256 = arith.addf %254, %255 : vector<128x2xf32>
    %257 = vector.extract_strided_slice %256 {offsets = [0, 0], sizes = [32, 2], strides = [1, 1]} : vector<128x2xf32> to vector<32x2xf32>
    %cst_107 = arith.constant 5.000000e-01 : f32
    %258 = vector.broadcast %cst_107 : f32 to vector<32x2xf32>
    %259 = arith.mulf %258, %257 : vector<32x2xf32>
    %260 = math.tanh %259 : vector<32x2xf32>
    %cst_108 = arith.constant 1.000000e+00 : f32
    %261 = vector.broadcast %cst_108 : f32 to vector<32x2xf32>
    %262 = arith.addf %260, %261 : vector<32x2xf32>
    %cst_109 = arith.constant 5.000000e-01 : f32
    %263 = vector.broadcast %cst_109 : f32 to vector<32x2xf32>
    %264 = arith.mulf %263, %262 : vector<32x2xf32>
    %265 = vector.extract_strided_slice %256 {offsets = [32, 0], sizes = [32, 2], strides = [1, 1]} : vector<128x2xf32> to vector<32x2xf32>
    %cst_110 = arith.constant 5.000000e-01 : f32
    %266 = vector.broadcast %cst_110 : f32 to vector<32x2xf32>
    %267 = arith.mulf %266, %265 : vector<32x2xf32>
    %268 = math.tanh %267 : vector<32x2xf32>
    %cst_111 = arith.constant 1.000000e+00 : f32
    %269 = vector.broadcast %cst_111 : f32 to vector<32x2xf32>
    %270 = arith.addf %268, %269 : vector<32x2xf32>
    %cst_112 = arith.constant 5.000000e-01 : f32
    %271 = vector.broadcast %cst_112 : f32 to vector<32x2xf32>
    %272 = arith.mulf %271, %270 : vector<32x2xf32>
    %273 = vector.extract_strided_slice %256 {offsets = [64, 0], sizes = [32, 2], strides = [1, 1]} : vector<128x2xf32> to vector<32x2xf32>
    %274 = math.tanh %273 : vector<32x2xf32>
    %275 = vector.extract_strided_slice %256 {offsets = [96, 0], sizes = [32, 2], strides = [1, 1]} : vector<128x2xf32> to vector<32x2xf32>
    %cst_113 = arith.constant 5.000000e-01 : f32
    %276 = vector.broadcast %cst_113 : f32 to vector<32x2xf32>
    %277 = arith.mulf %276, %275 : vector<32x2xf32>
    %278 = math.tanh %277 : vector<32x2xf32>
    %cst_114 = arith.constant 1.000000e+00 : f32
    %279 = vector.broadcast %cst_114 : f32 to vector<32x2xf32>
    %280 = arith.addf %278, %279 : vector<32x2xf32>
    %cst_115 = arith.constant 5.000000e-01 : f32
    %281 = vector.broadcast %cst_115 : f32 to vector<32x2xf32>
    %282 = arith.mulf %281, %280 : vector<32x2xf32>
    %283 = arith.mulf %272, %245 : vector<32x2xf32>
    %284 = arith.mulf %264, %274 : vector<32x2xf32>
    %285 = arith.addf %283, %284 : vector<32x2xf32>
    %286 = math.tanh %285 : vector<32x2xf32>
    %287 = arith.mulf %282, %286 : vector<32x2xf32>
    %c6_116 = arith.constant 6 : index
    %c0_117 = arith.constant 0 : index
    %c0_118 = arith.constant 0 : index
    %288 = vector.load %arg3[%c6_116, %c0_117, %c0_118] : memref<8x32x2xf32, #tpu.memory_space<vmem>>, vector<1x32x2xf32>
    %289 = vector.shape_cast %288 : vector<1x32x2xf32> to vector<32x2xf32>
    %290 = vector.shape_cast %287 : vector<32x2xf32> to vector<1x32x2xf32>
    tpu.vector_store %arg3[%c6_116, %c0_117, %c0_118], %290 {strides = array<i32>} : memref<8x32x2xf32, #tpu.memory_space<vmem>>, vector<1x32x2xf32>,
    %c7 = arith.constant 7 : index
    %c0_119 = arith.constant 0 : index
    %c0_120 = arith.constant 0 : index
    %291 = vector.load %arg0[%c7, %c0_119, %c0_120] : memref<8x4x2xf32, #tpu.memory_space<vmem>>, vector<1x4x2xf32>
    %292 = vector.shape_cast %291 : vector<1x4x2xf32> to vector<4x2xf32>
    %cst_121 = arith.constant dense<0.000000e+00> : vector<128x2xf32>
    %293 = tpu.matmul %4, %292, %cst_121 {dimension_numbers = #tpu.dot_dimension_numbers<[1], [0], [0], [1], [0, 0, 1, 1], [], []>} : vector<128x4xf32>, vector<4x2xf32>, vector<128x2xf32> -> vector<128x2xf32>
    %294 = arith.addf %293, %8 : vector<128x2xf32>
    %cst_122 = arith.constant dense<0.000000e+00> : vector<128x2xf32>
    %295 = tpu.matmul %5, %287, %cst_122 {dimension_numbers = #tpu.dot_dimension_numbers<[1], [0], [0], [1], [0, 0, 1, 1], [], []>} : vector<128x32xf32>, vector<32x2xf32>, vector<128x2xf32> -> vector<128x2xf32>
    %296 = arith.addf %294, %295 : vector<128x2xf32>
    %297 = vector.extract_strided_slice %296 {offsets = [0, 0], sizes = [32, 2], strides = [1, 1]} : vector<128x2xf32> to vector<32x2xf32>
    %cst_123 = arith.constant 5.000000e-01 : f32
    %298 = vector.broadcast %cst_123 : f32 to vector<32x2xf32>
    %299 = arith.mulf %298, %297 : vector<32x2xf32>
    %300 = math.tanh %299 : vector<32x2xf32>
    %cst_124 = arith.constant 1.000000e+00 : f32
    %301 = vector.broadcast %cst_124 : f32 to vector<32x2xf32>
    %302 = arith.addf %300, %301 : vector<32x2xf32>
    %cst_125 = arith.constant 5.000000e-01 : f32
    %303 = vector.broadcast %cst_125 : f32 to vector<32x2xf32>
    %304 = arith.mulf %303, %302 : vector<32x2xf32>
    %305 = vector.extract_strided_slice %296 {offsets = [32, 0], sizes = [32, 2], strides = [1, 1]} : vector<128x2xf32> to vector<32x2xf32>
    %cst_126 = arith.constant 5.000000e-01 : f32
    %306 = vector.broadcast %cst_126 : f32 to vector<32x2xf32>
    %307 = arith.mulf %306, %305 : vector<32x2xf32>
    %308 = math.tanh %307 : vector<32x2xf32>
    %cst_127 = arith.constant 1.000000e+00 : f32
    %309 = vector.broadcast %cst_127 : f32 to vector<32x2xf32>
    %310 = arith.addf %308, %309 : vector<32x2xf32>
    %cst_128 = arith.constant 5.000000e-01 : f32
    %311 = vector.broadcast %cst_128 : f32 to vector<32x2xf32>
    %312 = arith.mulf %311, %310 : vector<32x2xf32>
    %313 = vector.extract_strided_slice %296 {offsets = [64, 0], sizes = [32, 2], strides = [1, 1]} : vector<128x2xf32> to vector<32x2xf32>
    %314 = math.tanh %313 : vector<32x2xf32>
    %315 = vector.extract_strided_slice %296 {offsets = [96, 0], sizes = [32, 2], strides = [1, 1]} : vector<128x2xf32> to vector<32x2xf32>
    %cst_129 = arith.constant 5.000000e-01 : f32
    %316 = vector.broadcast %cst_129 : f32 to vector<32x2xf32>
    %317 = arith.mulf %316, %315 : vector<32x2xf32>
    %318 = math.tanh %317 : vector<32x2xf32>
    %cst_130 = arith.constant 1.000000e+00 : f32
    %319 = vector.broadcast %cst_130 : f32 to vector<32x2xf32>
    %320 = arith.addf %318, %319 : vector<32x2xf32>
    %cst_131 = arith.constant 5.000000e-01 : f32
    %321 = vector.broadcast %cst_131 : f32 to vector<32x2xf32>
    %322 = arith.mulf %321, %320 : vector<32x2xf32>
    %323 = arith.mulf %312, %285 : vector<32x2xf32>
    %324 = arith.mulf %304, %314 : vector<32x2xf32>
    %325 = arith.addf %323, %324 : vector<32x2xf32>
    %326 = math.tanh %325 : vector<32x2xf32>
    %327 = arith.mulf %322, %326 : vector<32x2xf32>
    %c7_132 = arith.constant 7 : index
    %c0_133 = arith.constant 0 : index
    %c0_134 = arith.constant 0 : index
    %328 = vector.load %arg3[%c7_132, %c0_133, %c0_134] : memref<8x32x2xf32, #tpu.memory_space<vmem>>, vector<1x32x2xf32>
    %329 = vector.shape_cast %328 : vector<1x32x2xf32> to vector<32x2xf32>
    %330 = vector.shape_cast %327 : vector<32x2xf32> to vector<1x32x2xf32>
    tpu.vector_store %arg3[%c7_132, %c0_133, %c0_134], %330 {strides = array<i32>} : memref<8x32x2xf32, #tpu.memory_space<vmem>>, vector<1x32x2xf32>,
    %c384 = arith.constant 384 : index
    %c0_135 = arith.constant 0 : index
    %331 = vector.load %arg1[%c384, %c0_135] : memref<800x32xf32, #tpu.memory_space<vmem>>, vector<128x32xf32>
    %c512 = arith.constant 512 : index
    %c0_136 = arith.constant 0 : index
    %332 = vector.load %arg1[%c512, %c0_136] : memref<800x32xf32, #tpu.memory_space<vmem>>, vector<128x32xf32>
    %c640 = arith.constant 640 : index
    %c0_137 = arith.constant 0 : index
    %333 = vector.load %arg1[%c640, %c0_137] : memref<800x32xf32, #tpu.memory_space<vmem>>, vector<128x1xf32>
    %334 = vector.shape_cast %333 : vector<128x1xf32> to vector<128x1xf32>
    %335 = vector.broadcast %334 : vector<128x1xf32> to vector<128x2xf32>
    %cst_138 = arith.constant 0.000000e+00 : f32
    %336 = vector.broadcast %cst_138 : f32 to vector<32x2xf32>
    %cst_139 = arith.constant 0.000000e+00 : f32
    %337 = vector.broadcast %cst_139 : f32 to vector<32x2xf32>
    %c0_140 = arith.constant 0 : index
    %c0_141 = arith.constant 0 : index
    %c0_142 = arith.constant 0 : index
    %338 = vector.load %arg3[%c0_140, %c0_141, %c0_142] : memref<8x32x2xf32, #tpu.memory_space<vmem>>, vector<1x32x2xf32>
    %339 = vector.shape_cast %338 : vector<1x32x2xf32> to vector<32x2xf32>
    %cst_143 = arith.constant dense<0.000000e+00> : vector<128x2xf32>
    %340 = tpu.matmul %331, %339, %cst_143 {dimension_numbers = #tpu.dot_dimension_numbers<[1], [0], [0], [1], [0, 0, 1, 1], [], []>} : vector<128x32xf32>, vector<32x2xf32>, vector<128x2xf32> -> vector<128x2xf32>
    %341 = arith.addf %340, %335 : vector<128x2xf32>
    %cst_144 = arith.constant dense<0.000000e+00> : vector<128x2xf32>
    %342 = tpu.matmul %332, %336, %cst_144 {dimension_numbers = #tpu.dot_dimension_numbers<[1], [0], [0], [1], [0, 0, 1, 1], [], []>} : vector<128x32xf32>, vector<32x2xf32>, vector<128x2xf32> -> vector<128x2xf32>
    %343 = arith.addf %341, %342 : vector<128x2xf32>
    %344 = vector.extract_strided_slice %343 {offsets = [0, 0], sizes = [32, 2], strides = [1, 1]} : vector<128x2xf32> to vector<32x2xf32>
    %cst_145 = arith.constant 5.000000e-01 : f32
    %345 = vector.broadcast %cst_145 : f32 to vector<32x2xf32>
    %346 = arith.mulf %345, %344 : vector<32x2xf32>
    %347 = math.tanh %346 : vector<32x2xf32>
    %cst_146 = arith.constant 1.000000e+00 : f32
    %348 = vector.broadcast %cst_146 : f32 to vector<32x2xf32>
    %349 = arith.addf %347, %348 : vector<32x2xf32>
    %cst_147 = arith.constant 5.000000e-01 : f32
    %350 = vector.broadcast %cst_147 : f32 to vector<32x2xf32>
    %351 = arith.mulf %350, %349 : vector<32x2xf32>
    %352 = vector.extract_strided_slice %343 {offsets = [32, 0], sizes = [32, 2], strides = [1, 1]} : vector<128x2xf32> to vector<32x2xf32>
    %cst_148 = arith.constant 5.000000e-01 : f32
    %353 = vector.broadcast %cst_148 : f32 to vector<32x2xf32>
    %354 = arith.mulf %353, %352 : vector<32x2xf32>
    %355 = math.tanh %354 : vector<32x2xf32>
    %cst_149 = arith.constant 1.000000e+00 : f32
    %356 = vector.broadcast %cst_149 : f32 to vector<32x2xf32>
    %357 = arith.addf %355, %356 : vector<32x2xf32>
    %cst_150 = arith.constant 5.000000e-01 : f32
    %358 = vector.broadcast %cst_150 : f32 to vector<32x2xf32>
    %359 = arith.mulf %358, %357 : vector<32x2xf32>
    %360 = vector.extract_strided_slice %343 {offsets = [64, 0], sizes = [32, 2], strides = [1, 1]} : vector<128x2xf32> to vector<32x2xf32>
    %361 = math.tanh %360 : vector<32x2xf32>
    %362 = vector.extract_strided_slice %343 {offsets = [96, 0], sizes = [32, 2], strides = [1, 1]} : vector<128x2xf32> to vector<32x2xf32>
    %cst_151 = arith.constant 5.000000e-01 : f32
    %363 = vector.broadcast %cst_151 : f32 to vector<32x2xf32>
    %364 = arith.mulf %363, %362 : vector<32x2xf32>
    %365 = math.tanh %364 : vector<32x2xf32>
    %cst_152 = arith.constant 1.000000e+00 : f32
    %366 = vector.broadcast %cst_152 : f32 to vector<32x2xf32>
    %367 = arith.addf %365, %366 : vector<32x2xf32>
    %cst_153 = arith.constant 5.000000e-01 : f32
    %368 = vector.broadcast %cst_153 : f32 to vector<32x2xf32>
    %369 = arith.mulf %368, %367 : vector<32x2xf32>
    %370 = arith.mulf %359, %337 : vector<32x2xf32>
    %371 = arith.mulf %351, %361 : vector<32x2xf32>
    %372 = arith.addf %370, %371 : vector<32x2xf32>
    %373 = math.tanh %372 : vector<32x2xf32>
    %374 = arith.mulf %369, %373 : vector<32x2xf32>
    %cst_154 = arith.constant dense<0.000000e+00> : vector<16x2xf32>
    %375 = tpu.matmul %0, %374, %cst_154 {dimension_numbers = #tpu.dot_dimension_numbers<[1], [0], [0], [1], [0, 0, 1, 1], [], []>} : vector<16x32xf32>, vector<32x2xf32>, vector<16x2xf32> -> vector<16x2xf32>
    %376 = arith.addf %375, %3 : vector<16x2xf32>
    %c0_155 = arith.constant 0 : index
    %c0_156 = arith.constant 0 : index
    %c0_157 = arith.constant 0 : index
    %377 = vector.load %arg2[%c0_155, %c0_156, %c0_157] : memref<8x16x2xf32, #tpu.memory_space<vmem>>, vector<1x16x2xf32>
    %378 = vector.shape_cast %377 : vector<1x16x2xf32> to vector<16x2xf32>
    %379 = vector.shape_cast %376 : vector<16x2xf32> to vector<1x16x2xf32>
    tpu.vector_store %arg2[%c0_155, %c0_156, %c0_157], %379 {strides = array<i32>} : memref<8x16x2xf32, #tpu.memory_space<vmem>>, vector<1x16x2xf32>,
    %c1_158 = arith.constant 1 : index
    %c0_159 = arith.constant 0 : index
    %c0_160 = arith.constant 0 : index
    %380 = vector.load %arg3[%c1_158, %c0_159, %c0_160] : memref<8x32x2xf32, #tpu.memory_space<vmem>>, vector<1x32x2xf32>
    %381 = vector.shape_cast %380 : vector<1x32x2xf32> to vector<32x2xf32>
    %cst_161 = arith.constant dense<0.000000e+00> : vector<128x2xf32>
    %382 = tpu.matmul %331, %381, %cst_161 {dimension_numbers = #tpu.dot_dimension_numbers<[1], [0], [0], [1], [0, 0, 1, 1], [], []>} : vector<128x32xf32>, vector<32x2xf32>, vector<128x2xf32> -> vector<128x2xf32>
    %383 = arith.addf %382, %335 : vector<128x2xf32>
    %cst_162 = arith.constant dense<0.000000e+00> : vector<128x2xf32>
    %384 = tpu.matmul %332, %374, %cst_162 {dimension_numbers = #tpu.dot_dimension_numbers<[1], [0], [0], [1], [0, 0, 1, 1], [], []>} : vector<128x32xf32>, vector<32x2xf32>, vector<128x2xf32> -> vector<128x2xf32>
    %385 = arith.addf %383, %384 : vector<128x2xf32>
    %386 = vector.extract_strided_slice %385 {offsets = [0, 0], sizes = [32, 2], strides = [1, 1]} : vector<128x2xf32> to vector<32x2xf32>
    %cst_163 = arith.constant 5.000000e-01 : f32
    %387 = vector.broadcast %cst_163 : f32 to vector<32x2xf32>
    %388 = arith.mulf %387, %386 : vector<32x2xf32>
    %389 = math.tanh %388 : vector<32x2xf32>
    %cst_164 = arith.constant 1.000000e+00 : f32
    %390 = vector.broadcast %cst_164 : f32 to vector<32x2xf32>
    %391 = arith.addf %389, %390 : vector<32x2xf32>
    %cst_165 = arith.constant 5.000000e-01 : f32
    %392 = vector.broadcast %cst_165 : f32 to vector<32x2xf32>
    %393 = arith.mulf %392, %391 : vector<32x2xf32>
    %394 = vector.extract_strided_slice %385 {offsets = [32, 0], sizes = [32, 2], strides = [1, 1]} : vector<128x2xf32> to vector<32x2xf32>
    %cst_166 = arith.constant 5.000000e-01 : f32
    %395 = vector.broadcast %cst_166 : f32 to vector<32x2xf32>
    %396 = arith.mulf %395, %394 : vector<32x2xf32>
    %397 = math.tanh %396 : vector<32x2xf32>
    %cst_167 = arith.constant 1.000000e+00 : f32
    %398 = vector.broadcast %cst_167 : f32 to vector<32x2xf32>
    %399 = arith.addf %397, %398 : vector<32x2xf32>
    %cst_168 = arith.constant 5.000000e-01 : f32
    %400 = vector.broadcast %cst_168 : f32 to vector<32x2xf32>
    %401 = arith.mulf %400, %399 : vector<32x2xf32>
    %402 = vector.extract_strided_slice %385 {offsets = [64, 0], sizes = [32, 2], strides = [1, 1]} : vector<128x2xf32> to vector<32x2xf32>
    %403 = math.tanh %402 : vector<32x2xf32>
    %404 = vector.extract_strided_slice %385 {offsets = [96, 0], sizes = [32, 2], strides = [1, 1]} : vector<128x2xf32> to vector<32x2xf32>
    %cst_169 = arith.constant 5.000000e-01 : f32
    %405 = vector.broadcast %cst_169 : f32 to vector<32x2xf32>
    %406 = arith.mulf %405, %404 : vector<32x2xf32>
    %407 = math.tanh %406 : vector<32x2xf32>
    %cst_170 = arith.constant 1.000000e+00 : f32
    %408 = vector.broadcast %cst_170 : f32 to vector<32x2xf32>
    %409 = arith.addf %407, %408 : vector<32x2xf32>
    %cst_171 = arith.constant 5.000000e-01 : f32
    %410 = vector.broadcast %cst_171 : f32 to vector<32x2xf32>
    %411 = arith.mulf %410, %409 : vector<32x2xf32>
    %412 = arith.mulf %401, %372 : vector<32x2xf32>
    %413 = arith.mulf %393, %403 : vector<32x2xf32>
    %414 = arith.addf %412, %413 : vector<32x2xf32>
    %415 = math.tanh %414 : vector<32x2xf32>
    %416 = arith.mulf %411, %415 : vector<32x2xf32>
    %cst_172 = arith.constant dense<0.000000e+00> : vector<16x2xf32>
    %417 = tpu.matmul %0, %416, %cst_172 {dimension_numbers = #tpu.dot_dimension_numbers<[1], [0], [0], [1], [0, 0, 1, 1], [], []>} : vector<16x32xf32>, vector<32x2xf32>, vector<16x2xf32> -> vector<16x2xf32>
    %418 = arith.addf %417, %3 : vector<16x2xf32>
    %c1_173 = arith.constant 1 : index
    %c0_174 = arith.constant 0 : index
    %c0_175 = arith.constant 0 : index
    %419 = vector.load %arg2[%c1_173, %c0_174, %c0_175] : memref<8x16x2xf32, #tpu.memory_space<vmem>>, vector<1x16x2xf32>
    %420 = vector.shape_cast %419 : vector<1x16x2xf32> to vector<16x2xf32>
    %421 = vector.shape_cast %418 : vector<16x2xf32> to vector<1x16x2xf32>
    tpu.vector_store %arg2[%c1_173, %c0_174, %c0_175], %421 {strides = array<i32>} : memref<8x16x2xf32, #tpu.memory_space<vmem>>, vector<1x16x2xf32>,
    %c2_176 = arith.constant 2 : index
    %c0_177 = arith.constant 0 : index
    %c0_178 = arith.constant 0 : index
    %422 = vector.load %arg3[%c2_176, %c0_177, %c0_178] : memref<8x32x2xf32, #tpu.memory_space<vmem>>, vector<1x32x2xf32>
    %423 = vector.shape_cast %422 : vector<1x32x2xf32> to vector<32x2xf32>
    %cst_179 = arith.constant dense<0.000000e+00> : vector<128x2xf32>
    %424 = tpu.matmul %331, %423, %cst_179 {dimension_numbers = #tpu.dot_dimension_numbers<[1], [0], [0], [1], [0, 0, 1, 1], [], []>} : vector<128x32xf32>, vector<32x2xf32>, vector<128x2xf32> -> vector<128x2xf32>
    %425 = arith.addf %424, %335 : vector<128x2xf32>
    %cst_180 = arith.constant dense<0.000000e+00> : vector<128x2xf32>
    %426 = tpu.matmul %332, %416, %cst_180 {dimension_numbers = #tpu.dot_dimension_numbers<[1], [0], [0], [1], [0, 0, 1, 1], [], []>} : vector<128x32xf32>, vector<32x2xf32>, vector<128x2xf32> -> vector<128x2xf32>
    %427 = arith.addf %425, %426 : vector<128x2xf32>
    %428 = vector.extract_strided_slice %427 {offsets = [0, 0], sizes = [32, 2], strides = [1, 1]} : vector<128x2xf32> to vector<32x2xf32>
    %cst_181 = arith.constant 5.000000e-01 : f32
    %429 = vector.broadcast %cst_181 : f32 to vector<32x2xf32>
    %430 = arith.mulf %429, %428 : vector<32x2xf32>
    %431 = math.tanh %430 : vector<32x2xf32>
    %cst_182 = arith.constant 1.000000e+00 : f32
    %432 = vector.broadcast %cst_182 : f32 to vector<32x2xf32>
    %433 = arith.addf %431, %432 : vector<32x2xf32>
    %cst_183 = arith.constant 5.000000e-01 : f32
    %434 = vector.broadcast %cst_183 : f32 to vector<32x2xf32>
    %435 = arith.mulf %434, %433 : vector<32x2xf32>
    %436 = vector.extract_strided_slice %427 {offsets = [32, 0], sizes = [32, 2], strides = [1, 1]} : vector<128x2xf32> to vector<32x2xf32>
    %cst_184 = arith.constant 5.000000e-01 : f32
    %437 = vector.broadcast %cst_184 : f32 to vector<32x2xf32>
    %438 = arith.mulf %437, %436 : vector<32x2xf32>
    %439 = math.tanh %438 : vector<32x2xf32>
    %cst_185 = arith.constant 1.000000e+00 : f32
    %440 = vector.broadcast %cst_185 : f32 to vector<32x2xf32>
    %441 = arith.addf %439, %440 : vector<32x2xf32>
    %cst_186 = arith.constant 5.000000e-01 : f32
    %442 = vector.broadcast %cst_186 : f32 to vector<32x2xf32>
    %443 = arith.mulf %442, %441 : vector<32x2xf32>
    %444 = vector.extract_strided_slice %427 {offsets = [64, 0], sizes = [32, 2], strides = [1, 1]} : vector<128x2xf32> to vector<32x2xf32>
    %445 = math.tanh %444 : vector<32x2xf32>
    %446 = vector.extract_strided_slice %427 {offsets = [96, 0], sizes = [32, 2], strides = [1, 1]} : vector<128x2xf32> to vector<32x2xf32>
    %cst_187 = arith.constant 5.000000e-01 : f32
    %447 = vector.broadcast %cst_187 : f32 to vector<32x2xf32>
    %448 = arith.mulf %447, %446 : vector<32x2xf32>
    %449 = math.tanh %448 : vector<32x2xf32>
    %cst_188 = arith.constant 1.000000e+00 : f32
    %450 = vector.broadcast %cst_188 : f32 to vector<32x2xf32>
    %451 = arith.addf %449, %450 : vector<32x2xf32>
    %cst_189 = arith.constant 5.000000e-01 : f32
    %452 = vector.broadcast %cst_189 : f32 to vector<32x2xf32>
    %453 = arith.mulf %452, %451 : vector<32x2xf32>
    %454 = arith.mulf %443, %414 : vector<32x2xf32>
    %455 = arith.mulf %435, %445 : vector<32x2xf32>
    %456 = arith.addf %454, %455 : vector<32x2xf32>
    %457 = math.tanh %456 : vector<32x2xf32>
    %458 = arith.mulf %453, %457 : vector<32x2xf32>
    %cst_190 = arith.constant dense<0.000000e+00> : vector<16x2xf32>
    %459 = tpu.matmul %0, %458, %cst_190 {dimension_numbers = #tpu.dot_dimension_numbers<[1], [0], [0], [1], [0, 0, 1, 1], [], []>} : vector<16x32xf32>, vector<32x2xf32>, vector<16x2xf32> -> vector<16x2xf32>
    %460 = arith.addf %459, %3 : vector<16x2xf32>
    %c2_191 = arith.constant 2 : index
    %c0_192 = arith.constant 0 : index
    %c0_193 = arith.constant 0 : index
    %461 = vector.load %arg2[%c2_191, %c0_192, %c0_193] : memref<8x16x2xf32, #tpu.memory_space<vmem>>, vector<1x16x2xf32>
    %462 = vector.shape_cast %461 : vector<1x16x2xf32> to vector<16x2xf32>
    %463 = vector.shape_cast %460 : vector<16x2xf32> to vector<1x16x2xf32>
    tpu.vector_store %arg2[%c2_191, %c0_192, %c0_193], %463 {strides = array<i32>} : memref<8x16x2xf32, #tpu.memory_space<vmem>>, vector<1x16x2xf32>,
    %c3_194 = arith.constant 3 : index
    %c0_195 = arith.constant 0 : index
    %c0_196 = arith.constant 0 : index
    %464 = vector.load %arg3[%c3_194, %c0_195, %c0_196] : memref<8x32x2xf32, #tpu.memory_space<vmem>>, vector<1x32x2xf32>
    %465 = vector.shape_cast %464 : vector<1x32x2xf32> to vector<32x2xf32>
    %cst_197 = arith.constant dense<0.000000e+00> : vector<128x2xf32>
    %466 = tpu.matmul %331, %465, %cst_197 {dimension_numbers = #tpu.dot_dimension_numbers<[1], [0], [0], [1], [0, 0, 1, 1], [], []>} : vector<128x32xf32>, vector<32x2xf32>, vector<128x2xf32> -> vector<128x2xf32>
    %467 = arith.addf %466, %335 : vector<128x2xf32>
    %cst_198 = arith.constant dense<0.000000e+00> : vector<128x2xf32>
    %468 = tpu.matmul %332, %458, %cst_198 {dimension_numbers = #tpu.dot_dimension_numbers<[1], [0], [0], [1], [0, 0, 1, 1], [], []>} : vector<128x32xf32>, vector<32x2xf32>, vector<128x2xf32> -> vector<128x2xf32>
    %469 = arith.addf %467, %468 : vector<128x2xf32>
    %470 = vector.extract_strided_slice %469 {offsets = [0, 0], sizes = [32, 2], strides = [1, 1]} : vector<128x2xf32> to vector<32x2xf32>
    %cst_199 = arith.constant 5.000000e-01 : f32
    %471 = vector.broadcast %cst_199 : f32 to vector<32x2xf32>
    %472 = arith.mulf %471, %470 : vector<32x2xf32>
    %473 = math.tanh %472 : vector<32x2xf32>
    %cst_200 = arith.constant 1.000000e+00 : f32
    %474 = vector.broadcast %cst_200 : f32 to vector<32x2xf32>
    %475 = arith.addf %473, %474 : vector<32x2xf32>
    %cst_201 = arith.constant 5.000000e-01 : f32
    %476 = vector.broadcast %cst_201 : f32 to vector<32x2xf32>
    %477 = arith.mulf %476, %475 : vector<32x2xf32>
    %478 = vector.extract_strided_slice %469 {offsets = [32, 0], sizes = [32, 2], strides = [1, 1]} : vector<128x2xf32> to vector<32x2xf32>
    %cst_202 = arith.constant 5.000000e-01 : f32
    %479 = vector.broadcast %cst_202 : f32 to vector<32x2xf32>
    %480 = arith.mulf %479, %478 : vector<32x2xf32>
    %481 = math.tanh %480 : vector<32x2xf32>
    %cst_203 = arith.constant 1.000000e+00 : f32
    %482 = vector.broadcast %cst_203 : f32 to vector<32x2xf32>
    %483 = arith.addf %481, %482 : vector<32x2xf32>
    %cst_204 = arith.constant 5.000000e-01 : f32
    %484 = vector.broadcast %cst_204 : f32 to vector<32x2xf32>
    %485 = arith.mulf %484, %483 : vector<32x2xf32>
    %486 = vector.extract_strided_slice %469 {offsets = [64, 0], sizes = [32, 2], strides = [1, 1]} : vector<128x2xf32> to vector<32x2xf32>
    %487 = math.tanh %486 : vector<32x2xf32>
    %488 = vector.extract_strided_slice %469 {offsets = [96, 0], sizes = [32, 2], strides = [1, 1]} : vector<128x2xf32> to vector<32x2xf32>
    %cst_205 = arith.constant 5.000000e-01 : f32
    %489 = vector.broadcast %cst_205 : f32 to vector<32x2xf32>
    %490 = arith.mulf %489, %488 : vector<32x2xf32>
    %491 = math.tanh %490 : vector<32x2xf32>
    %cst_206 = arith.constant 1.000000e+00 : f32
    %492 = vector.broadcast %cst_206 : f32 to vector<32x2xf32>
    %493 = arith.addf %491, %492 : vector<32x2xf32>
    %cst_207 = arith.constant 5.000000e-01 : f32
    %494 = vector.broadcast %cst_207 : f32 to vector<32x2xf32>
    %495 = arith.mulf %494, %493 : vector<32x2xf32>
    %496 = arith.mulf %485, %456 : vector<32x2xf32>
    %497 = arith.mulf %477, %487 : vector<32x2xf32>
    %498 = arith.addf %496, %497 : vector<32x2xf32>
    %499 = math.tanh %498 : vector<32x2xf32>
    %500 = arith.mulf %495, %499 : vector<32x2xf32>
    %cst_208 = arith.constant dense<0.000000e+00> : vector<16x2xf32>
    %501 = tpu.matmul %0, %500, %cst_208 {dimension_numbers = #tpu.dot_dimension_numbers<[1], [0], [0], [1], [0, 0, 1, 1], [], []>} : vector<16x32xf32>, vector<32x2xf32>, vector<16x2xf32> -> vector<16x2xf32>
    %502 = arith.addf %501, %3 : vector<16x2xf32>
    %c3_209 = arith.constant 3 : index
    %c0_210 = arith.constant 0 : index
    %c0_211 = arith.constant 0 : index
    %503 = vector.load %arg2[%c3_209, %c0_210, %c0_211] : memref<8x16x2xf32, #tpu.memory_space<vmem>>, vector<1x16x2xf32>
    %504 = vector.shape_cast %503 : vector<1x16x2xf32> to vector<16x2xf32>
    %505 = vector.shape_cast %502 : vector<16x2xf32> to vector<1x16x2xf32>
    tpu.vector_store %arg2[%c3_209, %c0_210, %c0_211], %505 {strides = array<i32>} : memref<8x16x2xf32, #tpu.memory_space<vmem>>, vector<1x16x2xf32>,
    %c4_212 = arith.constant 4 : index
    %c0_213 = arith.constant 0 : index
    %c0_214 = arith.constant 0 : index
    %506 = vector.load %arg3[%c4_212, %c0_213, %c0_214] : memref<8x32x2xf32, #tpu.memory_space<vmem>>, vector<1x32x2xf32>
    %507 = vector.shape_cast %506 : vector<1x32x2xf32> to vector<32x2xf32>
    %cst_215 = arith.constant dense<0.000000e+00> : vector<128x2xf32>
    %508 = tpu.matmul %331, %507, %cst_215 {dimension_numbers = #tpu.dot_dimension_numbers<[1], [0], [0], [1], [0, 0, 1, 1], [], []>} : vector<128x32xf32>, vector<32x2xf32>, vector<128x2xf32> -> vector<128x2xf32>
    %509 = arith.addf %508, %335 : vector<128x2xf32>
    %cst_216 = arith.constant dense<0.000000e+00> : vector<128x2xf32>
    %510 = tpu.matmul %332, %500, %cst_216 {dimension_numbers = #tpu.dot_dimension_numbers<[1], [0], [0], [1], [0, 0, 1, 1], [], []>} : vector<128x32xf32>, vector<32x2xf32>, vector<128x2xf32> -> vector<128x2xf32>
    %511 = arith.addf %509, %510 : vector<128x2xf32>
    %512 = vector.extract_strided_slice %511 {offsets = [0, 0], sizes = [32, 2], strides = [1, 1]} : vector<128x2xf32> to vector<32x2xf32>
    %cst_217 = arith.constant 5.000000e-01 : f32
    %513 = vector.broadcast %cst_217 : f32 to vector<32x2xf32>
    %514 = arith.mulf %513, %512 : vector<32x2xf32>
    %515 = math.tanh %514 : vector<32x2xf32>
    %cst_218 = arith.constant 1.000000e+00 : f32
    %516 = vector.broadcast %cst_218 : f32 to vector<32x2xf32>
    %517 = arith.addf %515, %516 : vector<32x2xf32>
    %cst_219 = arith.constant 5.000000e-01 : f32
    %518 = vector.broadcast %cst_219 : f32 to vector<32x2xf32>
    %519 = arith.mulf %518, %517 : vector<32x2xf32>
    %520 = vector.extract_strided_slice %511 {offsets = [32, 0], sizes = [32, 2], strides = [1, 1]} : vector<128x2xf32> to vector<32x2xf32>
    %cst_220 = arith.constant 5.000000e-01 : f32
    %521 = vector.broadcast %cst_220 : f32 to vector<32x2xf32>
    %522 = arith.mulf %521, %520 : vector<32x2xf32>
    %523 = math.tanh %522 : vector<32x2xf32>
    %cst_221 = arith.constant 1.000000e+00 : f32
    %524 = vector.broadcast %cst_221 : f32 to vector<32x2xf32>
    %525 = arith.addf %523, %524 : vector<32x2xf32>
    %cst_222 = arith.constant 5.000000e-01 : f32
    %526 = vector.broadcast %cst_222 : f32 to vector<32x2xf32>
    %527 = arith.mulf %526, %525 : vector<32x2xf32>
    %528 = vector.extract_strided_slice %511 {offsets = [64, 0], sizes = [32, 2], strides = [1, 1]} : vector<128x2xf32> to vector<32x2xf32>
    %529 = math.tanh %528 : vector<32x2xf32>
    %530 = vector.extract_strided_slice %511 {offsets = [96, 0], sizes = [32, 2], strides = [1, 1]} : vector<128x2xf32> to vector<32x2xf32>
    %cst_223 = arith.constant 5.000000e-01 : f32
    %531 = vector.broadcast %cst_223 : f32 to vector<32x2xf32>
    %532 = arith.mulf %531, %530 : vector<32x2xf32>
    %533 = math.tanh %532 : vector<32x2xf32>
    %cst_224 = arith.constant 1.000000e+00 : f32
    %534 = vector.broadcast %cst_224 : f32 to vector<32x2xf32>
    %535 = arith.addf %533, %534 : vector<32x2xf32>
    %cst_225 = arith.constant 5.000000e-01 : f32
    %536 = vector.broadcast %cst_225 : f32 to vector<32x2xf32>
    %537 = arith.mulf %536, %535 : vector<32x2xf32>
    %538 = arith.mulf %527, %498 : vector<32x2xf32>
    %539 = arith.mulf %519, %529 : vector<32x2xf32>
    %540 = arith.addf %538, %539 : vector<32x2xf32>
    %541 = math.tanh %540 : vector<32x2xf32>
    %542 = arith.mulf %537, %541 : vector<32x2xf32>
    %cst_226 = arith.constant dense<0.000000e+00> : vector<16x2xf32>
    %543 = tpu.matmul %0, %542, %cst_226 {dimension_numbers = #tpu.dot_dimension_numbers<[1], [0], [0], [1], [0, 0, 1, 1], [], []>} : vector<16x32xf32>, vector<32x2xf32>, vector<16x2xf32> -> vector<16x2xf32>
    %544 = arith.addf %543, %3 : vector<16x2xf32>
    %c4_227 = arith.constant 4 : index
    %c0_228 = arith.constant 0 : index
    %c0_229 = arith.constant 0 : index
    %545 = vector.load %arg2[%c4_227, %c0_228, %c0_229] : memref<8x16x2xf32, #tpu.memory_space<vmem>>, vector<1x16x2xf32>
    %546 = vector.shape_cast %545 : vector<1x16x2xf32> to vector<16x2xf32>
    %547 = vector.shape_cast %544 : vector<16x2xf32> to vector<1x16x2xf32>
    tpu.vector_store %arg2[%c4_227, %c0_228, %c0_229], %547 {strides = array<i32>} : memref<8x16x2xf32, #tpu.memory_space<vmem>>, vector<1x16x2xf32>,
    %c5_230 = arith.constant 5 : index
    %c0_231 = arith.constant 0 : index
    %c0_232 = arith.constant 0 : index
    %548 = vector.load %arg3[%c5_230, %c0_231, %c0_232] : memref<8x32x2xf32, #tpu.memory_space<vmem>>, vector<1x32x2xf32>
    %549 = vector.shape_cast %548 : vector<1x32x2xf32> to vector<32x2xf32>
    %cst_233 = arith.constant dense<0.000000e+00> : vector<128x2xf32>
    %550 = tpu.matmul %331, %549, %cst_233 {dimension_numbers = #tpu.dot_dimension_numbers<[1], [0], [0], [1], [0, 0, 1, 1], [], []>} : vector<128x32xf32>, vector<32x2xf32>, vector<128x2xf32> -> vector<128x2xf32>
    %551 = arith.addf %550, %335 : vector<128x2xf32>
    %cst_234 = arith.constant dense<0.000000e+00> : vector<128x2xf32>
    %552 = tpu.matmul %332, %542, %cst_234 {dimension_numbers = #tpu.dot_dimension_numbers<[1], [0], [0], [1], [0, 0, 1, 1], [], []>} : vector<128x32xf32>, vector<32x2xf32>, vector<128x2xf32> -> vector<128x2xf32>
    %553 = arith.addf %551, %552 : vector<128x2xf32>
    %554 = vector.extract_strided_slice %553 {offsets = [0, 0], sizes = [32, 2], strides = [1, 1]} : vector<128x2xf32> to vector<32x2xf32>
    %cst_235 = arith.constant 5.000000e-01 : f32
    %555 = vector.broadcast %cst_235 : f32 to vector<32x2xf32>
    %556 = arith.mulf %555, %554 : vector<32x2xf32>
    %557 = math.tanh %556 : vector<32x2xf32>
    %cst_236 = arith.constant 1.000000e+00 : f32
    %558 = vector.broadcast %cst_236 : f32 to vector<32x2xf32>
    %559 = arith.addf %557, %558 : vector<32x2xf32>
    %cst_237 = arith.constant 5.000000e-01 : f32
    %560 = vector.broadcast %cst_237 : f32 to vector<32x2xf32>
    %561 = arith.mulf %560, %559 : vector<32x2xf32>
    %562 = vector.extract_strided_slice %553 {offsets = [32, 0], sizes = [32, 2], strides = [1, 1]} : vector<128x2xf32> to vector<32x2xf32>
    %cst_238 = arith.constant 5.000000e-01 : f32
    %563 = vector.broadcast %cst_238 : f32 to vector<32x2xf32>
    %564 = arith.mulf %563, %562 : vector<32x2xf32>
    %565 = math.tanh %564 : vector<32x2xf32>
    %cst_239 = arith.constant 1.000000e+00 : f32
    %566 = vector.broadcast %cst_239 : f32 to vector<32x2xf32>
    %567 = arith.addf %565, %566 : vector<32x2xf32>
    %cst_240 = arith.constant 5.000000e-01 : f32
    %568 = vector.broadcast %cst_240 : f32 to vector<32x2xf32>
    %569 = arith.mulf %568, %567 : vector<32x2xf32>
    %570 = vector.extract_strided_slice %553 {offsets = [64, 0], sizes = [32, 2], strides = [1, 1]} : vector<128x2xf32> to vector<32x2xf32>
    %571 = math.tanh %570 : vector<32x2xf32>
    %572 = vector.extract_strided_slice %553 {offsets = [96, 0], sizes = [32, 2], strides = [1, 1]} : vector<128x2xf32> to vector<32x2xf32>
    %cst_241 = arith.constant 5.000000e-01 : f32
    %573 = vector.broadcast %cst_241 : f32 to vector<32x2xf32>
    %574 = arith.mulf %573, %572 : vector<32x2xf32>
    %575 = math.tanh %574 : vector<32x2xf32>
    %cst_242 = arith.constant 1.000000e+00 : f32
    %576 = vector.broadcast %cst_242 : f32 to vector<32x2xf32>
    %577 = arith.addf %575, %576 : vector<32x2xf32>
    %cst_243 = arith.constant 5.000000e-01 : f32
    %578 = vector.broadcast %cst_243 : f32 to vector<32x2xf32>
    %579 = arith.mulf %578, %577 : vector<32x2xf32>
    %580 = arith.mulf %569, %540 : vector<32x2xf32>
    %581 = arith.mulf %561, %571 : vector<32x2xf32>
    %582 = arith.addf %580, %581 : vector<32x2xf32>
    %583 = math.tanh %582 : vector<32x2xf32>
    %584 = arith.mulf %579, %583 : vector<32x2xf32>
    %cst_244 = arith.constant dense<0.000000e+00> : vector<16x2xf32>
    %585 = tpu.matmul %0, %584, %cst_244 {dimension_numbers = #tpu.dot_dimension_numbers<[1], [0], [0], [1], [0, 0, 1, 1], [], []>} : vector<16x32xf32>, vector<32x2xf32>, vector<16x2xf32> -> vector<16x2xf32>
    %586 = arith.addf %585, %3 : vector<16x2xf32>
    %c5_245 = arith.constant 5 : index
    %c0_246 = arith.constant 0 : index
    %c0_247 = arith.constant 0 : index
    %587 = vector.load %arg2[%c5_245, %c0_246, %c0_247] : memref<8x16x2xf32, #tpu.memory_space<vmem>>, vector<1x16x2xf32>
    %588 = vector.shape_cast %587 : vector<1x16x2xf32> to vector<16x2xf32>
    %589 = vector.shape_cast %586 : vector<16x2xf32> to vector<1x16x2xf32>
    tpu.vector_store %arg2[%c5_245, %c0_246, %c0_247], %589 {strides = array<i32>} : memref<8x16x2xf32, #tpu.memory_space<vmem>>, vector<1x16x2xf32>,
    %c6_248 = arith.constant 6 : index
    %c0_249 = arith.constant 0 : index
    %c0_250 = arith.constant 0 : index
    %590 = vector.load %arg3[%c6_248, %c0_249, %c0_250] : memref<8x32x2xf32, #tpu.memory_space<vmem>>, vector<1x32x2xf32>
    %591 = vector.shape_cast %590 : vector<1x32x2xf32> to vector<32x2xf32>
    %cst_251 = arith.constant dense<0.000000e+00> : vector<128x2xf32>
    %592 = tpu.matmul %331, %591, %cst_251 {dimension_numbers = #tpu.dot_dimension_numbers<[1], [0], [0], [1], [0, 0, 1, 1], [], []>} : vector<128x32xf32>, vector<32x2xf32>, vector<128x2xf32> -> vector<128x2xf32>
    %593 = arith.addf %592, %335 : vector<128x2xf32>
    %cst_252 = arith.constant dense<0.000000e+00> : vector<128x2xf32>
    %594 = tpu.matmul %332, %584, %cst_252 {dimension_numbers = #tpu.dot_dimension_numbers<[1], [0], [0], [1], [0, 0, 1, 1], [], []>} : vector<128x32xf32>, vector<32x2xf32>, vector<128x2xf32> -> vector<128x2xf32>
    %595 = arith.addf %593, %594 : vector<128x2xf32>
    %596 = vector.extract_strided_slice %595 {offsets = [0, 0], sizes = [32, 2], strides = [1, 1]} : vector<128x2xf32> to vector<32x2xf32>
    %cst_253 = arith.constant 5.000000e-01 : f32
    %597 = vector.broadcast %cst_253 : f32 to vector<32x2xf32>
    %598 = arith.mulf %597, %596 : vector<32x2xf32>
    %599 = math.tanh %598 : vector<32x2xf32>
    %cst_254 = arith.constant 1.000000e+00 : f32
    %600 = vector.broadcast %cst_254 : f32 to vector<32x2xf32>
    %601 = arith.addf %599, %600 : vector<32x2xf32>
    %cst_255 = arith.constant 5.000000e-01 : f32
    %602 = vector.broadcast %cst_255 : f32 to vector<32x2xf32>
    %603 = arith.mulf %602, %601 : vector<32x2xf32>
    %604 = vector.extract_strided_slice %595 {offsets = [32, 0], sizes = [32, 2], strides = [1, 1]} : vector<128x2xf32> to vector<32x2xf32>
    %cst_256 = arith.constant 5.000000e-01 : f32
    %605 = vector.broadcast %cst_256 : f32 to vector<32x2xf32>
    %606 = arith.mulf %605, %604 : vector<32x2xf32>
    %607 = math.tanh %606 : vector<32x2xf32>
    %cst_257 = arith.constant 1.000000e+00 : f32
    %608 = vector.broadcast %cst_257 : f32 to vector<32x2xf32>
    %609 = arith.addf %607, %608 : vector<32x2xf32>
    %cst_258 = arith.constant 5.000000e-01 : f32
    %610 = vector.broadcast %cst_258 : f32 to vector<32x2xf32>
    %611 = arith.mulf %610, %609 : vector<32x2xf32>
    %612 = vector.extract_strided_slice %595 {offsets = [64, 0], sizes = [32, 2], strides = [1, 1]} : vector<128x2xf32> to vector<32x2xf32>
    %613 = math.tanh %612 : vector<32x2xf32>
    %614 = vector.extract_strided_slice %595 {offsets = [96, 0], sizes = [32, 2], strides = [1, 1]} : vector<128x2xf32> to vector<32x2xf32>
    %cst_259 = arith.constant 5.000000e-01 : f32
    %615 = vector.broadcast %cst_259 : f32 to vector<32x2xf32>
    %616 = arith.mulf %615, %614 : vector<32x2xf32>
    %617 = math.tanh %616 : vector<32x2xf32>
    %cst_260 = arith.constant 1.000000e+00 : f32
    %618 = vector.broadcast %cst_260 : f32 to vector<32x2xf32>
    %619 = arith.addf %617, %618 : vector<32x2xf32>
    %cst_261 = arith.constant 5.000000e-01 : f32
    %620 = vector.broadcast %cst_261 : f32 to vector<32x2xf32>
    %621 = arith.mulf %620, %619 : vector<32x2xf32>
    %622 = arith.mulf %611, %582 : vector<32x2xf32>
    %623 = arith.mulf %603, %613 : vector<32x2xf32>
    %624 = arith.addf %622, %623 : vector<32x2xf32>
    %625 = math.tanh %624 : vector<32x2xf32>
    %626 = arith.mulf %621, %625 : vector<32x2xf32>
    %cst_262 = arith.constant dense<0.000000e+00> : vector<16x2xf32>
    %627 = tpu.matmul %0, %626, %cst_262 {dimension_numbers = #tpu.dot_dimension_numbers<[1], [0], [0], [1], [0, 0, 1, 1], [], []>} : vector<16x32xf32>, vector<32x2xf32>, vector<16x2xf32> -> vector<16x2xf32>
    %628 = arith.addf %627, %3 : vector<16x2xf32>
    %c6_263 = arith.constant 6 : index
    %c0_264 = arith.constant 0 : index
    %c0_265 = arith.constant 0 : index
    %629 = vector.load %arg2[%c6_263, %c0_264, %c0_265] : memref<8x16x2xf32, #tpu.memory_space<vmem>>, vector<1x16x2xf32>
    %630 = vector.shape_cast %629 : vector<1x16x2xf32> to vector<16x2xf32>
    %631 = vector.shape_cast %628 : vector<16x2xf32> to vector<1x16x2xf32>
    tpu.vector_store %arg2[%c6_263, %c0_264, %c0_265], %631 {strides = array<i32>} : memref<8x16x2xf32, #tpu.memory_space<vmem>>, vector<1x16x2xf32>,
    %c7_266 = arith.constant 7 : index
    %c0_267 = arith.constant 0 : index
    %c0_268 = arith.constant 0 : index
    %632 = vector.load %arg3[%c7_266, %c0_267, %c0_268] : memref<8x32x2xf32, #tpu.memory_space<vmem>>, vector<1x32x2xf32>
    %633 = vector.shape_cast %632 : vector<1x32x2xf32> to vector<32x2xf32>
    %cst_269 = arith.constant dense<0.000000e+00> : vector<128x2xf32>
    %634 = tpu.matmul %331, %633, %cst_269 {dimension_numbers = #tpu.dot_dimension_numbers<[1], [0], [0], [1], [0, 0, 1, 1], [], []>} : vector<128x32xf32>, vector<32x2xf32>, vector<128x2xf32> -> vector<128x2xf32>
    %635 = arith.addf %634, %335 : vector<128x2xf32>
    %cst_270 = arith.constant dense<0.000000e+00> : vector<128x2xf32>
    %636 = tpu.matmul %332, %626, %cst_270 {dimension_numbers = #tpu.dot_dimension_numbers<[1], [0], [0], [1], [0, 0, 1, 1], [], []>} : vector<128x32xf32>, vector<32x2xf32>, vector<128x2xf32> -> vector<128x2xf32>
    %637 = arith.addf %635, %636 : vector<128x2xf32>
    %638 = vector.extract_strided_slice %637 {offsets = [0, 0], sizes = [32, 2], strides = [1, 1]} : vector<128x2xf32> to vector<32x2xf32>
    %cst_271 = arith.constant 5.000000e-01 : f32
    %639 = vector.broadcast %cst_271 : f32 to vector<32x2xf32>
    %640 = arith.mulf %639, %638 : vector<32x2xf32>
    %641 = math.tanh %640 : vector<32x2xf32>
    %cst_272 = arith.constant 1.000000e+00 : f32
    %642 = vector.broadcast %cst_272 : f32 to vector<32x2xf32>
    %643 = arith.addf %641, %642 : vector<32x2xf32>
    %cst_273 = arith.constant 5.000000e-01 : f32
    %644 = vector.broadcast %cst_273 : f32 to vector<32x2xf32>
    %645 = arith.mulf %644, %643 : vector<32x2xf32>
    %646 = vector.extract_strided_slice %637 {offsets = [32, 0], sizes = [32, 2], strides = [1, 1]} : vector<128x2xf32> to vector<32x2xf32>
    %cst_274 = arith.constant 5.000000e-01 : f32
    %647 = vector.broadcast %cst_274 : f32 to vector<32x2xf32>
    %648 = arith.mulf %647, %646 : vector<32x2xf32>
    %649 = math.tanh %648 : vector<32x2xf32>
    %cst_275 = arith.constant 1.000000e+00 : f32
    %650 = vector.broadcast %cst_275 : f32 to vector<32x2xf32>
    %651 = arith.addf %649, %650 : vector<32x2xf32>
    %cst_276 = arith.constant 5.000000e-01 : f32
    %652 = vector.broadcast %cst_276 : f32 to vector<32x2xf32>
    %653 = arith.mulf %652, %651 : vector<32x2xf32>
    %654 = vector.extract_strided_slice %637 {offsets = [64, 0], sizes = [32, 2], strides = [1, 1]} : vector<128x2xf32> to vector<32x2xf32>
    %655 = math.tanh %654 : vector<32x2xf32>
    %656 = vector.extract_strided_slice %637 {offsets = [96, 0], sizes = [32, 2], strides = [1, 1]} : vector<128x2xf32> to vector<32x2xf32>
    %cst_277 = arith.constant 5.000000e-01 : f32
    %657 = vector.broadcast %cst_277 : f32 to vector<32x2xf32>
    %658 = arith.mulf %657, %656 : vector<32x2xf32>
    %659 = math.tanh %658 : vector<32x2xf32>
    %cst_278 = arith.constant 1.000000e+00 : f32
    %660 = vector.broadcast %cst_278 : f32 to vector<32x2xf32>
    %661 = arith.addf %659, %660 : vector<32x2xf32>
    %cst_279 = arith.constant 5.000000e-01 : f32
    %662 = vector.broadcast %cst_279 : f32 to vector<32x2xf32>
    %663 = arith.mulf %662, %661 : vector<32x2xf32>
    %664 = arith.mulf %653, %624 : vector<32x2xf32>
    %665 = arith.mulf %645, %655 : vector<32x2xf32>
    %666 = arith.addf %664, %665 : vector<32x2xf32>
    %667 = math.tanh %666 : vector<32x2xf32>
    %668 = arith.mulf %663, %667 : vector<32x2xf32>
    %cst_280 = arith.constant dense<0.000000e+00> : vector<16x2xf32>
    %669 = tpu.matmul %0, %668, %cst_280 {dimension_numbers = #tpu.dot_dimension_numbers<[1], [0], [0], [1], [0, 0, 1, 1], [], []>} : vector<16x32xf32>, vector<32x2xf32>, vector<16x2xf32> -> vector<16x2xf32>
    %670 = arith.addf %669, %3 : vector<16x2xf32>
    %c7_281 = arith.constant 7 : index
    %c0_282 = arith.constant 0 : index
    %c0_283 = arith.constant 0 : index
    %671 = vector.load %arg2[%c7_281, %c0_282, %c0_283] : memref<8x16x2xf32, #tpu.memory_space<vmem>>, vector<1x16x2xf32>
    %672 = vector.shape_cast %671 : vector<1x16x2xf32> to vector<16x2xf32>
    %673 = vector.shape_cast %670 : vector<16x2xf32> to vector<1x16x2xf32>
    tpu.vector_store %arg2[%c7_281, %c0_282, %c0_283], %673 {strides = array<i32>} : memref<8x16x2xf32, #tpu.memory_space<vmem>>, vector<1x16x2xf32>,
    return
  }
}

</mosaic_0001>

<bundles_post_ra>
// kernel: tpu_custom_call.1
= control target key start
LH: loop header
LB: loop body
LE: loop exit
PB: predicated region body
PF: predicated region fallthrough
CT: control target
= control target key end

     0   :  { %vm203_vm0 = vcmask 1043456   ;;  %vm154_vm1 = vcmask 31744   ;;  %v11062_v4 = vmov 0   ;;  %v13881_v5 = vmov 0.0   ;;  %s13878_s0 = inlined_call_operand.vmem [shape: f32[8,4,2], index: 0, kind: input, shape index: {}]   ;;  %s13879_s1 = inlined_call_operand.vmem [shape: f32[800,32], index: 1, kind: input, shape index: {}]   ;;  %s13880_s2 = inlined_call_operand.vmem [shape: f32[8,16,2], index: 2, kind: output, shape index: {}]  }
   0x1   :  { %v153_v0 = vld [vmem:[%s13878_s0] sm:$0xf]  ;;  %v11090_v2 = vld [vmem:[%s13879_s1 + $0x8] sm:$0xff]  ;;  %v11098_v3 = vld [vmem:[%s13879_s1 + $0x10] sm:$0xff]  ;;  %10290 = vset.pattern.permute.xlu1 %v11062_v4  ;;  %10289 = vset.pattern.permute.xlu0 %v11062_v4  ;;  %vm352_vm2 = vcmask 261120   ;;  %vm634_vm3 = vcmask 15360  }
   0x2   :  { %v11085_v1 = vld [vmem:[%s13879_s1] sm:$0xff]  ;;  %8483 = vmatprep.subr.msk.mxu0 %vm203_vm0, %v153_v0  ;;  %v11109_v6 = vld [vmem:[%s13879_s1 + $0x18] sm:$0xff]  ;;  %v11126_v8 = vld [vmem:[%s13879_s1 + $0x28] sm:$0xff] }
   0x3   :  { %8485 = vmatprep.mubr.msk.f32.mxu0 %vm154_vm1, %v11085_v1  ;;  %8484 = vmatpush3.msk.msra.mxu0 %vm203_vm0, %v153_v0  ;;  %v11115_v7 = vld [vmem:[%s13879_s1 + $0x20] sm:$0xff]  ;;  %v11131_v9 = vld [vmem:[%s13879_s1 + $0x30] sm:$0xff]  ;;  %v62_v12 = vld [vmem:[%s13879_s1 + $0x128] sm:$0xff] }
   0x4   :  { %8486 = vmatmul.mubr.msk.f32.vlgmr.msra.gmra.mrb[0].mxu0 %vm154_vm1, %v11090_v2  ;;  %8509 = vmatprep.subr.mxu0 %v13881_v5  ;;  %v61_v10 = vld [vmem:[%s13879_s1 + $0x120] sm:$0xff]  ;;  %v11149_v13 = vld [vmem:[%s13879_s1 + $0x38] sm:$0xff]  ;;  %v58_v14 = vld [vmem:[%s13879_s1 + $0x108] sm:$0xff] }
   0x5   :  { %8488 = vmatprep.mubr.msk.f32.mxu0 %vm154_vm1, %v11098_v3  ;;  %8510 = vmatpush3.msra.mxu0 %v13881_v5  ;;  %v57_v11 = vld [vmem:[%s13879_s1 + $0x100] sm:$0xff]  ;;  %v60_v16 = vld [vmem:[%s13879_s1 + $0x118] sm:$0xff]  ;;  %v11169_v17 = vld [vmem:[%s13879_s1 + $0x48] sm:$0xff] }
   0x6   :  { %8537 = vmatprep.mubr.msk.f32.mxu1 %vm154_vm1, %v11085_v1  ;;  %95 = vperm.xlu1 %10290, %v61_v10   ;;  %v11157_v15 = vld [vmem:[%s13879_s1 + $0x40] sm:$0xff]  ;;  %v59_v18 = vld [vmem:[%s13879_s1 + $0x110] sm:$0xff]  ;;  %v64_v20 = vld [vmem:[%s13879_s1 + $0x138] sm:$0xff] }
   0x7   :  { %75 = vperm.xlu0 %10289, %v57_v11   ;;  %v11177_v19 = vld [vmem:[%s13879_s1 + $0x50] sm:$0xff]  ;;  %v11189_v21 = vld [vmem:[%s13879_s1 + $0x58] sm:$0xff]  ;;  %v11197_v23 = vld [vmem:[%s13879_s1 + $0x60] sm:$0xff] }
   0x8   :  { %8489 = vmatmul.mubr.msk.f32.gmra.mrb[2].mxu0 %vm154_vm1, %v11109_v6  ;;  %v63_v22 = vld [vmem:[%s13879_s1 + $0x130] sm:$0xff]  ;;  %v66_v24 = vld [vmem:[%s13879_s1 + $0x148] sm:$0xff]  ;;  %v65_v26 = vld [vmem:[%s13879_s1 + $0x140] sm:$0xff] }
   0x9   :  { %8491 = vmatprep.mubr.msk.f32.mxu0 %vm154_vm1, %v11115_v7  ;;  %v11209_v25 = vld [vmem:[%s13879_s1 + $0x68] sm:$0xff]  ;;  %v11217_v27 = vld [vmem:[%s13879_s1 + $0x70] sm:$0xff]  ;;  %v68_v28 = vld [vmem:[%s13879_s1 + $0x158] sm:$0xff] }
   0xa   :  { %100 = vperm.xlu1 %10290, %v62_v12   ;;  %v11229_v29 = vld [vmem:[%s13879_s1 + $0x78] sm:$0xff]  ;;  %v67_v30 = vld [vmem:[%s13879_s1 + $0x150] sm:$0xff]  ;;  %v11237_v31 = vld [vmem:[%s13879_s1 + $0x80] sm:$0xff] }
   0xb   :  { %80 = vperm.xlu0 %10289, %v58_v14   ;;  %v70_v32 = vld [vmem:[%s13879_s1 + $0x168] sm:$0xff]  ;;  %v69_v34 = vld [vmem:[%s13879_s1 + $0x160] sm:$0xff]  ;;  %v11257_v35 = vld [vmem:[%s13879_s1 + $0x90] sm:$0xff] }
   0xc   :  { %8492 = vmatmul.mubr.msk.f32.gmra.mrb[4].mxu0 %vm154_vm1, %v11126_v8  ;;  %v11249_v33 = vld [vmem:[%s13879_s1 + $0x88] sm:$0xff]  ;;  %v72_v36 = vld [vmem:[%s13879_s1 + $0x178] sm:$0xff]  ;;  %v71_v38 = vld [vmem:[%s13879_s1 + $0x170] sm:$0xff] }
   0xd   :  { %8494 = vmatprep.mubr.msk.f32.mxu0 %vm154_vm1, %v11131_v9  ;;  %v11269_v37 = vld [vmem:[%s13879_s1 + $0x98] sm:$0xff]  ;;  %v11277_v39 = vld [vmem:[%s13879_s1 + $0xa0] sm:$0xff]  ;;  %v3388_v40 = vld [vmem:[%s13879_s1 + $0x288] sm:$0xff] }
   0xe   :  { %90 = vperm.xlu1 %10290, %v60_v16   ;;  %v11289_v41 = vld [vmem:[%s13879_s1 + $0xa8] sm:$0xff]  ;;  %v3387_v42 = vld [vmem:[%s13879_s1 + $0x280] sm:$0xff]  ;;  %v11297_v43 = vld [vmem:[%s13879_s1 + $0xb0] sm:$0xff] }
   0xf   :  { %85 = vperm.xlu0 %10289, %v59_v18   ;;  %v3392_v44 = vld [vmem:[%s13879_s1 + $0x2a8] sm:$0xff]  ;;  %v11309_v45 = vld [vmem:[%s13879_s1 + $0xb8] sm:$0xff]  ;;  %v3391_v46 = vld [vmem:[%s13879_s1 + $0x2a0] sm:$0xff] }
  0x10   :  { %8495 = vmatmul.mubr.msk.f32.gmra.mrb[6].mxu0 %vm154_vm1, %v11149_v13  ;;  %v11317_v47 = vld [vmem:[%s13879_s1 + $0xc0] sm:$0xff]  ;;  %v3390_v48 = vld [vmem:[%s13879_s1 + $0x298] sm:$0xff]  ;;  %v11329_v49 = vld [vmem:[%s13879_s1 + $0xc8] sm:$0xff] }
  0x11   :  { %8497 = vmatprep.mubr.msk.f32.mxu0 %vm154_vm1, %v11157_v15  ;;  %v3389_v50 = vld [vmem:[%s13879_s1 + $0x290] sm:$0xff]  ;;  %v3394_v52 = vld [vmem:[%s13879_s1 + $0x2b8] sm:$0xff]  ;;  %v11357_v55 = vld [vmem:[%s13879_s1 + $0xe0] sm:$0xff] }
  0x12   :  { %110 = vperm.xlu1 %10290, %v64_v20   ;;  %v11337_v51 = vld [vmem:[%s13879_s1 + $0xd0] sm:$0xff]  ;;  %v11349_v53 = vld [vmem:[%s13879_s1 + $0xd8] sm:$0xff]  ;;  %v3396_v56 = vld [vmem:[%s13879_s1 + $0x2c8] sm:$0xff] }
  0x13   :  { %105 = vperm.xlu0 %10289, %v63_v22   ;;  %v3393_v54 = vld [vmem:[%s13879_s1 + $0x2b0] sm:$0xff]  ;;  %v11369_v57 = vld [vmem:[%s13879_s1 + $0xe8] sm:$0xff]  ;;  %v3395_v58 = vld [vmem:[%s13879_s1 + $0x2c0] sm:$0xff] }
  0x14   :  { %8498 = vmatmul.mubr.msk.f32.gmra.mrb[8].mxu0 %vm154_vm1, %v11169_v17  ;;  %v11377_v59 = vld [vmem:[%s13879_s1 + $0xf0] sm:$0xff]  ;;  %v3398_v60 = vld [vmem:[%s13879_s1 + $0x2d8] sm:$0xff]  ;;  %v3400_v63 = vld [vmem:[%s13879_s1 + $0x2e8] sm:$0xff] }
  0x15   :  { %8500 = vmatprep.mubr.msk.f32.mxu0 %vm154_vm1, %v11177_v19  ;;  %v11389_v61 = vld [vmem:[%s13879_s1 + $0xf8] sm:$0xff]  ;;  %v3397_v62 = vld [vmem:[%s13879_s1 + $0x2d0] sm:$0xff]  ;;  %v3399_v0 = vld [vmem:[%s13879_s1 + $0x2e0] sm:$0xff] }
  0x16   :  { %120 = vperm.xlu1 %10290, %v66_v24   ;;  %v3402_v4 = vld [vmem:[%s13879_s1 + $0x2f8] sm:$0xff]  ;;  %v3401_v10 = vld [vmem:[%s13879_s1 + $0x2f0] sm:$0xff]  ;;  %v7301_v14 = vld [vmem:[%s13878_s0 + $0x4] sm:$0xf] }
  0x17   :  { %115 = vperm.xlu0 %10289, %v65_v26   ;;  %v14_v11 = vld [vmem:[%s13879_s1 + $0x318] sm:$0xff]  ;;  %v13_v12 = vld [vmem:[%s13879_s1 + $0x310] sm:$0xff]  ;;  %8535 = vmatprep.subr.msk.mxu1 %vm203_vm0, %v7301_v14 }
  0x18   :  { %8501 = vmatmul.mubr.msk.f32.gmra.mrb[10].mxu0 %vm154_vm1, %v11189_v21  ;;  %8536 = vmatpush3.msk.msra.mxu1 %vm203_vm0, %v7301_v14 }
  0x19   :  { %8503 = vmatprep.mubr.msk.f32.mxu0 %vm154_vm1, %v11197_v23  ;;  %8538 = vmatmul.mubr.msk.f32.vlgmr.msra.gmra.mrb[0].mxu1 %vm154_vm1, %v11090_v2 }
  0x1a   :  { %130 = vperm.xlu1 %10290, %v68_v28   ;;  %8540 = vmatprep.mubr.msk.f32.mxu1 %vm154_vm1, %v11098_v3 }
  0x1b   :  { %125 = vperm.xlu0 %10289, %v67_v30  }
  0x1c   :  { %8504 = vmatmul.mubr.msk.f32.gmra.mrb[12].mxu0 %vm154_vm1, %v11209_v25 }
  0x1d   :  { %8506 = vmatprep.mubr.msk.f32.mxu0 %vm154_vm1, %v11217_v27  ;;  %8541 = vmatmul.mubr.msk.f32.gmra.mrb[2].mxu1 %vm154_vm1, %v11109_v6 }
  0x1e   :  { %140 = vperm.xlu1 %10290, %v70_v32   ;;  %8543 = vmatprep.mubr.msk.f32.mxu1 %vm154_vm1, %v11115_v7 }
  0x1f   :  { %135 = vperm.xlu0 %10289, %v69_v34  }
  0x20   :  { %8507 = vmatmul.mubr.msk.f32.gmra.mrb[14].mxu0 %vm154_vm1, %v11229_v29 }
  0x21   :  { %8511 = vmatprep.mubr.msk.f32.mxu0 %vm352_vm2, %v11237_v31  ;;  %8544 = vmatmul.mubr.msk.f32.gmra.mrb[4].mxu1 %vm154_vm1, %v11126_v8 }
  0x22   :  { %150 = vperm.xlu1 %10290, %v72_v36   ;;  %8546 = vmatprep.mubr.msk.f32.mxu1 %vm154_vm1, %v11131_v9 }
  0x23   :  { %145 = vperm.xlu0 %10289, %v71_v38  }
  0x24   :  { %8512 = vmatmul.mubr.msk.f32.vlgmr.msra.gmra.mrb[0].mxu0 %vm352_vm2, %v11249_v33 }
  0x25   :  { %8514 = vmatprep.mubr.msk.f32.mxu0 %vm352_vm2, %v11257_v35  ;;  %8547 = vmatmul.mubr.msk.f32.gmra.mrb[6].mxu1 %vm154_vm1, %v11149_v13 }
  0x26   :  { %3410 = vperm.xlu1 %10290, %v3388_v40   ;;  %8549 = vmatprep.mubr.msk.f32.mxu1 %vm154_vm1, %v11157_v15 }
  0x27   :  { %3405 = vperm.xlu0 %10289, %v3387_v42  }
  0x28   :  { %8515 = vmatmul.mubr.msk.f32.gmra.mrb[2].mxu0 %vm352_vm2, %v11269_v37 }
  0x29   :  { %8517 = vmatprep.mubr.msk.f32.mxu0 %vm352_vm2, %v11277_v39  ;;  %8550 = vmatmul.mubr.msk.f32.gmra.mrb[8].mxu1 %vm154_vm1, %v11169_v17 }
  0x2a   :  { %3430 = vperm.xlu1 %10290, %v3392_v44   ;;  %8552 = vmatprep.mubr.msk.f32.mxu1 %vm154_vm1, %v11177_v19 }
  0x2b   :  { %3425 = vperm.xlu0 %10289, %v3391_v46  }
  0x2c   :  { %8518 = vmatmul.mubr.msk.f32.gmra.mrb[4].mxu0 %vm352_vm2, %v11289_v41 }
  0x2d   :  { %8520 = vmatprep.mubr.msk.f32.mxu0 %vm352_vm2, %v11297_v43  ;;  %8553 = vmatmul.mubr.msk.f32.gmra.mrb[10].mxu1 %vm154_vm1, %v11189_v21 }
  0x2e   :  { %3420 = vperm.xlu1 %10290, %v3390_v48   ;;  %8555 = vmatprep.mubr.msk.f32.mxu1 %vm154_vm1, %v11197_v23 }
  0x2f   :  { %3415 = vperm.xlu0 %10289, %v3389_v50  }
  0x30   :  { %8521 = vmatmul.mubr.msk.f32.gmra.mrb[6].mxu0 %vm352_vm2, %v11309_v45 }
  0x31   :  { %8523 = vmatprep.mubr.msk.f32.mxu0 %vm352_vm2, %v11317_v47  ;;  %8556 = vmatmul.mubr.msk.f32.gmra.mrb[12].mxu1 %vm154_vm1, %v11209_v25 }
  0x32   :  { %3440 = vperm.xlu1 %10290, %v3394_v52   ;;  %8558 = vmatprep.mubr.msk.f32.mxu1 %vm154_vm1, %v11217_v27 }
  0x33   :  { %3435 = vperm.xlu0 %10289, %v3393_v54  }
  0x34   :  { %8524 = vmatmul.mubr.msk.f32.gmra.mrb[8].mxu0 %vm352_vm2, %v11329_v49 }
  0x35   :  { %8526 = vmatprep.mubr.msk.f32.mxu0 %vm352_vm2, %v11337_v51  ;;  %8559 = vmatmul.mubr.msk.f32.gmra.mrb[14].mxu1 %vm154_vm1, %v11229_v29 }
  0x36   :  { %3450 = vperm.xlu1 %10290, %v3396_v56   ;;  %8569 = vmatprep.mubr.msk.f32.mxu1 %vm352_vm2, %v11237_v31 }
  0x37   :  { %3445 = vperm.xlu0 %10289, %v3395_v58  }
  0x38   :  { %8527 = vmatmul.mubr.msk.f32.gmra.mrb[10].mxu0 %vm352_vm2, %v11349_v53 }
  0x39   :  { %8529 = vmatprep.mubr.msk.f32.mxu0 %vm352_vm2, %v11357_v55 }
  0x3a   :  { %3460 = vperm.xlu1 %10290, %v3398_v60  }
  0x3b   :  { %3455 = vperm.xlu0 %10289, %v3397_v62  }
  0x3c   :  { %8530 = vmatmul.mubr.msk.f32.gmra.mrb[12].mxu0 %vm352_vm2, %v11369_v57 }
  0x3d   :  { %8532 = vmatprep.mubr.msk.f32.mxu0 %vm352_vm2, %v11377_v59 }
  0x3e   :  { %3470 = vperm.xlu1 %10290, %v3400_v63  }
  0x3f   :  { %3465 = vperm.xlu0 %10289, %v3399_v0  }
  0x40   :  { %8533 = vmatmul.mubr.msk.f32.gmra.mrb[14].mxu0 %vm352_vm2, %v11389_v61 }
  0x41   :  { %8595 = vmatprep.mubr.msk.f32.mxu0 %vm154_vm1, %v11085_v1 }
  0x42   :  { %3480 = vperm.xlu1 %10290, %v3402_v4  }
  0x43   :  { %3475 = vperm.xlu0 %10289, %v3401_v10  }
  0x46   :  { %22 = vperm.xlu1 %10290, %v14_v11  }
  0x47   :  { %17 = vperm.xlu0 %10289, %v13_v12  }
  0x85   :  { %v11453_v16 = vpop.permute.xlu1 %95 }
  0x86   :  { %14031 = vst [vmem:[#allocation3_spill] sm:$0xff] %v11453_v16  ;;  %v11455_v18 = vpop.permute.xlu0 %75 }
  0x87   :  { %14032 = vst [vmem:[#allocation4_spill] sm:$0xff] %v11455_v18 }
  0x89   :  { %v11457_v20 = vpop.permute.xlu1 %100 }
  0x8a   :  { %14033 = vst [vmem:[#allocation5_spill] sm:$0xff] %v11457_v20  ;;  %v11459_v22 = vpop.permute.xlu0 %80 }
  0x8b   :  { %14034 = vst [vmem:[#allocation6_spill] sm:$0xff] %v11459_v22 }
  0x8d   :  { %v11461_v24 = vpop.permute.xlu1 %90 }
  0x8e   :  { %14035 = vst [vmem:[#allocation7_spill] sm:$0xff] %v11461_v24  ;;  %v11463_v26 = vpop.permute.xlu0 %85 }
  0x8f   :  { %14036 = vst [vmem:[#allocation8_spill] sm:$0xff] %v11463_v26 }
  0x91   :  { %v11467_v36 = vpop.permute.xlu1 %110 }
  0x92   :  { %14037 = vst [vmem:[#allocation9_spill] sm:$0xff] %v11467_v36  ;;  %v11469_v40 = vpop.permute.xlu0 %105 }
  0x93   :  { %14038 = vst [vmem:[#allocation10_spill] sm:$0xff] %v11469_v40 }
  0x95   :  { %v11474_v60 = vpop.permute.xlu1 %120 }
  0x96   :  { %14039 = vst [vmem:[#allocation11_spill] sm:$0xff] %v11474_v60  ;;  %v11477_v63 = vpop.permute.xlu0 %115 }
  0x97   :  { %14040 = vst [vmem:[#allocation12_spill] sm:$0xff] %v11477_v63 }
  0xf7   :  { %v8513_v28 = vpop.f32.mrb[0].mxu0 }
  0xf8   :  { %v9775_v30 = vadd.f32 %v8513_v28, %v11459_v22  ;;  %v467_v32 = vpop.f32.mrb[1].mxu0 }
  0xf9   :  { %v9776_v34 = vadd.f32 %v467_v32, %v11455_v18  ;;  %v11481_v32 = vpop.permute.xlu1 %130 }
  0xfa   :  { %v563_v42 = vmul.f32 0.5, %v9775_v30  ;;  %14041 = vst [vmem:[#allocation13_spill] sm:$0xff] %v11481_v32 }
  0xfb   :  { %v8516_v38 = vpop.f32.mrb[2].mxu0  ;;  %v562_v48 = vmul.f32 0.5, %v9776_v34 }
  0xfc   :  { %v9777_v44 = vadd.f32 %v8516_v38, %v11461_v24  ;;  %v477_v46 = vpop.f32.mrb[3].mxu0  ;;  %10291 = vtanh.f32 %v563_v42  ;;  %v11483_v42 = vpop.permute.xlu0 %125 }
  0xfd   :  { %v9778_v50 = vadd.f32 %v477_v46, %v11463_v26  ;;  %10293 = vtanh.f32 %v562_v48  ;;  %14042 = vst [vmem:[#allocation14_spill] sm:$0xff] %v11483_v42 }
  0xfe   :  { %v565_v52 = vmul.f32 0.5, %v9777_v44 }
  0xff   :  { %v8519_v54 = vpop.f32.mrb[4].mxu0  ;;  %v564_v0 = vmul.f32 0.5, %v9778_v50 }
 0x100   :  { %v9779_v56 = vadd.f32 %v8519_v54, %v11457_v20  ;;  %v487_v58 = vpop.f32.mrb[5].mxu0  ;;  %10295 = vtanh.f32 %v565_v52 }
 0x101   :  { %v9780_v62 = vadd.f32 %v487_v58, %v11453_v16 }
 0x102   :  { %v579_v4 = vmul.f32 0.5, %v9779_v56 }
 0x103   :  { %v578_v10 = vmul.f32 0.5, %v9780_v62  ;;  %v8522_v11 = vpop.f32.mrb[6].mxu0 }
 0x104   :  { %10297 = vtanh.f32 %v579_v4  ;;  %v9781_v12 = vadd.f32 %v8522_v11, %v11467_v36  ;;  %v497_v14 = vpop.f32.mrb[7].mxu0  ;;  %v11491_v11 = vpop.permute.xlu0 %135 }
 0x105   :  { %10299 = vtanh.f32 %v578_v10  ;;  %v9782_v28 = vadd.f32 %v497_v14, %v11469_v40  ;;  %14044 = vst [vmem:[#allocation16_spill] sm:$0xff] %v11491_v11 }
 0x106   :  { %10301 = vtanh.f32 %v564_v0  ;;  %v581_v30 = vmul.f32 0.5, %v9781_v12  ;;  %v10292_v50 = vpop.eup %10291  ;;  %v11488_v0 = vpop.permute.xlu1 %140 }
 0x107   :  { %v580_v34 = vmul.f32 0.5, %v9782_v28  ;;  %v8525_v38 = vpop.f32.mrb[8].mxu0  ;;  %v10294_v52 = vpop.eup %10293  ;;  %14043 = vst [vmem:[#allocation15_spill] sm:$0xff] %v11488_v0  ;;  %v571_v12 = vadd.f32 1.0, %v10292_v50 }
 0x108   :  { %10303 = vtanh.f32 %v581_v30  ;;  %v9783_v44 = vadd.f32 %v8525_v38, %v11474_v60  ;;  %v507_v46 = vpop.f32.mrb[9].mxu0  ;;  %v570_v14 = vadd.f32 1.0, %v10294_v52  ;;  %v11497_v16 = vpop.permute.xlu0 %145 }
 0x109   :  { %10305 = vtanh.f32 %v580_v34  ;;  %v9784_v48 = vadd.f32 %v507_v46, %v11477_v63 }
 0x10a   :  { %10307 = vtanh.f32 %v9783_v44  ;;  %v10296_v62 = vpop.eup %10295  ;;  %v11495_v52 = vpop.permute.xlu1 %150 }
 0x10b   :  { %10309 = vtanh.f32 %v9784_v48  ;;  %v8528_v54 = vpop.f32.mrb[10].mxu0  ;;  %14045 = vst [vmem:[#allocation17_spill] sm:$0xff] %v11495_v52 }
 0x10c   :  { %v9785_v56 = vadd.f32 %v8528_v54, %v11481_v32  ;;  %v517_v58 = vpop.f32.mrb[11].mxu0 }
 0x10d   :  { %v9786_v4 = vadd.f32 %v517_v58, %v11483_v42  ;;  %v575_v58 = vmul.f32 0.5, %v571_v12  ;;  %v574_v42 = vmul.f32 0.5, %v570_v14 }
 0x10e   :  { %v10298_v10 = vpop.eup %10297  ;;  %10311 = vtanh.f32 %v9785_v56  ;;  %v573_v56 = vadd.f32 1.0, %v10296_v62 }
 0x10f   :  { %v10300_v28 = vpop.eup %10299  ;;  %v587_v30 = vadd.f32 1.0, %v10298_v10  ;;  %10313 = vtanh.f32 %v9786_v4  ;;  %v8531_v34 = vpop.f32.mrb[12].mxu0 }
 0x110   :  { %v10302_v38 = vpop.eup %10301  ;;  %v586_v44 = vadd.f32 1.0, %v10300_v28  ;;  %v9787_v46 = vadd.f32 %v8531_v34, %v11488_v0  ;;  %v527_v48 = vpop.f32.mrb[13].mxu0  ;;  %v577_v0 = vmul.f32 0.5, %v573_v56 }
 0x111   :  { %v591_v54 = vmul.f32 0.5, %v587_v30  ;;  %v9788_v5 = vadd.f32 %v527_v48, %v11491_v11  ;;  %v572_v10 = vadd.f32 1.0, %v10302_v38 }
 0x112   :  { %v10304_v32 = vpop.eup %10303  ;;  %v590_v63 = vmul.f32 0.5, %v586_v44  ;;  %v599_v60 = vmul.f32 0.5, %v9787_v46 }
 0x113   :  { %v10306_v50 = vpop.eup %10305  ;;  %v589_v4 = vadd.f32 1.0, %v10304_v32  ;;  %v598_v40 = vmul.f32 0.5, %v9788_v5  ;;  %v8534_v36 = vpop.f32.mrb[14].mxu0  ;;  %v615_v34 = vmul.f32 0.0, %v591_v54 }
 0x114   :  { %v10308_v28 = vpop.eup %10307  ;;  %v588_v30 = vadd.f32 1.0, %v10306_v50  ;;  %10315 = vtanh.f32 %v599_v60  ;;  %v9789_v48 = vadd.f32 %v8534_v36, %v11495_v52  ;;  %v537_v12 = vpop.f32.mrb[15].mxu0  ;;  %v614_v62 = vmul.f32 0.0, %v590_v63 }
 0x115   :  { %v10310_v14 = vpop.eup %10309  ;;  %v593_v44 = vmul.f32 0.5, %v589_v4  ;;  %v619_v46 = vmul.f32 %v10308_v28, %v575_v58  ;;  %10317 = vtanh.f32 %v598_v40  ;;  %v9790_v11 = vadd.f32 %v537_v12, %v11497_v16 }
 0x116   :  { %v592_v38 = vmul.f32 0.5, %v588_v30  ;;  %v618_v32 = vmul.f32 %v10310_v14, %v574_v42  ;;  %v601_v5 = vmul.f32 0.5, %v9789_v48  ;;  %v576_v50 = vmul.f32 0.5, %v572_v10 }
 0x117   :  { %v11501_v20 = vadd.f32 %v619_v46, %v615_v34  ;;  %v600_v26 = vmul.f32 0.5, %v9790_v11  ;;  %v617_v52 = vmul.f32 0.0, %v593_v44 }
 0x118   :  { %v10312_v54 = vpop.eup %10311  ;;  %v11503_v60 = vadd.f32 %v618_v32, %v614_v62  ;;  %10319 = vtanh.f32 %v601_v5  ;;  %v616_v58 = vmul.f32 0.0, %v592_v38 }
 0x119   :  { %v10314_v36 = vpop.eup %10313  ;;  %10321 = vtanh.f32 %v11501_v20  ;;  %v621_v40 = vmul.f32 %v10312_v54, %v577_v0 }
 0x11a   :  { %10323 = vtanh.f32 %v11503_v60  ;;  %v620_v63 = vmul.f32 %v10314_v36, %v576_v50 }
 0x11b   :  { %v11507_v42 = vadd.f32 %v621_v40, %v617_v52  ;;  %10325 = vtanh.f32 %v600_v26 }
 0x11c   :  { %v11509_v56 = vadd.f32 %v620_v63, %v616_v58  ;;  %v7335_v58 = vld [vmem:[%s13878_s0 + $0x8] sm:$0xf] }
 0x11d   :  { %10327 = vtanh.f32 %v11507_v42  ;;  %8593 = vmatprep.subr.msk.mxu0 %vm203_vm0, %v7335_v58 }
 0x11e   :  { %v10316_v11 = vpop.eup %10315  ;;  %10329 = vtanh.f32 %v11509_v56  ;;  %8594 = vmatpush3.msk.msra.mxu0 %vm203_vm0, %v7335_v58 }
 0x11f   :  { %v10318_v10 = vpop.eup %10317  ;;  %v607_v4 = vadd.f32 1.0, %v10316_v11  ;;  %8596 = vmatmul.mubr.msk.f32.vlgmr.msra.gmra.mrb[16].mxu0 %vm154_vm1, %v11090_v2 }
 0x120   :  { %v606_v28 = vadd.f32 1.0, %v10318_v10  ;;  %8598 = vmatprep.mubr.msk.f32.mxu0 %vm154_vm1, %v11098_v3 }
 0x121   :  { %v611_v34 = vmul.f32 0.5, %v607_v4 }
 0x122   :  { %v10320_v30 = vpop.eup %10319  ;;  %v610_v0 = vmul.f32 0.5, %v606_v28 }
 0x123   :  { %v10322_v48 = vpop.eup %10321  ;;  %v609_v12 = vadd.f32 1.0, %v10320_v30  ;;  %8599 = vmatmul.mubr.msk.f32.gmra.mrb[18].mxu0 %vm154_vm1, %v11109_v6 }
 0x124   :  { %v10324_v14 = vpop.eup %10323  ;;  %v631_v52 = vmul.f32 %v10322_v48, %v611_v34  ;;  %8601 = vmatprep.mubr.msk.f32.mxu0 %vm154_vm1, %v11115_v7 }
 0x125   :  { %v10326_v44 = vpop.eup %10325  ;;  %v613_v26 = vmul.f32 0.5, %v609_v12  ;;  %v630_v46 = vmul.f32 %v10324_v14, %v610_v0  ;;  %v14046_v12 = vld [vmem:[#allocation8_spill] sm:$0xff] }
 0x126   :  { %v608_v62 = vadd.f32 1.0, %v10326_v44  ;;  %636 = vst.msk [vmem:[#allocation2 + $0x8] sm:$0xff] %vm634_vm3, %v631_v52 }
 0x127   :  { %v10328_v38 = vpop.eup %10327  ;;  %635 = vst.msk [vmem:[#allocation2] sm:$0xff] %vm634_vm3, %v630_v46  ;;  %v9535_v32 = vpack.c.bf16 %v631_v52, %v630_v46  ;;  %8602 = vmatmul.mubr.msk.f32.gmra.mrb[20].mxu0 %vm154_vm1, %v11126_v8 }
 0x128   :  { %v10330_v5 = vpop.eup %10329  ;;  %v612_v54 = vmul.f32 0.5, %v608_v62  ;;  %v633_v50 = vmul.f32 %v10328_v38, %v613_v26  ;;  %8604 = vmatprep.mubr.msk.f32.mxu0 %vm154_vm1, %v11131_v9  ;;  %v14047_v26 = vld [vmem:[#allocation5_spill] sm:$0xff]  ;;  %v14048_v38 = vld [vmem:[#allocation3_spill] sm:$0xff] }
 0x129   :  { %9536 = vmatprep.subr.bf16.mxu1 %v9535_v32 }
 0x12a   :  { %9538 = vmatpush3.bf16.msra.mxu1 %v9535_v32  ;;  %v632_v36 = vmul.f32 %v10330_v5, %v612_v54  ;;  %638 = vst.msk [vmem:[#allocation2 + $0x18] sm:$0xff] %vm634_vm3, %v633_v50 }
 0x12b   :  { %8605 = vmatmul.mubr.msk.f32.gmra.mrb[22].mxu0 %vm154_vm1, %v11149_v13 }
 0x12c   :  { %637 = vst.msk [vmem:[#allocation2 + $0x10] sm:$0xff] %vm634_vm3, %v632_v36  ;;  %v9539_v40 = vpack.c.bf16 %v633_v50, %v632_v36  ;;  %8607 = vmatprep.mubr.msk.f32.mxu0 %vm154_vm1, %v11157_v15 }
 0x12e   :  { %9540 = vmatprep.subr.bf16.mxu1 %v9539_v40 }
 0x12f   :  { %9542 = vmatpush3.bf16.msra.mxu1 %v9539_v40  ;;  %8608 = vmatmul.mubr.msk.f32.gmra.mrb[24].mxu0 %vm154_vm1, %v11169_v17  ;;  %v14049_v40 = vld [vmem:[#allocation9_spill] sm:$0xff] }
 0x130   :  { %8610 = vmatprep.mubr.msk.f32.mxu0 %vm154_vm1, %v11177_v19 }
 0x132   :  { %8570 = vmatmul.mubr.msk.f32.vlgmr.msra.gmra.mrb[0].mxu1 %vm352_vm2, %v11249_v33 }
 0x133   :  { %8572 = vmatprep.mubr.msk.f32.mxu1 %vm352_vm2, %v11257_v35  ;;  %8611 = vmatmul.mubr.msk.f32.gmra.mrb[26].mxu0 %vm154_vm1, %v11189_v21 }
 0x134   :  { %8613 = vmatprep.mubr.msk.f32.mxu0 %vm154_vm1, %v11197_v23 }
 0x136   :  { %8573 = vmatmul.mubr.msk.f32.gmra.mrb[2].mxu1 %vm352_vm2, %v11269_v37 }
 0x137   :  { %8575 = vmatprep.mubr.msk.f32.mxu1 %vm352_vm2, %v11277_v39  ;;  %8614 = vmatmul.mubr.msk.f32.gmra.mrb[28].mxu0 %vm154_vm1, %v11209_v25 }
 0x138   :  { %8616 = vmatprep.mubr.msk.f32.mxu0 %vm154_vm1, %v11217_v27 }
 0x13a   :  { %8576 = vmatmul.mubr.msk.f32.gmra.mrb[4].mxu1 %vm352_vm2, %v11289_v41 }
 0x13b   :  { %8578 = vmatprep.mubr.msk.f32.mxu1 %vm352_vm2, %v11297_v43  ;;  %8617 = vmatmul.mubr.msk.f32.gmra.mrb[30].mxu0 %vm154_vm1, %v11229_v29 }
 0x13c   :  { %8627 = vmatprep.mubr.msk.f32.mxu0 %vm352_vm2, %v11237_v31 }
 0x13e   :  { %8579 = vmatmul.mubr.msk.f32.gmra.mrb[6].mxu1 %vm352_vm2, %v11309_v45 }
 0x13f   :  { %8581 = vmatprep.mubr.msk.f32.mxu1 %vm352_vm2, %v11317_v47 }
 0x142   :  { %8582 = vmatmul.mubr.msk.f32.gmra.mrb[8].mxu1 %vm352_vm2, %v11329_v49 }
 0x143   :  { %8584 = vmatprep.mubr.msk.f32.mxu1 %vm352_vm2, %v11337_v51 }
 0x146   :  { %8585 = vmatmul.mubr.msk.f32.gmra.mrb[10].mxu1 %vm352_vm2, %v11349_v53 }
 0x147   :  { %8587 = vmatprep.mubr.msk.f32.mxu1 %vm352_vm2, %v11357_v55 }
 0x14a   :  { %8588 = vmatmul.mubr.msk.f32.gmra.mrb[12].mxu1 %vm352_vm2, %v11369_v57 }
 0x14b   :  { %8590 = vmatprep.mubr.msk.f32.mxu1 %vm352_vm2, %v11377_v59 }
 0x14e   :  { %8591 = vmatmul.mubr.msk.f32.gmra.mrb[14].mxu1 %vm352_vm2, %v11389_v61 }
 0x14f   :  { %8653 = vmatprep.mubr.msk.f32.mxu1 %vm154_vm1, %v11085_v1 }
 0x205   :  { %v8571_v63 = vpop.f32.mrb[0].mxu1 }
 0x206   :  { %v9791_v11 = vadd.f32 %v8571_v63, %v11459_v22  ;;  %v855_v10 = vpop.f32.mrb[1].mxu1 }
 0x207   :  { %v9792_v4 = vadd.f32 %v855_v10, %v11455_v18 }
 0x208   :  { %v951_v34 = vmul.f32 0.5, %v9791_v11  ;;  %v14050_v11 = vld [vmem:[#allocation10_spill] sm:$0xff] }
 0x209   :  { %v8574_v28 = vpop.f32.mrb[2].mxu1  ;;  %v950_v48 = vmul.f32 0.5, %v9792_v4 }
 0x20a   :  { %v9793_v30 = vadd.f32 %v8574_v28, %v11461_v24  ;;  %v865_v0 = vpop.f32.mrb[3].mxu1  ;;  %10331 = vtanh.f32 %v951_v34 }
 0x20b   :  { %v9794_v14 = vadd.f32 %v865_v0, %v14046_v12  ;;  %10333 = vtanh.f32 %v950_v48 }
 0x20c   :  { %v953_v52 = vmul.f32 0.5, %v9793_v30  ;;  %v14051_v30 = vld [vmem:[#allocation11_spill] sm:$0xff] }
 0x20d   :  { %v8577_v44 = vpop.f32.mrb[4].mxu1  ;;  %v952_v5 = vmul.f32 0.5, %v9794_v14  ;;  %v14052_v14 = vld [vmem:[#allocation12_spill] sm:$0xff] }
 0x20e   :  { %v9795_v46 = vadd.f32 %v8577_v44, %v14047_v26  ;;  %v875_v62 = vpop.f32.mrb[5].mxu1  ;;  %10335 = vtanh.f32 %v953_v52 }
 0x20f   :  { %v9796_v32 = vadd.f32 %v875_v62, %v14048_v38  ;;  %v14056_v38 = vld [vmem:[#allocation16_spill] sm:$0xff] }
 0x210   :  { %v967_v54 = vmul.f32 0.5, %v9795_v46 }
 0x211   :  { %v966_v50 = vmul.f32 0.5, %v9796_v32  ;;  %v8580_v36 = vpop.f32.mrb[6].mxu1  ;;  %v14053_v32 = vld [vmem:[#allocation13_spill] sm:$0xff] }
 0x212   :  { %10337 = vtanh.f32 %v967_v54  ;;  %v9797_v58 = vadd.f32 %v8580_v36, %v14049_v40  ;;  %v885_v63 = vpop.f32.mrb[7].mxu1 }
 0x213   :  { %10339 = vtanh.f32 %v966_v50  ;;  %v9798_v10 = vadd.f32 %v885_v63, %v14050_v11 }
 0x214   :  { %10341 = vtanh.f32 %v952_v5  ;;  %v969_v4 = vmul.f32 0.5, %v9797_v58  ;;  %v10332_v44 = vpop.eup %10331  ;;  %v14054_v5 = vld [vmem:[#allocation14_spill] sm:$0xff] }
 0x215   :  { %v968_v28 = vmul.f32 0.5, %v9798_v10  ;;  %v8583_v34 = vpop.f32.mrb[8].mxu1  ;;  %v10334_v46 = vpop.eup %10333  ;;  %v959_v10 = vadd.f32 1.0, %v10332_v44 }
 0x216   :  { %10343 = vtanh.f32 %v969_v4  ;;  %v9799_v0 = vadd.f32 %v8583_v34, %v14051_v30  ;;  %v895_v48 = vpop.f32.mrb[9].mxu1  ;;  %v958_v4 = vadd.f32 1.0, %v10334_v46 }
 0x217   :  { %10345 = vtanh.f32 %v968_v28  ;;  %v9800_v52 = vadd.f32 %v895_v48, %v14052_v14  ;;  %v963_v26 = vmul.f32 0.5, %v959_v10 }
 0x218   :  { %10347 = vtanh.f32 %v9799_v0  ;;  %v10336_v36 = vpop.eup %10335  ;;  %v14055_v0 = vld [vmem:[#allocation15_spill] sm:$0xff]  ;;  %v962_v12 = vmul.f32 0.5, %v958_v4 }
 0x219   :  { %10349 = vtanh.f32 %v9800_v52  ;;  %v8586_v62 = vpop.f32.mrb[10].mxu1  ;;  %v961_v46 = vadd.f32 1.0, %v10336_v36 }
 0x21a   :  { %v9801_v54 = vadd.f32 %v8586_v62, %v14053_v32  ;;  %v905_v50 = vpop.f32.mrb[11].mxu1 }
 0x21b   :  { %v9802_v58 = vadd.f32 %v905_v50, %v14054_v5 }
 0x21c   :  { %v10338_v63 = vpop.eup %10337  ;;  %10351 = vtanh.f32 %v9801_v54 }
 0x21d   :  { %v10340_v34 = vpop.eup %10339  ;;  %v975_v30 = vadd.f32 1.0, %v10338_v63  ;;  %10353 = vtanh.f32 %v9802_v58  ;;  %v8589_v28 = vpop.f32.mrb[12].mxu1 }
 0x21e   :  { %v10342_v48 = vpop.eup %10341  ;;  %v974_v14 = vadd.f32 1.0, %v10340_v34  ;;  %v9803_v11 = vadd.f32 %v8589_v28, %v14055_v0  ;;  %v915_v52 = vpop.f32.mrb[13].mxu1  ;;  %v14057_v28 = vld [vmem:[#allocation17_spill] sm:$0xff] }
 0x21f   :  { %v979_v40 = vmul.f32 0.5, %v975_v30  ;;  %v9804_v62 = vadd.f32 %v915_v52, %v14056_v38  ;;  %v960_v54 = vadd.f32 1.0, %v10342_v48  ;;  %v965_v48 = vmul.f32 0.5, %v961_v46 }
 0x220   :  { %v10344_v32 = vpop.eup %10343  ;;  %v978_v50 = vmul.f32 0.5, %v974_v14  ;;  %v987_v5 = vmul.f32 0.5, %v9803_v11 }
 0x221   :  { %v10346_v44 = vpop.eup %10345  ;;  %v977_v24 = vadd.f32 1.0, %v10344_v32  ;;  %v986_v63 = vmul.f32 0.5, %v9804_v62  ;;  %v8592_v58 = vpop.f32.mrb[14].mxu1  ;;  %v1003_v34 = vmul.f32 %v979_v40, %v11501_v20 }
 0x222   :  { %v10348_v18 = vpop.eup %10347  ;;  %v976_v22 = vadd.f32 1.0, %v10346_v44  ;;  %10355 = vtanh.f32 %v987_v5  ;;  %v9805_v30 = vadd.f32 %v8592_v58, %v14057_v28  ;;  %v925_v0 = vpop.f32.mrb[15].mxu1  ;;  %v1002_v14 = vmul.f32 %v978_v50, %v11503_v60 }
 0x223   :  { %v10350_v52 = vpop.eup %10349  ;;  %v981_v38 = vmul.f32 0.5, %v977_v24  ;;  %v1007_v10 = vmul.f32 %v10348_v18, %v963_v26  ;;  %10357 = vtanh.f32 %v986_v63  ;;  %v9806_v11 = vadd.f32 %v925_v0, %v11497_v16 }
 0x224   :  { %v980_v36 = vmul.f32 0.5, %v976_v22  ;;  %v1006_v32 = vmul.f32 %v10350_v52, %v962_v12  ;;  %v989_v4 = vmul.f32 0.5, %v9805_v30  ;;  %v964_v5 = vmul.f32 0.5, %v960_v54 }
 0x225   :  { %v11604_v62 = vadd.f32 %v1007_v10, %v1003_v34  ;;  %v988_v20 = vmul.f32 0.5, %v9806_v11  ;;  %v1005_v18 = vmul.f32 %v981_v38, %v11507_v42 }
 0x226   :  { %v10352_v40 = vpop.eup %10351  ;;  %v11606_v44 = vadd.f32 %v1006_v32, %v1002_v14  ;;  %10359 = vtanh.f32 %v989_v4  ;;  %v1004_v60 = vmul.f32 %v980_v36, %v11509_v56 }
 0x227   :  { %v10354_v58 = vpop.eup %10353  ;;  %10361 = vtanh.f32 %v11604_v62  ;;  %v1009_v24 = vmul.f32 %v10352_v40, %v965_v48 }
 0x228   :  { %10363 = vtanh.f32 %v11606_v44  ;;  %v1008_v22 = vmul.f32 %v10354_v58, %v964_v5 }
 0x229   :  { %v11612_v12 = vadd.f32 %v1009_v24, %v1005_v18  ;;  %10365 = vtanh.f32 %v988_v20 }
 0x22a   :  { %v11614_v26 = vadd.f32 %v1008_v22, %v1004_v60  ;;  %v14066_v60 = vld [vmem:[#allocation11_spill] sm:$0xff] }
 0x22b   :  { %10367 = vtanh.f32 %v11612_v12 }
 0x22c   :  { %v10356_v0 = vpop.eup %10355  ;;  %10369 = vtanh.f32 %v11614_v26 }
 0x22d   :  { %v10358_v50 = vpop.eup %10357  ;;  %v995_v42 = vadd.f32 1.0, %v10356_v0 }
 0x22e   :  { %v994_v38 = vadd.f32 1.0, %v10358_v50  ;;  %v14067_v50 = vld [vmem:[#allocation12_spill] sm:$0xff] }
 0x22f   :  { %v999_v46 = vmul.f32 0.5, %v995_v42 }
 0x230   :  { %v10360_v54 = vpop.eup %10359  ;;  %v998_v63 = vmul.f32 0.5, %v994_v38 }
 0x231   :  { %v10362_v56 = vpop.eup %10361  ;;  %v997_v34 = vadd.f32 1.0, %v10360_v54 }
 0x232   :  { %v10364_v30 = vpop.eup %10363  ;;  %v1019_v52 = vmul.f32 %v10362_v56, %v999_v46 }
 0x233   :  { %v10366_v10 = vpop.eup %10365  ;;  %v1001_v11 = vmul.f32 0.5, %v997_v34  ;;  %v1018_v14 = vmul.f32 %v10364_v30, %v998_v63  ;;  %v14068_v63 = vld [vmem:[#allocation13_spill] sm:$0xff] }
 0x234   :  { %v996_v36 = vadd.f32 1.0, %v10366_v10  ;;  %1024 = vst.msk [vmem:[#allocation2 + $0x28] sm:$0xff] %vm634_vm3, %v1019_v52 }
 0x235   :  { %v10368_v32 = vpop.eup %10367  ;;  %1023 = vst.msk [vmem:[#allocation2 + $0x20] sm:$0xff] %vm634_vm3, %v1018_v14  ;;  %v9543_v4 = vpack.c.bf16 %v1019_v52, %v1018_v14  ;;  %v14069_v52 = vld [vmem:[#allocation14_spill] sm:$0xff] }
 0x236   :  { %v10370_v48 = vpop.eup %10369  ;;  %v1000_v20 = vmul.f32 0.5, %v996_v36  ;;  %v1021_v40 = vmul.f32 %v10368_v32, %v1001_v11 }
 0x237   :  { %9544 = vmatprep.subr.bf16.mxu0 %v9543_v4 }
 0x238   :  { %9546 = vmatpush3.bf16.msra.mxu0 %v9543_v4  ;;  %v1020_v5 = vmul.f32 %v10370_v48, %v1000_v20  ;;  %1026 = vst.msk [vmem:[#allocation2 + $0x38] sm:$0xff] %vm634_vm3, %v1021_v40 }
 0x23a   :  { %1025 = vst.msk [vmem:[#allocation2 + $0x30] sm:$0xff] %vm634_vm3, %v1020_v5  ;;  %v9547_v58 = vpack.c.bf16 %v1021_v40, %v1020_v5  ;;  %v14070_v5 = vld [vmem:[#allocation15_spill] sm:$0xff] }
 0x23c   :  { %9548 = vmatprep.subr.bf16.mxu0 %v9547_v58 }
 0x23d   :  { %9550 = vmatpush3.bf16.msra.mxu0 %v9547_v58 }
 0x240   :  { %8628 = vmatmul.mubr.msk.f32.vlgmr.msra.gmra.mrb[16].mxu0 %vm352_vm2, %v11249_v33  ;;  %v7369_v33 = vld [vmem:[%s13878_s0 + $0xc] sm:$0xf] }
 0x241   :  { %8630 = vmatprep.mubr.msk.f32.mxu0 %vm352_vm2, %v11257_v35  ;;  %8651 = vmatprep.subr.msk.mxu1 %vm203_vm0, %v7369_v33 }
 0x242   :  { %8652 = vmatpush3.msk.msra.mxu1 %vm203_vm0, %v7369_v33 }
 0x243   :  { %8654 = vmatmul.mubr.msk.f32.vlgmr.msra.gmra.mrb[16].mxu1 %vm154_vm1, %v11090_v2  ;;  %v14058_v2 = vld [vmem:[#allocation6_spill] sm:$0xff] }
 0x244   :  { %8631 = vmatmul.mubr.msk.f32.gmra.mrb[18].mxu0 %vm352_vm2, %v11269_v37  ;;  %8656 = vmatprep.mubr.msk.f32.mxu1 %vm154_vm1, %v11098_v3 }
 0x245   :  { %8633 = vmatprep.mubr.msk.f32.mxu0 %vm352_vm2, %v11277_v39  ;;  %v14063_v39 = vld [vmem:[#allocation3_spill] sm:$0xff] }
 0x247   :  { %8657 = vmatmul.mubr.msk.f32.gmra.mrb[18].mxu1 %vm154_vm1, %v11109_v6 }
 0x248   :  { %8634 = vmatmul.mubr.msk.f32.gmra.mrb[20].mxu0 %vm352_vm2, %v11289_v41  ;;  %8659 = vmatprep.mubr.msk.f32.mxu1 %vm154_vm1, %v11115_v7  ;;  %v14059_v7 = vld [vmem:[#allocation4_spill] sm:$0xff] }
 0x249   :  { %8636 = vmatprep.mubr.msk.f32.mxu0 %vm352_vm2, %v11297_v43 }
 0x24b   :  { %8660 = vmatmul.mubr.msk.f32.gmra.mrb[20].mxu1 %vm154_vm1, %v11126_v8 }
 0x24c   :  { %8637 = vmatmul.mubr.msk.f32.gmra.mrb[22].mxu0 %vm352_vm2, %v11309_v45  ;;  %8662 = vmatprep.mubr.msk.f32.mxu1 %vm154_vm1, %v11131_v9 }
 0x24d   :  { %8639 = vmatprep.mubr.msk.f32.mxu0 %vm352_vm2, %v11317_v47 }
 0x24f   :  { %8663 = vmatmul.mubr.msk.f32.gmra.mrb[22].mxu1 %vm154_vm1, %v11149_v13 }
 0x250   :  { %8640 = vmatmul.mubr.msk.f32.gmra.mrb[24].mxu0 %vm352_vm2, %v11329_v49  ;;  %8665 = vmatprep.mubr.msk.f32.mxu1 %vm154_vm1, %v11157_v15  ;;  %v14060_v15 = vld [vmem:[#allocation7_spill] sm:$0xff] }
 0x251   :  { %8642 = vmatprep.mubr.msk.f32.mxu0 %vm352_vm2, %v11337_v51  ;;  %v14064_v51 = vld [vmem:[#allocation9_spill] sm:$0xff] }
 0x253   :  { %8666 = vmatmul.mubr.msk.f32.gmra.mrb[24].mxu1 %vm154_vm1, %v11169_v17 }
 0x254   :  { %8643 = vmatmul.mubr.msk.f32.gmra.mrb[26].mxu0 %vm352_vm2, %v11349_v53  ;;  %8668 = vmatprep.mubr.msk.f32.mxu1 %vm154_vm1, %v11177_v19 }
 0x255   :  { %8645 = vmatprep.mubr.msk.f32.mxu0 %vm352_vm2, %v11357_v55 }
 0x257   :  { %8669 = vmatmul.mubr.msk.f32.gmra.mrb[26].mxu1 %vm154_vm1, %v11189_v21 }
 0x258   :  { %8646 = vmatmul.mubr.msk.f32.gmra.mrb[28].mxu0 %vm352_vm2, %v11369_v57  ;;  %8671 = vmatprep.mubr.msk.f32.mxu1 %vm154_vm1, %v11197_v23  ;;  %v14061_v23 = vld [vmem:[#allocation8_spill] sm:$0xff]  ;;  %v14065_v57 = vld [vmem:[#allocation10_spill] sm:$0xff] }
 0x259   :  { %8648 = vmatprep.mubr.msk.f32.mxu0 %vm352_vm2, %v11377_v59 }
 0x25b   :  { %8672 = vmatmul.mubr.msk.f32.gmra.mrb[28].mxu1 %vm154_vm1, %v11209_v25 }
 0x25c   :  { %8649 = vmatmul.mubr.msk.f32.gmra.mrb[30].mxu0 %vm352_vm2, %v11389_v61  ;;  %8674 = vmatprep.mubr.msk.f32.mxu1 %vm154_vm1, %v11217_v27 }
 0x25d   :  { %8711 = vmatprep.mubr.msk.f32.mxu0 %vm154_vm1, %v11085_v1 }
 0x25f   :  { %8675 = vmatmul.mubr.msk.f32.gmra.mrb[30].mxu1 %vm154_vm1, %v11229_v29  ;;  %v14062_v29 = vld [vmem:[#allocation5_spill] sm:$0xff] }
 0x260   :  { %8685 = vmatprep.mubr.msk.f32.mxu1 %vm352_vm2, %v11237_v31 }
 0x313   :  { %v8629_v1 = vpop.f32.mrb[16].mxu0 }
 0x314   :  { %v9807_v3 = vadd.f32 %v8629_v1, %v14058_v2  ;;  %v1243_v6 = vpop.f32.mrb[17].mxu0 }
 0x315   :  { %v9808_v8 = vadd.f32 %v1243_v6, %v14059_v7 }
 0x316   :  { %v1339_v13 = vmul.f32 0.5, %v9807_v3  ;;  %v14071_v3 = vld [vmem:[#allocation16_spill] sm:$0xff] }
 0x317   :  { %v8632_v9 = vpop.f32.mrb[18].mxu0  ;;  %v1338_v21 = vmul.f32 0.5, %v9808_v8 }
 0x318   :  { %v9809_v17 = vadd.f32 %v8632_v9, %v14060_v15  ;;  %v1253_v19 = vpop.f32.mrb[19].mxu0  ;;  %10371 = vtanh.f32 %v1339_v13 }
 0x319   :  { %v9810_v25 = vadd.f32 %v1253_v19, %v14061_v23  ;;  %10373 = vtanh.f32 %v1338_v21 }
 0x31a   :  { %v1341_v27 = vmul.f32 0.5, %v9809_v17 }
 0x31b   :  { %v8635_v35 = vpop.f32.mrb[20].mxu0  ;;  %v1340_v43 = vmul.f32 0.5, %v9810_v25 }
 0x31c   :  { %v9811_v37 = vadd.f32 %v8635_v35, %v14062_v29  ;;  %v1263_v31 = vpop.f32.mrb[21].mxu0  ;;  %10375 = vtanh.f32 %v1341_v27 }
 0x31d   :  { %v9812_v41 = vadd.f32 %v1263_v31, %v14063_v39 }
 0x31e   :  { %v1355_v45 = vmul.f32 0.5, %v9811_v37 }
 0x31f   :  { %v1354_v47 = vmul.f32 0.5, %v9812_v41  ;;  %v8638_v49 = vpop.f32.mrb[22].mxu0 }
 0x320   :  { %10377 = vtanh.f32 %v1355_v45  ;;  %v9813_v53 = vadd.f32 %v8638_v49, %v14064_v51  ;;  %v1273_v55 = vpop.f32.mrb[23].mxu0 }
 0x321   :  { %10379 = vtanh.f32 %v1354_v47  ;;  %v9814_v59 = vadd.f32 %v1273_v55, %v14065_v57 }
 0x322   :  { %10381 = vtanh.f32 %v1340_v43  ;;  %v1357_v61 = vmul.f32 0.5, %v9813_v53  ;;  %v10372_v38 = vpop.eup %10371 }
 0x323   :  { %v1356_v18 = vmul.f32 0.5, %v9814_v59  ;;  %v8641_v24 = vpop.f32.mrb[24].mxu0  ;;  %v10374_v46 = vpop.eup %10373  ;;  %v1347_v14 = vadd.f32 1.0, %v10372_v38 }
 0x324   :  { %10383 = vtanh.f32 %v1357_v61  ;;  %v9815_v22 = vadd.f32 %v8641_v24, %v14066_v60  ;;  %v1283_v0 = vpop.f32.mrb[25].mxu0  ;;  %v1346_v36 = vadd.f32 1.0, %v10374_v46 }
 0x325   :  { %10385 = vtanh.f32 %v1356_v18  ;;  %v9816_v42 = vadd.f32 %v1283_v0, %v14067_v50  ;;  %v1351_v9 = vmul.f32 0.5, %v1347_v14 }
 0x326   :  { %10387 = vtanh.f32 %v9815_v22  ;;  %v10376_v30 = vpop.eup %10375  ;;  %v1350_v13 = vmul.f32 0.5, %v1346_v36 }
 0x327   :  { %10389 = vtanh.f32 %v9816_v42  ;;  %v8644_v54 = vpop.f32.mrb[26].mxu0  ;;  %v1349_v25 = vadd.f32 1.0, %v10376_v30 }
 0x328   :  { %v9817_v56 = vadd.f32 %v8644_v54, %v14068_v63  ;;  %v1293_v34 = vpop.f32.mrb[27].mxu0 }
 0x329   :  { %v9818_v10 = vadd.f32 %v1293_v34, %v14069_v52  ;;  %v1353_v42 = vmul.f32 0.5, %v1349_v25 }
 0x32a   :  { %v10378_v11 = vpop.eup %10377  ;;  %10391 = vtanh.f32 %v9817_v56 }
 0x32b   :  { %v10380_v32 = vpop.eup %10379  ;;  %v1363_v4 = vadd.f32 1.0, %v10378_v11  ;;  %10393 = vtanh.f32 %v9818_v10  ;;  %v8647_v48 = vpop.f32.mrb[28].mxu0 }
 0x32c   :  { %v10382_v20 = vpop.eup %10381  ;;  %v1362_v40 = vadd.f32 1.0, %v10380_v32  ;;  %v9819_v58 = vadd.f32 %v8647_v48, %v14070_v5  ;;  %v1303_v33 = vpop.f32.mrb[29].mxu0 }
 0x32d   :  { %v1367_v1 = vmul.f32 0.5, %v1363_v4  ;;  %v9820_v6 = vadd.f32 %v1303_v33, %v14071_v3  ;;  %v1348_v27 = vadd.f32 1.0, %v10382_v20 }
 0x32e   :  { %v10384_v8 = vpop.eup %10383  ;;  %v1366_v17 = vmul.f32 0.5, %v1362_v40  ;;  %v1375_v19 = vmul.f32 0.5, %v9819_v58 }
 0x32f   :  { %v10386_v21 = vpop.eup %10385  ;;  %v1365_v35 = vadd.f32 1.0, %v10384_v8  ;;  %v1374_v37 = vmul.f32 0.5, %v9820_v6  ;;  %v8650_v31 = vpop.f32.mrb[30].mxu0  ;;  %v1391_v43 = vmul.f32 %v1367_v1, %v11604_v62  ;;  %v1352_v54 = vmul.f32 0.5, %v1348_v27 }
 0x330   :  { %v10388_v41 = vpop.eup %10387  ;;  %v1364_v45 = vadd.f32 1.0, %v10386_v21  ;;  %10395 = vtanh.f32 %v1375_v19  ;;  %v9821_v47 = vadd.f32 %v8650_v31, %v14057_v28  ;;  %v1313_v49 = vpop.f32.mrb[31].mxu0  ;;  %v1390_v18 = vmul.f32 %v1366_v17, %v11606_v44 }
 0x331   :  { %v10390_v53 = vpop.eup %10389  ;;  %v1369_v55 = vmul.f32 0.5, %v1365_v35  ;;  %v1395_v59 = vmul.f32 %v10388_v41, %v1351_v9  ;;  %10397 = vtanh.f32 %v1374_v37  ;;  %v9822_v61 = vadd.f32 %v1313_v49, %v11497_v16  ;;  %v11730_v41 = vld [vmem:[%s13879_s1 + $0x88] sm:$0xff] }
 0x332   :  { %v1368_v24 = vmul.f32 0.5, %v1364_v45  ;;  %v1394_v22 = vmul.f32 %v10390_v53, %v1350_v13  ;;  %v1377_v0 = vmul.f32 0.5, %v9821_v47  ;;  %v11744_v45 = vld [vmem:[%s13879_s1 + $0x98] sm:$0xff]  ;;  %v11751_v47 = vld [vmem:[%s13879_s1 + $0xa0] sm:$0xff]  ;;  %v11758_v49 = vld [vmem:[%s13879_s1 + $0xa8] sm:$0xff] }
 0x333   :  { %v11709_v38 = vadd.f32 %v1395_v59, %v1391_v43  ;;  %v1376_v62 = vmul.f32 0.5, %v9822_v61  ;;  %v1393_v30 = vmul.f32 %v1369_v55, %v11612_v12  ;;  %v11737_v43 = vld [vmem:[%s13879_s1 + $0x90] sm:$0xff]  ;;  %v11772_v55 = vld [vmem:[%s13879_s1 + $0xb8] sm:$0xff]  ;;  %v11779_v59 = vld [vmem:[%s13879_s1 + $0xc0] sm:$0xff] }
 0x334   :  { %v10392_v46 = vpop.eup %10391  ;;  %v11711_v56 = vadd.f32 %v1394_v22, %v1390_v18  ;;  %10399 = vtanh.f32 %v1377_v0  ;;  %v1392_v44 = vmul.f32 %v1368_v24, %v11614_v26  ;;  %v11765_v53 = vld [vmem:[%s13879_s1 + $0xb0] sm:$0xff]  ;;  %v11786_v61 = vld [vmem:[%s13879_s1 + $0xc8] sm:$0xff]  ;;  %v11800_v24 = vld [vmem:[%s13879_s1 + $0xd8] sm:$0xff] }
 0x335   :  { %v10394_v34 = vpop.eup %10393  ;;  %10401 = vtanh.f32 %v11709_v38  ;;  %v1397_v10 = vmul.f32 %v10392_v46, %v1353_v42  ;;  %v11793_v18 = vld [vmem:[%s13879_s1 + $0xd0] sm:$0xff]  ;;  %v11807_v22 = vld [vmem:[%s13879_s1 + $0xe0] sm:$0xff]  ;;  %v11814_v0 = vld [vmem:[%s13879_s1 + $0xe8] sm:$0xff] }
 0x336   :  { %10403 = vtanh.f32 %v11711_v56  ;;  %v1396_v11 = vmul.f32 %v10394_v34, %v1352_v54  ;;  %v11821_v42 = vld [vmem:[%s13879_s1 + $0xf0] sm:$0xff]  ;;  %v11835_v46 = vld [vmem:[%s13879_s1] sm:$0xff]  ;;  %v11847_v34 = vld [vmem:[%s13879_s1 + $0x8] sm:$0xff] }
 0x337   :  { %v11717_v14 = vadd.f32 %v1397_v10, %v1393_v30  ;;  %10405 = vtanh.f32 %v1376_v62  ;;  %v11828_v62 = vld [vmem:[%s13879_s1 + $0xf8] sm:$0xff]  ;;  %v7403_v54 = vld [vmem:[%s13878_s0 + $0x10] sm:$0xf] }
 0x338   :  { %v11719_v36 = vadd.f32 %v1396_v11, %v1392_v44  ;;  %8709 = vmatprep.subr.msk.mxu0 %vm203_vm0, %v7403_v54  ;;  %v11854_v30 = vld [vmem:[%s13879_s1 + $0x10] sm:$0xff]  ;;  %v11861_v10 = vld [vmem:[%s13879_s1 + $0x18] sm:$0xff]  ;;  %v11868_v44 = vld [vmem:[%s13879_s1 + $0x20] sm:$0xff] }
 0x339   :  { %10407 = vtanh.f32 %v11717_v14  ;;  %8710 = vmatpush3.msk.msra.mxu0 %vm203_vm0, %v7403_v54  ;;  %v11875_v11 = vld [vmem:[%s13879_s1 + $0x28] sm:$0xff] }
 0x33a   :  { %v10396_v32 = vpop.eup %10395  ;;  %10409 = vtanh.f32 %v11719_v36  ;;  %8712 = vmatmul.mubr.msk.f32.vlgmr.msra.gmra.mrb[32].mxu0 %vm154_vm1, %v11847_v34 }
 0x33b   :  { %v10398_v4 = vpop.eup %10397  ;;  %v1383_v12 = vadd.f32 1.0, %v10396_v32  ;;  %8714 = vmatprep.mubr.msk.f32.mxu0 %vm154_vm1, %v11854_v30  ;;  %v11882_v32 = vld [vmem:[%s13879_s1 + $0x30] sm:$0xff] }
 0x33c   :  { %v1382_v48 = vadd.f32 1.0, %v10398_v4  ;;  %v11889_v4 = vld [vmem:[%s13879_s1 + $0x38] sm:$0xff] }
 0x33d   :  { %v1387_v20 = vmul.f32 0.5, %v1383_v12  ;;  %v11896_v12 = vld [vmem:[%s13879_s1 + $0x40] sm:$0xff] }
 0x33e   :  { %v10400_v40 = vpop.eup %10399  ;;  %v1386_v58 = vmul.f32 0.5, %v1382_v48  ;;  %8715 = vmatmul.mubr.msk.f32.gmra.mrb[34].mxu0 %vm154_vm1, %v11861_v10  ;;  %v11903_v48 = vld [vmem:[%s13879_s1 + $0x48] sm:$0xff] }
 0x33f   :  { %v10402_v26 = vpop.eup %10401  ;;  %v1385_v33 = vadd.f32 1.0, %v10400_v40  ;;  %8717 = vmatprep.mubr.msk.f32.mxu0 %vm154_vm1, %v11868_v44  ;;  %v11917_v40 = vld [vmem:[%s13879_s1 + $0x58] sm:$0xff] }
 0x340   :  { %v10404_v1 = vpop.eup %10403  ;;  %v1407_v6 = vmul.f32 %v10402_v26, %v1387_v20  ;;  %v11910_v20 = vld [vmem:[%s13879_s1 + $0x50] sm:$0xff]  ;;  %v11931_v26 = vld [vmem:[%s13879_s1 + $0x68] sm:$0xff] }
 0x341   :  { %v10406_v8 = vpop.eup %10405  ;;  %v1389_v9 = vmul.f32 0.5, %v1385_v33  ;;  %v1406_v13 = vmul.f32 %v10404_v1, %v1386_v58  ;;  %v11924_v58 = vld [vmem:[%s13879_s1 + $0x60] sm:$0xff]  ;;  %v11938_v33 = vld [vmem:[%s13879_s1 + $0x70] sm:$0xff]  ;;  %v11945_v1 = vld [vmem:[%s13879_s1 + $0x78] sm:$0xff] }
 0x342   :  { %v1384_v17 = vadd.f32 1.0, %v10406_v8  ;;  %1412 = vst.msk [vmem:[#allocation2 + $0x48] sm:$0xff] %vm634_vm3, %v1407_v6  ;;  %8718 = vmatmul.mubr.msk.f32.gmra.mrb[36].mxu0 %vm154_vm1, %v11875_v11  ;;  %14072 = vst [vmem:[#allocation17_spill] sm:$0xff] %v11938_v33 }
 0x343   :  { %v10408_v19 = vpop.eup %10407  ;;  %1411 = vst.msk [vmem:[#allocation2 + $0x40] sm:$0xff] %vm634_vm3, %v1406_v13  ;;  %v9551_v21 = vpack.c.bf16 %v1407_v6, %v1406_v13  ;;  %8720 = vmatprep.mubr.msk.f32.mxu0 %vm154_vm1, %v11882_v32  ;;  %14073 = vst [vmem:[#allocation15_spill] sm:$0xff] %v11945_v1  ;;  %v11952_v6 = vld [vmem:[%s13879_s1 + $0x80] sm:$0xff] }
 0x344   :  { %v10410_v25 = vpop.eup %10409  ;;  %v1388_v27 = vmul.f32 0.5, %v1384_v17  ;;  %v1409_v35 = vmul.f32 %v10408_v19, %v1389_v9  ;;  %14074 = vst [vmem:[#allocation18_spill] sm:$0xff] %v11952_v6 }
 0x345   :  { %9552 = vmatprep.subr.bf16.mxu1 %v9551_v21 }
 0x346   :  { %9554 = vmatpush3.bf16.msra.mxu1 %v9551_v21  ;;  %v1408_v37 = vmul.f32 %v10410_v25, %v1388_v27  ;;  %1414 = vst.msk [vmem:[#allocation2 + $0x58] sm:$0xff] %vm634_vm3, %v1409_v35  ;;  %8721 = vmatmul.mubr.msk.f32.gmra.mrb[38].mxu0 %vm154_vm1, %v11889_v4 }
 0x347   :  { %8723 = vmatprep.mubr.msk.f32.mxu0 %vm154_vm1, %v11896_v12 }
 0x348   :  { %1413 = vst.msk [vmem:[#allocation2 + $0x50] sm:$0xff] %vm634_vm3, %v1408_v37  ;;  %v9555_v31 = vpack.c.bf16 %v1409_v35, %v1408_v37 }
 0x34a   :  { %9556 = vmatprep.subr.bf16.mxu1 %v9555_v31  ;;  %8724 = vmatmul.mubr.msk.f32.gmra.mrb[40].mxu0 %vm154_vm1, %v11903_v48 }
 0x34b   :  { %9558 = vmatpush3.bf16.msra.mxu1 %v9555_v31  ;;  %8726 = vmatprep.mubr.msk.f32.mxu0 %vm154_vm1, %v11910_v20 }
 0x34e   :  { %8686 = vmatmul.mubr.msk.f32.vlgmr.msra.gmra.mrb[16].mxu1 %vm352_vm2, %v11730_v41  ;;  %8727 = vmatmul.mubr.msk.f32.gmra.mrb[42].mxu0 %vm154_vm1, %v11917_v40 }
 0x34f   :  { %8688 = vmatprep.mubr.msk.f32.mxu1 %vm352_vm2, %v11737_v43  ;;  %8729 = vmatprep.mubr.msk.f32.mxu0 %vm154_vm1, %v11924_v58 }
 0x352   :  { %8689 = vmatmul.mubr.msk.f32.gmra.mrb[18].mxu1 %vm352_vm2, %v11744_v45  ;;  %8730 = vmatmul.mubr.msk.f32.gmra.mrb[44].mxu0 %vm154_vm1, %v11931_v26 }
 0x353   :  { %8691 = vmatprep.mubr.msk.f32.mxu1 %vm352_vm2, %v11751_v47  ;;  %8732 = vmatprep.mubr.msk.f32.mxu0 %vm154_vm1, %v11938_v33 }
 0x356   :  { %8692 = vmatmul.mubr.msk.f32.gmra.mrb[20].mxu1 %vm352_vm2, %v11758_v49  ;;  %8733 = vmatmul.mubr.msk.f32.gmra.mrb[46].mxu0 %vm154_vm1, %v11945_v1 }
 0x357   :  { %8694 = vmatprep.mubr.msk.f32.mxu1 %vm352_vm2, %v11765_v53  ;;  %8743 = vmatprep.mubr.msk.f32.mxu0 %vm352_vm2, %v11952_v6 }
 0x35a   :  { %8695 = vmatmul.mubr.msk.f32.gmra.mrb[22].mxu1 %vm352_vm2, %v11772_v55 }
 0x35b   :  { %8697 = vmatprep.mubr.msk.f32.mxu1 %vm352_vm2, %v11779_v59 }
 0x35e   :  { %8698 = vmatmul.mubr.msk.f32.gmra.mrb[24].mxu1 %vm352_vm2, %v11786_v61 }
 0x35f   :  { %8700 = vmatprep.mubr.msk.f32.mxu1 %vm352_vm2, %v11793_v18 }
 0x362   :  { %8701 = vmatmul.mubr.msk.f32.gmra.mrb[26].mxu1 %vm352_vm2, %v11800_v24 }
 0x363   :  { %8703 = vmatprep.mubr.msk.f32.mxu1 %vm352_vm2, %v11807_v22 }
 0x366   :  { %8704 = vmatmul.mubr.msk.f32.gmra.mrb[28].mxu1 %vm352_vm2, %v11814_v0 }
 0x367   :  { %8706 = vmatprep.mubr.msk.f32.mxu1 %vm352_vm2, %v11821_v42 }
 0x36a   :  { %8707 = vmatmul.mubr.msk.f32.gmra.mrb[30].mxu1 %vm352_vm2, %v11828_v62 }
 0x36b   :  { %8769 = vmatprep.mubr.msk.f32.mxu1 %vm154_vm1, %v11835_v46 }
 0x421   :  { %v8687_v8 = vpop.f32.mrb[16].mxu1 }
 0x422   :  { %v9823_v9 = vadd.f32 %v8687_v8, %v14058_v2  ;;  %v1631_v13 = vpop.f32.mrb[17].mxu1 }
 0x423   :  { %v9824_v17 = vadd.f32 %v1631_v13, %v14059_v7 }
 0x424   :  { %v1727_v21 = vmul.f32 0.5, %v9823_v9 }
 0x425   :  { %v8690_v19 = vpop.f32.mrb[18].mxu1  ;;  %v1726_v35 = vmul.f32 0.5, %v9824_v17 }
 0x426   :  { %v9825_v25 = vadd.f32 %v8690_v19, %v14060_v15  ;;  %v1641_v27 = vpop.f32.mrb[19].mxu1  ;;  %10411 = vtanh.f32 %v1727_v21 }
 0x427   :  { %v9826_v37 = vadd.f32 %v1641_v27, %v14061_v23  ;;  %10413 = vtanh.f32 %v1726_v35 }
 0x428   :  { %v1729_v31 = vmul.f32 0.5, %v9825_v25 }
 0x429   :  { %v8693_v54 = vpop.f32.mrb[20].mxu1  ;;  %v1728_v2 = vmul.f32 0.5, %v9826_v37 }
 0x42a   :  { %v9827_v1 = vadd.f32 %v8693_v54, %v14062_v29  ;;  %v1651_v6 = vpop.f32.mrb[21].mxu1  ;;  %10415 = vtanh.f32 %v1729_v31 }
 0x42b   :  { %v9828_v8 = vadd.f32 %v1651_v6, %v14063_v39 }
 0x42c   :  { %v1743_v33 = vmul.f32 0.5, %v9827_v1 }
 0x42d   :  { %v1742_v13 = vmul.f32 0.5, %v9828_v8  ;;  %v8696_v9 = vpop.f32.mrb[22].mxu1 }
 0x42e   :  { %10417 = vtanh.f32 %v1743_v33  ;;  %v9829_v19 = vadd.f32 %v8696_v9, %v14064_v51  ;;  %v1661_v17 = vpop.f32.mrb[23].mxu1 }
 0x42f   :  { %10419 = vtanh.f32 %v1742_v13  ;;  %v9830_v25 = vadd.f32 %v1661_v17, %v14065_v57 }
 0x430   :  { %10421 = vtanh.f32 %v1728_v2  ;;  %v1745_v21 = vmul.f32 0.5, %v9829_v19  ;;  %v10412_v37 = vpop.eup %10411 }
 0x431   :  { %v1744_v27 = vmul.f32 0.5, %v9830_v25  ;;  %v8699_v54 = vpop.f32.mrb[24].mxu1  ;;  %v10414_v33 = vpop.eup %10413  ;;  %v1735_v17 = vadd.f32 1.0, %v10412_v37 }
 0x432   :  { %10423 = vtanh.f32 %v1745_v21  ;;  %v9831_v35 = vadd.f32 %v8699_v54, %v14066_v60  ;;  %v1671_v6 = vpop.f32.mrb[25].mxu1  ;;  %v1734_v25 = vadd.f32 1.0, %v10414_v33 }
 0x433   :  { %10425 = vtanh.f32 %v1744_v27  ;;  %v9832_v1 = vadd.f32 %v1671_v6, %v14067_v50  ;;  %v1739_v57 = vmul.f32 0.5, %v1735_v17 }
 0x434   :  { %10427 = vtanh.f32 %v9831_v35  ;;  %v10416_v9 = vpop.eup %10415  ;;  %v1738_v51 = vmul.f32 0.5, %v1734_v25 }
 0x435   :  { %10429 = vtanh.f32 %v9832_v1  ;;  %v8702_v31 = vpop.f32.mrb[26].mxu1  ;;  %v1737_v33 = vadd.f32 1.0, %v10416_v9 }
 0x436   :  { %v9833_v8 = vadd.f32 %v8702_v31, %v14068_v63  ;;  %v1681_v13 = vpop.f32.mrb[27].mxu1 }
 0x437   :  { %v9834_v2 = vadd.f32 %v1681_v13, %v14069_v52 }
 0x438   :  { %v10418_v19 = vpop.eup %10417  ;;  %10431 = vtanh.f32 %v9833_v8 }
 0x439   :  { %v10420_v21 = vpop.eup %10419  ;;  %v1751_v54 = vadd.f32 1.0, %v10418_v19  ;;  %10433 = vtanh.f32 %v9834_v2  ;;  %v8705_v27 = vpop.f32.mrb[28].mxu1 }
 0x43a   :  { %v10422_v6 = vpop.eup %10421  ;;  %v1750_v50 = vadd.f32 1.0, %v10420_v21  ;;  %v9835_v35 = vadd.f32 %v8705_v27, %v14070_v5  ;;  %v1691_v1 = vpop.f32.mrb[29].mxu1 }
 0x43b   :  { %v1755_v60 = vmul.f32 0.5, %v1751_v54  ;;  %v9836_v31 = vadd.f32 %v1691_v1, %v14071_v3  ;;  %v1736_v8 = vadd.f32 1.0, %v10422_v6 }
 0x43c   :  { %v10424_v63 = vpop.eup %10423  ;;  %v1754_v13 = vmul.f32 0.5, %v1750_v50  ;;  %v1763_v52 = vmul.f32 0.5, %v9835_v35  ;;  %v1741_v35 = vmul.f32 0.5, %v1737_v33 }
 0x43d   :  { %v10426_v37 = vpop.eup %10425  ;;  %v1753_v39 = vadd.f32 1.0, %v10424_v63  ;;  %v1762_v19 = vmul.f32 0.5, %v9836_v31  ;;  %v8708_v2 = vpop.f32.mrb[30].mxu1  ;;  %v1779_v21 = vmul.f32 %v1755_v60, %v11709_v38 }
 0x43e   :  { %v10428_v29 = vpop.eup %10427  ;;  %v1752_v23 = vadd.f32 1.0, %v10426_v37  ;;  %10435 = vtanh.f32 %v1763_v52  ;;  %v9837_v54 = vadd.f32 %v8708_v2, %v14057_v28  ;;  %v1701_v27 = vpop.f32.mrb[31].mxu1  ;;  %v1778_v9 = vmul.f32 %v1754_v13, %v11711_v56 }
 0x43f   :  { %v10430_v1 = vpop.eup %10429  ;;  %v1757_v3 = vmul.f32 0.5, %v1753_v39  ;;  %v1783_v17 = vmul.f32 %v10428_v29, %v1739_v57  ;;  %10437 = vtanh.f32 %v1762_v19  ;;  %v9838_v50 = vadd.f32 %v1701_v27, %v11497_v16 }
 0x440   :  { %v1756_v25 = vmul.f32 0.5, %v1752_v23  ;;  %v1782_v63 = vmul.f32 %v10430_v1, %v1738_v51  ;;  %v1765_v6 = vmul.f32 0.5, %v9837_v54  ;;  %v1740_v52 = vmul.f32 0.5, %v1736_v8 }
 0x441   :  { %v11974_v31 = vadd.f32 %v1783_v17, %v1779_v21  ;;  %v1764_v60 = vmul.f32 0.5, %v9838_v50  ;;  %v1781_v29 = vmul.f32 %v1757_v3, %v11717_v14 }
 0x442   :  { %v10432_v38 = vpop.eup %10431  ;;  %v11976_v37 = vadd.f32 %v1782_v63, %v1778_v9  ;;  %10439 = vtanh.f32 %v1765_v6  ;;  %v1780_v57 = vmul.f32 %v1756_v25, %v11719_v36 }
 0x443   :  { %v10434_v2 = vpop.eup %10433  ;;  %10441 = vtanh.f32 %v11974_v31  ;;  %v1785_v39 = vmul.f32 %v10432_v38, %v1741_v35 }
 0x444   :  { %10443 = vtanh.f32 %v11976_v37  ;;  %v1784_v23 = vmul.f32 %v10434_v2, %v1740_v52 }
 0x445   :  { %v11982_v51 = vadd.f32 %v1785_v39, %v1781_v29  ;;  %10445 = vtanh.f32 %v1764_v60  ;;  %v7437_v29 = vld [vmem:[%s13878_s0 + $0x14] sm:$0xf] }
 0x446   :  { %v11984_v56 = vadd.f32 %v1784_v23, %v1780_v57  ;;  %8767 = vmatprep.subr.msk.mxu1 %vm203_vm0, %v7437_v29  ;;  %v14075_v39 = vld [vmem:[#allocation17_spill] sm:$0xff]  ;;  %v14076_v57 = vld [vmem:[#allocation15_spill] sm:$0xff]  ;;  %v14077_v23 = vld [vmem:[#allocation18_spill] sm:$0xff] }
 0x447   :  { %10447 = vtanh.f32 %v11982_v51  ;;  %8768 = vmatpush3.msk.msra.mxu1 %vm203_vm0, %v7437_v29 }
 0x448   :  { %v10436_v13 = vpop.eup %10435  ;;  %10449 = vtanh.f32 %v11984_v56  ;;  %8770 = vmatmul.mubr.msk.f32.vlgmr.msra.gmra.mrb[32].mxu1 %vm154_vm1, %v11847_v34 }
 0x449   :  { %v10438_v33 = vpop.eup %10437  ;;  %v1771_v3 = vadd.f32 1.0, %v10436_v13  ;;  %8772 = vmatprep.mubr.msk.f32.mxu1 %vm154_vm1, %v11854_v30 }
 0x44a   :  { %v1770_v14 = vadd.f32 1.0, %v10438_v33  ;;  %v14078_v33 = vld [vmem:[#allocation6_spill] sm:$0xff] }
 0x44b   :  { %v1775_v8 = vmul.f32 0.5, %v1771_v3 }
 0x44c   :  { %v10440_v19 = vpop.eup %10439  ;;  %v1774_v21 = vmul.f32 0.5, %v1770_v14  ;;  %8773 = vmatmul.mubr.msk.f32.gmra.mrb[34].mxu1 %vm154_vm1, %v11861_v10 }
 0x44d   :  { %v10442_v36 = vpop.eup %10441  ;;  %v1773_v54 = vadd.f32 1.0, %v10440_v19  ;;  %8775 = vmatprep.mubr.msk.f32.mxu1 %vm154_vm1, %v11868_v44 }
 0x44e   :  { %v10444_v27 = vpop.eup %10443  ;;  %v1795_v1 = vmul.f32 %v10442_v36, %v1775_v8 }
 0x44f   :  { %v10446_v17 = vpop.eup %10445  ;;  %v1777_v50 = vmul.f32 0.5, %v1773_v54  ;;  %v1794_v9 = vmul.f32 %v10444_v27, %v1774_v21 }
 0x450   :  { %v1772_v25 = vadd.f32 1.0, %v10446_v17  ;;  %1800 = vst.msk [vmem:[#allocation2 + $0x68] sm:$0xff] %vm634_vm3, %v1795_v1  ;;  %8776 = vmatmul.mubr.msk.f32.gmra.mrb[36].mxu1 %vm154_vm1, %v11875_v11 }
 0x451   :  { %v10448_v63 = vpop.eup %10447  ;;  %1799 = vst.msk [vmem:[#allocation2 + $0x60] sm:$0xff] %vm634_vm3, %v1794_v9  ;;  %v9559_v6 = vpack.c.bf16 %v1795_v1, %v1794_v9  ;;  %8778 = vmatprep.mubr.msk.f32.mxu1 %vm154_vm1, %v11882_v32  ;;  %v14079_v1 = vld [vmem:[#allocation8_spill] sm:$0xff] }
 0x452   :  { %v10450_v35 = vpop.eup %10449  ;;  %v1776_v60 = vmul.f32 0.5, %v1772_v25  ;;  %v1797_v38 = vmul.f32 %v10448_v63, %v1777_v50  ;;  %v14080_v25 = vld [vmem:[#allocation5_spill] sm:$0xff] }
 0x453   :  { %9560 = vmatprep.subr.bf16.mxu0 %v9559_v6 }
 0x454   :  { %9562 = vmatpush3.bf16.msra.mxu0 %v9559_v6  ;;  %v1796_v52 = vmul.f32 %v10450_v35, %v1776_v60  ;;  %1802 = vst.msk [vmem:[#allocation2 + $0x78] sm:$0xff] %vm634_vm3, %v1797_v38  ;;  %8779 = vmatmul.mubr.msk.f32.gmra.mrb[38].mxu1 %vm154_vm1, %v11889_v4  ;;  %v14081_v35 = vld [vmem:[#allocation3_spill] sm:$0xff] }
 0x455   :  { %8781 = vmatprep.mubr.msk.f32.mxu1 %vm154_vm1, %v11896_v12 }
 0x456   :  { %1801 = vst.msk [vmem:[#allocation2 + $0x70] sm:$0xff] %vm634_vm3, %v1796_v52  ;;  %v9563_v2 = vpack.c.bf16 %v1797_v38, %v1796_v52 }
 0x458   :  { %9564 = vmatprep.subr.bf16.mxu0 %v9563_v2  ;;  %8782 = vmatmul.mubr.msk.f32.gmra.mrb[40].mxu1 %vm154_vm1, %v11903_v48 }
 0x459   :  { %9566 = vmatpush3.bf16.msra.mxu0 %v9563_v2  ;;  %8784 = vmatprep.mubr.msk.f32.mxu1 %vm154_vm1, %v11910_v20 }
 0x45c   :  { %8744 = vmatmul.mubr.msk.f32.vlgmr.msra.gmra.mrb[32].mxu0 %vm352_vm2, %v11730_v41  ;;  %8785 = vmatmul.mubr.msk.f32.gmra.mrb[42].mxu1 %vm154_vm1, %v11917_v40 }
 0x45d   :  { %8746 = vmatprep.mubr.msk.f32.mxu0 %vm352_vm2, %v11737_v43  ;;  %8787 = vmatprep.mubr.msk.f32.mxu1 %vm154_vm1, %v11924_v58 }
 0x460   :  { %8747 = vmatmul.mubr.msk.f32.gmra.mrb[34].mxu0 %vm352_vm2, %v11744_v45  ;;  %8788 = vmatmul.mubr.msk.f32.gmra.mrb[44].mxu1 %vm154_vm1, %v11931_v26 }
 0x461   :  { %8749 = vmatprep.mubr.msk.f32.mxu0 %vm352_vm2, %v11751_v47  ;;  %8790 = vmatprep.mubr.msk.f32.mxu1 %vm154_vm1, %v14075_v39 }
 0x464   :  { %8750 = vmatmul.mubr.msk.f32.gmra.mrb[36].mxu0 %vm352_vm2, %v11758_v49  ;;  %8791 = vmatmul.mubr.msk.f32.gmra.mrb[46].mxu1 %vm154_vm1, %v14076_v57 }
 0x465   :  { %8752 = vmatprep.mubr.msk.f32.mxu0 %vm352_vm2, %v11765_v53  ;;  %8801 = vmatprep.mubr.msk.f32.mxu1 %vm352_vm2, %v14077_v23 }
 0x468   :  { %8753 = vmatmul.mubr.msk.f32.gmra.mrb[38].mxu0 %vm352_vm2, %v11772_v55 }
 0x469   :  { %8755 = vmatprep.mubr.msk.f32.mxu0 %vm352_vm2, %v11779_v59 }
 0x46c   :  { %8756 = vmatmul.mubr.msk.f32.gmra.mrb[40].mxu0 %vm352_vm2, %v11786_v61 }
 0x46d   :  { %8758 = vmatprep.mubr.msk.f32.mxu0 %vm352_vm2, %v11793_v18 }
 0x470   :  { %8759 = vmatmul.mubr.msk.f32.gmra.mrb[42].mxu0 %vm352_vm2, %v11800_v24 }
 0x471   :  { %8761 = vmatprep.mubr.msk.f32.mxu0 %vm352_vm2, %v11807_v22 }
 0x474   :  { %8762 = vmatmul.mubr.msk.f32.gmra.mrb[44].mxu0 %vm352_vm2, %v11814_v0 }
 0x475   :  { %8764 = vmatprep.mubr.msk.f32.mxu0 %vm352_vm2, %v11821_v42 }
 0x478   :  { %8765 = vmatmul.mubr.msk.f32.gmra.mrb[46].mxu0 %vm352_vm2, %v11828_v62 }
 0x479   :  { %8827 = vmatprep.mubr.msk.f32.mxu0 %vm154_vm1, %v11835_v46 }
 0x52f   :  { %v8745_v13 = vpop.f32.mrb[32].mxu0 }
 0x530   :  { %v9839_v3 = vadd.f32 %v8745_v13, %v14078_v33  ;;  %v2019_v14 = vpop.f32.mrb[33].mxu0  ;;  %v14082_v13 = vld [vmem:[#allocation9_spill] sm:$0xff] }
 0x531   :  { %v9840_v8 = vadd.f32 %v2019_v14, %v14059_v7 }
 0x532   :  { %v2115_v21 = vmul.f32 0.5, %v9839_v3 }
 0x533   :  { %v8748_v19 = vpop.f32.mrb[34].mxu0  ;;  %v2114_v27 = vmul.f32 0.5, %v9840_v8  ;;  %v14083_v8 = vld [vmem:[#allocation10_spill] sm:$0xff] }
 0x534   :  { %v9841_v36 = vadd.f32 %v8748_v19, %v14060_v15  ;;  %v2029_v54 = vpop.f32.mrb[35].mxu0  ;;  %10451 = vtanh.f32 %v2115_v21 }
 0x535   :  { %v9842_v17 = vadd.f32 %v2029_v54, %v14079_v1  ;;  %10453 = vtanh.f32 %v2114_v27  ;;  %v14084_v27 = vld [vmem:[#allocation11_spill] sm:$0xff] }
 0x536   :  { %v2117_v50 = vmul.f32 0.5, %v9841_v36 }
 0x537   :  { %v8751_v9 = vpop.f32.mrb[36].mxu0  ;;  %v2116_v38 = vmul.f32 0.5, %v9842_v17  ;;  %v14085_v17 = vld [vmem:[#allocation12_spill] sm:$0xff] }
 0x538   :  { %v9843_v63 = vadd.f32 %v8751_v9, %v14080_v25  ;;  %v2039_v6 = vpop.f32.mrb[37].mxu0  ;;  %10455 = vtanh.f32 %v2117_v50  ;;  %v14088_v25 = vld [vmem:[#allocation16_spill] sm:$0xff] }
 0x539   :  { %v9844_v60 = vadd.f32 %v2039_v6, %v14081_v35 }
 0x53a   :  { %v2131_v52 = vmul.f32 0.5, %v9843_v63 }
 0x53b   :  { %v2130_v2 = vmul.f32 0.5, %v9844_v60  ;;  %v8754_v29 = vpop.f32.mrb[38].mxu0 }
 0x53c   :  { %10457 = vtanh.f32 %v2131_v52  ;;  %v9845_v3 = vadd.f32 %v8754_v29, %v14082_v13  ;;  %v2049_v14 = vpop.f32.mrb[39].mxu0  ;;  %v14086_v29 = vld [vmem:[#allocation13_spill] sm:$0xff] }
 0x53d   :  { %10459 = vtanh.f32 %v2130_v2  ;;  %v9846_v19 = vadd.f32 %v2049_v14, %v14083_v8 }
 0x53e   :  { %10461 = vtanh.f32 %v2116_v38  ;;  %v2133_v21 = vmul.f32 0.5, %v9845_v3  ;;  %v10452_v63 = vpop.eup %10451  ;;  %v14087_v38 = vld [vmem:[#allocation14_spill] sm:$0xff] }
 0x53f   :  { %v2132_v36 = vmul.f32 0.5, %v9846_v19  ;;  %v8757_v54 = vpop.f32.mrb[40].mxu0  ;;  %v10454_v60 = vpop.eup %10453  ;;  %v2123_v8 = vadd.f32 1.0, %v10452_v63 }
 0x540   :  { %10463 = vtanh.f32 %v2133_v21  ;;  %v9847_v9 = vadd.f32 %v8757_v54, %v14084_v27  ;;  %v2059_v6 = vpop.f32.mrb[41].mxu0  ;;  %v2122_v21 = vadd.f32 1.0, %v10454_v60 }
 0x541   :  { %10465 = vtanh.f32 %v2132_v36  ;;  %v9848_v50 = vadd.f32 %v2059_v6, %v14085_v17  ;;  %v2127_v1 = vmul.f32 0.5, %v2123_v8 }
 0x542   :  { %10467 = vtanh.f32 %v9847_v9  ;;  %v10456_v14 = vpop.eup %10455  ;;  %v2126_v15 = vmul.f32 0.5, %v2122_v21 }
 0x543   :  { %10469 = vtanh.f32 %v9848_v50  ;;  %v8760_v52 = vpop.f32.mrb[42].mxu0  ;;  %v2125_v60 = vadd.f32 1.0, %v10456_v14 }
 0x544   :  { %v9849_v2 = vadd.f32 %v8760_v52, %v14086_v29  ;;  %v2069_v13 = vpop.f32.mrb[43].mxu0 }
 0x545   :  { %v9850_v3 = vadd.f32 %v2069_v13, %v14087_v38 }
 0x546   :  { %v10458_v19 = vpop.eup %10457  ;;  %10471 = vtanh.f32 %v9849_v2 }
 0x547   :  { %v10460_v54 = vpop.eup %10459  ;;  %v2139_v27 = vadd.f32 1.0, %v10458_v19  ;;  %10473 = vtanh.f32 %v9850_v3  ;;  %v8763_v36 = vpop.f32.mrb[44].mxu0 }
 0x548   :  { %v10462_v6 = vpop.eup %10461  ;;  %v2138_v17 = vadd.f32 1.0, %v10460_v54  ;;  %v9851_v9 = vadd.f32 %v8763_v36, %v14070_v5  ;;  %v2079_v50 = vpop.f32.mrb[45].mxu0 }
 0x549   :  { %v2143_v35 = vmul.f32 0.5, %v2139_v27  ;;  %v9852_v52 = vadd.f32 %v2079_v50, %v14088_v25  ;;  %v2124_v2 = vadd.f32 1.0, %v10462_v6 }
 0x54a   :  { %v10464_v29 = vpop.eup %10463  ;;  %v2142_v13 = vmul.f32 0.5, %v2138_v17  ;;  %v2151_v38 = vmul.f32 0.5, %v9851_v9  ;;  %v2129_v9 = vmul.f32 0.5, %v2125_v60 }
 0x54b   :  { %v10466_v63 = vpop.eup %10465  ;;  %v2141_v7 = vadd.f32 1.0, %v10464_v29  ;;  %v2150_v19 = vmul.f32 0.5, %v9852_v52  ;;  %v8766_v3 = vpop.f32.mrb[46].mxu0  ;;  %v2167_v54 = vmul.f32 %v2143_v35, %v11974_v31 }
 0x54c   :  { %v10468_v33 = vpop.eup %10467  ;;  %v2140_v23 = vadd.f32 1.0, %v10466_v63  ;;  %10475 = vtanh.f32 %v2151_v38  ;;  %v9853_v27 = vadd.f32 %v8766_v3, %v14057_v28  ;;  %v2089_v36 = vpop.f32.mrb[47].mxu0  ;;  %v2166_v14 = vmul.f32 %v2142_v13, %v11976_v37 }
 0x54d   :  { %v10470_v50 = vpop.eup %10469  ;;  %v2145_v25 = vmul.f32 0.5, %v2141_v7  ;;  %v2171_v8 = vmul.f32 %v10468_v33, %v2127_v1  ;;  %10477 = vtanh.f32 %v2150_v19  ;;  %v9854_v17 = vadd.f32 %v2089_v36, %v11497_v16 }
 0x54e   :  { %v2144_v21 = vmul.f32 0.5, %v2140_v23  ;;  %v2170_v29 = vmul.f32 %v10470_v50, %v2126_v15  ;;  %v2153_v6 = vmul.f32 0.5, %v9853_v27  ;;  %v2128_v38 = vmul.f32 0.5, %v2124_v2 }
 0x54f   :  { %v12079_v52 = vadd.f32 %v2171_v8, %v2167_v54  ;;  %v2152_v31 = vmul.f32 0.5, %v9854_v17  ;;  %v2169_v7 = vmul.f32 %v2145_v25, %v11982_v51 }
 0x550   :  { %v10472_v35 = vpop.eup %10471  ;;  %v12081_v63 = vadd.f32 %v2170_v29, %v2166_v14  ;;  %10479 = vtanh.f32 %v2153_v6  ;;  %v2168_v37 = vmul.f32 %v2144_v21, %v11984_v56 }
 0x551   :  { %v10474_v3 = vpop.eup %10473  ;;  %10481 = vtanh.f32 %v12079_v52  ;;  %v2173_v33 = vmul.f32 %v10472_v35, %v2129_v9 }
 0x552   :  { %10483 = vtanh.f32 %v12081_v63  ;;  %v2172_v15 = vmul.f32 %v10474_v3, %v2128_v38 }
 0x553   :  { %v12087_v23 = vadd.f32 %v2173_v33, %v2169_v7  ;;  %10485 = vtanh.f32 %v2152_v31 }
 0x554   :  { %v12089_v1 = vadd.f32 %v2172_v15, %v2168_v37 }
 0x555   :  { %10487 = vtanh.f32 %v12087_v23 }
 0x556   :  { %v10476_v13 = vpop.eup %10475  ;;  %10489 = vtanh.f32 %v12089_v1 }
 0x557   :  { %v10478_v60 = vpop.eup %10477  ;;  %v2159_v51 = vadd.f32 1.0, %v10476_v13  ;;  %v14098_v13 = vld [vmem:[#allocation11_spill] sm:$0xff] }
 0x558   :  { %v2158_v25 = vadd.f32 1.0, %v10478_v60 }
 0x559   :  { %v2163_v2 = vmul.f32 0.5, %v2159_v51 }
 0x55a   :  { %v10480_v19 = vpop.eup %10479  ;;  %v2162_v54 = vmul.f32 0.5, %v2158_v25  ;;  %v14099_v25 = vld [vmem:[#allocation12_spill] sm:$0xff] }
 0x55b   :  { %v10482_v56 = vpop.eup %10481  ;;  %v2161_v27 = vadd.f32 1.0, %v10480_v19 }
 0x55c   :  { %v10484_v36 = vpop.eup %10483  ;;  %v2183_v50 = vmul.f32 %v10482_v56, %v2163_v2 }
 0x55d   :  { %v10486_v8 = vpop.eup %10485  ;;  %v2165_v17 = vmul.f32 0.5, %v2161_v27  ;;  %v2182_v14 = vmul.f32 %v10484_v36, %v2162_v54  ;;  %v14100_v27 = vld [vmem:[#allocation13_spill] sm:$0xff] }
 0x55e   :  { %v2160_v21 = vadd.f32 1.0, %v10486_v8  ;;  %2188 = vst.msk [vmem:[#allocation2 + $0x88] sm:$0xff] %vm634_vm3, %v2183_v50 }
 0x55f   :  { %v10488_v29 = vpop.eup %10487  ;;  %2187 = vst.msk [vmem:[#allocation2 + $0x80] sm:$0xff] %vm634_vm3, %v2182_v14  ;;  %v9567_v6 = vpack.c.bf16 %v2183_v50, %v2182_v14 }
 0x560   :  { %v10490_v9 = vpop.eup %10489  ;;  %v2164_v31 = vmul.f32 0.5, %v2160_v21  ;;  %v2185_v35 = vmul.f32 %v10488_v29, %v2165_v17  ;;  %v14101_v17 = vld [vmem:[#allocation14_spill] sm:$0xff] }
 0x561   :  { %9568 = vmatprep.subr.bf16.mxu1 %v9567_v6 }
 0x562   :  { %9570 = vmatpush3.bf16.msra.mxu1 %v9567_v6  ;;  %v2184_v38 = vmul.f32 %v10490_v9, %v2164_v31  ;;  %2190 = vst.msk [vmem:[#allocation2 + $0x98] sm:$0xff] %vm634_vm3, %v2185_v35 }
 0x564   :  { %2189 = vst.msk [vmem:[#allocation2 + $0x90] sm:$0xff] %vm634_vm3, %v2184_v38  ;;  %v9571_v3 = vpack.c.bf16 %v2185_v35, %v2184_v38 }
 0x566   :  { %9572 = vmatprep.subr.bf16.mxu1 %v9571_v3 }
 0x567   :  { %9574 = vmatpush3.bf16.msra.mxu1 %v9571_v3 }
 0x56a   :  { %8802 = vmatmul.mubr.msk.f32.vlgmr.msra.gmra.mrb[32].mxu1 %vm352_vm2, %v11730_v41  ;;  %v7471_v41 = vld [vmem:[%s13878_s0 + $0x18] sm:$0xf] }
 0x56b   :  { %8804 = vmatprep.mubr.msk.f32.mxu1 %vm352_vm2, %v11737_v43  ;;  %8825 = vmatprep.subr.msk.mxu0 %vm203_vm0, %v7471_v41  ;;  %v14089_v43 = vld [vmem:[#allocation18_spill] sm:$0xff] }
 0x56c   :  { %8826 = vmatpush3.msk.msra.mxu0 %vm203_vm0, %v7471_v41 }
 0x56d   :  { %8828 = vmatmul.mubr.msk.f32.vlgmr.msra.gmra.mrb[48].mxu0 %vm154_vm1, %v11847_v34 }
 0x56e   :  { %8805 = vmatmul.mubr.msk.f32.gmra.mrb[34].mxu1 %vm352_vm2, %v11744_v45  ;;  %8830 = vmatprep.mubr.msk.f32.mxu0 %vm154_vm1, %v11854_v30 }
 0x56f   :  { %8807 = vmatprep.mubr.msk.f32.mxu1 %vm352_vm2, %v11751_v47  ;;  %v14090_v47 = vld [vmem:[#allocation6_spill] sm:$0xff] }
 0x571   :  { %8831 = vmatmul.mubr.msk.f32.gmra.mrb[50].mxu0 %vm154_vm1, %v11861_v10  ;;  %v14094_v10 = vld [vmem:[#allocation5_spill] sm:$0xff] }
 0x572   :  { %8808 = vmatmul.mubr.msk.f32.gmra.mrb[36].mxu1 %vm352_vm2, %v11758_v49  ;;  %8833 = vmatprep.mubr.msk.f32.mxu0 %vm154_vm1, %v11868_v44 }
 0x573   :  { %8810 = vmatprep.mubr.msk.f32.mxu1 %vm352_vm2, %v11765_v53 }
 0x575   :  { %8834 = vmatmul.mubr.msk.f32.gmra.mrb[52].mxu0 %vm154_vm1, %v11875_v11 }
 0x576   :  { %8811 = vmatmul.mubr.msk.f32.gmra.mrb[38].mxu1 %vm352_vm2, %v11772_v55  ;;  %8836 = vmatprep.mubr.msk.f32.mxu0 %vm154_vm1, %v11882_v32  ;;  %v14091_v55 = vld [vmem:[#allocation4_spill] sm:$0xff]  ;;  %v14095_v32 = vld [vmem:[#allocation3_spill] sm:$0xff] }
 0x577   :  { %8813 = vmatprep.mubr.msk.f32.mxu1 %vm352_vm2, %v11779_v59 }
 0x579   :  { %8837 = vmatmul.mubr.msk.f32.gmra.mrb[54].mxu0 %vm154_vm1, %v11889_v4 }
 0x57a   :  { %8814 = vmatmul.mubr.msk.f32.gmra.mrb[40].mxu1 %vm352_vm2, %v11786_v61  ;;  %8839 = vmatprep.mubr.msk.f32.mxu0 %vm154_vm1, %v11896_v12 }
 0x57b   :  { %8816 = vmatprep.mubr.msk.f32.mxu1 %vm352_vm2, %v11793_v18 }
 0x57d   :  { %8840 = vmatmul.mubr.msk.f32.gmra.mrb[56].mxu0 %vm154_vm1, %v11903_v48 }
 0x57e   :  { %8817 = vmatmul.mubr.msk.f32.gmra.mrb[42].mxu1 %vm352_vm2, %v11800_v24  ;;  %8842 = vmatprep.mubr.msk.f32.mxu0 %vm154_vm1, %v11910_v20  ;;  %v14092_v24 = vld [vmem:[#allocation7_spill] sm:$0xff] }
 0x57f   :  { %8819 = vmatprep.mubr.msk.f32.mxu1 %vm352_vm2, %v11807_v22 }
 0x581   :  { %8843 = vmatmul.mubr.msk.f32.gmra.mrb[58].mxu0 %vm154_vm1, %v11917_v40 }
 0x582   :  { %8820 = vmatmul.mubr.msk.f32.gmra.mrb[44].mxu1 %vm352_vm2, %v11814_v0  ;;  %8845 = vmatprep.mubr.msk.f32.mxu0 %vm154_vm1, %v11924_v58  ;;  %v14096_v58 = vld [vmem:[#allocation9_spill] sm:$0xff] }
 0x583   :  { %8822 = vmatprep.mubr.msk.f32.mxu1 %vm352_vm2, %v11821_v42 }
 0x585   :  { %8846 = vmatmul.mubr.msk.f32.gmra.mrb[60].mxu0 %vm154_vm1, %v11931_v26 }
 0x586   :  { %8823 = vmatmul.mubr.msk.f32.gmra.mrb[46].mxu1 %vm352_vm2, %v11828_v62  ;;  %8848 = vmatprep.mubr.msk.f32.mxu0 %vm154_vm1, %v14075_v39  ;;  %v14093_v62 = vld [vmem:[#allocation8_spill] sm:$0xff] }
 0x587   :  { %8885 = vmatprep.mubr.msk.f32.mxu1 %vm154_vm1, %v11835_v46 }
 0x589   :  { %8849 = vmatmul.mubr.msk.f32.gmra.mrb[62].mxu0 %vm154_vm1, %v14076_v57  ;;  %v14097_v57 = vld [vmem:[#allocation10_spill] sm:$0xff] }
 0x58a   :  { %8859 = vmatprep.mubr.msk.f32.mxu0 %vm352_vm2, %v14089_v43 }
 0x63d   :  { %v8803_v45 = vpop.f32.mrb[32].mxu1 }
 0x63e   :  { %v9855_v49 = vadd.f32 %v8803_v45, %v14090_v47  ;;  %v2407_v53 = vpop.f32.mrb[33].mxu1 }
 0x63f   :  { %v9856_v59 = vadd.f32 %v2407_v53, %v14091_v55 }
 0x640   :  { %v2503_v18 = vmul.f32 0.5, %v9855_v49  ;;  %v14102_v49 = vld [vmem:[#allocation16_spill] sm:$0xff] }
 0x641   :  { %v8806_v61 = vpop.f32.mrb[34].mxu1  ;;  %v2502_v42 = vmul.f32 0.5, %v9856_v59 }
 0x642   :  { %v9857_v22 = vadd.f32 %v8806_v61, %v14092_v24  ;;  %v2417_v0 = vpop.f32.mrb[35].mxu1  ;;  %10491 = vtanh.f32 %v2503_v18 }
 0x643   :  { %v9858_v46 = vadd.f32 %v2417_v0, %v14093_v62  ;;  %10493 = vtanh.f32 %v2502_v42 }
 0x644   :  { %v2505_v34 = vmul.f32 0.5, %v9857_v22 }
 0x645   :  { %v8809_v30 = vpop.f32.mrb[36].mxu1  ;;  %v2504_v12 = vmul.f32 0.5, %v9858_v46 }
 0x646   :  { %v9859_v44 = vadd.f32 %v8809_v30, %v14094_v10  ;;  %v2427_v11 = vpop.f32.mrb[37].mxu1  ;;  %10495 = vtanh.f32 %v2505_v34 }
 0x647   :  { %v9860_v4 = vadd.f32 %v2427_v11, %v14095_v32 }
 0x648   :  { %v2519_v48 = vmul.f32 0.5, %v9859_v44 }
 0x649   :  { %v2518_v20 = vmul.f32 0.5, %v9860_v4  ;;  %v8812_v40 = vpop.f32.mrb[38].mxu1 }
 0x64a   :  { %10497 = vtanh.f32 %v2519_v48  ;;  %v9861_v26 = vadd.f32 %v8812_v40, %v14096_v58  ;;  %v2437_v39 = vpop.f32.mrb[39].mxu1 }
 0x64b   :  { %10499 = vtanh.f32 %v2518_v20  ;;  %v9862_v7 = vadd.f32 %v2437_v39, %v14097_v57 }
 0x64c   :  { %10501 = vtanh.f32 %v2504_v12  ;;  %v2521_v33 = vmul.f32 0.5, %v9861_v26  ;;  %v10492_v19 = vpop.eup %10491 }
 0x64d   :  { %v2520_v37 = vmul.f32 0.5, %v9862_v7  ;;  %v8815_v15 = vpop.f32.mrb[40].mxu1  ;;  %v10494_v54 = vpop.eup %10493  ;;  %v2511_v29 = vadd.f32 1.0, %v10492_v19 }
 0x64e   :  { %10503 = vtanh.f32 %v2521_v33  ;;  %v9863_v60 = vadd.f32 %v8815_v15, %v14098_v13  ;;  %v2447_v51 = vpop.f32.mrb[41].mxu1  ;;  %v2510_v6 = vadd.f32 1.0, %v10494_v54 }
 0x64f   :  { %10505 = vtanh.f32 %v2520_v37  ;;  %v9864_v2 = vadd.f32 %v2447_v51, %v14099_v25  ;;  %v2515_v61 = vmul.f32 0.5, %v2511_v29 }
 0x650   :  { %10507 = vtanh.f32 %v9863_v60  ;;  %v10496_v8 = vpop.eup %10495  ;;  %v2514_v18 = vmul.f32 0.5, %v2510_v6 }
 0x651   :  { %10509 = vtanh.f32 %v9864_v2  ;;  %v8818_v56 = vpop.f32.mrb[42].mxu1  ;;  %v2513_v46 = vadd.f32 1.0, %v10496_v8 }
 0x652   :  { %v9865_v36 = vadd.f32 %v8818_v56, %v14100_v27  ;;  %v2457_v50 = vpop.f32.mrb[43].mxu1 }
 0x653   :  { %v9866_v14 = vadd.f32 %v2457_v50, %v14101_v17  ;;  %v2517_v2 = vmul.f32 0.5, %v2513_v46 }
 0x654   :  { %v10498_v21 = vpop.eup %10497  ;;  %10511 = vtanh.f32 %v9865_v36 }
 0x655   :  { %v10500_v9 = vpop.eup %10499  ;;  %v2527_v31 = vadd.f32 1.0, %v10498_v21  ;;  %10513 = vtanh.f32 %v9866_v14  ;;  %v8821_v35 = vpop.f32.mrb[44].mxu1 }
 0x656   :  { %v10502_v38 = vpop.eup %10501  ;;  %v2526_v3 = vadd.f32 1.0, %v10500_v9  ;;  %v9867_v41 = vadd.f32 %v8821_v35, %v14070_v5  ;;  %v2467_v43 = vpop.f32.mrb[45].mxu1 }
 0x657   :  { %v2531_v45 = vmul.f32 0.5, %v2527_v31  ;;  %v9868_v53 = vadd.f32 %v2467_v43, %v14102_v49  ;;  %v2512_v34 = vadd.f32 1.0, %v10502_v38 }
 0x658   :  { %v10504_v59 = vpop.eup %10503  ;;  %v2530_v22 = vmul.f32 0.5, %v2526_v3  ;;  %v2539_v0 = vmul.f32 0.5, %v9867_v41 }
 0x659   :  { %v10506_v42 = vpop.eup %10505  ;;  %v2529_v30 = vadd.f32 1.0, %v10504_v59  ;;  %v2538_v44 = vmul.f32 0.5, %v9868_v53  ;;  %v8824_v11 = vpop.f32.mrb[46].mxu1  ;;  %v2555_v12 = vmul.f32 %v2531_v45, %v12079_v52  ;;  %v2516_v56 = vmul.f32 0.5, %v2512_v34 }
 0x65a   :  { %v10508_v4 = vpop.eup %10507  ;;  %v2528_v48 = vadd.f32 1.0, %v10506_v42  ;;  %10515 = vtanh.f32 %v2539_v0  ;;  %v9869_v20 = vadd.f32 %v8824_v11, %v14057_v28  ;;  %v2477_v40 = vpop.f32.mrb[47].mxu1  ;;  %v2554_v37 = vmul.f32 %v2530_v22, %v12081_v63  ;;  %v3483_v11 = vld [vmem:[#allocation2] sm:$0xff] }
 0x65b   :  { %v10510_v26 = vpop.eup %10509  ;;  %v2533_v39 = vmul.f32 0.5, %v2529_v30  ;;  %v2559_v7 = vmul.f32 %v10508_v4, %v2515_v61  ;;  %10517 = vtanh.f32 %v2538_v44  ;;  %v9870_v33 = vadd.f32 %v2477_v40, %v11497_v16  ;;  %v3484_v4 = vld [vmem:[#allocation2 + $0x8] sm:$0xff]  ;;  %v3486_v40 = vld [vmem:[#allocation2 + $0x18] sm:$0xff] }
 0x65c   :  { %v2532_v15 = vmul.f32 0.5, %v2528_v48  ;;  %v2558_v60 = vmul.f32 %v10510_v26, %v2514_v18  ;;  %v2541_v51 = vmul.f32 0.5, %v9869_v20  ;;  %v9591_v48 = vpack.c.bf16 %v3484_v4, %v3483_v11  ;;  %v3485_v20 = vld [vmem:[#allocation2 + $0x10] sm:$0xff]  ;;  %v12205_v26 = vld [vmem:[%s13879_s1 + $0x88] sm:$0xff] }
 0x65d   :  { %v12184_v19 = vadd.f32 %v2559_v7, %v2555_v12  ;;  %v2540_v52 = vmul.f32 0.5, %v9870_v33  ;;  %v2557_v8 = vmul.f32 %v2533_v39, %v12087_v23  ;;  %v9595_v39 = vpack.c.bf16 %v3486_v40, %v3485_v20  ;;  %v12212_v7 = vld [vmem:[%s13879_s1 + $0x90] sm:$0xff]  ;;  %v12219_v33 = vld [vmem:[%s13879_s1 + $0x98] sm:$0xff]  ;;  %v12459_v11 = vld [vmem:[%s13879_s1 + $0x228] sm:$0xff] }
 0x65e   :  { %v10512_v54 = vpop.eup %10511  ;;  %v12186_v36 = vadd.f32 %v2558_v60, %v2554_v37  ;;  %10519 = vtanh.f32 %v2541_v51  ;;  %v2556_v63 = vmul.f32 %v2532_v15, %v12089_v1  ;;  %v12226_v37 = vld [vmem:[%s13879_s1 + $0xa0] sm:$0xff]  ;;  %v14103_v15 = vmov 0.0   ;;  %v12234_v60 = vld [vmem:[%s13879_s1 + $0xa8] sm:$0xff]  ;;  %v12241_v51 = vld [vmem:[%s13879_s1 + $0xb0] sm:$0xff]  ;;  %14112 = vst [vmem:[#allocation22_spill] sm:$0xff] %v12459_v11 }
 0x65f   :  { %v10514_v50 = vpop.eup %10513  ;;  %10521 = vtanh.f32 %v12184_v19  ;;  %v2561_v14 = vmul.f32 %v10512_v54, %v2517_v2  ;;  %v12248_v2 = vld [vmem:[%s13879_s1 + $0xb8] sm:$0xff]  ;;  %v12262_v54 = vld [vmem:[%s13879_s1 + $0xc8] sm:$0xff]  ;;  %v12464_v4 = vld [vmem:[%s13879_s1 + $0x230] sm:$0xff] }
 0x660   :  { %10523 = vtanh.f32 %v12186_v36  ;;  %v2560_v21 = vmul.f32 %v10514_v50, %v2516_v56  ;;  %v12269_v56 = vld [vmem:[%s13879_s1 + $0xd0] sm:$0xff]  ;;  %v12276_v50 = vld [vmem:[%s13879_s1 + $0xd8] sm:$0xff]  ;;  %14113 = vst [vmem:[#allocation23_spill] sm:$0xff] %v12464_v4  ;;  %v12487_v20 = vld [vmem:[%s13879_s1 + $0x248] sm:$0xff] }
 0x661   :  { %v12192_v29 = vadd.f32 %v2561_v14, %v2557_v8  ;;  %10525 = vtanh.f32 %v2540_v52  ;;  %v12255_v52 = vld [vmem:[%s13879_s1 + $0xc0] sm:$0xff]  ;;  %v12290_v14 = vld [vmem:[%s13879_s1 + $0xe8] sm:$0xff]  ;;  %14116 = vst [vmem:[#allocation26_spill] sm:$0xff] %v12487_v20  ;;  %v12492_v40 = vld [vmem:[%s13879_s1 + $0x250] sm:$0xff] }
 0x662   :  { %v12194_v6 = vadd.f32 %v2560_v21, %v2556_v63  ;;  %v12283_v8 = vld [vmem:[%s13879_s1 + $0xe0] sm:$0xff]  ;;  %v12297_v63 = vld [vmem:[%s13879_s1 + $0xf0] sm:$0xff]  ;;  %14117 = vst [vmem:[#allocation27_spill] sm:$0xff] %v12492_v40 }
 0x663   :  { %10527 = vtanh.f32 %v12192_v29  ;;  %v12304_v21 = vld [vmem:[%s13879_s1 + $0x180] sm:$0xff] }
 0x664   :  { %v10516_v9 = vpop.eup %10515  ;;  %10529 = vtanh.f32 %v12194_v6 }
 0x665   :  { %v10518_v31 = vpop.eup %10517  ;;  %v2547_v23 = vadd.f32 1.0, %v10516_v9  ;;  %v12309_v9 = vld [vmem:[%s13879_s1 + $0xf8] sm:$0xff] }
 0x666   :  { %v2546_v35 = vadd.f32 1.0, %v10518_v31  ;;  %v12318_v31 = vld [vmem:[%s13879_s1 + $0x188] sm:$0xff] }
 0x667   :  { %v2551_v38 = vmul.f32 0.5, %v2547_v23  ;;  %v12323_v23 = vld [vmem:[%s13879_s1 + $0x190] sm:$0xff] }
 0x668   :  { %v10520_v3 = vpop.eup %10519  ;;  %v2550_v41 = vmul.f32 0.5, %v2546_v35  ;;  %v12332_v35 = vld [vmem:[%s13879_s1 + $0x198] sm:$0xff] }
 0x669   :  { %v10522_v1 = vpop.eup %10521  ;;  %v2549_v43 = vadd.f32 1.0, %v10520_v3  ;;  %v12347_v3 = vld [vmem:[%s13879_s1 + $0x1a8] sm:$0xff] }
 0x66a   :  { %v10524_v45 = vpop.eup %10523  ;;  %v2571_v53 = vmul.f32 %v10522_v1, %v2551_v38  ;;  %v12338_v38 = vld [vmem:[%s13879_s1 + $0x1a0] sm:$0xff]  ;;  %v12361_v1 = vld [vmem:[%s13879_s1 + $0x1b8] sm:$0xff] }
 0x66b   :  { %v10526_v59 = vpop.eup %10525  ;;  %v2553_v61 = vmul.f32 0.5, %v2549_v43  ;;  %v2570_v18 = vmul.f32 %v10524_v45, %v2550_v41  ;;  %v12352_v41 = vld [vmem:[%s13879_s1 + $0x1b0] sm:$0xff]  ;;  %v12366_v43 = vld [vmem:[%s13879_s1 + $0x1c0] sm:$0xff]  ;;  %v12375_v45 = vld [vmem:[%s13879_s1 + $0x1c8] sm:$0xff] }
 0x66c   :  { %v2548_v22 = vadd.f32 1.0, %v10526_v59  ;;  %2576 = vst.msk [vmem:[#allocation2 + $0xa8] sm:$0xff] %vm634_vm3, %v2571_v53  ;;  %v12389_v59 = vld [vmem:[%s13879_s1 + $0x1d8] sm:$0xff] }
 0x66d   :  { %v10528_v0 = vpop.eup %10527  ;;  %2575 = vst.msk [vmem:[#allocation2 + $0xa0] sm:$0xff] %vm634_vm3, %v2570_v18  ;;  %v9575_v42 = vpack.c.bf16 %v2571_v53, %v2570_v18  ;;  %v12380_v53 = vld [vmem:[%s13879_s1 + $0x1d0] sm:$0xff]  ;;  %v12403_v18 = vld [vmem:[%s13879_s1 + $0x1e8] sm:$0xff] }
 0x66e   :  { %v10530_v46 = vpop.eup %10529  ;;  %v2552_v34 = vmul.f32 0.5, %v2548_v22  ;;  %v2573_v30 = vmul.f32 %v10528_v0, %v2553_v61  ;;  %v12394_v61 = vld [vmem:[%s13879_s1 + $0x1e0] sm:$0xff]  ;;  %14104 = vst [vmem:[#allocation17_spill] sm:$0xff] %v12403_v18  ;;  %v12408_v22 = vld [vmem:[%s13879_s1 + $0x1f0] sm:$0xff]  ;;  %v12417_v0 = vld [vmem:[%s13879_s1 + $0x1f8] sm:$0xff] }
 0x66f   :  { %9576 = vmatprep.subr.bf16.mxu0 %v9575_v42  ;;  %14105 = vst [vmem:[#allocation15_spill] sm:$0xff] %v12408_v22  ;;  %14106 = vst [vmem:[#allocation18_spill] sm:$0xff] %v12417_v0 }
 0x670   :  { %9578 = vmatpush3.bf16.msra.mxu0 %v9575_v42  ;;  %v2572_v44 = vmul.f32 %v10530_v46, %v2552_v34  ;;  %2578 = vst.msk [vmem:[#allocation2 + $0xb8] sm:$0xff] %vm634_vm3, %v2573_v30  ;;  %v12422_v42 = vld [vmem:[%s13879_s1 + $0x200] sm:$0xff]  ;;  %v12431_v46 = vld [vmem:[%s13879_s1 + $0x208] sm:$0xff]  ;;  %v12436_v34 = vld [vmem:[%s13879_s1 + $0x210] sm:$0xff] }
 0x671   :  { %14107 = vst [vmem:[#allocation4_spill] sm:$0xff] %v12422_v42  ;;  %14108 = vst [vmem:[#allocation7_spill] sm:$0xff] %v12431_v46 }
 0x672   :  { %2577 = vst.msk [vmem:[#allocation2 + $0xb0] sm:$0xff] %vm634_vm3, %v2572_v44  ;;  %v9579_v12 = vpack.c.bf16 %v2573_v30, %v2572_v44  ;;  %14109 = vst [vmem:[#allocation19_spill] sm:$0xff] %v12436_v34  ;;  %v12445_v30 = vld [vmem:[%s13879_s1 + $0x218] sm:$0xff]  ;;  %v12450_v44 = vld [vmem:[%s13879_s1 + $0x220] sm:$0xff] }
 0x673   :  { %14110 = vst [vmem:[#allocation20_spill] sm:$0xff] %v12445_v30  ;;  %14111 = vst [vmem:[#allocation21_spill] sm:$0xff] %v12450_v44 }
 0x674   :  { %9580 = vmatprep.subr.bf16.mxu0 %v9579_v12 }
 0x675   :  { %9582 = vmatpush3.bf16.msra.mxu0 %v9579_v12  ;;  %v12473_v12 = vld [vmem:[%s13879_s1 + $0x238] sm:$0xff] }
 0x676   :  { %9592 = vmatprep.subr.bf16.mxu0 %v9591_v48  ;;  %14114 = vst [vmem:[#allocation24_spill] sm:$0xff] %v12473_v12 }
 0x678   :  { %8860 = vmatmul.mubr.msk.f32.vlgmr.msra.gmra.mrb[48].mxu0 %vm352_vm2, %v12205_v26 }
 0x679   :  { %9594 = vmatpush3.bf16.msra.mxu0 %v9591_v48  ;;  %8862 = vmatprep.mubr.msk.f32.mxu0 %vm352_vm2, %v12212_v7  ;;  %v12478_v48 = vld [vmem:[%s13879_s1 + $0x240] sm:$0xff] }
 0x67a   :  { %9596 = vmatprep.subr.bf16.mxu0 %v9595_v39  ;;  %14115 = vst [vmem:[#allocation25_spill] sm:$0xff] %v12478_v48 }
 0x67c   :  { %8863 = vmatmul.mubr.msk.f32.gmra.mrb[50].mxu0 %vm352_vm2, %v12219_v33 }
 0x67d   :  { %9598 = vmatpush3.bf16.msra.mxu0 %v9595_v39  ;;  %8865 = vmatprep.mubr.msk.f32.mxu0 %vm352_vm2, %v12226_v37  ;;  %v12501_v39 = vld [vmem:[%s13879_s1 + $0x258] sm:$0xff] }
 0x67e   :  { %8973 = vmatprep.subr.mxu0 %v14103_v15  ;;  %14118 = vst [vmem:[#allocation28_spill] sm:$0xff] %v12501_v39 }
 0x680   :  { %8866 = vmatmul.mubr.msk.f32.gmra.mrb[52].mxu0 %vm352_vm2, %v12234_v60 }
 0x681   :  { %8868 = vmatprep.mubr.msk.f32.mxu0 %vm352_vm2, %v12241_v51 }
 0x684   :  { %8869 = vmatmul.mubr.msk.f32.gmra.mrb[54].mxu0 %vm352_vm2, %v12248_v2 }
 0x685   :  { %8871 = vmatprep.mubr.msk.f32.mxu0 %vm352_vm2, %v12255_v52 }
 0x688   :  { %8872 = vmatmul.mubr.msk.f32.gmra.mrb[56].mxu0 %vm352_vm2, %v12262_v54 }
 0x689   :  { %8874 = vmatprep.mubr.msk.f32.mxu0 %vm352_vm2, %v12269_v56 }
 0x68c   :  { %8875 = vmatmul.mubr.msk.f32.gmra.mrb[58].mxu0 %vm352_vm2, %v12276_v50 }
 0x68d   :  { %8877 = vmatprep.mubr.msk.f32.mxu0 %vm352_vm2, %v12283_v8 }
 0x690   :  { %8878 = vmatmul.mubr.msk.f32.gmra.mrb[60].mxu0 %vm352_vm2, %v12290_v14 }
 0x691   :  { %8880 = vmatprep.mubr.msk.f32.mxu0 %vm352_vm2, %v12297_v63 }
 0x694   :  { %8881 = vmatmul.mubr.msk.f32.gmra.mrb[62].mxu0 %vm352_vm2, %v12309_v9 }
 0x695   :  { %8949 = vmatprep.mubr.msk.f32.mxu0 %vm352_vm2, %v12304_v21 }
 0x698   :  { %8950 = vmatmul.mubr.msk.f32.vlgmr.msra.gmra.mrb[64].mxu0 %vm352_vm2, %v12318_v31 }
 0x699   :  { %8952 = vmatprep.mubr.msk.f32.mxu0 %vm352_vm2, %v12323_v23  ;;  %8974 = vmatpush3.msra.mxu0 %v14103_v15  ;;  %v12506_v15 = vld [vmem:[%s13879_s1 + $0x260] sm:$0xff] }
 0x69a   :  { %14119 = vst [vmem:[#allocation29_spill] sm:$0xff] %v12506_v15 }
 0x69c   :  { %8953 = vmatmul.mubr.msk.f32.gmra.mrb[66].mxu0 %vm352_vm2, %v12332_v35 }
 0x69d   :  { %8955 = vmatprep.mubr.msk.f32.mxu0 %vm352_vm2, %v12338_v38 }
 0x6a0   :  { %8956 = vmatmul.mubr.msk.f32.gmra.mrb[68].mxu0 %vm352_vm2, %v12347_v3 }
 0x6a1   :  { %8958 = vmatprep.mubr.msk.f32.mxu0 %vm352_vm2, %v12352_v41 }
 0x6a4   :  { %8959 = vmatmul.mubr.msk.f32.gmra.mrb[70].mxu0 %vm352_vm2, %v12361_v1 }
 0x6a5   :  { %8961 = vmatprep.mubr.msk.f32.mxu0 %vm352_vm2, %v12366_v43 }
 0x6a8   :  { %8962 = vmatmul.mubr.msk.f32.gmra.mrb[72].mxu0 %vm352_vm2, %v12375_v45 }
 0x6a9   :  { %8964 = vmatprep.mubr.msk.f32.mxu0 %vm352_vm2, %v12380_v53 }
 0x6ac   :  { %8965 = vmatmul.mubr.msk.f32.gmra.mrb[74].mxu0 %vm352_vm2, %v12389_v59 }
 0x6ad   :  { %8967 = vmatprep.mubr.msk.f32.mxu0 %vm352_vm2, %v12394_v61 }
 0x6b0   :  { %8968 = vmatmul.mubr.msk.f32.gmra.mrb[76].mxu0 %vm352_vm2, %v12403_v18 }
 0x6b1   :  { %8970 = vmatprep.mubr.msk.f32.mxu0 %vm352_vm2, %v12408_v22 }
 0x6b4   :  { %8971 = vmatmul.mubr.msk.f32.gmra.mrb[78].mxu0 %vm352_vm2, %v12417_v0 }
 0x6b5   :  { %8975 = vmatprep.mubr.msk.f32.mxu0 %vm352_vm2, %v12422_v42 }
 0x6b8   :  { %8976 = vmatmul.mubr.msk.f32.vlgmr.msra.gmra.mrb[64].mxu0 %vm352_vm2, %v12431_v46 }
 0x6b9   :  { %8978 = vmatprep.mubr.msk.f32.mxu0 %vm352_vm2, %v12436_v34 }
 0x6bc   :  { %8979 = vmatmul.mubr.msk.f32.gmra.mrb[66].mxu0 %vm352_vm2, %v12445_v30 }
 0x6bd   :  { %8981 = vmatprep.mubr.msk.f32.mxu0 %vm352_vm2, %v12450_v44 }
 0x6c0   :  { %8982 = vmatmul.mubr.msk.f32.gmra.mrb[68].mxu0 %vm352_vm2, %v12459_v11 }
 0x6c1   :  { %8984 = vmatprep.mubr.msk.f32.mxu0 %vm352_vm2, %v12464_v4 }
 0x6c4   :  { %8985 = vmatmul.mubr.msk.f32.gmra.mrb[70].mxu0 %vm352_vm2, %v12473_v12 }
 0x6c5   :  { %8987 = vmatprep.mubr.msk.f32.mxu0 %vm352_vm2, %v12478_v48 }
 0x6c8   :  { %8988 = vmatmul.mubr.msk.f32.gmra.mrb[72].mxu0 %vm352_vm2, %v12487_v20  ;;  %v12520_v20 = vld [vmem:[%s13879_s1 + $0x270] sm:$0xff] }
 0x6c9   :  { %8990 = vmatprep.mubr.msk.f32.mxu0 %vm352_vm2, %v12492_v40  ;;  %v12515_v40 = vld [vmem:[%s13879_s1 + $0x268] sm:$0xff]  ;;  %14121 = vst [vmem:[#allocation31_spill] sm:$0xff] %v12520_v20 }
 0x6ca   :  { %14120 = vst [vmem:[#allocation30_spill] sm:$0xff] %v12515_v40 }
 0x6cc   :  { %8991 = vmatmul.mubr.msk.f32.gmra.mrb[74].mxu0 %vm352_vm2, %v12501_v39  ;;  %v7505_v39 = vld [vmem:[%s13878_s0 + $0x1c] sm:$0xf] }
 0x6cd   :  { %8993 = vmatprep.mubr.msk.f32.mxu0 %vm352_vm2, %v12506_v15  ;;  %v12529_v15 = vld [vmem:[%s13879_s1 + $0x278] sm:$0xff]  ;;  %8883 = vmatprep.subr.msk.mxu1 %vm203_vm0, %v7505_v39 }
 0x6ce   :  { %14122 = vst [vmem:[#allocation32_spill] sm:$0xff] %v12529_v15  ;;  %8884 = vmatpush3.msk.msra.mxu1 %vm203_vm0, %v7505_v39  ;;  %v10981_v39 = vld [vmem:[%s13879_s1 + $0x20] sm:$0xff] }
 0x6d0   :  { %8994 = vmatmul.mubr.msk.f32.gmra.mrb[76].mxu0 %vm352_vm2, %v12515_v40  ;;  %v10979_v40 = vld [vmem:[%s13879_s1 + $0x10] sm:$0xff] }
 0x6d1   :  { %8996 = vmatprep.mubr.msk.f32.mxu0 %vm352_vm2, %v12520_v20  ;;  %v10978_v20 = vld [vmem:[%s13879_s1 + $0x8] sm:$0xff] }
 0x6d2   :  { %8886 = vmatmul.mubr.msk.f32.vlgmr.msra.gmra.mrb[48].mxu1 %vm154_vm1, %v10978_v20  ;;  %v10982_v20 = vld [vmem:[%s13879_s1 + $0x28] sm:$0xff] }
 0x6d3   :  { %8888 = vmatprep.mubr.msk.f32.mxu1 %vm154_vm1, %v10979_v40  ;;  %v10983_v40 = vld [vmem:[%s13879_s1 + $0x30] sm:$0xff] }
 0x6d4   :  { %8997 = vmatmul.mubr.msk.f32.gmra.mrb[78].mxu0 %vm352_vm2, %v12529_v15  ;;  %v10980_v15 = vld [vmem:[%s13879_s1 + $0x18] sm:$0xff] }
 0x6d6   :  { %8889 = vmatmul.mubr.msk.f32.gmra.mrb[50].mxu1 %vm154_vm1, %v10980_v15  ;;  %v10984_v15 = vld [vmem:[%s13879_s1 + $0x38] sm:$0xff] }
 0x6d7   :  { %8891 = vmatprep.mubr.msk.f32.mxu1 %vm154_vm1, %v10981_v39  ;;  %v10985_v39 = vld [vmem:[%s13879_s1 + $0x40] sm:$0xff] }
 0x6da   :  { %8892 = vmatmul.mubr.msk.f32.gmra.mrb[52].mxu1 %vm154_vm1, %v10982_v20  ;;  %v10986_v20 = vld [vmem:[%s13879_s1 + $0x48] sm:$0xff] }
 0x6db   :  { %8894 = vmatprep.mubr.msk.f32.mxu1 %vm154_vm1, %v10983_v40  ;;  %v10987_v40 = vld [vmem:[%s13879_s1 + $0x50] sm:$0xff] }
 0x6de   :  { %8895 = vmatmul.mubr.msk.f32.gmra.mrb[54].mxu1 %vm154_vm1, %v10984_v15  ;;  %v10988_v15 = vld [vmem:[%s13879_s1 + $0x58] sm:$0xff] }
 0x6df   :  { %8897 = vmatprep.mubr.msk.f32.mxu1 %vm154_vm1, %v10985_v39  ;;  %v10989_v39 = vld [vmem:[%s13879_s1 + $0x60] sm:$0xff] }
 0x6e2   :  { %8898 = vmatmul.mubr.msk.f32.gmra.mrb[56].mxu1 %vm154_vm1, %v10986_v20  ;;  %v10990_v20 = vld [vmem:[%s13879_s1 + $0x68] sm:$0xff] }
 0x6e3   :  { %8900 = vmatprep.mubr.msk.f32.mxu1 %vm154_vm1, %v10987_v40  ;;  %v10991_v40 = vld [vmem:[%s13879_s1 + $0x70] sm:$0xff] }
 0x6e6   :  { %8901 = vmatmul.mubr.msk.f32.gmra.mrb[58].mxu1 %vm154_vm1, %v10988_v15  ;;  %v10992_v15 = vld [vmem:[%s13879_s1 + $0x78] sm:$0xff] }
 0x6e7   :  { %8903 = vmatprep.mubr.msk.f32.mxu1 %vm154_vm1, %v10989_v39  ;;  %v10993_v39 = vld [vmem:[%s13879_s1 + $0x80] sm:$0xff] }
 0x6ea   :  { %8904 = vmatmul.mubr.msk.f32.gmra.mrb[60].mxu1 %vm154_vm1, %v10990_v20  ;;  %v12605_v20 = vld [vmem:[%s13879_s1 + $0x300] sm:$0xff] }
 0x6eb   :  { %8906 = vmatprep.mubr.msk.f32.mxu1 %vm154_vm1, %v10991_v40  ;;  %9082 = vmatprep.mubr.msk.f32.mxu0 %vm352_vm2, %v12605_v20 }
 0x6ee   :  { %8907 = vmatmul.mubr.msk.f32.gmra.mrb[62].mxu1 %vm154_vm1, %v10992_v15 }
 0x6ef   :  { %8917 = vmatprep.mubr.msk.f32.mxu1 %vm352_vm2, %v10993_v39 }
 0x74b   :  { %v8861_v40 = vpop.f32.mrb[48].mxu0 }
 0x74c   :  { %v9871_v48 = vadd.f32 %v8861_v40, %v14090_v47  ;;  %v2795_v12 = vpop.f32.mrb[49].mxu0 }
 0x74d   :  { %v9872_v15 = vadd.f32 %v2795_v12, %v14091_v55 }
 0x74e   :  { %v2891_v11 = vmul.f32 0.5, %v9871_v48 }
 0x74f   :  { %v8864_v4 = vpop.f32.mrb[50].mxu0  ;;  %v2890_v39 = vmul.f32 0.5, %v9872_v15 }
 0x750   :  { %v9873_v44 = vadd.f32 %v8864_v4, %v14092_v24  ;;  %v2805_v30 = vpop.f32.mrb[51].mxu0  ;;  %10531 = vtanh.f32 %v2891_v11 }
 0x751   :  { %v9874_v34 = vadd.f32 %v2805_v30, %v14093_v62  ;;  %10533 = vtanh.f32 %v2890_v39 }
 0x752   :  { %v2893_v46 = vmul.f32 0.5, %v9873_v44 }
 0x753   :  { %v8867_v42 = vpop.f32.mrb[52].mxu0  ;;  %v2892_v47 = vmul.f32 0.5, %v9874_v34 }
 0x754   :  { %v9875_v0 = vadd.f32 %v8867_v42, %v14094_v10  ;;  %v2815_v22 = vpop.f32.mrb[53].mxu0  ;;  %10535 = vtanh.f32 %v2893_v46 }
 0x755   :  { %v9876_v40 = vadd.f32 %v2815_v22, %v14095_v32 }
 0x756   :  { %v2907_v18 = vmul.f32 0.5, %v9875_v0 }
 0x757   :  { %v2906_v12 = vmul.f32 0.5, %v9876_v40  ;;  %v8870_v48 = vpop.f32.mrb[54].mxu0 }
 0x758   :  { %10537 = vtanh.f32 %v2907_v18  ;;  %v9877_v4 = vadd.f32 %v8870_v48, %v14096_v58  ;;  %v2825_v15 = vpop.f32.mrb[55].mxu0 }
 0x759   :  { %10539 = vtanh.f32 %v2906_v12  ;;  %v9878_v30 = vadd.f32 %v2825_v15, %v14097_v57 }
 0x75a   :  { %10541 = vtanh.f32 %v2892_v47  ;;  %v2909_v44 = vmul.f32 0.5, %v9877_v4  ;;  %v10532_v46 = vpop.eup %10531 }
 0x75b   :  { %v2908_v11 = vmul.f32 0.5, %v9878_v30  ;;  %v8873_v42 = vpop.f32.mrb[56].mxu0  ;;  %v10534_v18 = vpop.eup %10533  ;;  %v2899_v15 = vadd.f32 1.0, %v10532_v46 }
 0x75c   :  { %10543 = vtanh.f32 %v2909_v44  ;;  %v9879_v39 = vadd.f32 %v8873_v42, %v14098_v13  ;;  %v2835_v22 = vpop.f32.mrb[57].mxu0  ;;  %v2898_v30 = vadd.f32 1.0, %v10534_v18 }
 0x75d   :  { %10545 = vtanh.f32 %v2908_v11  ;;  %v9880_v0 = vadd.f32 %v2835_v22, %v14099_v25  ;;  %v2903_v57 = vmul.f32 0.5, %v2899_v15 }
 0x75e   :  { %10547 = vtanh.f32 %v9879_v39  ;;  %v10536_v48 = vpop.eup %10535  ;;  %v2902_v58 = vmul.f32 0.5, %v2898_v30 }
 0x75f   :  { %10549 = vtanh.f32 %v9880_v0  ;;  %v8876_v34 = vpop.f32.mrb[58].mxu0  ;;  %v2901_v18 = vadd.f32 1.0, %v10536_v48 }
 0x760   :  { %v9881_v40 = vadd.f32 %v8876_v34, %v14100_v27  ;;  %v2845_v12 = vpop.f32.mrb[59].mxu0 }
 0x761   :  { %v9882_v47 = vadd.f32 %v2845_v12, %v14101_v17 }
 0x762   :  { %v10538_v4 = vpop.eup %10537  ;;  %10551 = vtanh.f32 %v9881_v40 }
 0x763   :  { %v10540_v44 = vpop.eup %10539  ;;  %v2915_v42 = vadd.f32 1.0, %v10538_v4  ;;  %10553 = vtanh.f32 %v9882_v47  ;;  %v8879_v11 = vpop.f32.mrb[60].mxu0 }
 0x764   :  { %v10542_v22 = vpop.eup %10541  ;;  %v2914_v25 = vadd.f32 1.0, %v10540_v44  ;;  %v9883_v39 = vadd.f32 %v8879_v11, %v14070_v5  ;;  %v2855_v0 = vpop.f32.mrb[61].mxu0 }
 0x765   :  { %v2919_v13 = vmul.f32 0.5, %v2915_v42  ;;  %v9884_v34 = vadd.f32 %v2855_v0, %v14102_v49  ;;  %v2900_v40 = vadd.f32 1.0, %v10542_v22 }
 0x766   :  { %v10544_v27 = vpop.eup %10543  ;;  %v2918_v12 = vmul.f32 0.5, %v2914_v25  ;;  %v2927_v17 = vmul.f32 0.5, %v9883_v39  ;;  %v2905_v39 = vmul.f32 0.5, %v2901_v18 }
 0x767   :  { %v10546_v46 = vpop.eup %10545  ;;  %v2917_v32 = vadd.f32 1.0, %v10544_v27  ;;  %v2926_v4 = vmul.f32 0.5, %v9884_v34  ;;  %v8882_v47 = vpop.f32.mrb[62].mxu0  ;;  %v2943_v44 = vmul.f32 %v2919_v13, %v12184_v19 }
 0x768   :  { %v10548_v10 = vpop.eup %10547  ;;  %v2916_v62 = vadd.f32 1.0, %v10546_v46  ;;  %10555 = vtanh.f32 %v2927_v17  ;;  %v9885_v42 = vadd.f32 %v8882_v47, %v14057_v28  ;;  %v2865_v11 = vpop.f32.mrb[63].mxu0  ;;  %v2942_v48 = vmul.f32 %v2918_v12, %v12186_v36 }
 0x769   :  { %v10550_v0 = vpop.eup %10549  ;;  %v2921_v49 = vmul.f32 0.5, %v2917_v32  ;;  %v2947_v15 = vmul.f32 %v10548_v10, %v2903_v57  ;;  %10557 = vtanh.f32 %v2926_v4  ;;  %v9886_v25 = vadd.f32 %v2865_v11, %v11497_v16 }
 0x76a   :  { %v2920_v30 = vmul.f32 0.5, %v2916_v62  ;;  %v2946_v27 = vmul.f32 %v10550_v0, %v2902_v58  ;;  %v2929_v22 = vmul.f32 0.5, %v9885_v42  ;;  %v2904_v17 = vmul.f32 0.5, %v2900_v40 }
 0x76b   :  { %v12627_v34 = vadd.f32 %v2947_v15, %v2943_v44  ;;  %v2928_v13 = vmul.f32 0.5, %v9886_v25  ;;  %v2945_v10 = vmul.f32 %v2921_v49, %v12192_v29 }
 0x76c   :  { %v10552_v19 = vpop.eup %10551  ;;  %v12629_v46 = vadd.f32 %v2946_v27, %v2942_v48  ;;  %10559 = vtanh.f32 %v2929_v22  ;;  %v2944_v57 = vmul.f32 %v2920_v30, %v12194_v6 }
 0x76d   :  { %v10554_v47 = vpop.eup %10553  ;;  %10561 = vtanh.f32 %v12627_v34  ;;  %v2949_v32 = vmul.f32 %v10552_v19, %v2905_v39 }
 0x76e   :  { %10563 = vtanh.f32 %v12629_v46  ;;  %v2948_v62 = vmul.f32 %v10554_v47, %v2904_v17  ;;  %v12643_v17 = vpop.permute.xlu1 %3410  ;;  %v12645_v47 = vpop.permute.xlu0 %3405 }
 0x76f   :  { %v12635_v58 = vadd.f32 %v2949_v32, %v2945_v10  ;;  %10565 = vtanh.f32 %v2928_v13  ;;  %14123 = vst [vmem:[#allocation33_spill] sm:$0xff] %v12643_v17  ;;  %14124 = vst [vmem:[#allocation34_spill] sm:$0xff] %v12645_v47 }
 0x770   :  { %v12637_v36 = vadd.f32 %v2948_v62, %v2944_v57 }
 0x771   :  { %10567 = vtanh.f32 %v12635_v58 }
 0x772   :  { %v10556_v12 = vpop.eup %10555  ;;  %10569 = vtanh.f32 %v12637_v36  ;;  %v12649_v57 = vpop.permute.xlu1 %3430 }
 0x773   :  { %v10558_v18 = vpop.eup %10557  ;;  %v2935_v49 = vadd.f32 1.0, %v10556_v12  ;;  %14125 = vst [vmem:[#allocation35_spill] sm:$0xff] %v12649_v57  ;;  %v12651_v62 = vpop.permute.xlu0 %3425 }
 0x774   :  { %v2934_v29 = vadd.f32 1.0, %v10558_v18  ;;  %14126 = vst [vmem:[#allocation36_spill] sm:$0xff] %v12651_v62 }
 0x775   :  { %v2939_v40 = vmul.f32 0.5, %v2935_v49 }
 0x776   :  { %v10560_v4 = vpop.eup %10559  ;;  %v2938_v44 = vmul.f32 0.5, %v2934_v29  ;;  %v12657_v12 = vpop.permute.xlu1 %3420 }
 0x777   :  { %v10562_v6 = vpop.eup %10561  ;;  %v2937_v42 = vadd.f32 1.0, %v10560_v4  ;;  %14127 = vst [vmem:[#allocation37_spill] sm:$0xff] %v12657_v12  ;;  %v12659_v18 = vpop.permute.xlu0 %3415 }
 0x778   :  { %v10564_v11 = vpop.eup %10563  ;;  %v2959_v0 = vmul.f32 %v10562_v6, %v2939_v40  ;;  %14128 = vst [vmem:[#allocation38_spill] sm:$0xff] %v12659_v18 }
 0x779   :  { %v10566_v15 = vpop.eup %10565  ;;  %v2941_v25 = vmul.f32 0.5, %v2937_v42  ;;  %v2958_v48 = vmul.f32 %v10564_v11, %v2938_v44 }
 0x77a   :  { %v2936_v30 = vadd.f32 1.0, %v10566_v15  ;;  %2964 = vst.msk [vmem:[#allocation2 + $0xc8] sm:$0xff] %vm634_vm3, %v2959_v0 }
 0x77b   :  { %v10568_v27 = vpop.eup %10567  ;;  %2963 = vst.msk [vmem:[#allocation2 + $0xc0] sm:$0xff] %vm634_vm3, %v2958_v48  ;;  %v9583_v22 = vpack.c.bf16 %v2959_v0, %v2958_v48  ;;  %v12673_v44 = vpop.permute.xlu0 %3435 }
 0x77c   :  { %v10570_v39 = vpop.eup %10569  ;;  %v2940_v13 = vmul.f32 0.5, %v2936_v30  ;;  %v2961_v19 = vmul.f32 %v10568_v27, %v2941_v25  ;;  %14130 = vst [vmem:[#allocation40_spill] sm:$0xff] %v12673_v44 }
 0x77d   :  { %9584 = vmatprep.subr.bf16.mxu1 %v9583_v22 }
 0x77e   :  { %9586 = vmatpush3.bf16.msra.mxu1 %v9583_v22  ;;  %v2960_v10 = vmul.f32 %v10570_v39, %v2940_v13  ;;  %2966 = vst.msk [vmem:[#allocation2 + $0xd8] sm:$0xff] %vm634_vm3, %v2961_v19 }
 0x77f   :  { %v12685_v30 = vpop.permute.xlu0 %3445 }
 0x780   :  { %2965 = vst.msk [vmem:[#allocation2 + $0xd0] sm:$0xff] %vm634_vm3, %v2960_v10  ;;  %v9587_v32 = vpack.c.bf16 %v2961_v19, %v2960_v10  ;;  %14132 = vst [vmem:[#allocation42_spill] sm:$0xff] %v12685_v30 }
 0x782   :  { %9588 = vmatprep.subr.bf16.mxu1 %v9587_v32 }
 0x783   :  { %9590 = vmatpush3.bf16.msra.mxu1 %v9587_v32 }
 0x786   :  { %8918 = vmatmul.mubr.msk.f32.vlgmr.msra.gmra.mrb[48].mxu1 %vm352_vm2, %v12205_v26  ;;  %v12669_v26 = vpop.permute.xlu1 %3440 }
 0x787   :  { %8920 = vmatprep.mubr.msk.f32.mxu1 %vm352_vm2, %v12212_v7  ;;  %14129 = vst [vmem:[#allocation39_spill] sm:$0xff] %v12669_v26 }
 0x78a   :  { %8921 = vmatmul.mubr.msk.f32.gmra.mrb[50].mxu1 %vm352_vm2, %v12219_v33  ;;  %v12682_v25 = vpop.permute.xlu1 %3450 }
 0x78b   :  { %v8977_v49 = vpop.f32.mrb[64].mxu0  ;;  %8923 = vmatprep.mubr.msk.f32.mxu1 %vm352_vm2, %v12226_v37  ;;  %14131 = vst [vmem:[#allocation41_spill] sm:$0xff] %v12682_v25 }
 0x78c   :  { %v9903_v29 = vadd.f32 %v8977_v49, %v12643_v17  ;;  %v3794_v40 = vpop.f32.mrb[65].mxu0 }
 0x78d   :  { %v9904_v4 = vadd.f32 %v3794_v40, %v12645_v47 }
 0x78e   :  { %8924 = vmatmul.mubr.msk.f32.gmra.mrb[52].mxu1 %vm352_vm2, %v12234_v60  ;;  %v3890_v33 = vmul.f32 0.5, %v9903_v29  ;;  %v12695_v32 = vpop.permute.xlu1 %3460 }
 0x78f   :  { %v8980_v7 = vpop.f32.mrb[66].mxu0  ;;  %8926 = vmatprep.mubr.msk.f32.mxu1 %vm352_vm2, %v12241_v51  ;;  %v3889_v42 = vmul.f32 0.5, %v9904_v4  ;;  %14133 = vst [vmem:[#allocation43_spill] sm:$0xff] %v12695_v32 }
 0x790   :  { %v9905_v6 = vadd.f32 %v8980_v7, %v12657_v12  ;;  %v3804_v37 = vpop.f32.mrb[67].mxu0  ;;  %10571 = vtanh.f32 %v3890_v33 }
 0x791   :  { %v9906_v11 = vadd.f32 %v3804_v37, %v12659_v18  ;;  %10573 = vtanh.f32 %v3889_v42 }
 0x792   :  { %8927 = vmatmul.mubr.msk.f32.gmra.mrb[54].mxu1 %vm352_vm2, %v12248_v2  ;;  %v3892_v0 = vmul.f32 0.5, %v9905_v6  ;;  %v12708_v42 = vpop.permute.xlu1 %3470 }
 0x793   :  { %v8983_v60 = vpop.f32.mrb[68].mxu0  ;;  %8929 = vmatprep.mubr.msk.f32.mxu1 %vm352_vm2, %v12255_v52  ;;  %v3891_v27 = vmul.f32 0.5, %v9906_v11  ;;  %14135 = vst [vmem:[#allocation45_spill] sm:$0xff] %v12708_v42 }
 0x794   :  { %v9907_v51 = vadd.f32 %v8983_v60, %v12649_v57  ;;  %v3814_v15 = vpop.f32.mrb[69].mxu0  ;;  %10575 = vtanh.f32 %v3892_v0 }
 0x795   :  { %v9908_v48 = vadd.f32 %v3814_v15, %v12651_v62 }
 0x796   :  { %v3906_v22 = vmul.f32 0.5, %v9907_v51  ;;  %8930 = vmatmul.mubr.msk.f32.gmra.mrb[56].mxu1 %vm352_vm2, %v12262_v54 }
 0x797   :  { %v3905_v2 = vmul.f32 0.5, %v9908_v48  ;;  %v8986_v39 = vpop.f32.mrb[70].mxu0  ;;  %8932 = vmatprep.mubr.msk.f32.mxu1 %vm352_vm2, %v12269_v56  ;;  %v12699_v56 = vpop.permute.xlu0 %3455 }
 0x798   :  { %10577 = vtanh.f32 %v3906_v22  ;;  %v9909_v52 = vadd.f32 %v8986_v39, %v12669_v26  ;;  %v3824_v13 = vpop.f32.mrb[71].mxu0  ;;  %14134 = vst [vmem:[#allocation44_spill] sm:$0xff] %v12699_v56 }
 0x799   :  { %10579 = vtanh.f32 %v3905_v2  ;;  %v9910_v19 = vadd.f32 %v3824_v13, %v12673_v44 }
 0x79a   :  { %10581 = vtanh.f32 %v3891_v27  ;;  %v3908_v10 = vmul.f32 0.5, %v9909_v52  ;;  %8933 = vmatmul.mubr.msk.f32.gmra.mrb[58].mxu1 %vm352_vm2, %v12276_v50  ;;  %v10572_v7 = vpop.eup %10571 }
 0x79b   :  { %v3907_v54 = vmul.f32 0.5, %v9910_v19  ;;  %v8989_v49 = vpop.f32.mrb[72].mxu0  ;;  %8935 = vmatprep.mubr.msk.f32.mxu1 %vm352_vm2, %v12283_v8  ;;  %v10574_v50 = vpop.eup %10573  ;;  %v3898_v51 = vadd.f32 1.0, %v10572_v7 }
 0x79c   :  { %10583 = vtanh.f32 %v3908_v10  ;;  %v9911_v29 = vadd.f32 %v8989_v49, %v12682_v25  ;;  %v3834_v40 = vpop.f32.mrb[73].mxu0  ;;  %v12711_v60 = vpop.permute.xlu0 %3465  ;;  %v3897_v15 = vadd.f32 1.0, %v10574_v50 }
 0x79d   :  { %10585 = vtanh.f32 %v3907_v54  ;;  %v9912_v4 = vadd.f32 %v3834_v40, %v12685_v30  ;;  %14136 = vst [vmem:[#allocation46_spill] sm:$0xff] %v12711_v60  ;;  %v3902_v10 = vmul.f32 0.5, %v3898_v51  ;;  %v12719_v40 = vpop.permute.xlu1 %3480 }
 0x79e   :  { %10587 = vtanh.f32 %v9911_v29  ;;  %8936 = vmatmul.mubr.msk.f32.gmra.mrb[60].mxu1 %vm352_vm2, %v12290_v14  ;;  %v10576_v37 = vpop.eup %10575  ;;  %v3901_v54 = vmul.f32 0.5, %v3897_v15  ;;  %14137 = vst [vmem:[#allocation47_spill] sm:$0xff] %v12719_v40 }
 0x79f   :  { %10589 = vtanh.f32 %v9912_v4  ;;  %v8992_v33 = vpop.f32.mrb[74].mxu0  ;;  %8938 = vmatprep.mubr.msk.f32.mxu1 %vm352_vm2, %v12297_v63  ;;  %v3900_v4 = vadd.f32 1.0, %v10576_v37 }
 0x7a0   :  { %v9913_v8 = vadd.f32 %v8992_v33, %v12695_v32  ;;  %v3844_v6 = vpop.f32.mrb[75].mxu0 }
 0x7a1   :  { %v9914_v11 = vadd.f32 %v3844_v6, %v12699_v56 }
 0x7a2   :  { %v10578_v0 = vpop.eup %10577  ;;  %10591 = vtanh.f32 %v9913_v8  ;;  %8939 = vmatmul.mubr.msk.f32.gmra.mrb[62].mxu1 %vm352_vm2, %v12309_v9 }
 0x7a3   :  { %v10580_v14 = vpop.eup %10579  ;;  %v3914_v48 = vadd.f32 1.0, %v10578_v0  ;;  %10593 = vtanh.f32 %v9914_v11  ;;  %v8995_v63 = vpop.f32.mrb[76].mxu0  ;;  %9007 = vmatprep.mubr.msk.f32.mxu1 %vm352_vm2, %v12605_v20 }
 0x7a4   :  { %v10582_v27 = vpop.eup %10581  ;;  %v3913_v22 = vadd.f32 1.0, %v10580_v14  ;;  %v9915_v2 = vadd.f32 %v8995_v63, %v12708_v42  ;;  %v3854_v39 = vpop.f32.mrb[77].mxu0 }
 0x7a5   :  { %v3918_v52 = vmul.f32 0.5, %v3914_v48  ;;  %v9916_v13 = vadd.f32 %v3854_v39, %v12711_v60  ;;  %v3899_v7 = vadd.f32 1.0, %v10582_v27  ;;  %v12721_v11 = vpop.permute.xlu0 %3475 }
 0x7a6   :  { %v10584_v19 = vpop.eup %10583  ;;  %v3917_v49 = vmul.f32 0.5, %v3913_v22  ;;  %v3926_v9 = vmul.f32 0.5, %v9915_v2 }
 0x7a7   :  { %v10586_v29 = vpop.eup %10585  ;;  %v3916_v50 = vadd.f32 1.0, %v10584_v19  ;;  %v3925_v33 = vmul.f32 0.5, %v9916_v13  ;;  %v8998_v8 = vpop.f32.mrb[78].mxu0  ;;  %v3942_v0 = vmul.f32 0.0, %v3918_v52  ;;  %v3904_v19 = vmul.f32 0.5, %v3900_v4 }
 0x7a8   :  { %v10588_v6 = vpop.eup %10587  ;;  %v3915_v14 = vadd.f32 1.0, %v10586_v29  ;;  %10595 = vtanh.f32 %v3926_v9  ;;  %v9917_v48 = vadd.f32 %v8998_v8, %v12719_v40  ;;  %v3864_v51 = vpop.f32.mrb[79].mxu0  ;;  %v3941_v37 = vmul.f32 0.0, %v3917_v49 }
 0x7a9   :  { %v10590_v15 = vpop.eup %10589  ;;  %v3920_v63 = vmul.f32 0.5, %v3916_v50  ;;  %v3946_v22 = vmul.f32 %v10588_v6, %v3902_v10  ;;  %10597 = vtanh.f32 %v3925_v33  ;;  %v9918_v2 = vadd.f32 %v3864_v51, %v12721_v11 }
 0x7aa   :  { %v3919_v27 = vmul.f32 0.5, %v3915_v14  ;;  %v3945_v39 = vmul.f32 %v10590_v15, %v3901_v54  ;;  %v3928_v13 = vmul.f32 0.5, %v9917_v48  ;;  %v3903_v29 = vmul.f32 0.5, %v3899_v7 }
 0x7ab   :  { %v12725_v60 = vadd.f32 %v3946_v22, %v3942_v0  ;;  %v3927_v42 = vmul.f32 0.5, %v9918_v2  ;;  %v3944_v40 = vmul.f32 0.0, %v3920_v63 }
 0x7ac   :  { %v10592_v52 = vpop.eup %10591  ;;  %v12727_v9 = vadd.f32 %v3945_v39, %v3941_v37  ;;  %10599 = vtanh.f32 %v3928_v13  ;;  %v3943_v50 = vmul.f32 0.0, %v3919_v27 }
 0x7ad   :  { %v10594_v8 = vpop.eup %10593  ;;  %10601 = vtanh.f32 %v12725_v60  ;;  %v3948_v10 = vmul.f32 %v10592_v52, %v3904_v19 }
 0x7ae   :  { %10603 = vtanh.f32 %v12727_v9  ;;  %v3947_v49 = vmul.f32 %v10594_v8, %v3903_v29 }
 0x7af   :  { %v12731_v54 = vadd.f32 %v3948_v10, %v3944_v40  ;;  %10605 = vtanh.f32 %v3927_v42  ;;  %v4044_v10 = vld [vmem:[#allocation2 + $0x20] sm:$0xff] }
 0x7b0   :  { %v12733_v4 = vadd.f32 %v3947_v49, %v3943_v50  ;;  %v4045_v50 = vld [vmem:[#allocation2 + $0x28] sm:$0xff] }
 0x7b1   :  { %10607 = vtanh.f32 %v12731_v54 }
 0x7b2   :  { %v10596_v7 = vpop.eup %10595  ;;  %10609 = vtanh.f32 %v12733_v4 }
 0x7b3   :  { %v10598_v33 = vpop.eup %10597  ;;  %v3934_v6 = vadd.f32 1.0, %v10596_v7  ;;  %v9607_v7 = vpack.c.bf16 %v4045_v50, %v4044_v10  ;;  %v14158_v10 = vld [vmem:[#allocation8_spill] sm:$0xff] }
 0x7b4   :  { %v3933_v0 = vadd.f32 1.0, %v10598_v33  ;;  %v12740_v33 = vld [vmem:[%s13879_s1 + $0x308] sm:$0xff] }
 0x7b5   :  { %v3938_v14 = vmul.f32 0.5, %v3934_v6  ;;  %v4046_v6 = vld [vmem:[#allocation2 + $0x30] sm:$0xff] }
 0x7b6   :  { %v10600_v48 = vpop.eup %10599  ;;  %v3937_v51 = vmul.f32 0.5, %v3933_v0  ;;  %v4047_v0 = vld [vmem:[#allocation2 + $0x38] sm:$0xff] }
 0x7b7   :  { %v10602_v15 = vpop.eup %10601  ;;  %v3936_v63 = vadd.f32 1.0, %v10600_v48  ;;  %v14151_v48 = vld [vmem:[#allocation27_spill] sm:$0xff] }
 0x7b8   :  { %v10604_v22 = vpop.eup %10603  ;;  %v3958_v2 = vmul.f32 %v10602_v15, %v3938_v14  ;;  %v9611_v14 = vpack.c.bf16 %v4047_v0, %v4046_v6  ;;  %v14153_v15 = vld [vmem:[#allocation29_spill] sm:$0xff] }
 0x7b9   :  { %v10606_v40 = vpop.eup %10605  ;;  %v3957_v37 = vmul.f32 %v10604_v22, %v3937_v51  ;;  %v3940_v42 = vmul.f32 0.5, %v3936_v63  ;;  %v14152_v51 = vld [vmem:[#allocation28_spill] sm:$0xff]  ;;  %v14154_v63 = vld [vmem:[#allocation30_spill] sm:$0xff]  ;;  %v14155_v22 = vld [vmem:[#allocation31_spill] sm:$0xff] }
 0x7ba   :  { %v3935_v27 = vadd.f32 1.0, %v10606_v40  ;;  %v14159_v6 = vld [vmem:[#allocation5_spill] sm:$0xff] }
 0x7bb   :  { %v10608_v39 = vpop.eup %10607  ;;  %v9599_v13 = vpack.c.bf16 %v3958_v2, %v3957_v37  ;;  %v14156_v2 = vld [vmem:[#allocation32_spill] sm:$0xff]  ;;  %v14157_v37 = vld [vmem:[#allocation6_spill] sm:$0xff] }
 0x7bc   :  { %v10610_v19 = vpop.eup %10609  ;;  %v3960_v52 = vmul.f32 %v10608_v39, %v3940_v42  ;;  %v3939_v29 = vmul.f32 0.5, %v3935_v27 }
 0x7bd   :  { %9600 = vmatprep.subr.bf16.mxu1 %v9599_v13 }
 0x7be   :  { %v3959_v8 = vmul.f32 %v10610_v19, %v3939_v29  ;;  %9602 = vmatpush3.bf16.msra.mxu1 %v9599_v13 }
 0x7c0   :  { %v9603_v49 = vpack.c.bf16 %v3960_v52, %v3959_v8 }
 0x7c2   :  { %9604 = vmatprep.subr.bf16.mxu1 %v9603_v49 }
 0x7c3   :  { %9606 = vmatpush3.bf16.msra.mxu1 %v9603_v49 }
 0x7c4   :  { %9608 = vmatprep.subr.bf16.mxu1 %v9607_v7 }
 0x7c6   :  { %9008 = vmatmul.mubr.msk.f32.vlgmr.msra.gmra.mrb[64].mxu1 %vm352_vm2, %v12740_v33 }
 0x7c7   :  { %9610 = vmatpush3.bf16.msra.mxu1 %v9607_v7  ;;  %9018 = vmatprep.mubr.msk.f32.mxu1 %vm352_vm2, %v12304_v21  ;;  %v14138_v21 = vld [vmem:[#allocation17_spill] sm:$0xff] }
 0x7c8   :  { %9612 = vmatprep.subr.bf16.mxu1 %v9611_v14 }
 0x7cb   :  { %9614 = vmatpush3.bf16.msra.mxu1 %v9611_v14  ;;  %v14160_v14 = vld [vmem:[#allocation3_spill] sm:$0xff] }
 0x7cc   :  { %9616 = vmatprep.subr.bf16.mxu1 %v9599_v13 }
 0x7ce   :  { %9019 = vmatmul.mubr.msk.f32.vlgmr.msra.gmra.mrb[66].mxu1 %vm352_vm2, %v12318_v31  ;;  %v14139_v31 = vld [vmem:[#allocation15_spill] sm:$0xff] }
 0x7cf   :  { %9618 = vmatpush3.bf16.msra.mxu1 %v9599_v13  ;;  %9021 = vmatprep.mubr.msk.f32.mxu1 %vm352_vm2, %v12323_v23  ;;  %v14140_v23 = vld [vmem:[#allocation18_spill] sm:$0xff] }
 0x7d0   :  { %9620 = vmatprep.subr.bf16.mxu1 %v9603_v49 }
 0x7d2   :  { %9022 = vmatmul.mubr.msk.f32.gmra.mrb[68].mxu1 %vm352_vm2, %v12332_v35  ;;  %v14141_v35 = vld [vmem:[#allocation4_spill] sm:$0xff] }
 0x7d3   :  { %9622 = vmatpush3.bf16.msra.mxu1 %v9603_v49  ;;  %9024 = vmatprep.mubr.msk.f32.mxu1 %vm352_vm2, %v12338_v38  ;;  %v14142_v38 = vld [vmem:[#allocation7_spill] sm:$0xff] }
 0x7d6   :  { %9025 = vmatmul.mubr.msk.f32.gmra.mrb[70].mxu1 %vm352_vm2, %v12347_v3  ;;  %v14143_v3 = vld [vmem:[#allocation19_spill] sm:$0xff] }
 0x7d7   :  { %9027 = vmatprep.mubr.msk.f32.mxu1 %vm352_vm2, %v12352_v41  ;;  %v14144_v41 = vld [vmem:[#allocation20_spill] sm:$0xff] }
 0x7da   :  { %9028 = vmatmul.mubr.msk.f32.gmra.mrb[72].mxu1 %vm352_vm2, %v12361_v1  ;;  %v14145_v1 = vld [vmem:[#allocation21_spill] sm:$0xff] }
 0x7db   :  { %9030 = vmatprep.mubr.msk.f32.mxu1 %vm352_vm2, %v12366_v43  ;;  %v14146_v43 = vld [vmem:[#allocation22_spill] sm:$0xff] }
 0x7de   :  { %9031 = vmatmul.mubr.msk.f32.gmra.mrb[74].mxu1 %vm352_vm2, %v12375_v45  ;;  %v14147_v45 = vld [vmem:[#allocation23_spill] sm:$0xff] }
 0x7df   :  { %9033 = vmatprep.mubr.msk.f32.mxu1 %vm352_vm2, %v12380_v53  ;;  %v14148_v53 = vld [vmem:[#allocation24_spill] sm:$0xff] }
 0x7e2   :  { %9034 = vmatmul.mubr.msk.f32.gmra.mrb[76].mxu1 %vm352_vm2, %v12389_v59  ;;  %v14149_v59 = vld [vmem:[#allocation25_spill] sm:$0xff] }
 0x7e3   :  { %9036 = vmatprep.mubr.msk.f32.mxu1 %vm352_vm2, %v12394_v61  ;;  %v14150_v61 = vld [vmem:[#allocation26_spill] sm:$0xff] }
 0x7e6   :  { %9037 = vmatmul.mubr.msk.f32.gmra.mrb[78].mxu1 %vm352_vm2, %v14138_v21 }
 0x7e7   :  { %9039 = vmatprep.mubr.msk.f32.mxu1 %vm352_vm2, %v14139_v31 }
 0x7ea   :  { %9040 = vmatmul.mubr.msk.f32.gmra.mrb[80].mxu1 %vm352_vm2, %v14140_v23 }
 0x7eb   :  { %9050 = vmatprep.mubr.msk.f32.mxu1 %vm352_vm2, %v14141_v35 }
 0x7ee   :  { %9051 = vmatmul.mubr.msk.f32.vlgmr.msra.gmra.mrb[66].mxu1 %vm352_vm2, %v14142_v38 }
 0x7ef   :  { %9053 = vmatprep.mubr.msk.f32.mxu1 %vm352_vm2, %v14143_v3 }
 0x7f2   :  { %9054 = vmatmul.mubr.msk.f32.gmra.mrb[68].mxu1 %vm352_vm2, %v14144_v41  ;;  %v14162_v41 = vld [vmem:[#allocation10_spill] sm:$0xff] }
 0x7f3   :  { %9056 = vmatprep.mubr.msk.f32.mxu1 %vm352_vm2, %v14145_v1 }
 0x7f6   :  { %9057 = vmatmul.mubr.msk.f32.gmra.mrb[70].mxu1 %vm352_vm2, %v14146_v43 }
 0x7f7   :  { %9059 = vmatprep.mubr.msk.f32.mxu1 %vm352_vm2, %v14147_v45 }
 0x7fa   :  { %9060 = vmatmul.mubr.msk.f32.gmra.mrb[72].mxu1 %vm352_vm2, %v14148_v53 }
 0x7fb   :  { %9062 = vmatprep.mubr.msk.f32.mxu1 %vm352_vm2, %v14149_v59  ;;  %v14163_v59 = vld [vmem:[#allocation11_spill] sm:$0xff] }
 0x7fe   :  { %9063 = vmatmul.mubr.msk.f32.gmra.mrb[74].mxu1 %vm352_vm2, %v14150_v61 }
 0x7ff   :  { %9065 = vmatprep.mubr.msk.f32.mxu1 %vm352_vm2, %v14151_v48 }
 0x802   :  { %9066 = vmatmul.mubr.msk.f32.gmra.mrb[76].mxu1 %vm352_vm2, %v14152_v51  ;;  %v14164_v51 = vld [vmem:[#allocation12_spill] sm:$0xff] }
 0x803   :  { %9068 = vmatprep.mubr.msk.f32.mxu1 %vm352_vm2, %v14153_v15 }
 0x806   :  { %9069 = vmatmul.mubr.msk.f32.gmra.mrb[78].mxu1 %vm352_vm2, %v14154_v63 }
 0x807   :  { %9071 = vmatprep.mubr.msk.f32.mxu1 %vm352_vm2, %v14155_v22 }
 0x80a   :  { %9072 = vmatmul.mubr.msk.f32.gmra.mrb[80].mxu1 %vm352_vm2, %v14156_v2 }
 0x80b   :  { %9157 = vmatprep.mubr.msk.f32.mxu1 %vm352_vm2, %v12605_v20 }
 0x859   :  { %v8919_v40 = vpop.f32.mrb[48].mxu1 }
 0x85a   :  { %v9887_v42 = vadd.f32 %v8919_v40, %v14157_v37  ;;  %v3183_v27 = vpop.f32.mrb[49].mxu1  ;;  %v14165_v40 = vld [vmem:[#allocation13_spill] sm:$0xff] }
 0x85b   :  { %v9888_v39 = vadd.f32 %v3183_v27, %v14091_v55 }
 0x85c   :  { %v3279_v19 = vmul.f32 0.5, %v9887_v42 }
 0x85d   :  { %v8922_v13 = vpop.f32.mrb[50].mxu1  ;;  %v3278_v8 = vmul.f32 0.5, %v9888_v39  ;;  %v14166_v39 = vld [vmem:[#allocation14_spill] sm:$0xff] }
 0x85e   :  { %v9889_v52 = vadd.f32 %v8922_v13, %v14092_v24  ;;  %v3193_v29 = vpop.f32.mrb[51].mxu1  ;;  %10611 = vtanh.f32 %v3279_v19  ;;  %v14161_v24 = vld [vmem:[#allocation9_spill] sm:$0xff] }
 0x85f   :  { %v9890_v50 = vadd.f32 %v3193_v29, %v14158_v10  ;;  %10613 = vtanh.f32 %v3278_v8 }
 0x860   :  { %v3281_v49 = vmul.f32 0.5, %v9889_v52 }
 0x861   :  { %v8925_v7 = vpop.f32.mrb[52].mxu1  ;;  %v3280_v31 = vmul.f32 0.5, %v9890_v50 }
 0x862   :  { %v9891_v0 = vadd.f32 %v8925_v7, %v14159_v6  ;;  %v3203_v20 = vpop.f32.mrb[53].mxu1  ;;  %10615 = vtanh.f32 %v3281_v49 }
 0x863   :  { %v9892_v21 = vadd.f32 %v3203_v20, %v14160_v14  ;;  %v14167_v14 = vld [vmem:[#allocation16_spill] sm:$0xff] }
 0x864   :  { %v3295_v23 = vmul.f32 0.5, %v9891_v0 }
 0x865   :  { %v3294_v55 = vmul.f32 0.5, %v9892_v21  ;;  %v8928_v35 = vpop.f32.mrb[54].mxu1 }
 0x866   :  { %10617 = vtanh.f32 %v3295_v23  ;;  %v9893_v38 = vadd.f32 %v8928_v35, %v14161_v24  ;;  %v3213_v3 = vpop.f32.mrb[55].mxu1 }
 0x867   :  { %10619 = vtanh.f32 %v3294_v55  ;;  %v9894_v1 = vadd.f32 %v3213_v3, %v14162_v41 }
 0x868   :  { %10621 = vtanh.f32 %v3280_v31  ;;  %v3297_v43 = vmul.f32 0.5, %v9893_v38  ;;  %v10612_v63 = vpop.eup %10611 }
 0x869   :  { %v3296_v45 = vmul.f32 0.5, %v9894_v1  ;;  %v8931_v53 = vpop.f32.mrb[56].mxu1  ;;  %v10614_v22 = vpop.eup %10613  ;;  %v3287_v52 = vadd.f32 1.0, %v10612_v63 }
 0x86a   :  { %10623 = vtanh.f32 %v3297_v43  ;;  %v9895_v61 = vadd.f32 %v8931_v53, %v14163_v59  ;;  %v3223_v48 = vpop.f32.mrb[57].mxu1  ;;  %v3286_v29 = vadd.f32 1.0, %v10614_v22 }
 0x86b   :  { %10625 = vtanh.f32 %v3296_v45  ;;  %v9896_v15 = vadd.f32 %v3223_v48, %v14164_v51  ;;  %v3291_v23 = vmul.f32 0.5, %v3287_v52 }
 0x86c   :  { %10627 = vtanh.f32 %v9895_v61  ;;  %v10616_v27 = vpop.eup %10615  ;;  %v3290_v55 = vmul.f32 0.5, %v3286_v29 }
 0x86d   :  { %10629 = vtanh.f32 %v9896_v15  ;;  %v8934_v2 = vpop.f32.mrb[58].mxu1  ;;  %v3289_v3 = vadd.f32 1.0, %v10616_v27 }
 0x86e   :  { %v9897_v37 = vadd.f32 %v8934_v2, %v14165_v40  ;;  %v3233_v42 = vpop.f32.mrb[59].mxu1 }
 0x86f   :  { %v9898_v13 = vadd.f32 %v3233_v42, %v14166_v39  ;;  %v3293_v27 = vmul.f32 0.5, %v3289_v3 }
 0x870   :  { %v10618_v19 = vpop.eup %10617  ;;  %10631 = vtanh.f32 %v9897_v37 }
 0x871   :  { %v10620_v8 = vpop.eup %10619  ;;  %v3303_v10 = vadd.f32 1.0, %v10618_v19  ;;  %10633 = vtanh.f32 %v9898_v13  ;;  %v8937_v50 = vpop.f32.mrb[60].mxu1 }
 0x872   :  { %v10622_v49 = vpop.eup %10621  ;;  %v3302_v7 = vadd.f32 1.0, %v10620_v8  ;;  %v9899_v6 = vadd.f32 %v8937_v50, %v14070_v5  ;;  %v3243_v0 = vpop.f32.mrb[61].mxu1 }
 0x873   :  { %v3307_v20 = vmul.f32 0.5, %v3303_v10  ;;  %v9900_v21 = vadd.f32 %v3243_v0, %v14167_v14  ;;  %v3288_v41 = vadd.f32 1.0, %v10622_v49 }
 0x874   :  { %v10624_v31 = vpop.eup %10623  ;;  %v3306_v35 = vmul.f32 0.5, %v3302_v7  ;;  %v3315_v24 = vmul.f32 0.5, %v9899_v6 }
 0x875   :  { %v10626_v38 = vpop.eup %10625  ;;  %v3305_v1 = vadd.f32 1.0, %v10624_v31  ;;  %v3314_v43 = vmul.f32 0.5, %v9900_v21  ;;  %v8940_v45 = vpop.f32.mrb[62].mxu1  ;;  %v3331_v59 = vmul.f32 %v3307_v20, %v12627_v34  ;;  %v3292_v19 = vmul.f32 0.5, %v3288_v41 }
 0x876   :  { %v10628_v53 = vpop.eup %10627  ;;  %v3304_v61 = vadd.f32 1.0, %v10626_v38  ;;  %10635 = vtanh.f32 %v3315_v24  ;;  %v9901_v5 = vadd.f32 %v8940_v45, %v14057_v28  ;;  %v3253_v48 = vpop.f32.mrb[63].mxu1  ;;  %v3330_v2 = vmul.f32 %v3306_v35, %v12629_v46 }
 0x877   :  { %v10630_v51 = vpop.eup %10629  ;;  %v3309_v15 = vmul.f32 0.5, %v3305_v1  ;;  %v3335_v63 = vmul.f32 %v10628_v53, %v3291_v23  ;;  %10637 = vtanh.f32 %v3314_v43  ;;  %v9902_v22 = vadd.f32 %v3253_v48, %v11497_v16  ;;  %v12834_v53 = vpop.permute.xlu1 %22 }
 0x878   :  { %v3308_v40 = vmul.f32 0.5, %v3304_v61  ;;  %v3334_v37 = vmul.f32 %v10630_v51, %v3290_v55  ;;  %v3317_v42 = vmul.f32 0.5, %v9901_v5  ;;  %14168 = vst [vmem:[#allocation17_spill] sm:$0xff] %v12834_v53  ;;  %v12836_v61 = vpop.permute.xlu0 %17 }
 0x879   :  { %v3339_v39 = vadd.f32 %v3335_v63, %v3331_v59  ;;  %v3316_v13 = vmul.f32 0.5, %v9902_v22  ;;  %v3333_v29 = vmul.f32 %v3309_v15, %v12635_v58  ;;  %14169 = vst [vmem:[#allocation15_spill] sm:$0xff] %v12836_v61 }
 0x87a   :  { %v10632_v34 = vpop.eup %10631  ;;  %v3338_v52 = vadd.f32 %v3334_v37, %v3330_v2  ;;  %10639 = vtanh.f32 %v3317_v42  ;;  %v3332_v10 = vmul.f32 %v3308_v40, %v12637_v36 }
 0x87b   :  { %v10634_v28 = vpop.eup %10633  ;;  %10641 = vtanh.f32 %v3339_v39  ;;  %v3337_v8 = vmul.f32 %v10632_v34, %v3293_v27 }
 0x87c   :  { %10643 = vtanh.f32 %v3338_v52  ;;  %v3336_v16 = vmul.f32 %v10634_v28, %v3292_v19 }
 0x87d   :  { %v3341_v46 = vadd.f32 %v3337_v8, %v3333_v29  ;;  %10645 = vtanh.f32 %v3316_v13 }
 0x87e   :  { %v3340_v50 = vadd.f32 %v3336_v16, %v3332_v10 }
 0x87f   :  { %10647 = vtanh.f32 %v3341_v46 }
 0x880   :  { %v10636_v49 = vpop.eup %10635  ;;  %10649 = vtanh.f32 %v3340_v50 }
 0x881   :  { %v10638_v7 = vpop.eup %10637  ;;  %v3323_v6 = vadd.f32 1.0, %v10636_v49 }
 0x882   :  { %v3322_v0 = vadd.f32 1.0, %v10638_v7 }
 0x883   :  { %v3327_v20 = vmul.f32 0.5, %v3323_v6 }
 0x884   :  { %v10640_v14 = vpop.eup %10639  ;;  %v3326_v21 = vmul.f32 0.5, %v3322_v0 }
 0x885   :  { %v10642_v31 = vpop.eup %10641  ;;  %v3325_v58 = vadd.f32 1.0, %v10640_v14 }
 0x886   :  { %v10644_v23 = vpop.eup %10643  ;;  %v3347_v55 = vmul.f32 %v10642_v31, %v3327_v20 }
 0x887   :  { %v10646_v35 = vpop.eup %10645  ;;  %v3346_v36 = vmul.f32 %v10644_v23, %v3326_v21  ;;  %v3329_v24 = vmul.f32 0.5, %v3325_v58 }
 0x888   :  { %3352 = vst.msk [vmem:[#allocation2 + $0xe8] sm:$0xff] %vm634_vm3, %v3347_v55  ;;  %v3324_v38 = vadd.f32 1.0, %v10646_v35 }
 0x889   :  { %v10648_v3 = vpop.eup %10647  ;;  %3351 = vst.msk [vmem:[#allocation2 + $0xe0] sm:$0xff] %vm634_vm3, %v3346_v36 }
 0x88a   :  { %v10650_v41 = vpop.eup %10649  ;;  %v3349_v1 = vmul.f32 %v10648_v3, %v3329_v24  ;;  %v3328_v43 = vmul.f32 0.5, %v3324_v38 }
 0x88c   :  { %3354 = vst.msk [vmem:[#allocation2 + $0xf8] sm:$0xff] %vm634_vm3, %v3349_v1  ;;  %v3348_v45 = vmul.f32 %v10650_v41, %v3328_v43 }
 0x88e   :  { %3353 = vst.msk [vmem:[#allocation2 + $0xf0] sm:$0xff] %vm634_vm3, %v3348_v45 }
 0x899   :  { %v9009_v59 = vpop.f32.mrb[64].mxu1 }
 0x89a   :  { %v4039_v5 = vadd.f32 %v9009_v59, %v12834_v53  ;;  %v4033_v48 = vpop.f32.mrb[65].mxu1 }
 0x89b   :  { %v4034_v51 = vadd.f32 %v4033_v48, %v12836_v61 }
 0x89c   :  { %4043 = vst.msk [vmem:[%s13880_s2 + $0x8] sm:$0xff] %vm634_vm3, %v4039_v5 }
 0x89d   :  { %4042 = vst.msk [vmem:[%s13880_s2] sm:$0xff] %vm634_vm3, %v4034_v51  ;;  %v14170_v51 = vld [vmem:[#allocation45_spill] sm:$0xff] }
 0x8c1   :  { %v9052_v15 = vpop.f32.mrb[66].mxu1 }
 0x8c2   :  { %v9919_v63 = vadd.f32 %v9052_v15, %v12643_v17  ;;  %v4259_v22 = vpop.f32.mrb[67].mxu1 }
 0x8c3   :  { %v9920_v2 = vadd.f32 %v4259_v22, %v12645_v47 }
 0x8c4   :  { %v4355_v37 = vmul.f32 0.5, %v9919_v63 }
 0x8c5   :  { %v9055_v40 = vpop.f32.mrb[68].mxu1  ;;  %v4354_v39 = vmul.f32 0.5, %v9920_v2  ;;  %v14171_v2 = vld [vmem:[#allocation46_spill] sm:$0xff] }
 0x8c6   :  { %v9921_v42 = vadd.f32 %v9055_v40, %v12657_v12  ;;  %v4269_v27 = vpop.f32.mrb[69].mxu1  ;;  %10651 = vtanh.f32 %v4355_v37 }
 0x8c7   :  { %v9922_v13 = vadd.f32 %v4269_v27, %v12659_v18  ;;  %10653 = vtanh.f32 %v4354_v39 }
 0x8c8   :  { %v4357_v34 = vmul.f32 0.5, %v9921_v42 }
 0x8c9   :  { %v9058_v19 = vpop.f32.mrb[70].mxu1  ;;  %v4356_v8 = vmul.f32 0.5, %v9922_v13 }
 0x8ca   :  { %v9923_v52 = vadd.f32 %v9058_v19, %v12649_v57  ;;  %v4279_v28 = vpop.f32.mrb[71].mxu1  ;;  %10655 = vtanh.f32 %v4357_v34 }
 0x8cb   :  { %v9924_v29 = vadd.f32 %v4279_v28, %v12651_v62 }
 0x8cc   :  { %v4371_v10 = vmul.f32 0.5, %v9923_v52 }
 0x8cd   :  { %v4370_v16 = vmul.f32 0.5, %v9924_v29  ;;  %v9061_v46 = vpop.f32.mrb[72].mxu1 }
 0x8ce   :  { %10657 = vtanh.f32 %v4371_v10  ;;  %v9925_v50 = vadd.f32 %v9061_v46, %v12669_v26  ;;  %v4289_v49 = vpop.f32.mrb[73].mxu1 }
 0x8cf   :  { %10659 = vtanh.f32 %v4370_v16  ;;  %v9926_v7 = vadd.f32 %v4289_v49, %v12673_v44 }
 0x8d0   :  { %10661 = vtanh.f32 %v4356_v8  ;;  %v4373_v6 = vmul.f32 0.5, %v9925_v50  ;;  %v10652_v58 = vpop.eup %10651  ;;  %v14172_v50 = vld [vmem:[#allocation47_spill] sm:$0xff] }
 0x8d1   :  { %v4372_v0 = vmul.f32 0.5, %v9926_v7  ;;  %v9064_v20 = vpop.f32.mrb[74].mxu1  ;;  %v10654_v23 = vpop.eup %10653  ;;  %v4363_v41 = vadd.f32 1.0, %v10652_v58 }
 0x8d2   :  { %10663 = vtanh.f32 %v4373_v6  ;;  %v9927_v14 = vadd.f32 %v9064_v20, %v12682_v25  ;;  %v4299_v21 = vpop.f32.mrb[75].mxu1  ;;  %v4362_v1 = vadd.f32 1.0, %v10654_v23 }
 0x8d3   :  { %10665 = vtanh.f32 %v4372_v0  ;;  %v9928_v31 = vadd.f32 %v4299_v21, %v12685_v30  ;;  %v4367_v42 = vmul.f32 0.5, %v4363_v41 }
 0x8d4   :  { %10667 = vtanh.f32 %v9927_v14  ;;  %v10656_v24 = vpop.eup %10655  ;;  %v4366_v27 = vmul.f32 0.5, %v4362_v1 }
 0x8d5   :  { %10669 = vtanh.f32 %v9928_v31  ;;  %v9067_v55 = vpop.f32.mrb[76].mxu1  ;;  %v4365_v19 = vadd.f32 1.0, %v10656_v24 }
 0x8d6   :  { %v9929_v35 = vadd.f32 %v9067_v55, %v12695_v32  ;;  %v4309_v36 = vpop.f32.mrb[77].mxu1 }
 0x8d7   :  { %v9930_v38 = vadd.f32 %v4309_v36, %v12699_v56  ;;  %v4369_v55 = vmul.f32 0.5, %v4365_v19 }
 0x8d8   :  { %v10658_v3 = vpop.eup %10657  ;;  %10671 = vtanh.f32 %v9929_v35 }
 0x8d9   :  { %v10660_v43 = vpop.eup %10659  ;;  %v4379_v45 = vadd.f32 1.0, %v10658_v3  ;;  %10673 = vtanh.f32 %v9930_v38  ;;  %v9070_v59 = vpop.f32.mrb[78].mxu1 }
 0x8da   :  { %v10662_v5 = vpop.eup %10661  ;;  %v4378_v48 = vadd.f32 1.0, %v10660_v43  ;;  %v9931_v15 = vadd.f32 %v9070_v59, %v14170_v51  ;;  %v4319_v63 = vpop.f32.mrb[79].mxu1 }
 0x8db   :  { %v4383_v22 = vmul.f32 0.5, %v4379_v45  ;;  %v9932_v40 = vadd.f32 %v4319_v63, %v14171_v2  ;;  %v4364_v52 = vadd.f32 1.0, %v10662_v5 }
 0x8dc   :  { %v10664_v37 = vpop.eup %10663  ;;  %v4382_v39 = vmul.f32 0.5, %v4378_v48  ;;  %v4391_v13 = vmul.f32 0.5, %v9931_v15 }
 0x8dd   :  { %v10666_v34 = vpop.eup %10665  ;;  %v4381_v28 = vadd.f32 1.0, %v10664_v37  ;;  %v4390_v29 = vmul.f32 0.5, %v9932_v40  ;;  %v9073_v8 = vpop.f32.mrb[80].mxu1  ;;  %v4407_v16 = vmul.f32 %v4383_v22, %v12725_v60  ;;  %v4368_v24 = vmul.f32 0.5, %v4364_v52 }
 0x8de   :  { %v10668_v10 = vpop.eup %10667  ;;  %v4380_v46 = vadd.f32 1.0, %v10666_v34  ;;  %10675 = vtanh.f32 %v4391_v13  ;;  %v9933_v49 = vadd.f32 %v9073_v8, %v14172_v50  ;;  %v4329_v7 = vpop.f32.mrb[81].mxu1  ;;  %v4406_v21 = vmul.f32 %v4382_v39, %v12727_v9 }
 0x8df   :  { %v10670_v6 = vpop.eup %10669  ;;  %v4385_v0 = vmul.f32 0.5, %v4381_v28  ;;  %v4411_v20 = vmul.f32 %v10668_v10, %v4367_v42  ;;  %10677 = vtanh.f32 %v4390_v29  ;;  %v9934_v14 = vadd.f32 %v4329_v7, %v12721_v11 }
 0x8e0   :  { %v4384_v31 = vmul.f32 0.5, %v4380_v46  ;;  %v4410_v58 = vmul.f32 %v10670_v6, %v4366_v27  ;;  %v4393_v23 = vmul.f32 0.5, %v9933_v49  ;;  %v4504_v46 = vld [vmem:[#allocation2 + $0x40] sm:$0xff]  ;;  %v4505_v49 = vld [vmem:[#allocation2 + $0x48] sm:$0xff] }
 0x8e1   :  { %v12866_v35 = vadd.f32 %v4411_v20, %v4407_v16  ;;  %v4392_v60 = vmul.f32 0.5, %v9934_v14  ;;  %v4409_v41 = vmul.f32 %v4385_v0, %v12731_v54  ;;  %v9631_v6 = vpack.c.bf16 %v4505_v49, %v4504_v46  ;;  %v4506_v0 = vld [vmem:[#allocation2 + $0x50] sm:$0xff]  ;;  %v4507_v20 = vld [vmem:[#allocation2 + $0x58] sm:$0xff] }
 0x8e2   :  { %v10672_v36 = vpop.eup %10671  ;;  %v12868_v38 = vadd.f32 %v4410_v58, %v4406_v21  ;;  %10679 = vtanh.f32 %v4393_v23  ;;  %v4408_v9 = vmul.f32 %v4384_v31, %v12733_v4  ;;  %v9635_v14 = vpack.c.bf16 %v4507_v20, %v4506_v0  ;;  %v12885_v21 = vld [vmem:[%s13879_s1 + $0x180] sm:$0xff]  ;;  %v12892_v31 = vld [vmem:[%s13879_s1 + $0x188] sm:$0xff]  ;;  %v12899_v58 = vld [vmem:[%s13879_s1 + $0x190] sm:$0xff] }
 0x8e3   :  { %v10674_v3 = vpop.eup %10673  ;;  %10681 = vtanh.f32 %v12866_v35  ;;  %v4413_v1 = vmul.f32 %v10672_v36, %v4369_v55  ;;  %v12906_v23 = vld [vmem:[%s13879_s1 + $0x198] sm:$0xff]  ;;  %v12913_v55 = vld [vmem:[%s13879_s1 + $0x1a0] sm:$0xff]  ;;  %v12927_v36 = vld [vmem:[%s13879_s1 + $0x1b0] sm:$0xff] }
 0x8e4   :  { %10683 = vtanh.f32 %v12868_v38  ;;  %v4412_v43 = vmul.f32 %v10674_v3, %v4368_v24  ;;  %v12934_v24 = vld [vmem:[%s13879_s1 + $0x1b8] sm:$0xff]  ;;  %v12941_v3 = vld [vmem:[%s13879_s1 + $0x1c0] sm:$0xff] }
 0x8e5   :  { %v12874_v45 = vadd.f32 %v4413_v1, %v4409_v41  ;;  %10685 = vtanh.f32 %v4392_v60  ;;  %v12920_v60 = vld [vmem:[%s13879_s1 + $0x1a8] sm:$0xff]  ;;  %v12955_v1 = vld [vmem:[%s13879_s1 + $0x1d0] sm:$0xff] }
 0x8e6   :  { %v12876_v59 = vadd.f32 %v4412_v43, %v4408_v9  ;;  %v12948_v41 = vld [vmem:[%s13879_s1 + $0x1c8] sm:$0xff]  ;;  %v12962_v9 = vld [vmem:[%s13879_s1 + $0x1d8] sm:$0xff]  ;;  %v12969_v43 = vld [vmem:[%s13879_s1 + $0x1e0] sm:$0xff] }
 0x8e7   :  { %10687 = vtanh.f32 %v12874_v45 }
 0x8e8   :  { %v10676_v5 = vpop.eup %10675  ;;  %10689 = vtanh.f32 %v12876_v59 }
 0x8e9   :  { %v10678_v48 = vpop.eup %10677  ;;  %v4399_v54 = vadd.f32 1.0, %v10676_v5  ;;  %v12976_v5 = vld [vmem:[%s13879_s1 + $0x1e8] sm:$0xff] }
 0x8ea   :  { %v4398_v15 = vadd.f32 1.0, %v10678_v48  ;;  %v12983_v48 = vld [vmem:[%s13879_s1 + $0x1f0] sm:$0xff] }
 0x8eb   :  { %v4403_v63 = vmul.f32 0.5, %v4399_v54  ;;  %v12990_v54 = vld [vmem:[%s13879_s1 + $0x1f8] sm:$0xff] }
 0x8ec   :  { %v10680_v22 = vpop.eup %10679  ;;  %v4402_v40 = vmul.f32 0.5, %v4398_v15  ;;  %v12997_v15 = vld [vmem:[%s13879_s1 + $0x200] sm:$0xff] }
 0x8ed   :  { %v10682_v4 = vpop.eup %10681  ;;  %v4401_v37 = vadd.f32 1.0, %v10680_v22  ;;  %v13011_v22 = vld [vmem:[%s13879_s1 + $0x210] sm:$0xff] }
 0x8ee   :  { %v10684_v42 = vpop.eup %10683  ;;  %v4423_v27 = vmul.f32 %v10682_v4, %v4403_v63  ;;  %v13004_v63 = vld [vmem:[%s13879_s1 + $0x208] sm:$0xff]  ;;  %v13025_v4 = vld [vmem:[%s13879_s1 + $0x220] sm:$0xff] }
 0x8ef   :  { %v10686_v39 = vpop.eup %10685  ;;  %v4422_v13 = vmul.f32 %v10684_v42, %v4402_v40  ;;  %v4405_v34 = vmul.f32 0.5, %v4401_v37  ;;  %v13018_v40 = vld [vmem:[%s13879_s1 + $0x218] sm:$0xff]  ;;  %v13032_v37 = vld [vmem:[%s13879_s1 + $0x228] sm:$0xff]  ;;  %v13039_v42 = vld [vmem:[%s13879_s1 + $0x230] sm:$0xff] }
 0x8f0   :  { %v4400_v19 = vadd.f32 1.0, %v10686_v39  ;;  %v13053_v39 = vld [vmem:[%s13879_s1 + $0x240] sm:$0xff] }
 0x8f1   :  { %v10688_v52 = vpop.eup %10687  ;;  %v9623_v28 = vpack.c.bf16 %v4423_v27, %v4422_v13  ;;  %v13046_v27 = vld [vmem:[%s13879_s1 + $0x238] sm:$0xff]  ;;  %v13060_v13 = vld [vmem:[%s13879_s1 + $0x248] sm:$0xff] }
 0x8f2   :  { %v10690_v29 = vpop.eup %10689  ;;  %v4425_v8 = vmul.f32 %v10688_v52, %v4405_v34  ;;  %v4404_v10 = vmul.f32 0.5, %v4400_v19  ;;  %v13067_v34 = vld [vmem:[%s13879_s1 + $0x250] sm:$0xff]  ;;  %v13074_v19 = vld [vmem:[%s13879_s1 + $0x258] sm:$0xff]  ;;  %v13081_v52 = vld [vmem:[%s13879_s1 + $0x260] sm:$0xff] }
 0x8f3   :  { %9624 = vmatprep.subr.bf16.mxu0 %v9623_v28  ;;  %14173 = vst [vmem:[#allocation18_spill] sm:$0xff] %v13081_v52 }
 0x8f4   :  { %v4424_v16 = vmul.f32 %v10690_v29, %v4404_v10  ;;  %9626 = vmatpush3.bf16.msra.mxu0 %v9623_v28  ;;  %v13095_v29 = vld [vmem:[%s13879_s1 + $0x270] sm:$0xff]  ;;  %v13109_v10 = vld [vmem:[%s13879_s1 + $0x300] sm:$0xff] }
 0x8f5   :  { %14175 = vst [vmem:[#allocation7_spill] sm:$0xff] %v13095_v29  ;;  %14177 = vst [vmem:[#allocation20_spill] sm:$0xff] %v13109_v10 }
 0x8f6   :  { %v9627_v7 = vpack.c.bf16 %v4425_v8, %v4424_v16  ;;  %v13102_v8 = vld [vmem:[%s13879_s1 + $0x278] sm:$0xff] }
 0x8f7   :  { %14176 = vst [vmem:[#allocation19_spill] sm:$0xff] %v13102_v8 }
 0x8f8   :  { %9628 = vmatprep.subr.bf16.mxu0 %v9627_v7 }
 0x8f9   :  { %9630 = vmatpush3.bf16.msra.mxu0 %v9627_v7 }
 0x8fa   :  { %9632 = vmatprep.subr.bf16.mxu0 %v9631_v6 }
 0x8fc   :  { %9083 = vmatmul.mubr.msk.f32.vlgmr.msra.gmra.mrb[80].mxu0 %vm352_vm2, %v12740_v33 }
 0x8fd   :  { %9634 = vmatpush3.bf16.msra.mxu0 %v9631_v6  ;;  %9093 = vmatprep.mubr.msk.f32.mxu0 %vm352_vm2, %v12885_v21 }
 0x8fe   :  { %9636 = vmatprep.subr.bf16.mxu0 %v9635_v14 }
 0x901   :  { %9638 = vmatpush3.bf16.msra.mxu0 %v9635_v14 }
 0x902   :  { %9640 = vmatprep.subr.bf16.mxu0 %v9623_v28 }
 0x904   :  { %9094 = vmatmul.mubr.msk.f32.vlgmr.msra.gmra.mrb[82].mxu0 %vm352_vm2, %v12892_v31 }
 0x905   :  { %9642 = vmatpush3.bf16.msra.mxu0 %v9623_v28  ;;  %9096 = vmatprep.mubr.msk.f32.mxu0 %vm352_vm2, %v12899_v58  ;;  %v13088_v28 = vld [vmem:[%s13879_s1 + $0x268] sm:$0xff] }
 0x906   :  { %9644 = vmatprep.subr.bf16.mxu0 %v9627_v7  ;;  %14174 = vst [vmem:[#allocation4_spill] sm:$0xff] %v13088_v28 }
 0x908   :  { %9097 = vmatmul.mubr.msk.f32.gmra.mrb[84].mxu0 %vm352_vm2, %v12906_v23 }
 0x909   :  { %9646 = vmatpush3.bf16.msra.mxu0 %v9627_v7  ;;  %9099 = vmatprep.mubr.msk.f32.mxu0 %vm352_vm2, %v12913_v55 }
 0x90c   :  { %9100 = vmatmul.mubr.msk.f32.gmra.mrb[86].mxu0 %vm352_vm2, %v12920_v60 }
 0x90d   :  { %9102 = vmatprep.mubr.msk.f32.mxu0 %vm352_vm2, %v12927_v36 }
 0x910   :  { %9103 = vmatmul.mubr.msk.f32.gmra.mrb[88].mxu0 %vm352_vm2, %v12934_v24 }
 0x911   :  { %9105 = vmatprep.mubr.msk.f32.mxu0 %vm352_vm2, %v12941_v3 }
 0x914   :  { %9106 = vmatmul.mubr.msk.f32.gmra.mrb[90].mxu0 %vm352_vm2, %v12948_v41 }
 0x915   :  { %9108 = vmatprep.mubr.msk.f32.mxu0 %vm352_vm2, %v12955_v1 }
 0x918   :  { %9109 = vmatmul.mubr.msk.f32.gmra.mrb[92].mxu0 %vm352_vm2, %v12962_v9 }
 0x919   :  { %9111 = vmatprep.mubr.msk.f32.mxu0 %vm352_vm2, %v12969_v43 }
 0x91c   :  { %9112 = vmatmul.mubr.msk.f32.gmra.mrb[94].mxu0 %vm352_vm2, %v12976_v5 }
 0x91d   :  { %9114 = vmatprep.mubr.msk.f32.mxu0 %vm352_vm2, %v12983_v48 }
 0x920   :  { %9115 = vmatmul.mubr.msk.f32.gmra.mrb[96].mxu0 %vm352_vm2, %v12990_v54 }
 0x921   :  { %9125 = vmatprep.mubr.msk.f32.mxu0 %vm352_vm2, %v12997_v15 }
 0x924   :  { %9126 = vmatmul.mubr.msk.f32.vlgmr.msra.gmra.mrb[82].mxu0 %vm352_vm2, %v13004_v63 }
 0x925   :  { %9128 = vmatprep.mubr.msk.f32.mxu0 %vm352_vm2, %v13011_v22 }
 0x928   :  { %9129 = vmatmul.mubr.msk.f32.gmra.mrb[84].mxu0 %vm352_vm2, %v13018_v40 }
 0x929   :  { %9131 = vmatprep.mubr.msk.f32.mxu0 %vm352_vm2, %v13025_v4 }
 0x92c   :  { %9132 = vmatmul.mubr.msk.f32.gmra.mrb[86].mxu0 %vm352_vm2, %v13032_v37 }
 0x92d   :  { %9134 = vmatprep.mubr.msk.f32.mxu0 %vm352_vm2, %v13039_v42 }
 0x930   :  { %9135 = vmatmul.mubr.msk.f32.gmra.mrb[88].mxu0 %vm352_vm2, %v13046_v27 }
 0x931   :  { %9137 = vmatprep.mubr.msk.f32.mxu0 %vm352_vm2, %v13053_v39 }
 0x934   :  { %9138 = vmatmul.mubr.msk.f32.gmra.mrb[90].mxu0 %vm352_vm2, %v13060_v13 }
 0x935   :  { %9140 = vmatprep.mubr.msk.f32.mxu0 %vm352_vm2, %v13067_v34 }
 0x938   :  { %9141 = vmatmul.mubr.msk.f32.gmra.mrb[92].mxu0 %vm352_vm2, %v13074_v19 }
 0x939   :  { %9143 = vmatprep.mubr.msk.f32.mxu0 %vm352_vm2, %v13081_v52 }
 0x93c   :  { %9144 = vmatmul.mubr.msk.f32.gmra.mrb[94].mxu0 %vm352_vm2, %v13088_v28 }
 0x93d   :  { %9146 = vmatprep.mubr.msk.f32.mxu0 %vm352_vm2, %v13095_v29 }
 0x940   :  { %9147 = vmatmul.mubr.msk.f32.gmra.mrb[96].mxu0 %vm352_vm2, %v13102_v8 }
 0x941   :  { %9232 = vmatprep.mubr.msk.f32.mxu0 %vm352_vm2, %v13109_v10 }
 0x9cf   :  { %v9084_v16 = vpop.f32.mrb[80].mxu0 }
 0x9d0   :  { %v4498_v46 = vadd.f32 %v9084_v16, %v12834_v53  ;;  %v4492_v49 = vpop.f32.mrb[81].mxu0 }
 0x9d1   :  { %v4493_v7 = vadd.f32 %v4492_v49, %v12836_v61 }
 0x9d2   :  { %7608 = vst.msk [vmem:[%s13880_s2 + $0x18] sm:$0xff] %vm634_vm3, %v4498_v46 }
 0x9d3   :  { %7607 = vst.msk [vmem:[%s13880_s2 + $0x10] sm:$0xff] %vm634_vm3, %v4493_v7 }
 0x9f7   :  { %v9127_v6 = vpop.f32.mrb[82].mxu0 }
 0x9f8   :  { %v9935_v0 = vadd.f32 %v9127_v6, %v12643_v17  ;;  %v4719_v20 = vpop.f32.mrb[83].mxu0 }
 0x9f9   :  { %v9936_v14 = vadd.f32 %v4719_v20, %v12645_v47 }
 0x9fa   :  { %v4815_v53 = vmul.f32 0.5, %v9935_v0 }
 0x9fb   :  { %v9130_v16 = vpop.f32.mrb[84].mxu0  ;;  %v4814_v10 = vmul.f32 0.5, %v9936_v14 }
 0x9fc   :  { %v9937_v49 = vadd.f32 %v9130_v16, %v12657_v12  ;;  %v4729_v61 = vpop.f32.mrb[85].mxu0  ;;  %10691 = vtanh.f32 %v4815_v53 }
 0x9fd   :  { %v9938_v8 = vadd.f32 %v4729_v61, %v12659_v18  ;;  %10693 = vtanh.f32 %v4814_v10 }
 0x9fe   :  { %v4817_v46 = vmul.f32 0.5, %v9937_v49 }
 0x9ff   :  { %v9133_v29 = vpop.f32.mrb[86].mxu0  ;;  %v4816_v17 = vmul.f32 0.5, %v9938_v8 }
 0xa00   :  { %v9939_v28 = vadd.f32 %v9133_v29, %v12649_v57  ;;  %v4739_v7 = vpop.f32.mrb[87].mxu0  ;;  %10695 = vtanh.f32 %v4817_v46 }
 0xa01   :  { %v9940_v6 = vadd.f32 %v4739_v7, %v12651_v62 }
 0xa02   :  { %v4831_v52 = vmul.f32 0.5, %v9939_v28 }
 0xa03   :  { %v4830_v20 = vmul.f32 0.5, %v9940_v6  ;;  %v9136_v0 = vpop.f32.mrb[88].mxu0 }
 0xa04   :  { %10697 = vtanh.f32 %v4831_v52  ;;  %v9941_v16 = vadd.f32 %v9136_v0, %v12669_v26  ;;  %v4749_v14 = vpop.f32.mrb[89].mxu0 }
 0xa05   :  { %10699 = vtanh.f32 %v4830_v20  ;;  %v9942_v61 = vadd.f32 %v4749_v14, %v12673_v44 }
 0xa06   :  { %10701 = vtanh.f32 %v4816_v17  ;;  %v4833_v53 = vmul.f32 0.5, %v9941_v16  ;;  %v10692_v8 = vpop.eup %10691 }
 0xa07   :  { %v4832_v49 = vmul.f32 0.5, %v9942_v61  ;;  %v9139_v29 = vpop.f32.mrb[90].mxu0  ;;  %v10694_v52 = vpop.eup %10693  ;;  %v4823_v14 = vadd.f32 1.0, %v10692_v8 }
 0xa08   :  { %10703 = vtanh.f32 %v4833_v53  ;;  %v9943_v10 = vadd.f32 %v9139_v29, %v12682_v25  ;;  %v4759_v7 = vpop.f32.mrb[91].mxu0  ;;  %v4822_v61 = vadd.f32 1.0, %v10694_v52 }
 0xa09   :  { %10705 = vtanh.f32 %v4832_v49  ;;  %v9944_v28 = vadd.f32 %v4759_v7, %v12685_v30  ;;  %v4827_v44 = vmul.f32 0.5, %v4823_v14 }
 0xa0a   :  { %10707 = vtanh.f32 %v9943_v10  ;;  %v10696_v0 = vpop.eup %10695  ;;  %v4826_v26 = vmul.f32 0.5, %v4822_v61 }
 0xa0b   :  { %10709 = vtanh.f32 %v9944_v28  ;;  %v9142_v46 = vpop.f32.mrb[92].mxu0  ;;  %v4825_v52 = vadd.f32 1.0, %v10696_v0 }
 0xa0c   :  { %v9945_v6 = vadd.f32 %v9142_v46, %v12695_v32  ;;  %v4769_v20 = vpop.f32.mrb[93].mxu0 }
 0xa0d   :  { %v9946_v17 = vadd.f32 %v4769_v20, %v12699_v56 }
 0xa0e   :  { %v10698_v16 = vpop.eup %10697  ;;  %10711 = vtanh.f32 %v9945_v6 }
 0xa0f   :  { %v10700_v53 = vpop.eup %10699  ;;  %v4839_v29 = vadd.f32 1.0, %v10698_v16  ;;  %10713 = vtanh.f32 %v9946_v17  ;;  %v9145_v49 = vpop.f32.mrb[94].mxu0 }
 0xa10   :  { %v10702_v7 = vpop.eup %10701  ;;  %v4838_v30 = vadd.f32 1.0, %v10700_v53  ;;  %v9947_v10 = vadd.f32 %v9145_v49, %v14170_v51  ;;  %v4779_v28 = vpop.f32.mrb[95].mxu0 }
 0xa11   :  { %v4843_v25 = vmul.f32 0.5, %v4839_v29  ;;  %v9948_v46 = vadd.f32 %v4779_v28, %v14171_v2  ;;  %v4824_v6 = vadd.f32 1.0, %v10702_v7 }
 0xa12   :  { %v10704_v32 = vpop.eup %10703  ;;  %v4842_v20 = vmul.f32 0.5, %v4838_v30  ;;  %v4851_v56 = vmul.f32 0.5, %v9947_v10  ;;  %v4829_v10 = vmul.f32 0.5, %v4825_v52 }
 0xa13   :  { %v10706_v8 = vpop.eup %10705  ;;  %v4841_v62 = vadd.f32 1.0, %v10704_v32  ;;  %v4850_v16 = vmul.f32 0.5, %v9948_v46  ;;  %v9148_v17 = vpop.f32.mrb[96].mxu0  ;;  %v4867_v53 = vmul.f32 %v4843_v25, %v12866_v35 }
 0xa14   :  { %v10708_v57 = vpop.eup %10707  ;;  %v4840_v18 = vadd.f32 1.0, %v10706_v8  ;;  %10715 = vtanh.f32 %v4851_v56  ;;  %v9949_v29 = vadd.f32 %v9148_v17, %v14172_v50  ;;  %v4789_v49 = vpop.f32.mrb[97].mxu0  ;;  %v4866_v0 = vmul.f32 %v4842_v20, %v12868_v38 }
 0xa15   :  { %v10710_v28 = vpop.eup %10709  ;;  %v4845_v2 = vmul.f32 0.5, %v4841_v62  ;;  %v4871_v14 = vmul.f32 %v10708_v57, %v4827_v44  ;;  %10717 = vtanh.f32 %v4850_v16  ;;  %v9950_v30 = vadd.f32 %v4789_v49, %v12721_v11 }
 0xa16   :  { %v4844_v61 = vmul.f32 0.5, %v4840_v18  ;;  %v4870_v32 = vmul.f32 %v10710_v28, %v4826_v26  ;;  %v4853_v7 = vmul.f32 0.5, %v9949_v29  ;;  %v4828_v56 = vmul.f32 0.5, %v4824_v6 }
 0xa17   :  { %v13141_v46 = vadd.f32 %v4871_v14, %v4867_v53  ;;  %v4852_v25 = vmul.f32 0.5, %v9950_v30  ;;  %v4869_v57 = vmul.f32 %v4845_v2, %v12874_v45 }
 0xa18   :  { %v10712_v35 = vpop.eup %10711  ;;  %v13143_v8 = vadd.f32 %v4870_v32, %v4866_v0  ;;  %10719 = vtanh.f32 %v4853_v7  ;;  %v4868_v44 = vmul.f32 %v4844_v61, %v12876_v59 }
 0xa19   :  { %v10714_v17 = vpop.eup %10713  ;;  %10721 = vtanh.f32 %v13141_v46  ;;  %v4873_v62 = vmul.f32 %v10712_v35, %v4829_v10 }
 0xa1a   :  { %10723 = vtanh.f32 %v13143_v8  ;;  %v4872_v18 = vmul.f32 %v10714_v17, %v4828_v56  ;;  %v4964_v17 = vld [vmem:[#allocation2 + $0x60] sm:$0xff] }
 0xa1b   :  { %v13149_v26 = vadd.f32 %v4873_v62, %v4869_v57  ;;  %10725 = vtanh.f32 %v4852_v25  ;;  %v4965_v57 = vld [vmem:[#allocation2 + $0x68] sm:$0xff] }
 0xa1c   :  { %v13151_v38 = vadd.f32 %v4872_v18, %v4868_v44  ;;  %v9655_v44 = vpack.c.bf16 %v4965_v57, %v4964_v17  ;;  %v4966_v18 = vld [vmem:[#allocation2 + $0x70] sm:$0xff]  ;;  %v14186_v57 = vld [vmem:[#allocation38_spill] sm:$0xff] }
 0xa1d   :  { %10727 = vtanh.f32 %v13149_v26 }
 0xa1e   :  { %v10716_v20 = vpop.eup %10715  ;;  %10729 = vtanh.f32 %v13151_v38 }
 0xa1f   :  { %v10718_v52 = vpop.eup %10717  ;;  %v4859_v2 = vadd.f32 1.0, %v10716_v20  ;;  %v4967_v20 = vld [vmem:[#allocation2 + $0x78] sm:$0xff] }
 0xa20   :  { %v4858_v45 = vadd.f32 1.0, %v10718_v52  ;;  %v9659_v52 = vpack.c.bf16 %v4967_v20, %v4966_v18  ;;  %v14187_v20 = vld [vmem:[#allocation35_spill] sm:$0xff] }
 0xa21   :  { %v4863_v6 = vmul.f32 0.5, %v4859_v2  ;;  %v14179_v2 = vld [vmem:[#allocation4_spill] sm:$0xff] }
 0xa22   :  { %v10720_v16 = vpop.eup %10719  ;;  %v4862_v53 = vmul.f32 0.5, %v4858_v45  ;;  %v14180_v45 = vld [vmem:[#allocation7_spill] sm:$0xff] }
 0xa23   :  { %v10722_v59 = vpop.eup %10721  ;;  %v4861_v29 = vadd.f32 1.0, %v10720_v16  ;;  %v14182_v16 = vld [vmem:[#allocation20_spill] sm:$0xff] }
 0xa24   :  { %v10724_v49 = vpop.eup %10723  ;;  %v4883_v28 = vmul.f32 %v10722_v59, %v4863_v6  ;;  %v14181_v6 = vld [vmem:[#allocation19_spill] sm:$0xff]  ;;  %v14183_v59 = vld [vmem:[#allocation17_spill] sm:$0xff] }
 0xa25   :  { %v10726_v14 = vpop.eup %10725  ;;  %v4882_v30 = vmul.f32 %v10724_v49, %v4862_v53  ;;  %v4865_v0 = vmul.f32 0.5, %v4861_v29 }
 0xa26   :  { %v4860_v61 = vadd.f32 1.0, %v10726_v14 }
 0xa27   :  { %v10728_v32 = vpop.eup %10727  ;;  %v9647_v7 = vpack.c.bf16 %v4883_v28, %v4882_v30  ;;  %v14184_v28 = vld [vmem:[#allocation15_spill] sm:$0xff] }
 0xa28   :  { %v10730_v10 = vpop.eup %10729  ;;  %v4885_v25 = vmul.f32 %v10728_v32, %v4865_v0  ;;  %v4864_v35 = vmul.f32 0.5, %v4860_v61  ;;  %v14185_v0 = vld [vmem:[#allocation33_spill] sm:$0xff] }
 0xa29   :  { %9648 = vmatprep.subr.bf16.mxu1 %v9647_v7 }
 0xa2a   :  { %v4884_v56 = vmul.f32 %v10730_v10, %v4864_v35  ;;  %9650 = vmatpush3.bf16.msra.mxu1 %v9647_v7 }
 0xa2c   :  { %v9651_v62 = vpack.c.bf16 %v4885_v25, %v4884_v56 }
 0xa2e   :  { %9652 = vmatprep.subr.bf16.mxu1 %v9651_v62 }
 0xa2f   :  { %9654 = vmatpush3.bf16.msra.mxu1 %v9651_v62 }
 0xa30   :  { %9656 = vmatprep.subr.bf16.mxu1 %v9655_v44 }
 0xa32   :  { %9158 = vmatmul.mubr.msk.f32.vlgmr.msra.gmra.mrb[82].mxu1 %vm352_vm2, %v12740_v33  ;;  %v14178_v33 = vld [vmem:[#allocation18_spill] sm:$0xff] }
 0xa33   :  { %9658 = vmatpush3.bf16.msra.mxu1 %v9655_v44  ;;  %9168 = vmatprep.mubr.msk.f32.mxu1 %vm352_vm2, %v12885_v21 }
 0xa34   :  { %9660 = vmatprep.subr.bf16.mxu1 %v9659_v52 }
 0xa37   :  { %9662 = vmatpush3.bf16.msra.mxu1 %v9659_v52 }
 0xa38   :  { %9664 = vmatprep.subr.bf16.mxu1 %v9647_v7 }
 0xa3a   :  { %9169 = vmatmul.mubr.msk.f32.vlgmr.msra.gmra.mrb[84].mxu1 %vm352_vm2, %v12892_v31 }
 0xa3b   :  { %9666 = vmatpush3.bf16.msra.mxu1 %v9647_v7  ;;  %9171 = vmatprep.mubr.msk.f32.mxu1 %vm352_vm2, %v12899_v58 }
 0xa3c   :  { %9668 = vmatprep.subr.bf16.mxu1 %v9651_v62 }
 0xa3e   :  { %9172 = vmatmul.mubr.msk.f32.gmra.mrb[86].mxu1 %vm352_vm2, %v12906_v23 }
 0xa3f   :  { %9670 = vmatpush3.bf16.msra.mxu1 %v9651_v62  ;;  %9174 = vmatprep.mubr.msk.f32.mxu1 %vm352_vm2, %v12913_v55 }
 0xa42   :  { %9175 = vmatmul.mubr.msk.f32.gmra.mrb[88].mxu1 %vm352_vm2, %v12920_v60 }
 0xa43   :  { %9177 = vmatprep.mubr.msk.f32.mxu1 %vm352_vm2, %v12927_v36 }
 0xa46   :  { %9178 = vmatmul.mubr.msk.f32.gmra.mrb[90].mxu1 %vm352_vm2, %v12934_v24 }
 0xa47   :  { %9180 = vmatprep.mubr.msk.f32.mxu1 %vm352_vm2, %v12941_v3 }
 0xa4a   :  { %9181 = vmatmul.mubr.msk.f32.gmra.mrb[92].mxu1 %vm352_vm2, %v12948_v41 }
 0xa4b   :  { %9183 = vmatprep.mubr.msk.f32.mxu1 %vm352_vm2, %v12955_v1 }
 0xa4e   :  { %9184 = vmatmul.mubr.msk.f32.gmra.mrb[94].mxu1 %vm352_vm2, %v12962_v9 }
 0xa4f   :  { %9186 = vmatprep.mubr.msk.f32.mxu1 %vm352_vm2, %v12969_v43 }
 0xa52   :  { %9187 = vmatmul.mubr.msk.f32.gmra.mrb[96].mxu1 %vm352_vm2, %v12976_v5 }
 0xa53   :  { %9189 = vmatprep.mubr.msk.f32.mxu1 %vm352_vm2, %v12983_v48 }
 0xa56   :  { %9190 = vmatmul.mubr.msk.f32.gmra.mrb[98].mxu1 %vm352_vm2, %v12990_v54 }
 0xa57   :  { %9200 = vmatprep.mubr.msk.f32.mxu1 %vm352_vm2, %v12997_v15 }
 0xa5a   :  { %9201 = vmatmul.mubr.msk.f32.vlgmr.msra.gmra.mrb[84].mxu1 %vm352_vm2, %v13004_v63 }
 0xa5b   :  { %9203 = vmatprep.mubr.msk.f32.mxu1 %vm352_vm2, %v13011_v22 }
 0xa5e   :  { %9204 = vmatmul.mubr.msk.f32.gmra.mrb[86].mxu1 %vm352_vm2, %v13018_v40 }
 0xa5f   :  { %9206 = vmatprep.mubr.msk.f32.mxu1 %vm352_vm2, %v13025_v4 }
 0xa62   :  { %9207 = vmatmul.mubr.msk.f32.gmra.mrb[88].mxu1 %vm352_vm2, %v13032_v37 }
 0xa63   :  { %9209 = vmatprep.mubr.msk.f32.mxu1 %vm352_vm2, %v13039_v42 }
 0xa66   :  { %9210 = vmatmul.mubr.msk.f32.gmra.mrb[90].mxu1 %vm352_vm2, %v13046_v27 }
 0xa67   :  { %9212 = vmatprep.mubr.msk.f32.mxu1 %vm352_vm2, %v13053_v39 }
 0xa6a   :  { %9213 = vmatmul.mubr.msk.f32.gmra.mrb[92].mxu1 %vm352_vm2, %v13060_v13 }
 0xa6b   :  { %9215 = vmatprep.mubr.msk.f32.mxu1 %vm352_vm2, %v13067_v34 }
 0xa6e   :  { %9216 = vmatmul.mubr.msk.f32.gmra.mrb[94].mxu1 %vm352_vm2, %v13074_v19 }
 0xa6f   :  { %9218 = vmatprep.mubr.msk.f32.mxu1 %vm352_vm2, %v14178_v33 }
 0xa72   :  { %9219 = vmatmul.mubr.msk.f32.gmra.mrb[96].mxu1 %vm352_vm2, %v14179_v2 }
 0xa73   :  { %9221 = vmatprep.mubr.msk.f32.mxu1 %vm352_vm2, %v14180_v45 }
 0xa76   :  { %9222 = vmatmul.mubr.msk.f32.gmra.mrb[98].mxu1 %vm352_vm2, %v14181_v6 }
 0xa77   :  { %9307 = vmatprep.mubr.msk.f32.mxu1 %vm352_vm2, %v14182_v16 }
 0xb05   :  { %v9159_v53 = vpop.f32.mrb[82].mxu1 }
 0xb06   :  { %v4958_v29 = vadd.f32 %v9159_v53, %v14183_v59  ;;  %v4952_v49 = vpop.f32.mrb[83].mxu1 }
 0xb07   :  { %v4953_v14 = vadd.f32 %v4952_v49, %v14184_v28 }
 0xb08   :  { %7644 = vst.msk [vmem:[%s13880_s2 + $0x28] sm:$0xff] %vm634_vm3, %v4958_v29  ;;  %v14188_v29 = vld [vmem:[#allocation36_spill] sm:$0xff] }
 0xb09   :  { %7643 = vst.msk [vmem:[%s13880_s2 + $0x20] sm:$0xff] %vm634_vm3, %v4953_v14 }
 0xb2d   :  { %v9202_v30 = vpop.f32.mrb[84].mxu1 }
 0xb2e   :  { %v9951_v61 = vadd.f32 %v9202_v30, %v14185_v0  ;;  %v5179_v32 = vpop.f32.mrb[85].mxu1 }
 0xb2f   :  { %v9952_v7 = vadd.f32 %v5179_v32, %v12645_v47  ;;  %v14195_v47 = vld [vmem:[#allocation46_spill] sm:$0xff] }
 0xb30   :  { %v5275_v25 = vmul.f32 0.5, %v9951_v61 }
 0xb31   :  { %v9205_v10 = vpop.f32.mrb[86].mxu1  ;;  %v5274_v17 = vmul.f32 0.5, %v9952_v7 }
 0xb32   :  { %v9953_v35 = vadd.f32 %v9205_v10, %v12657_v12  ;;  %v5189_v56 = vpop.f32.mrb[87].mxu1  ;;  %10731 = vtanh.f32 %v5275_v25  ;;  %v14189_v10 = vld [vmem:[#allocation39_spill] sm:$0xff] }
 0xb33   :  { %v9954_v62 = vadd.f32 %v5189_v56, %v14186_v57  ;;  %10733 = vtanh.f32 %v5274_v17  ;;  %v14190_v56 = vld [vmem:[#allocation40_spill] sm:$0xff]  ;;  %v14191_v17 = vld [vmem:[#allocation41_spill] sm:$0xff] }
 0xb34   :  { %v5277_v44 = vmul.f32 0.5, %v9953_v35 }
 0xb35   :  { %v9208_v18 = vpop.f32.mrb[88].mxu1  ;;  %v5276_v14 = vmul.f32 0.5, %v9954_v62  ;;  %v14192_v62 = vld [vmem:[#allocation42_spill] sm:$0xff] }
 0xb36   :  { %v9955_v52 = vadd.f32 %v9208_v18, %v14187_v20  ;;  %v5199_v53 = vpop.f32.mrb[89].mxu1  ;;  %10735 = vtanh.f32 %v5277_v44 }
 0xb37   :  { %v9956_v49 = vadd.f32 %v5199_v53, %v14188_v29 }
 0xb38   :  { %v5291_v30 = vmul.f32 0.5, %v9955_v52 }
 0xb39   :  { %v5290_v32 = vmul.f32 0.5, %v9956_v49  ;;  %v9211_v61 = vpop.f32.mrb[90].mxu1 }
 0xb3a   :  { %10737 = vtanh.f32 %v5291_v30  ;;  %v9957_v12 = vadd.f32 %v9211_v61, %v14189_v10  ;;  %v5209_v7 = vpop.f32.mrb[91].mxu1  ;;  %v14193_v61 = vld [vmem:[#allocation43_spill] sm:$0xff] }
 0xb3b   :  { %10739 = vtanh.f32 %v5290_v32  ;;  %v9958_v35 = vadd.f32 %v5209_v7, %v14190_v56 }
 0xb3c   :  { %10741 = vtanh.f32 %v5276_v14  ;;  %v5293_v25 = vmul.f32 0.5, %v9957_v12  ;;  %v10732_v52 = vpop.eup %10731  ;;  %v14194_v14 = vld [vmem:[#allocation44_spill] sm:$0xff] }
 0xb3d   :  { %v5292_v57 = vmul.f32 0.5, %v9958_v35  ;;  %v9214_v18 = vpop.f32.mrb[92].mxu1  ;;  %v10734_v49 = vpop.eup %10733  ;;  %v5283_v56 = vadd.f32 1.0, %v10732_v52 }
 0xb3e   :  { %10743 = vtanh.f32 %v5293_v25  ;;  %v9959_v20 = vadd.f32 %v9214_v18, %v14191_v17  ;;  %v5219_v53 = vpop.f32.mrb[93].mxu1  ;;  %v5282_v25 = vadd.f32 1.0, %v10734_v49 }
 0xb3f   :  { %10745 = vtanh.f32 %v5292_v57  ;;  %v9960_v44 = vadd.f32 %v5219_v53, %v14192_v62  ;;  %v5287_v0 = vmul.f32 0.5, %v5283_v56 }
 0xb40   :  { %10747 = vtanh.f32 %v9959_v20  ;;  %v10736_v7 = vpop.eup %10735  ;;  %v5286_v28 = vmul.f32 0.5, %v5282_v25 }
 0xb41   :  { %10749 = vtanh.f32 %v9960_v44  ;;  %v9217_v30 = vpop.f32.mrb[94].mxu1  ;;  %v5285_v49 = vadd.f32 1.0, %v10736_v7 }
 0xb42   :  { %v9961_v32 = vadd.f32 %v9217_v30, %v14193_v61  ;;  %v5229_v10 = vpop.f32.mrb[95].mxu1 }
 0xb43   :  { %v9962_v12 = vadd.f32 %v5229_v10, %v14194_v14 }
 0xb44   :  { %v10738_v35 = vpop.eup %10737  ;;  %10751 = vtanh.f32 %v9961_v32 }
 0xb45   :  { %v10740_v18 = vpop.eup %10739  ;;  %v5299_v17 = vadd.f32 1.0, %v10738_v35  ;;  %10753 = vtanh.f32 %v9962_v12  ;;  %v9220_v57 = vpop.f32.mrb[96].mxu1 }
 0xb46   :  { %v10742_v53 = vpop.eup %10741  ;;  %v5298_v62 = vadd.f32 1.0, %v10740_v18  ;;  %v9963_v20 = vadd.f32 %v9220_v57, %v14170_v51  ;;  %v5239_v44 = vpop.f32.mrb[97].mxu1 }
 0xb47   :  { %v5303_v29 = vmul.f32 0.5, %v5299_v17  ;;  %v9964_v30 = vadd.f32 %v5239_v44, %v14195_v47  ;;  %v5284_v32 = vadd.f32 1.0, %v10742_v53 }
 0xb48   :  { %v10744_v61 = vpop.eup %10743  ;;  %v5302_v10 = vmul.f32 0.5, %v5298_v62  ;;  %v5311_v14 = vmul.f32 0.5, %v9963_v20  ;;  %v5289_v20 = vmul.f32 0.5, %v5285_v49 }
 0xb49   :  { %v10746_v52 = vpop.eup %10745  ;;  %v5301_v59 = vadd.f32 1.0, %v10744_v61  ;;  %v5310_v35 = vmul.f32 0.5, %v9964_v30  ;;  %v9223_v12 = vpop.f32.mrb[98].mxu1  ;;  %v5327_v18 = vmul.f32 %v5303_v29, %v13141_v46 }
 0xb4a   :  { %v10748_v16 = vpop.eup %10747  ;;  %v5300_v6 = vadd.f32 1.0, %v10746_v52  ;;  %10755 = vtanh.f32 %v5311_v14  ;;  %v9965_v17 = vadd.f32 %v9223_v12, %v14172_v50  ;;  %v5249_v57 = vpop.f32.mrb[99].mxu1  ;;  %v5326_v7 = vmul.f32 %v5302_v10, %v13143_v8 }
 0xb4b   :  { %v10750_v44 = vpop.eup %10749  ;;  %v5305_v47 = vmul.f32 0.5, %v5301_v59  ;;  %v5331_v56 = vmul.f32 %v10748_v16, %v5287_v0  ;;  %10757 = vtanh.f32 %v5310_v35  ;;  %v9966_v62 = vadd.f32 %v5249_v57, %v12721_v11 }
 0xb4c   :  { %v5304_v25 = vmul.f32 0.5, %v5300_v6  ;;  %v5330_v61 = vmul.f32 %v10750_v44, %v5286_v28  ;;  %v5313_v53 = vmul.f32 0.5, %v9965_v17  ;;  %v5288_v14 = vmul.f32 0.5, %v5284_v32 }
 0xb4d   :  { %v13251_v30 = vadd.f32 %v5331_v56, %v5327_v18  ;;  %v5312_v46 = vmul.f32 0.5, %v9966_v62  ;;  %v5329_v16 = vmul.f32 %v5305_v47, %v13149_v26 }
 0xb4e   :  { %v10752_v29 = vpop.eup %10751  ;;  %v13253_v52 = vadd.f32 %v5330_v61, %v5326_v7  ;;  %10759 = vtanh.f32 %v5313_v53  ;;  %v5328_v8 = vmul.f32 %v5304_v25, %v13151_v38 }
 0xb4f   :  { %v10754_v12 = vpop.eup %10753  ;;  %10761 = vtanh.f32 %v13251_v30  ;;  %v5333_v59 = vmul.f32 %v10752_v29, %v5289_v20 }
 0xb50   :  { %10763 = vtanh.f32 %v13253_v52  ;;  %v5332_v6 = vmul.f32 %v10754_v12, %v5288_v14  ;;  %v5424_v12 = vld [vmem:[#allocation2 + $0x80] sm:$0xff] }
 0xb51   :  { %v13259_v28 = vadd.f32 %v5333_v59, %v5329_v16  ;;  %10765 = vtanh.f32 %v5312_v46  ;;  %v5425_v16 = vld [vmem:[#allocation2 + $0x88] sm:$0xff] }
 0xb52   :  { %v13261_v0 = vadd.f32 %v5332_v6, %v5328_v8  ;;  %v9679_v8 = vpack.c.bf16 %v5425_v16, %v5424_v12  ;;  %v5426_v6 = vld [vmem:[#allocation2 + $0x90] sm:$0xff]  ;;  %v14210_v12 = vld [vmem:[#allocation43_spill] sm:$0xff] }
 0xb53   :  { %10767 = vtanh.f32 %v13259_v28 }
 0xb54   :  { %v10756_v10 = vpop.eup %10755  ;;  %10769 = vtanh.f32 %v13261_v0 }
 0xb55   :  { %v10758_v49 = vpop.eup %10757  ;;  %v5319_v47 = vadd.f32 1.0, %v10756_v10  ;;  %v5427_v10 = vld [vmem:[#allocation2 + $0x98] sm:$0xff] }
 0xb56   :  { %v5318_v26 = vadd.f32 1.0, %v10758_v49  ;;  %v13268_v49 = vld [vmem:[%s13879_s1 + $0x308] sm:$0xff] }
 0xb57   :  { %v5323_v32 = vmul.f32 0.5, %v5319_v47  ;;  %v9683_v47 = vpack.c.bf16 %v5427_v10, %v5426_v6  ;;  %v14211_v6 = vld [vmem:[#allocation44_spill] sm:$0xff] }
 0xb58   :  { %v10760_v35 = vpop.eup %10759  ;;  %v5322_v18 = vmul.f32 0.5, %v5318_v26 }
 0xb59   :  { %v10762_v38 = vpop.eup %10761  ;;  %v5321_v17 = vadd.f32 1.0, %v10760_v35  ;;  %v14206_v35 = vld [vmem:[#allocation39_spill] sm:$0xff] }
 0xb5a   :  { %v10764_v57 = vpop.eup %10763  ;;  %v5343_v44 = vmul.f32 %v10762_v38, %v5323_v32 }
 0xb5b   :  { %v10766_v56 = vpop.eup %10765  ;;  %v5342_v62 = vmul.f32 %v10764_v57, %v5322_v18  ;;  %v5325_v7 = vmul.f32 0.5, %v5321_v17  ;;  %v14207_v17 = vld [vmem:[#allocation40_spill] sm:$0xff] }
 0xb5c   :  { %v5320_v25 = vadd.f32 1.0, %v10766_v56 }
 0xb5d   :  { %v10768_v61 = vpop.eup %10767  ;;  %v9671_v53 = vpack.c.bf16 %v5343_v44, %v5342_v62 }
 0xb5e   :  { %v10770_v20 = vpop.eup %10769  ;;  %v5345_v46 = vmul.f32 %v10768_v61, %v5325_v7  ;;  %v5324_v29 = vmul.f32 0.5, %v5320_v25  ;;  %v14208_v7 = vld [vmem:[#allocation41_spill] sm:$0xff] }
 0xb5f   :  { %9672 = vmatprep.subr.bf16.mxu0 %v9671_v53 }
 0xb60   :  { %v5344_v14 = vmul.f32 %v10770_v20, %v5324_v29  ;;  %9674 = vmatpush3.bf16.msra.mxu0 %v9671_v53 }
 0xb62   :  { %v9675_v59 = vpack.c.bf16 %v5345_v46, %v5344_v14 }
 0xb64   :  { %9676 = vmatprep.subr.bf16.mxu0 %v9675_v59 }
 0xb65   :  { %9678 = vmatpush3.bf16.msra.mxu0 %v9675_v59 }
 0xb66   :  { %9680 = vmatprep.subr.bf16.mxu0 %v9679_v8 }
 0xb68   :  { %9233 = vmatmul.mubr.msk.f32.vlgmr.msra.gmra.mrb[98].mxu0 %vm352_vm2, %v13268_v49 }
 0xb69   :  { %9682 = vmatpush3.bf16.msra.mxu0 %v9679_v8  ;;  %9243 = vmatprep.mubr.msk.f32.mxu0 %vm352_vm2, %v12885_v21  ;;  %v14196_v21 = vld [vmem:[#allocation19_spill] sm:$0xff] }
 0xb6a   :  { %9684 = vmatprep.subr.bf16.mxu0 %v9683_v47 }
 0xb6d   :  { %9686 = vmatpush3.bf16.msra.mxu0 %v9683_v47 }
 0xb6e   :  { %9688 = vmatprep.subr.bf16.mxu0 %v9671_v53 }
 0xb70   :  { %9244 = vmatmul.mubr.msk.f32.vlgmr.msra.gmra.mrb[100].mxu0 %vm352_vm2, %v12892_v31  ;;  %v14197_v31 = vld [vmem:[#allocation20_spill] sm:$0xff] }
 0xb71   :  { %9690 = vmatpush3.bf16.msra.mxu0 %v9671_v53  ;;  %9246 = vmatprep.mubr.msk.f32.mxu0 %vm352_vm2, %v12899_v58  ;;  %v14209_v53 = vld [vmem:[#allocation42_spill] sm:$0xff] }
 0xb72   :  { %9692 = vmatprep.subr.bf16.mxu0 %v9675_v59 }
 0xb74   :  { %9247 = vmatmul.mubr.msk.f32.gmra.mrb[102].mxu0 %vm352_vm2, %v12906_v23  ;;  %v14198_v23 = vld [vmem:[#allocation17_spill] sm:$0xff] }
 0xb75   :  { %9694 = vmatpush3.bf16.msra.mxu0 %v9675_v59  ;;  %9249 = vmatprep.mubr.msk.f32.mxu0 %vm352_vm2, %v12913_v55 }
 0xb78   :  { %9250 = vmatmul.mubr.msk.f32.gmra.mrb[104].mxu0 %vm352_vm2, %v12920_v60 }
 0xb79   :  { %9252 = vmatprep.mubr.msk.f32.mxu0 %vm352_vm2, %v12927_v36  ;;  %v14199_v36 = vld [vmem:[#allocation15_spill] sm:$0xff] }
 0xb7c   :  { %9253 = vmatmul.mubr.msk.f32.gmra.mrb[106].mxu0 %vm352_vm2, %v12934_v24 }
 0xb7d   :  { %9255 = vmatprep.mubr.msk.f32.mxu0 %vm352_vm2, %v12941_v3 }
 0xb80   :  { %9256 = vmatmul.mubr.msk.f32.gmra.mrb[108].mxu0 %vm352_vm2, %v12948_v41  ;;  %v14200_v41 = vld [vmem:[#allocation33_spill] sm:$0xff] }
 0xb81   :  { %9258 = vmatprep.mubr.msk.f32.mxu0 %vm352_vm2, %v12955_v1 }
 0xb84   :  { %9259 = vmatmul.mubr.msk.f32.gmra.mrb[110].mxu0 %vm352_vm2, %v12962_v9 }
 0xb85   :  { %9261 = vmatprep.mubr.msk.f32.mxu0 %vm352_vm2, %v12969_v43  ;;  %v14201_v43 = vld [vmem:[#allocation34_spill] sm:$0xff] }
 0xb88   :  { %9262 = vmatmul.mubr.msk.f32.gmra.mrb[112].mxu0 %vm352_vm2, %v12976_v5 }
 0xb89   :  { %9264 = vmatprep.mubr.msk.f32.mxu0 %vm352_vm2, %v12983_v48 }
 0xb8c   :  { %9265 = vmatmul.mubr.msk.f32.gmra.mrb[114].mxu0 %vm352_vm2, %v12990_v54 }
 0xb8d   :  { %9275 = vmatprep.mubr.msk.f32.mxu0 %vm352_vm2, %v12997_v15  ;;  %v14202_v15 = vld [vmem:[#allocation37_spill] sm:$0xff] }
 0xb90   :  { %9276 = vmatmul.mubr.msk.f32.vlgmr.msra.gmra.mrb[100].mxu0 %vm352_vm2, %v13004_v63 }
 0xb91   :  { %9278 = vmatprep.mubr.msk.f32.mxu0 %vm352_vm2, %v13011_v22 }
 0xb94   :  { %9279 = vmatmul.mubr.msk.f32.gmra.mrb[102].mxu0 %vm352_vm2, %v13018_v40 }
 0xb95   :  { %9281 = vmatprep.mubr.msk.f32.mxu0 %vm352_vm2, %v13025_v4  ;;  %v14203_v4 = vld [vmem:[#allocation38_spill] sm:$0xff] }
 0xb98   :  { %9282 = vmatmul.mubr.msk.f32.gmra.mrb[104].mxu0 %vm352_vm2, %v13032_v37 }
 0xb99   :  { %9284 = vmatprep.mubr.msk.f32.mxu0 %vm352_vm2, %v13039_v42 }
 0xb9c   :  { %9285 = vmatmul.mubr.msk.f32.gmra.mrb[106].mxu0 %vm352_vm2, %v13046_v27 }
 0xb9d   :  { %9287 = vmatprep.mubr.msk.f32.mxu0 %vm352_vm2, %v13053_v39  ;;  %v14204_v39 = vld [vmem:[#allocation35_spill] sm:$0xff] }
 0xba0   :  { %9288 = vmatmul.mubr.msk.f32.gmra.mrb[108].mxu0 %vm352_vm2, %v13060_v13 }
 0xba1   :  { %9290 = vmatprep.mubr.msk.f32.mxu0 %vm352_vm2, %v13067_v34 }
 0xba4   :  { %9291 = vmatmul.mubr.msk.f32.gmra.mrb[110].mxu0 %vm352_vm2, %v13074_v19  ;;  %v14205_v19 = vld [vmem:[#allocation36_spill] sm:$0xff] }
 0xba5   :  { %9293 = vmatprep.mubr.msk.f32.mxu0 %vm352_vm2, %v14178_v33 }
 0xba8   :  { %9294 = vmatmul.mubr.msk.f32.gmra.mrb[112].mxu0 %vm352_vm2, %v14179_v2 }
 0xba9   :  { %9296 = vmatprep.mubr.msk.f32.mxu0 %vm352_vm2, %v14180_v45 }
 0xbac   :  { %9297 = vmatmul.mubr.msk.f32.gmra.mrb[114].mxu0 %vm352_vm2, %v14196_v21 }
 0xbad   :  { %9382 = vmatprep.mubr.msk.f32.mxu0 %vm352_vm2, %v14197_v31 }
 0xc3b   :  { %v9234_v58 = vpop.f32.mrb[98].mxu0 }
 0xc3c   :  { %v5418_v55 = vadd.f32 %v9234_v58, %v14198_v23  ;;  %v5412_v60 = vpop.f32.mrb[99].mxu0 }
 0xc3d   :  { %v5413_v24 = vadd.f32 %v5412_v60, %v14199_v36 }
 0xc3e   :  { %7680 = vst.msk [vmem:[%s13880_s2 + $0x38] sm:$0xff] %vm634_vm3, %v5418_v55 }
 0xc3f   :  { %7679 = vst.msk [vmem:[%s13880_s2 + $0x30] sm:$0xff] %vm634_vm3, %v5413_v24 }
 0xc63   :  { %v9277_v3 = vpop.f32.mrb[100].mxu0 }
 0xc64   :  { %v9967_v1 = vadd.f32 %v9277_v3, %v14200_v41  ;;  %v5639_v9 = vpop.f32.mrb[101].mxu0 }
 0xc65   :  { %v9968_v5 = vadd.f32 %v5639_v9, %v14201_v43 }
 0xc66   :  { %v5735_v54 = vmul.f32 0.5, %v9967_v1 }
 0xc67   :  { %v9280_v48 = vpop.f32.mrb[102].mxu0  ;;  %v5734_v40 = vmul.f32 0.5, %v9968_v5 }
 0xc68   :  { %v9969_v63 = vadd.f32 %v9280_v48, %v14202_v15  ;;  %v5649_v22 = vpop.f32.mrb[103].mxu0  ;;  %10771 = vtanh.f32 %v5735_v54  ;;  %v14212_v48 = vld [vmem:[#allocation46_spill] sm:$0xff] }
 0xc69   :  { %v9970_v37 = vadd.f32 %v5649_v22, %v14203_v4  ;;  %10773 = vtanh.f32 %v5734_v40 }
 0xc6a   :  { %v5737_v42 = vmul.f32 0.5, %v9969_v63 }
 0xc6b   :  { %v9283_v27 = vpop.f32.mrb[104].mxu0  ;;  %v5736_v2 = vmul.f32 0.5, %v9970_v37 }
 0xc6c   :  { %v9971_v13 = vadd.f32 %v9283_v27, %v14204_v39  ;;  %v5659_v34 = vpop.f32.mrb[105].mxu0  ;;  %10775 = vtanh.f32 %v5737_v42 }
 0xc6d   :  { %v9972_v33 = vadd.f32 %v5659_v34, %v14205_v19 }
 0xc6e   :  { %v5751_v45 = vmul.f32 0.5, %v9971_v13 }
 0xc6f   :  { %v5750_v26 = vmul.f32 0.5, %v9972_v33  ;;  %v9286_v32 = vpop.f32.mrb[106].mxu0 }
 0xc70   :  { %10777 = vtanh.f32 %v5751_v45  ;;  %v9973_v18 = vadd.f32 %v9286_v32, %v14206_v35  ;;  %v5669_v38 = vpop.f32.mrb[107].mxu0 }
 0xc71   :  { %10779 = vtanh.f32 %v5750_v26  ;;  %v9974_v57 = vadd.f32 %v5669_v38, %v14207_v17 }
 0xc72   :  { %10781 = vtanh.f32 %v5736_v2  ;;  %v5753_v44 = vmul.f32 0.5, %v9973_v18  ;;  %v10772_v46 = vpop.eup %10771 }
 0xc73   :  { %v5752_v56 = vmul.f32 0.5, %v9974_v57  ;;  %v9289_v62 = vpop.f32.mrb[108].mxu0  ;;  %v10774_v29 = vpop.eup %10773  ;;  %v5743_v21 = vadd.f32 1.0, %v10772_v46 }
 0xc74   :  { %10783 = vtanh.f32 %v5753_v44  ;;  %v9975_v25 = vadd.f32 %v9289_v62, %v14208_v7  ;;  %v5679_v61 = vpop.f32.mrb[109].mxu0  ;;  %v5742_v31 = vadd.f32 1.0, %v10774_v29 }
 0xc75   :  { %10785 = vtanh.f32 %v5752_v56  ;;  %v9976_v20 = vadd.f32 %v5679_v61, %v14209_v53  ;;  %v5747_v22 = vmul.f32 0.5, %v5743_v21 }
 0xc76   :  { %10787 = vtanh.f32 %v9975_v25  ;;  %v10776_v8 = vpop.eup %10775  ;;  %v5746_v40 = vmul.f32 0.5, %v5742_v31 }
 0xc77   :  { %10789 = vtanh.f32 %v9976_v20  ;;  %v9292_v14 = vpop.f32.mrb[110].mxu0  ;;  %v5745_v13 = vadd.f32 1.0, %v10776_v8 }
 0xc78   :  { %v9977_v16 = vadd.f32 %v9292_v14, %v14210_v12  ;;  %v5689_v59 = vpop.f32.mrb[111].mxu0 }
 0xc79   :  { %v9978_v10 = vadd.f32 %v5689_v59, %v14211_v6  ;;  %v5749_v14 = vmul.f32 0.5, %v5745_v13 }
 0xc7a   :  { %v10778_v47 = vpop.eup %10777  ;;  %10791 = vtanh.f32 %v9977_v16 }
 0xc7b   :  { %v10780_v58 = vpop.eup %10779  ;;  %v5759_v55 = vadd.f32 1.0, %v10778_v47  ;;  %10793 = vtanh.f32 %v9978_v10  ;;  %v9295_v60 = vpop.f32.mrb[112].mxu0 }
 0xc7c   :  { %v10782_v24 = vpop.eup %10781  ;;  %v5758_v3 = vadd.f32 1.0, %v10780_v58  ;;  %v9979_v1 = vadd.f32 %v9295_v60, %v14170_v51  ;;  %v5699_v9 = vpop.f32.mrb[113].mxu0 }
 0xc7d   :  { %v5763_v5 = vmul.f32 0.5, %v5759_v55  ;;  %v9980_v54 = vadd.f32 %v5699_v9, %v14212_v48  ;;  %v5744_v34 = vadd.f32 1.0, %v10782_v24 }
 0xc7e   :  { %v10784_v63 = vpop.eup %10783  ;;  %v5762_v37 = vmul.f32 0.5, %v5758_v3  ;;  %v5771_v42 = vmul.f32 0.5, %v9979_v1 }
 0xc7f   :  { %v10786_v27 = vpop.eup %10785  ;;  %v5761_v33 = vadd.f32 1.0, %v10784_v63  ;;  %v5770_v2 = vmul.f32 0.5, %v9980_v54  ;;  %v9298_v45 = vpop.f32.mrb[114].mxu0  ;;  %v5787_v32 = vmul.f32 %v5763_v5, %v13251_v30  ;;  %v5748_v8 = vmul.f32 0.5, %v5744_v34 }
 0xc80   :  { %v10788_v26 = vpop.eup %10787  ;;  %v5760_v18 = vadd.f32 1.0, %v10786_v27  ;;  %10795 = vtanh.f32 %v5771_v42  ;;  %v9981_v38 = vadd.f32 %v9298_v45, %v14172_v50  ;;  %v5709_v57 = vpop.f32.mrb[115].mxu0  ;;  %v5786_v61 = vmul.f32 %v5762_v37, %v13253_v52 }
 0xc81   :  { %v10790_v44 = vpop.eup %10789  ;;  %v5765_v56 = vmul.f32 0.5, %v5761_v33  ;;  %v5791_v62 = vmul.f32 %v10788_v26, %v5747_v22  ;;  %10797 = vtanh.f32 %v5770_v2  ;;  %v9982_v25 = vadd.f32 %v5709_v57, %v12721_v11 }
 0xc82   :  { %v5764_v20 = vmul.f32 0.5, %v5760_v18  ;;  %v5790_v46 = vmul.f32 %v10790_v44, %v5746_v40  ;;  %v5773_v29 = vmul.f32 0.5, %v9981_v38  ;;  %v5884_v18 = vld [vmem:[#allocation2 + $0xa0] sm:$0xff]  ;;  %v5885_v38 = vld [vmem:[#allocation2 + $0xa8] sm:$0xff] }
 0xc83   :  { %v13366_v16 = vadd.f32 %v5791_v62, %v5787_v32  ;;  %v5772_v30 = vmul.f32 0.5, %v9982_v25  ;;  %v5789_v21 = vmul.f32 %v5765_v56, %v13259_v28  ;;  %v9703_v44 = vpack.c.bf16 %v5885_v38, %v5884_v18  ;;  %v5886_v56 = vld [vmem:[#allocation2 + $0xb0] sm:$0xff]  ;;  %v5887_v62 = vld [vmem:[#allocation2 + $0xb8] sm:$0xff] }
 0xc84   :  { %v10792_v59 = vpop.eup %10791  ;;  %v13368_v10 = vadd.f32 %v5790_v46, %v5786_v61  ;;  %10799 = vtanh.f32 %v5773_v29  ;;  %v5788_v52 = vmul.f32 %v5764_v20, %v13261_v0  ;;  %v9707_v25 = vpack.c.bf16 %v5887_v62, %v5886_v56  ;;  %v13385_v61 = vld [vmem:[%s13879_s1 + $0x180] sm:$0xff]  ;;  %v13392_v20 = vld [vmem:[%s13879_s1 + $0x188] sm:$0xff]  ;;  %v13399_v46 = vld [vmem:[%s13879_s1 + $0x190] sm:$0xff] }
 0xc85   :  { %v10794_v47 = vpop.eup %10793  ;;  %10801 = vtanh.f32 %v13366_v16  ;;  %v5793_v31 = vmul.f32 %v10792_v59, %v5749_v14  ;;  %v13406_v29 = vld [vmem:[%s13879_s1 + $0x198] sm:$0xff]  ;;  %v13413_v14 = vld [vmem:[%s13879_s1 + $0x1a0] sm:$0xff]  ;;  %v13427_v59 = vld [vmem:[%s13879_s1 + $0x1b0] sm:$0xff] }
 0xc86   :  { %10803 = vtanh.f32 %v13368_v10  ;;  %v5792_v58 = vmul.f32 %v10794_v47, %v5748_v8  ;;  %v13434_v8 = vld [vmem:[%s13879_s1 + $0x1b8] sm:$0xff]  ;;  %v13441_v47 = vld [vmem:[%s13879_s1 + $0x1c0] sm:$0xff] }
 0xc87   :  { %v13374_v55 = vadd.f32 %v5793_v31, %v5789_v21  ;;  %10805 = vtanh.f32 %v5772_v30  ;;  %v13420_v30 = vld [vmem:[%s13879_s1 + $0x1a8] sm:$0xff]  ;;  %v13455_v31 = vld [vmem:[%s13879_s1 + $0x1d0] sm:$0xff] }
 0xc88   :  { %v13376_v60 = vadd.f32 %v5792_v58, %v5788_v52  ;;  %v13448_v21 = vld [vmem:[%s13879_s1 + $0x1c8] sm:$0xff]  ;;  %v13462_v52 = vld [vmem:[%s13879_s1 + $0x1d8] sm:$0xff]  ;;  %v13469_v58 = vld [vmem:[%s13879_s1 + $0x1e0] sm:$0xff] }
 0xc89   :  { %10807 = vtanh.f32 %v13374_v55 }
 0xc8a   :  { %v10796_v24 = vpop.eup %10795  ;;  %10809 = vtanh.f32 %v13376_v60 }
 0xc8b   :  { %v10798_v3 = vpop.eup %10797  ;;  %v5779_v28 = vadd.f32 1.0, %v10796_v24  ;;  %v13476_v24 = vld [vmem:[%s13879_s1 + $0x1e8] sm:$0xff] }
 0xc8c   :  { %v5778_v1 = vadd.f32 1.0, %v10798_v3  ;;  %v13483_v3 = vld [vmem:[%s13879_s1 + $0x1f0] sm:$0xff] }
 0xc8d   :  { %v5783_v9 = vmul.f32 0.5, %v5779_v28  ;;  %v13490_v28 = vld [vmem:[%s13879_s1 + $0x1f8] sm:$0xff] }
 0xc8e   :  { %v10800_v5 = vpop.eup %10799  ;;  %v5782_v54 = vmul.f32 0.5, %v5778_v1  ;;  %v13497_v1 = vld [vmem:[%s13879_s1 + $0x200] sm:$0xff] }
 0xc8f   :  { %v10802_v0 = vpop.eup %10801  ;;  %v5781_v63 = vadd.f32 1.0, %v10800_v5  ;;  %v13511_v5 = vld [vmem:[%s13879_s1 + $0x210] sm:$0xff] }
 0xc90   :  { %v10804_v22 = vpop.eup %10803  ;;  %v5803_v40 = vmul.f32 %v10802_v0, %v5783_v9  ;;  %v13504_v9 = vld [vmem:[%s13879_s1 + $0x208] sm:$0xff]  ;;  %v13525_v0 = vld [vmem:[%s13879_s1 + $0x220] sm:$0xff] }
 0xc91   :  { %v10806_v37 = vpop.eup %10805  ;;  %v5802_v42 = vmul.f32 %v10804_v22, %v5782_v54  ;;  %v5785_v27 = vmul.f32 0.5, %v5781_v63  ;;  %v13518_v54 = vld [vmem:[%s13879_s1 + $0x218] sm:$0xff]  ;;  %v13532_v63 = vld [vmem:[%s13879_s1 + $0x228] sm:$0xff]  ;;  %v13539_v22 = vld [vmem:[%s13879_s1 + $0x230] sm:$0xff] }
 0xc92   :  { %v5780_v13 = vadd.f32 1.0, %v10806_v37  ;;  %v13553_v37 = vld [vmem:[%s13879_s1 + $0x240] sm:$0xff] }
 0xc93   :  { %v10808_v34 = vpop.eup %10807  ;;  %v9695_v33 = vpack.c.bf16 %v5803_v40, %v5802_v42  ;;  %v13546_v40 = vld [vmem:[%s13879_s1 + $0x238] sm:$0xff]  ;;  %v13560_v42 = vld [vmem:[%s13879_s1 + $0x248] sm:$0xff] }
 0xc94   :  { %v10810_v2 = vpop.eup %10809  ;;  %v5805_v45 = vmul.f32 %v10808_v34, %v5785_v27  ;;  %v5784_v26 = vmul.f32 0.5, %v5780_v13  ;;  %v13567_v27 = vld [vmem:[%s13879_s1 + $0x250] sm:$0xff]  ;;  %v13574_v13 = vld [vmem:[%s13879_s1 + $0x258] sm:$0xff]  ;;  %v13581_v34 = vld [vmem:[%s13879_s1 + $0x260] sm:$0xff] }
 0xc95   :  { %9696 = vmatprep.subr.bf16.mxu1 %v9695_v33  ;;  %14213 = vst [vmem:[#allocation21_spill] sm:$0xff] %v13581_v34 }
 0xc96   :  { %v5804_v32 = vmul.f32 %v10810_v2, %v5784_v26  ;;  %9698 = vmatpush3.bf16.msra.mxu1 %v9695_v33  ;;  %v13595_v2 = vld [vmem:[%s13879_s1 + $0x270] sm:$0xff]  ;;  %v13609_v26 = vld [vmem:[%s13879_s1 + $0x300] sm:$0xff] }
 0xc97   :  { %14215 = vst [vmem:[#allocation23_spill] sm:$0xff] %v13595_v2  ;;  %14217 = vst [vmem:[#allocation25_spill] sm:$0xff] %v13609_v26 }
 0xc98   :  { %v9699_v57 = vpack.c.bf16 %v5805_v45, %v5804_v32  ;;  %v13602_v45 = vld [vmem:[%s13879_s1 + $0x278] sm:$0xff] }
 0xc99   :  { %14216 = vst [vmem:[#allocation24_spill] sm:$0xff] %v13602_v45 }
 0xc9a   :  { %9700 = vmatprep.subr.bf16.mxu1 %v9699_v57 }
 0xc9b   :  { %9702 = vmatpush3.bf16.msra.mxu1 %v9699_v57 }
 0xc9c   :  { %9704 = vmatprep.subr.bf16.mxu1 %v9703_v44 }
 0xc9e   :  { %9308 = vmatmul.mubr.msk.f32.vlgmr.msra.gmra.mrb[100].mxu1 %vm352_vm2, %v13268_v49 }
 0xc9f   :  { %9706 = vmatpush3.bf16.msra.mxu1 %v9703_v44  ;;  %9318 = vmatprep.mubr.msk.f32.mxu1 %vm352_vm2, %v13385_v61 }
 0xca0   :  { %9708 = vmatprep.subr.bf16.mxu1 %v9707_v25 }
 0xca3   :  { %9710 = vmatpush3.bf16.msra.mxu1 %v9707_v25 }
 0xca4   :  { %9712 = vmatprep.subr.bf16.mxu1 %v9695_v33 }
 0xca6   :  { %9319 = vmatmul.mubr.msk.f32.vlgmr.msra.gmra.mrb[102].mxu1 %vm352_vm2, %v13392_v20 }
 0xca7   :  { %9714 = vmatpush3.bf16.msra.mxu1 %v9695_v33  ;;  %9321 = vmatprep.mubr.msk.f32.mxu1 %vm352_vm2, %v13399_v46  ;;  %v13588_v33 = vld [vmem:[%s13879_s1 + $0x268] sm:$0xff] }
 0xca8   :  { %9716 = vmatprep.subr.bf16.mxu1 %v9699_v57  ;;  %14214 = vst [vmem:[#allocation22_spill] sm:$0xff] %v13588_v33 }
 0xcaa   :  { %9322 = vmatmul.mubr.msk.f32.gmra.mrb[104].mxu1 %vm352_vm2, %v13406_v29 }
 0xcab   :  { %9718 = vmatpush3.bf16.msra.mxu1 %v9699_v57  ;;  %9324 = vmatprep.mubr.msk.f32.mxu1 %vm352_vm2, %v13413_v14 }
 0xcae   :  { %9325 = vmatmul.mubr.msk.f32.gmra.mrb[106].mxu1 %vm352_vm2, %v13420_v30 }
 0xcaf   :  { %9327 = vmatprep.mubr.msk.f32.mxu1 %vm352_vm2, %v13427_v59 }
 0xcb2   :  { %9328 = vmatmul.mubr.msk.f32.gmra.mrb[108].mxu1 %vm352_vm2, %v13434_v8 }
 0xcb3   :  { %9330 = vmatprep.mubr.msk.f32.mxu1 %vm352_vm2, %v13441_v47 }
 0xcb6   :  { %9331 = vmatmul.mubr.msk.f32.gmra.mrb[110].mxu1 %vm352_vm2, %v13448_v21 }
 0xcb7   :  { %9333 = vmatprep.mubr.msk.f32.mxu1 %vm352_vm2, %v13455_v31 }
 0xcba   :  { %9334 = vmatmul.mubr.msk.f32.gmra.mrb[112].mxu1 %vm352_vm2, %v13462_v52 }
 0xcbb   :  { %9336 = vmatprep.mubr.msk.f32.mxu1 %vm352_vm2, %v13469_v58 }
 0xcbe   :  { %9337 = vmatmul.mubr.msk.f32.gmra.mrb[114].mxu1 %vm352_vm2, %v13476_v24 }
 0xcbf   :  { %9339 = vmatprep.mubr.msk.f32.mxu1 %vm352_vm2, %v13483_v3 }
 0xcc2   :  { %9340 = vmatmul.mubr.msk.f32.gmra.mrb[116].mxu1 %vm352_vm2, %v13490_v28 }
 0xcc3   :  { %9350 = vmatprep.mubr.msk.f32.mxu1 %vm352_vm2, %v13497_v1 }
 0xcc6   :  { %9351 = vmatmul.mubr.msk.f32.vlgmr.msra.gmra.mrb[102].mxu1 %vm352_vm2, %v13504_v9 }
 0xcc7   :  { %9353 = vmatprep.mubr.msk.f32.mxu1 %vm352_vm2, %v13511_v5 }
 0xcca   :  { %9354 = vmatmul.mubr.msk.f32.gmra.mrb[104].mxu1 %vm352_vm2, %v13518_v54 }
 0xccb   :  { %9356 = vmatprep.mubr.msk.f32.mxu1 %vm352_vm2, %v13525_v0 }
 0xcce   :  { %9357 = vmatmul.mubr.msk.f32.gmra.mrb[106].mxu1 %vm352_vm2, %v13532_v63 }
 0xccf   :  { %9359 = vmatprep.mubr.msk.f32.mxu1 %vm352_vm2, %v13539_v22 }
 0xcd2   :  { %9360 = vmatmul.mubr.msk.f32.gmra.mrb[108].mxu1 %vm352_vm2, %v13546_v40 }
 0xcd3   :  { %9362 = vmatprep.mubr.msk.f32.mxu1 %vm352_vm2, %v13553_v37 }
 0xcd6   :  { %9363 = vmatmul.mubr.msk.f32.gmra.mrb[110].mxu1 %vm352_vm2, %v13560_v42 }
 0xcd7   :  { %9365 = vmatprep.mubr.msk.f32.mxu1 %vm352_vm2, %v13567_v27 }
 0xcda   :  { %9366 = vmatmul.mubr.msk.f32.gmra.mrb[112].mxu1 %vm352_vm2, %v13574_v13 }
 0xcdb   :  { %9368 = vmatprep.mubr.msk.f32.mxu1 %vm352_vm2, %v13581_v34 }
 0xcde   :  { %9369 = vmatmul.mubr.msk.f32.gmra.mrb[114].mxu1 %vm352_vm2, %v13588_v33 }
 0xcdf   :  { %9371 = vmatprep.mubr.msk.f32.mxu1 %vm352_vm2, %v13595_v2 }
 0xce2   :  { %9372 = vmatmul.mubr.msk.f32.gmra.mrb[116].mxu1 %vm352_vm2, %v13602_v45 }
 0xce3   :  { %9457 = vmatprep.mubr.msk.f32.mxu1 %vm352_vm2, %v13609_v26 }
 0xd71   :  { %v9309_v32 = vpop.f32.mrb[100].mxu1 }
 0xd72   :  { %v5878_v18 = vadd.f32 %v9309_v32, %v14198_v23  ;;  %v5872_v38 = vpop.f32.mrb[101].mxu1 }
 0xd73   :  { %v5873_v57 = vadd.f32 %v5872_v38, %v14199_v36 }
 0xd74   :  { %7716 = vst.msk [vmem:[%s13880_s2 + $0x48] sm:$0xff] %vm634_vm3, %v5878_v18 }
 0xd75   :  { %7715 = vst.msk [vmem:[%s13880_s2 + $0x40] sm:$0xff] %vm634_vm3, %v5873_v57 }
 0xd99   :  { %v9352_v44 = vpop.f32.mrb[102].mxu1 }
 0xd9a   :  { %v9983_v56 = vadd.f32 %v9352_v44, %v14200_v41  ;;  %v6099_v62 = vpop.f32.mrb[103].mxu1 }
 0xd9b   :  { %v9984_v25 = vadd.f32 %v6099_v62, %v14201_v43 }
 0xd9c   :  { %v6195_v23 = vmul.f32 0.5, %v9983_v56 }
 0xd9d   :  { %v9355_v32 = vpop.f32.mrb[104].mxu1  ;;  %v6194_v26 = vmul.f32 0.5, %v9984_v25 }
 0xd9e   :  { %v9985_v38 = vadd.f32 %v9355_v32, %v14202_v15  ;;  %v6109_v36 = vpop.f32.mrb[105].mxu1  ;;  %10811 = vtanh.f32 %v6195_v23 }
 0xd9f   :  { %v9986_v45 = vadd.f32 %v6109_v36, %v14203_v4  ;;  %10813 = vtanh.f32 %v6194_v26 }
 0xda0   :  { %v6197_v18 = vmul.f32 0.5, %v9985_v38 }
 0xda1   :  { %v9358_v2 = vpop.f32.mrb[106].mxu1  ;;  %v6196_v41 = vmul.f32 0.5, %v9986_v45 }
 0xda2   :  { %v9987_v33 = vadd.f32 %v9358_v2, %v14204_v39  ;;  %v6119_v57 = vpop.f32.mrb[107].mxu1  ;;  %10815 = vtanh.f32 %v6197_v18 }
 0xda3   :  { %v9988_v44 = vadd.f32 %v6119_v57, %v14205_v19 }
 0xda4   :  { %v6211_v34 = vmul.f32 0.5, %v9987_v33 }
 0xda5   :  { %v6210_v62 = vmul.f32 0.5, %v9988_v44  ;;  %v9361_v56 = vpop.f32.mrb[108].mxu1 }
 0xda6   :  { %10817 = vtanh.f32 %v6211_v34  ;;  %v9989_v32 = vadd.f32 %v9361_v56, %v14206_v35  ;;  %v6129_v25 = vpop.f32.mrb[109].mxu1 }
 0xda7   :  { %10819 = vtanh.f32 %v6210_v62  ;;  %v9990_v36 = vadd.f32 %v6129_v25, %v14207_v17 }
 0xda8   :  { %10821 = vtanh.f32 %v6196_v41  ;;  %v6213_v23 = vmul.f32 0.5, %v9989_v32  ;;  %v10812_v45 = vpop.eup %10811 }
 0xda9   :  { %v6212_v38 = vmul.f32 0.5, %v9990_v36  ;;  %v9364_v2 = vpop.f32.mrb[110].mxu1  ;;  %v10814_v34 = vpop.eup %10813  ;;  %v6203_v25 = vadd.f32 1.0, %v10812_v45 }
 0xdaa   :  { %10823 = vtanh.f32 %v6213_v23  ;;  %v9991_v26 = vadd.f32 %v9364_v2, %v14208_v7  ;;  %v6139_v57 = vpop.f32.mrb[111].mxu1  ;;  %v6202_v36 = vadd.f32 1.0, %v10814_v34 }
 0xdab   :  { %10825 = vtanh.f32 %v6212_v38  ;;  %v9992_v33 = vadd.f32 %v6139_v57, %v14209_v53  ;;  %v6207_v17 = vmul.f32 0.5, %v6203_v25 }
 0xdac   :  { %10827 = vtanh.f32 %v9991_v26  ;;  %v10816_v56 = vpop.eup %10815  ;;  %v6206_v35 = vmul.f32 0.5, %v6202_v36 }
 0xdad   :  { %10829 = vtanh.f32 %v9992_v33  ;;  %v9367_v18 = vpop.f32.mrb[112].mxu1  ;;  %v6205_v34 = vadd.f32 1.0, %v10816_v56 }
 0xdae   :  { %v9993_v44 = vadd.f32 %v9367_v18, %v14210_v12  ;;  %v6149_v62 = vpop.f32.mrb[113].mxu1 }
 0xdaf   :  { %v9994_v41 = vadd.f32 %v6149_v62, %v14211_v6 }
 0xdb0   :  { %v10818_v32 = vpop.eup %10817  ;;  %10831 = vtanh.f32 %v9993_v44 }
 0xdb1   :  { %v10820_v23 = vpop.eup %10819  ;;  %v6219_v2 = vadd.f32 1.0, %v10818_v32  ;;  %10833 = vtanh.f32 %v9994_v41  ;;  %v9370_v38 = vpop.f32.mrb[114].mxu1 }
 0xdb2   :  { %v10822_v57 = vpop.eup %10821  ;;  %v6218_v53 = vadd.f32 1.0, %v10820_v23  ;;  %v9995_v26 = vadd.f32 %v9370_v38, %v14170_v51  ;;  %v6159_v33 = vpop.f32.mrb[115].mxu1 }
 0xdb3   :  { %v6223_v7 = vmul.f32 0.5, %v6219_v2  ;;  %v9996_v18 = vadd.f32 %v6159_v33, %v14212_v48  ;;  %v6204_v44 = vadd.f32 1.0, %v10822_v57 }
 0xdb4   :  { %v10824_v12 = vpop.eup %10823  ;;  %v6222_v62 = vmul.f32 0.5, %v6218_v53  ;;  %v6231_v6 = vmul.f32 0.5, %v9995_v26  ;;  %v6209_v26 = vmul.f32 0.5, %v6205_v34 }
 0xdb5   :  { %v10826_v45 = vpop.eup %10825  ;;  %v6221_v19 = vadd.f32 1.0, %v10824_v12  ;;  %v6230_v32 = vmul.f32 0.5, %v9996_v18  ;;  %v9373_v41 = vpop.f32.mrb[116].mxu1  ;;  %v6247_v23 = vmul.f32 %v6223_v7, %v13366_v16 }
 0xdb6   :  { %v10828_v39 = vpop.eup %10827  ;;  %v6220_v4 = vadd.f32 1.0, %v10826_v45  ;;  %10835 = vtanh.f32 %v6231_v6  ;;  %v9997_v2 = vadd.f32 %v9373_v41, %v14172_v50  ;;  %v6169_v38 = vpop.f32.mrb[117].mxu1  ;;  %v6246_v56 = vmul.f32 %v6222_v62, %v13368_v10 }
 0xdb7   :  { %v10830_v33 = vpop.eup %10829  ;;  %v6225_v48 = vmul.f32 0.5, %v6221_v19  ;;  %v6251_v25 = vmul.f32 %v10828_v39, %v6207_v17  ;;  %10837 = vtanh.f32 %v6230_v32  ;;  %v9998_v53 = vadd.f32 %v6169_v38, %v12721_v11 }
 0xdb8   :  { %v6224_v36 = vmul.f32 0.5, %v6220_v4  ;;  %v6250_v12 = vmul.f32 %v10830_v33, %v6206_v35  ;;  %v6233_v57 = vmul.f32 0.5, %v9997_v2  ;;  %v6208_v6 = vmul.f32 0.5, %v6204_v44 }
 0xdb9   :  { %v13641_v18 = vadd.f32 %v6251_v25, %v6247_v23  ;;  %v6232_v7 = vmul.f32 0.5, %v9998_v53  ;;  %v6249_v39 = vmul.f32 %v6225_v48, %v13374_v55 }
 0xdba   :  { %v10832_v16 = vpop.eup %10831  ;;  %v13643_v45 = vadd.f32 %v6250_v12, %v6246_v56  ;;  %10839 = vtanh.f32 %v6233_v57  ;;  %v6248_v17 = vmul.f32 %v6224_v36, %v13376_v60 }
 0xdbb   :  { %v10834_v41 = vpop.eup %10833  ;;  %10841 = vtanh.f32 %v13641_v18  ;;  %v6253_v19 = vmul.f32 %v10832_v16, %v6209_v26 }
 0xdbc   :  { %10843 = vtanh.f32 %v13643_v45  ;;  %v6252_v4 = vmul.f32 %v10834_v41, %v6208_v6  ;;  %v6344_v41 = vld [vmem:[#allocation2 + $0xc0] sm:$0xff] }
 0xdbd   :  { %v13649_v35 = vadd.f32 %v6253_v19, %v6249_v39  ;;  %10845 = vtanh.f32 %v6232_v7  ;;  %v6345_v39 = vld [vmem:[#allocation2 + $0xc8] sm:$0xff] }
 0xdbe   :  { %v13651_v10 = vadd.f32 %v6252_v4, %v6248_v17  ;;  %v9727_v17 = vpack.c.bf16 %v6345_v39, %v6344_v41  ;;  %v6346_v4 = vld [vmem:[#allocation2 + $0xd0] sm:$0xff]  ;;  %v14226_v39 = vld [vmem:[#allocation38_spill] sm:$0xff] }
 0xdbf   :  { %10847 = vtanh.f32 %v13649_v35 }
 0xdc0   :  { %v10836_v62 = vpop.eup %10835  ;;  %10849 = vtanh.f32 %v13651_v10 }
 0xdc1   :  { %v10838_v34 = vpop.eup %10837  ;;  %v6239_v48 = vadd.f32 1.0, %v10836_v62  ;;  %v6347_v62 = vld [vmem:[#allocation2 + $0xd8] sm:$0xff] }
 0xdc2   :  { %v6238_v55 = vadd.f32 1.0, %v10838_v34  ;;  %v9731_v34 = vpack.c.bf16 %v6347_v62, %v6346_v4  ;;  %v14227_v62 = vld [vmem:[#allocation35_spill] sm:$0xff] }
 0xdc3   :  { %v6243_v44 = vmul.f32 0.5, %v6239_v48  ;;  %v14219_v48 = vld [vmem:[#allocation22_spill] sm:$0xff] }
 0xdc4   :  { %v10840_v32 = vpop.eup %10839  ;;  %v6242_v23 = vmul.f32 0.5, %v6238_v55  ;;  %v14220_v55 = vld [vmem:[#allocation23_spill] sm:$0xff] }
 0xdc5   :  { %v10842_v60 = vpop.eup %10841  ;;  %v6241_v2 = vadd.f32 1.0, %v10840_v32  ;;  %v14222_v32 = vld [vmem:[#allocation25_spill] sm:$0xff] }
 0xdc6   :  { %v10844_v38 = vpop.eup %10843  ;;  %v6263_v33 = vmul.f32 %v10842_v60, %v6243_v44  ;;  %v14221_v44 = vld [vmem:[#allocation24_spill] sm:$0xff]  ;;  %v14223_v60 = vld [vmem:[#allocation17_spill] sm:$0xff] }
 0xdc7   :  { %v10846_v25 = vpop.eup %10845  ;;  %v6262_v53 = vmul.f32 %v10844_v38, %v6242_v23  ;;  %v6245_v56 = vmul.f32 0.5, %v6241_v2 }
 0xdc8   :  { %v6240_v36 = vadd.f32 1.0, %v10846_v25 }
 0xdc9   :  { %v10848_v12 = vpop.eup %10847  ;;  %v9719_v57 = vpack.c.bf16 %v6263_v33, %v6262_v53  ;;  %v14224_v33 = vld [vmem:[#allocation15_spill] sm:$0xff] }
 0xdca   :  { %v10850_v26 = vpop.eup %10849  ;;  %v6265_v7 = vmul.f32 %v10848_v12, %v6245_v56  ;;  %v6244_v16 = vmul.f32 0.5, %v6240_v36  ;;  %v14225_v56 = vld [vmem:[#allocation33_spill] sm:$0xff] }
 0xdcb   :  { %9720 = vmatprep.subr.bf16.mxu0 %v9719_v57 }
 0xdcc   :  { %v6264_v6 = vmul.f32 %v10850_v26, %v6244_v16  ;;  %9722 = vmatpush3.bf16.msra.mxu0 %v9719_v57 }
 0xdce   :  { %v9723_v19 = vpack.c.bf16 %v6265_v7, %v6264_v6 }
 0xdd0   :  { %9724 = vmatprep.subr.bf16.mxu0 %v9723_v19 }
 0xdd1   :  { %9726 = vmatpush3.bf16.msra.mxu0 %v9723_v19 }
 0xdd2   :  { %9728 = vmatprep.subr.bf16.mxu0 %v9727_v17 }
 0xdd4   :  { %9383 = vmatmul.mubr.msk.f32.vlgmr.msra.gmra.mrb[116].mxu0 %vm352_vm2, %v13268_v49  ;;  %v14218_v49 = vld [vmem:[#allocation21_spill] sm:$0xff] }
 0xdd5   :  { %9730 = vmatpush3.bf16.msra.mxu0 %v9727_v17  ;;  %9393 = vmatprep.mubr.msk.f32.mxu0 %vm352_vm2, %v13385_v61 }
 0xdd6   :  { %9732 = vmatprep.subr.bf16.mxu0 %v9731_v34 }
 0xdd9   :  { %9734 = vmatpush3.bf16.msra.mxu0 %v9731_v34 }
 0xdda   :  { %9736 = vmatprep.subr.bf16.mxu0 %v9719_v57 }
 0xddc   :  { %9394 = vmatmul.mubr.msk.f32.vlgmr.msra.gmra.mrb[118].mxu0 %vm352_vm2, %v13392_v20 }
 0xddd   :  { %9738 = vmatpush3.bf16.msra.mxu0 %v9719_v57  ;;  %9396 = vmatprep.mubr.msk.f32.mxu0 %vm352_vm2, %v13399_v46 }
 0xdde   :  { %9740 = vmatprep.subr.bf16.mxu0 %v9723_v19 }
 0xde0   :  { %9397 = vmatmul.mubr.msk.f32.gmra.mrb[120].mxu0 %vm352_vm2, %v13406_v29 }
 0xde1   :  { %9742 = vmatpush3.bf16.msra.mxu0 %v9723_v19  ;;  %9399 = vmatprep.mubr.msk.f32.mxu0 %vm352_vm2, %v13413_v14 }
 0xde4   :  { %9400 = vmatmul.mubr.msk.f32.gmra.mrb[122].mxu0 %vm352_vm2, %v13420_v30 }
 0xde5   :  { %9402 = vmatprep.mubr.msk.f32.mxu0 %vm352_vm2, %v13427_v59 }
 0xde8   :  { %9403 = vmatmul.mubr.msk.f32.gmra.mrb[124].mxu0 %vm352_vm2, %v13434_v8 }
 0xde9   :  { %9405 = vmatprep.mubr.msk.f32.mxu0 %vm352_vm2, %v13441_v47 }
 0xdec   :  { %9406 = vmatmul.mubr.msk.f32.gmra.mrb[126].mxu0 %vm352_vm2, %v13448_v21 }
 0xded   :  { %9408 = vmatprep.mubr.msk.f32.mxu0 %vm352_vm2, %v13455_v31 }
 0xdf0   :  { %9409 = vmatmul.mubr.msk.f32.gmra.mrb[128].mxu0 %vm352_vm2, %v13462_v52 }
 0xdf1   :  { %9411 = vmatprep.mubr.msk.f32.mxu0 %vm352_vm2, %v13469_v58 }
 0xdf4   :  { %9412 = vmatmul.mubr.msk.f32.gmra.mrb[130].mxu0 %vm352_vm2, %v13476_v24 }
 0xdf5   :  { %9414 = vmatprep.mubr.msk.f32.mxu0 %vm352_vm2, %v13483_v3 }
 0xdf8   :  { %9415 = vmatmul.mubr.msk.f32.gmra.mrb[132].mxu0 %vm352_vm2, %v13490_v28 }
 0xdf9   :  { %9425 = vmatprep.mubr.msk.f32.mxu0 %vm352_vm2, %v13497_v1 }
 0xdfc   :  { %9426 = vmatmul.mubr.msk.f32.vlgmr.msra.gmra.mrb[118].mxu0 %vm352_vm2, %v13504_v9 }
 0xdfd   :  { %9428 = vmatprep.mubr.msk.f32.mxu0 %vm352_vm2, %v13511_v5 }
 0xe00   :  { %9429 = vmatmul.mubr.msk.f32.gmra.mrb[120].mxu0 %vm352_vm2, %v13518_v54 }
 0xe01   :  { %9431 = vmatprep.mubr.msk.f32.mxu0 %vm352_vm2, %v13525_v0 }
 0xe04   :  { %9432 = vmatmul.mubr.msk.f32.gmra.mrb[122].mxu0 %vm352_vm2, %v13532_v63 }
 0xe05   :  { %9434 = vmatprep.mubr.msk.f32.mxu0 %vm352_vm2, %v13539_v22 }
 0xe08   :  { %9435 = vmatmul.mubr.msk.f32.gmra.mrb[124].mxu0 %vm352_vm2, %v13546_v40 }
 0xe09   :  { %9437 = vmatprep.mubr.msk.f32.mxu0 %vm352_vm2, %v13553_v37 }
 0xe0c   :  { %9438 = vmatmul.mubr.msk.f32.gmra.mrb[126].mxu0 %vm352_vm2, %v13560_v42 }
 0xe0d   :  { %9440 = vmatprep.mubr.msk.f32.mxu0 %vm352_vm2, %v13567_v27 }
 0xe10   :  { %9441 = vmatmul.mubr.msk.f32.gmra.mrb[128].mxu0 %vm352_vm2, %v13574_v13 }
 0xe11   :  { %9443 = vmatprep.mubr.msk.f32.mxu0 %vm352_vm2, %v14218_v49 }
 0xe14   :  { %9444 = vmatmul.mubr.msk.f32.gmra.mrb[130].mxu0 %vm352_vm2, %v14219_v48 }
 0xe15   :  { %9446 = vmatprep.mubr.msk.f32.mxu0 %vm352_vm2, %v14220_v55 }
 0xe18   :  { %9447 = vmatmul.mubr.msk.f32.gmra.mrb[132].mxu0 %vm352_vm2, %v14221_v44 }
 0xe19   :  { %9532 = vmatprep.mubr.msk.f32.mxu0 %vm352_vm2, %v14222_v32 }
 0xea7   :  { %v9384_v23 = vpop.f32.mrb[116].mxu0 }
 0xea8   :  { %v6338_v2 = vadd.f32 %v9384_v23, %v14223_v60  ;;  %v6332_v38 = vpop.f32.mrb[117].mxu0  ;;  %v14228_v23 = vld [vmem:[#allocation36_spill] sm:$0xff] }
 0xea9   :  { %v6333_v25 = vadd.f32 %v6332_v38, %v14224_v33 }
 0xeaa   :  { %7752 = vst.msk [vmem:[%s13880_s2 + $0x58] sm:$0xff] %vm634_vm3, %v6338_v2 }
 0xeab   :  { %7751 = vst.msk [vmem:[%s13880_s2 + $0x50] sm:$0xff] %vm634_vm3, %v6333_v25 }
 0xecf   :  { %v9427_v53 = vpop.f32.mrb[118].mxu0 }
 0xed0   :  { %v9999_v36 = vadd.f32 %v9427_v53, %v14225_v56  ;;  %v6559_v12 = vpop.f32.mrb[119].mxu0 }
 0xed1   :  { %v10000_v57 = vadd.f32 %v6559_v12, %v14201_v43  ;;  %v14229_v12 = vld [vmem:[#allocation39_spill] sm:$0xff] }
 0xed2   :  { %v6655_v7 = vmul.f32 0.5, %v9999_v36 }
 0xed3   :  { %v9430_v26 = vpop.f32.mrb[120].mxu0  ;;  %v6654_v41 = vmul.f32 0.5, %v10000_v57 }
 0xed4   :  { %v10001_v16 = vadd.f32 %v9430_v26, %v14202_v15  ;;  %v6569_v6 = vpop.f32.mrb[121].mxu0  ;;  %10851 = vtanh.f32 %v6655_v7  ;;  %v14235_v15 = vld [vmem:[#allocation46_spill] sm:$0xff] }
 0xed5   :  { %v10002_v19 = vadd.f32 %v6569_v6, %v14226_v39  ;;  %10853 = vtanh.f32 %v6654_v41  ;;  %v14230_v6 = vld [vmem:[#allocation40_spill] sm:$0xff]  ;;  %v14231_v41 = vld [vmem:[#allocation41_spill] sm:$0xff] }
 0xed6   :  { %v6657_v17 = vmul.f32 0.5, %v10001_v16 }
 0xed7   :  { %v9433_v4 = vpop.f32.mrb[122].mxu0  ;;  %v6656_v38 = vmul.f32 0.5, %v10002_v19  ;;  %v14232_v19 = vld [vmem:[#allocation42_spill] sm:$0xff] }
 0xed8   :  { %v10003_v34 = vadd.f32 %v9433_v4, %v14227_v62  ;;  %v6579_v32 = vpop.f32.mrb[123].mxu0  ;;  %10855 = vtanh.f32 %v6657_v17 }
 0xed9   :  { %v10004_v2 = vadd.f32 %v6579_v32, %v14228_v23 }
 0xeda   :  { %v6671_v25 = vmul.f32 0.5, %v10003_v34 }
 0xedb   :  { %v6670_v53 = vmul.f32 0.5, %v10004_v2  ;;  %v9436_v36 = vpop.f32.mrb[124].mxu0 }
 0xedc   :  { %10857 = vtanh.f32 %v6671_v25  ;;  %v10005_v26 = vadd.f32 %v9436_v36, %v14229_v12  ;;  %v6589_v57 = vpop.f32.mrb[125].mxu0  ;;  %v14233_v36 = vld [vmem:[#allocation43_spill] sm:$0xff] }
 0xedd   :  { %10859 = vtanh.f32 %v6670_v53  ;;  %v10006_v16 = vadd.f32 %v6589_v57, %v14230_v6 }
 0xede   :  { %10861 = vtanh.f32 %v6656_v38  ;;  %v6673_v7 = vmul.f32 0.5, %v10005_v26  ;;  %v10852_v34 = vpop.eup %10851  ;;  %v14234_v38 = vld [vmem:[#allocation44_spill] sm:$0xff] }
 0xedf   :  { %v6672_v39 = vmul.f32 0.5, %v10006_v16  ;;  %v9439_v4 = vpop.f32.mrb[126].mxu0  ;;  %v10854_v2 = vpop.eup %10853  ;;  %v6663_v6 = vadd.f32 1.0, %v10852_v34 }
 0xee0   :  { %10863 = vtanh.f32 %v6673_v7  ;;  %v10007_v62 = vadd.f32 %v9439_v4, %v14231_v41  ;;  %v6599_v32 = vpop.f32.mrb[127].mxu0  ;;  %v6662_v7 = vadd.f32 1.0, %v10854_v2 }
 0xee1   :  { %10865 = vtanh.f32 %v6672_v39  ;;  %v10008_v17 = vadd.f32 %v6599_v32, %v14232_v19  ;;  %v6667_v43 = vmul.f32 0.5, %v6663_v6 }
 0xee2   :  { %10867 = vtanh.f32 %v10007_v62  ;;  %v10856_v57 = vpop.eup %10855  ;;  %v6666_v56 = vmul.f32 0.5, %v6662_v7 }
 0xee3   :  { %10869 = vtanh.f32 %v10008_v17  ;;  %v9442_v25 = vpop.f32.mrb[128].mxu0  ;;  %v6665_v2 = vadd.f32 1.0, %v10856_v57 }
 0xee4   :  { %v10009_v53 = vadd.f32 %v9442_v25, %v14233_v36  ;;  %v6609_v12 = vpop.f32.mrb[129].mxu0 }
 0xee5   :  { %v10010_v26 = vadd.f32 %v6609_v12, %v14234_v38 }
 0xee6   :  { %v10858_v16 = vpop.eup %10857  ;;  %10871 = vtanh.f32 %v10009_v53 }
 0xee7   :  { %v10860_v4 = vpop.eup %10859  ;;  %v6679_v41 = vadd.f32 1.0, %v10858_v16  ;;  %10873 = vtanh.f32 %v10010_v26  ;;  %v9445_v39 = vpop.f32.mrb[130].mxu0 }
 0xee8   :  { %v10862_v32 = vpop.eup %10861  ;;  %v6678_v19 = vadd.f32 1.0, %v10860_v4  ;;  %v10011_v62 = vadd.f32 %v9445_v39, %v14170_v51  ;;  %v6619_v17 = vpop.f32.mrb[131].mxu0 }
 0xee9   :  { %v6683_v23 = vmul.f32 0.5, %v6679_v41  ;;  %v10012_v25 = vadd.f32 %v6619_v17, %v14235_v15  ;;  %v6664_v53 = vadd.f32 1.0, %v10862_v32 }
 0xeea   :  { %v10864_v36 = vpop.eup %10863  ;;  %v6682_v12 = vmul.f32 0.5, %v6678_v19  ;;  %v6691_v38 = vmul.f32 0.5, %v10011_v62  ;;  %v6669_v62 = vmul.f32 0.5, %v6665_v2 }
 0xeeb   :  { %v10866_v34 = vpop.eup %10865  ;;  %v6681_v33 = vadd.f32 1.0, %v10864_v36  ;;  %v6690_v16 = vmul.f32 0.5, %v10012_v25  ;;  %v9448_v26 = vpop.f32.mrb[132].mxu0  ;;  %v6707_v4 = vmul.f32 %v6683_v23, %v13641_v18 }
 0xeec   :  { %v10868_v60 = vpop.eup %10867  ;;  %v6680_v44 = vadd.f32 1.0, %v10866_v34  ;;  %10875 = vtanh.f32 %v6691_v38  ;;  %v10013_v41 = vadd.f32 %v9448_v26, %v14172_v50  ;;  %v6629_v39 = vpop.f32.mrb[133].mxu0  ;;  %v6706_v57 = vmul.f32 %v6682_v12, %v13643_v45 }
 0xeed   :  { %v10870_v17 = vpop.eup %10869  ;;  %v6685_v15 = vmul.f32 0.5, %v6681_v33  ;;  %v6711_v6 = vmul.f32 %v10868_v60, %v6667_v43  ;;  %10877 = vtanh.f32 %v6690_v16  ;;  %v10014_v19 = vadd.f32 %v6629_v39, %v12721_v11 }
 0xeee   :  { %v6684_v7 = vmul.f32 0.5, %v6680_v44  ;;  %v6710_v36 = vmul.f32 %v10870_v17, %v6666_v56  ;;  %v6693_v32 = vmul.f32 0.5, %v10013_v41  ;;  %v6668_v38 = vmul.f32 0.5, %v6664_v53 }
 0xeef   :  { %v13751_v25 = vadd.f32 %v6711_v6, %v6707_v4  ;;  %v6692_v18 = vmul.f32 0.5, %v10014_v19  ;;  %v6709_v43 = vmul.f32 %v6685_v15, %v13649_v35 }
 0xef0   :  { %v10872_v23 = vpop.eup %10871  ;;  %v13753_v34 = vadd.f32 %v6710_v36, %v6706_v57  ;;  %10879 = vtanh.f32 %v6693_v32  ;;  %v6708_v45 = vmul.f32 %v6684_v7, %v13651_v10 }
 0xef1   :  { %v10874_v26 = vpop.eup %10873  ;;  %10881 = vtanh.f32 %v13751_v25  ;;  %v6713_v60 = vmul.f32 %v10872_v23, %v6669_v62 }
 0xef2   :  { %10883 = vtanh.f32 %v13753_v34  ;;  %v6712_v44 = vmul.f32 %v10874_v26, %v6668_v38  ;;  %v6804_v26 = vld [vmem:[#allocation2 + $0xe0] sm:$0xff] }
 0xef3   :  { %v13759_v33 = vadd.f32 %v6713_v60, %v6709_v43  ;;  %10885 = vtanh.f32 %v6692_v18  ;;  %v6805_v43 = vld [vmem:[#allocation2 + $0xe8] sm:$0xff] }
 0xef4   :  { %v13761_v56 = vadd.f32 %v6712_v44, %v6708_v45  ;;  %v9751_v45 = vpack.c.bf16 %v6805_v43, %v6804_v26  ;;  %v6806_v44 = vld [vmem:[#allocation2 + $0xf0] sm:$0xff] }
 0xef5   :  { %10887 = vtanh.f32 %v13759_v33 }
 0xef6   :  { %v10876_v12 = vpop.eup %10875  ;;  %10889 = vtanh.f32 %v13761_v56 }
 0xef7   :  { %v10878_v2 = vpop.eup %10877  ;;  %v6699_v15 = vadd.f32 1.0, %v10876_v12  ;;  %v6807_v12 = vld [vmem:[#allocation2 + $0xf8] sm:$0xff] }
 0xef8   :  { %v6698_v35 = vadd.f32 1.0, %v10878_v2  ;;  %v13768_v2 = vld [vmem:[%s13879_s1 + $0x308] sm:$0xff] }
 0xef9   :  { %v6703_v53 = vmul.f32 0.5, %v6699_v15  ;;  %v9755_v15 = vpack.c.bf16 %v6807_v12, %v6806_v44 }
 0xefa   :  { %v10880_v16 = vpop.eup %10879  ;;  %v6702_v4 = vmul.f32 0.5, %v6698_v35 }
 0xefb   :  { %v10882_v10 = vpop.eup %10881  ;;  %v6701_v41 = vadd.f32 1.0, %v10880_v16 }
 0xefc   :  { %v10884_v39 = vpop.eup %10883  ;;  %v6723_v17 = vmul.f32 %v10882_v10, %v6703_v53  ;;  %v14245_v53 = vld [vmem:[#allocation39_spill] sm:$0xff]  ;;  %v14246_v10 = vld [vmem:[#allocation40_spill] sm:$0xff] }
 0xefd   :  { %v10886_v6 = vpop.eup %10885  ;;  %v6722_v19 = vmul.f32 %v10884_v39, %v6702_v4  ;;  %v6705_v57 = vmul.f32 0.5, %v6701_v41 }
 0xefe   :  { %v6700_v7 = vadd.f32 1.0, %v10886_v6 }
 0xeff   :  { %v10888_v36 = vpop.eup %10887  ;;  %v9743_v32 = vpack.c.bf16 %v6723_v17, %v6722_v19  ;;  %v14247_v19 = vld [vmem:[#allocation41_spill] sm:$0xff] }
 0xf00   :  { %v10890_v62 = vpop.eup %10889  ;;  %v6725_v18 = vmul.f32 %v10888_v36, %v6705_v57  ;;  %v6704_v23 = vmul.f32 0.5, %v6700_v7  ;;  %v14248_v36 = vld [vmem:[#allocation42_spill] sm:$0xff] }
 0xf01   :  { %9744 = vmatprep.subr.bf16.mxu1 %v9743_v32 }
 0xf02   :  { %v6724_v38 = vmul.f32 %v10890_v62, %v6704_v23  ;;  %9746 = vmatpush3.bf16.msra.mxu1 %v9743_v32 }
 0xf04   :  { %v9747_v60 = vpack.c.bf16 %v6725_v18, %v6724_v38  ;;  %v14249_v38 = vld [vmem:[#allocation43_spill] sm:$0xff] }
 0xf06   :  { %9748 = vmatprep.subr.bf16.mxu1 %v9747_v60 }
 0xf07   :  { %9750 = vmatpush3.bf16.msra.mxu1 %v9747_v60 }
 0xf08   :  { %9752 = vmatprep.subr.bf16.mxu1 %v9751_v45 }
 0xf0a   :  { %9458 = vmatmul.mubr.msk.f32.vlgmr.msra.gmra.mrb[118].mxu1 %vm352_vm2, %v13768_v2 }
 0xf0b   :  { %9754 = vmatpush3.bf16.msra.mxu1 %v9751_v45  ;;  %9468 = vmatprep.mubr.msk.f32.mxu1 %vm352_vm2, %v13385_v61  ;;  %v14236_v61 = vld [vmem:[#allocation24_spill] sm:$0xff] }
 0xf0c   :  { %9756 = vmatprep.subr.bf16.mxu1 %v9755_v15  ;;  %v14250_v45 = vld [vmem:[#allocation44_spill] sm:$0xff] }
 0xf0f   :  { %9758 = vmatpush3.bf16.msra.mxu1 %v9755_v15 }
 0xf10   :  { %9760 = vmatprep.subr.bf16.mxu1 %v9743_v32 }
 0xf12   :  { %9469 = vmatmul.mubr.msk.f32.vlgmr.msra.gmra.mrb[120].mxu1 %vm352_vm2, %v13392_v20 }
 0xf13   :  { %9762 = vmatpush3.bf16.msra.mxu1 %v9743_v32  ;;  %9471 = vmatprep.mubr.msk.f32.mxu1 %vm352_vm2, %v13399_v46  ;;  %v14237_v46 = vld [vmem:[#allocation17_spill] sm:$0xff] }
 0xf14   :  { %9764 = vmatprep.subr.bf16.mxu1 %v9747_v60 }
 0xf16   :  { %9472 = vmatmul.mubr.msk.f32.gmra.mrb[122].mxu1 %vm352_vm2, %v13406_v29 }
 0xf17   :  { %9766 = vmatpush3.bf16.msra.mxu1 %v9747_v60  ;;  %9474 = vmatprep.mubr.msk.f32.mxu1 %vm352_vm2, %v13413_v14 }
 0xf1a   :  { %9475 = vmatmul.mubr.msk.f32.gmra.mrb[124].mxu1 %vm352_vm2, %v13420_v30  ;;  %v14238_v30 = vld [vmem:[#allocation15_spill] sm:$0xff] }
 0xf1b   :  { %9477 = vmatprep.mubr.msk.f32.mxu1 %vm352_vm2, %v13427_v59 }
 0xf1e   :  { %9478 = vmatmul.mubr.msk.f32.gmra.mrb[126].mxu1 %vm352_vm2, %v13434_v8 }
 0xf1f   :  { %9480 = vmatprep.mubr.msk.f32.mxu1 %vm352_vm2, %v13441_v47  ;;  %v14239_v47 = vld [vmem:[#allocation33_spill] sm:$0xff] }
 0xf22   :  { %9481 = vmatmul.mubr.msk.f32.gmra.mrb[128].mxu1 %vm352_vm2, %v13448_v21 }
 0xf23   :  { %9483 = vmatprep.mubr.msk.f32.mxu1 %vm352_vm2, %v13455_v31 }
 0xf26   :  { %9484 = vmatmul.mubr.msk.f32.gmra.mrb[130].mxu1 %vm352_vm2, %v13462_v52  ;;  %v14240_v52 = vld [vmem:[#allocation34_spill] sm:$0xff] }
 0xf27   :  { %9486 = vmatprep.mubr.msk.f32.mxu1 %vm352_vm2, %v13469_v58 }
 0xf2a   :  { %9487 = vmatmul.mubr.msk.f32.gmra.mrb[132].mxu1 %vm352_vm2, %v13476_v24 }
 0xf2b   :  { %9489 = vmatprep.mubr.msk.f32.mxu1 %vm352_vm2, %v13483_v3 }
 0xf2e   :  { %9490 = vmatmul.mubr.msk.f32.gmra.mrb[134].mxu1 %vm352_vm2, %v13490_v28  ;;  %v14241_v28 = vld [vmem:[#allocation37_spill] sm:$0xff] }
 0xf2f   :  { %9500 = vmatprep.mubr.msk.f32.mxu1 %vm352_vm2, %v13497_v1 }
 0xf32   :  { %9501 = vmatmul.mubr.msk.f32.vlgmr.msra.gmra.mrb[120].mxu1 %vm352_vm2, %v13504_v9 }
 0xf33   :  { %9503 = vmatprep.mubr.msk.f32.mxu1 %vm352_vm2, %v13511_v5 }
 0xf36   :  { %9504 = vmatmul.mubr.msk.f32.gmra.mrb[122].mxu1 %vm352_vm2, %v13518_v54  ;;  %v14242_v54 = vld [vmem:[#allocation38_spill] sm:$0xff] }
 0xf37   :  { %9506 = vmatprep.mubr.msk.f32.mxu1 %vm352_vm2, %v13525_v0 }
 0xf3a   :  { %9507 = vmatmul.mubr.msk.f32.gmra.mrb[124].mxu1 %vm352_vm2, %v13532_v63 }
 0xf3b   :  { %9509 = vmatprep.mubr.msk.f32.mxu1 %vm352_vm2, %v13539_v22 }
 0xf3e   :  { %9510 = vmatmul.mubr.msk.f32.gmra.mrb[126].mxu1 %vm352_vm2, %v13546_v40  ;;  %v14243_v40 = vld [vmem:[#allocation35_spill] sm:$0xff] }
 0xf3f   :  { %9512 = vmatprep.mubr.msk.f32.mxu1 %vm352_vm2, %v13553_v37 }
 0xf42   :  { %9513 = vmatmul.mubr.msk.f32.gmra.mrb[128].mxu1 %vm352_vm2, %v13560_v42 }
 0xf43   :  { %9515 = vmatprep.mubr.msk.f32.mxu1 %vm352_vm2, %v13567_v27  ;;  %v14244_v27 = vld [vmem:[#allocation36_spill] sm:$0xff] }
 0xf46   :  { %9516 = vmatmul.mubr.msk.f32.gmra.mrb[130].mxu1 %vm352_vm2, %v13574_v13 }
 0xf47   :  { %9518 = vmatprep.mubr.msk.f32.mxu1 %vm352_vm2, %v14218_v49 }
 0xf4a   :  { %9519 = vmatmul.mubr.msk.f32.gmra.mrb[132].mxu1 %vm352_vm2, %v14219_v48 }
 0xf4b   :  { %9521 = vmatprep.mubr.msk.f32.mxu1 %vm352_vm2, %v14220_v55 }
 0xf4e   :  { %9522 = vmatmul.mubr.msk.f32.gmra.mrb[134].mxu1 %vm352_vm2, %v14236_v61 }
 0xfdd   :  { %v9459_v20 = vpop.f32.mrb[118].mxu1 }
 0xfde   :  { %v6798_v29 = vadd.f32 %v9459_v20, %v14237_v46  ;;  %v6792_v14 = vpop.f32.mrb[119].mxu1 }
 0xfdf   :  { %v6793_v59 = vadd.f32 %v6792_v14, %v14238_v30 }
 0xfe0   :  { %7788 = vst.msk [vmem:[%s13880_s2 + $0x68] sm:$0xff] %vm634_vm3, %v6798_v29 }
 0xfe1   :  { %7787 = vst.msk [vmem:[%s13880_s2 + $0x60] sm:$0xff] %vm634_vm3, %v6793_v59 }
0x1005   :  { %v9502_v8 = vpop.f32.mrb[120].mxu1 }
0x1006   :  { %v10015_v21 = vadd.f32 %v9502_v8, %v14239_v47  ;;  %v7019_v31 = vpop.f32.mrb[121].mxu1 }
0x1007   :  { %v10016_v58 = vadd.f32 %v7019_v31, %v14240_v52  ;;  %v14251_v52 = vld [vmem:[#allocation46_spill] sm:$0xff] }
0x1008   :  { %v7115_v3 = vmul.f32 0.5, %v10015_v21 }
0x1009   :  { %v9505_v24 = vpop.f32.mrb[122].mxu1  ;;  %v7114_v5 = vmul.f32 0.5, %v10016_v58 }
0x100a   :  { %v10017_v1 = vadd.f32 %v9505_v24, %v14241_v28  ;;  %v7029_v9 = vpop.f32.mrb[123].mxu1  ;;  %10891 = vtanh.f32 %v7115_v3 }
0x100b   :  { %v10018_v0 = vadd.f32 %v7029_v9, %v14242_v54  ;;  %10893 = vtanh.f32 %v7114_v5 }
0x100c   :  { %v7117_v63 = vmul.f32 0.5, %v10017_v1 }
0x100d   :  { %v9508_v22 = vpop.f32.mrb[124].mxu1  ;;  %v7116_v49 = vmul.f32 0.5, %v10018_v0 }
0x100e   :  { %v10019_v37 = vadd.f32 %v9508_v22, %v14243_v40  ;;  %v7039_v42 = vpop.f32.mrb[125].mxu1  ;;  %10895 = vtanh.f32 %v7117_v63 }
0x100f   :  { %v10020_v13 = vadd.f32 %v7039_v42, %v14244_v27 }
0x1010   :  { %v7131_v48 = vmul.f32 0.5, %v10019_v37 }
0x1011   :  { %v7130_v55 = vmul.f32 0.5, %v10020_v13  ;;  %v9511_v35 = vpop.f32.mrb[126].mxu1 }
0x1012   :  { %10897 = vtanh.f32 %v7131_v48  ;;  %v10021_v16 = vadd.f32 %v9511_v35, %v14245_v53  ;;  %v7049_v4 = vpop.f32.mrb[127].mxu1 }
0x1013   :  { %10899 = vtanh.f32 %v7130_v55  ;;  %v10022_v41 = vadd.f32 %v7049_v4, %v14246_v10 }
0x1014   :  { %10901 = vtanh.f32 %v7116_v49  ;;  %v7133_v39 = vmul.f32 0.5, %v10021_v16  ;;  %v10892_v62 = vpop.eup %10891 }
0x1015   :  { %v7132_v17 = vmul.f32 0.5, %v10022_v41  ;;  %v9514_v6 = vpop.f32.mrb[128].mxu1  ;;  %v10894_v18 = vpop.eup %10893  ;;  %v7123_v15 = vadd.f32 1.0, %v10892_v62 }
0x1016   :  { %10903 = vtanh.f32 %v7133_v39  ;;  %v10023_v57 = vadd.f32 %v9514_v6, %v14247_v19  ;;  %v7059_v7 = vpop.f32.mrb[129].mxu1  ;;  %v7122_v61 = vadd.f32 1.0, %v10894_v18 }
0x1017   :  { %10905 = vtanh.f32 %v7132_v17  ;;  %v10024_v32 = vadd.f32 %v7059_v7, %v14248_v36  ;;  %v7127_v3 = vmul.f32 0.5, %v7123_v15 }
0x1018   :  { %10907 = vtanh.f32 %v10023_v57  ;;  %v10896_v60 = vpop.eup %10895  ;;  %v7126_v28 = vmul.f32 0.5, %v7122_v61 }
0x1019   :  { %10909 = vtanh.f32 %v10024_v32  ;;  %v9517_v23 = vpop.f32.mrb[130].mxu1  ;;  %v7125_v54 = vadd.f32 1.0, %v10896_v60 }
0x101a   :  { %v10025_v26 = vadd.f32 %v9517_v23, %v14249_v38  ;;  %v7069_v43 = vpop.f32.mrb[131].mxu1 }
0x101b   :  { %v10026_v44 = vadd.f32 %v7069_v43, %v14250_v45  ;;  %v7129_v41 = vmul.f32 0.5, %v7125_v54 }
0x101c   :  { %v10898_v12 = vpop.eup %10897  ;;  %10911 = vtanh.f32 %v10025_v26 }
0x101d   :  { %v10900_v20 = vpop.eup %10899  ;;  %v7139_v29 = vadd.f32 1.0, %v10898_v12  ;;  %10913 = vtanh.f32 %v10026_v44  ;;  %v9520_v14 = vpop.f32.mrb[132].mxu1 }
0x101e   :  { %v10902_v59 = vpop.eup %10901  ;;  %v7138_v8 = vadd.f32 1.0, %v10900_v20  ;;  %v10027_v47 = vadd.f32 %v9520_v14, %v14170_v51  ;;  %v7079_v21 = vpop.f32.mrb[133].mxu1 }
0x101f   :  { %v7143_v31 = vmul.f32 0.5, %v7139_v29  ;;  %v10028_v58 = vadd.f32 %v7079_v21, %v14251_v52  ;;  %v7124_v0 = vadd.f32 1.0, %v10902_v59 }
0x1020   :  { %v10904_v24 = vpop.eup %10903  ;;  %v7142_v1 = vmul.f32 0.5, %v7138_v8  ;;  %v7151_v9 = vmul.f32 0.5, %v10027_v47 }
0x1021   :  { %v10906_v5 = vpop.eup %10905  ;;  %v7141_v63 = vadd.f32 1.0, %v10904_v24  ;;  %v7150_v22 = vmul.f32 0.5, %v10028_v58  ;;  %v9523_v40 = vpop.f32.mrb[134].mxu1  ;;  %v7167_v42 = vmul.f32 %v7143_v31, %v13751_v25  ;;  %v7128_v6 = vmul.f32 0.5, %v7124_v0 }
0x1022   :  { %v10908_v37 = vpop.eup %10907  ;;  %v7140_v27 = vadd.f32 1.0, %v10906_v5  ;;  %10915 = vtanh.f32 %v7151_v9  ;;  %v10029_v51 = vadd.f32 %v9523_v40, %v14172_v50  ;;  %v7089_v13 = vpop.f32.mrb[135].mxu1  ;;  %v7166_v53 = vmul.f32 %v7142_v1, %v13753_v34 }
0x1023   :  { %v10910_v49 = vpop.eup %10909  ;;  %v7145_v48 = vmul.f32 0.5, %v7141_v63  ;;  %v7171_v55 = vmul.f32 %v10908_v37, %v7127_v3  ;;  %10917 = vtanh.f32 %v7150_v22  ;;  %v10030_v35 = vadd.f32 %v7089_v13, %v12721_v11 }
0x1024   :  { %v7144_v16 = vmul.f32 0.5, %v7140_v27  ;;  %v7170_v4 = vmul.f32 %v10910_v49, %v7126_v28  ;;  %v7153_v10 = vmul.f32 0.5, %v10029_v51 }
0x1025   :  { %v7175_v39 = vadd.f32 %v7171_v55, %v7167_v42  ;;  %v7152_v17 = vmul.f32 0.5, %v10030_v35  ;;  %v7169_v57 = vmul.f32 %v7145_v48, %v13759_v33 }
0x1026   :  { %v10912_v25 = vpop.eup %10911  ;;  %v7174_v19 = vadd.f32 %v7170_v4, %v7166_v53  ;;  %10919 = vtanh.f32 %v7153_v10  ;;  %v7168_v36 = vmul.f32 %v7144_v16, %v13761_v56 }
0x1027   :  { %v10914_v50 = vpop.eup %10913  ;;  %10921 = vtanh.f32 %v7175_v39  ;;  %v7173_v7 = vmul.f32 %v10912_v25, %v7129_v41 }
0x1028   :  { %10923 = vtanh.f32 %v7174_v19  ;;  %v7172_v11 = vmul.f32 %v10914_v50, %v7128_v6 }
0x1029   :  { %v7177_v34 = vadd.f32 %v7173_v7, %v7169_v57  ;;  %10925 = vtanh.f32 %v7152_v17 }
0x102a   :  { %v7176_v32 = vadd.f32 %v7172_v11, %v7168_v36 }
0x102b   :  { %10927 = vtanh.f32 %v7177_v34 }
0x102c   :  { %v10916_v62 = vpop.eup %10915  ;;  %10929 = vtanh.f32 %v7176_v32 }
0x102d   :  { %v10918_v18 = vpop.eup %10917  ;;  %v7159_v23 = vadd.f32 1.0, %v10916_v62 }
0x102e   :  { %v7158_v38 = vadd.f32 1.0, %v10918_v18 }
0x102f   :  { %v7163_v26 = vmul.f32 0.5, %v7159_v23 }
0x1030   :  { %v10920_v43 = vpop.eup %10919  ;;  %v7162_v60 = vmul.f32 0.5, %v7158_v38 }
0x1031   :  { %v10922_v45 = vpop.eup %10921  ;;  %v7161_v33 = vadd.f32 1.0, %v10920_v43 }
0x1032   :  { %v10924_v44 = vpop.eup %10923  ;;  %v7183_v12 = vmul.f32 %v10922_v45, %v7163_v26 }
0x1033   :  { %v10926_v15 = vpop.eup %10925  ;;  %v7165_v56 = vmul.f32 0.5, %v7161_v33  ;;  %v7182_v61 = vmul.f32 %v10924_v44, %v7162_v60 }
0x1034   :  { %v7160_v20 = vadd.f32 1.0, %v10926_v15 }
0x1035   :  { %v10928_v29 = vpop.eup %10927  ;;  %v9767_v14 = vpack.c.bf16 %v7183_v12, %v7182_v61 }
0x1036   :  { %v10930_v59 = vpop.eup %10929  ;;  %v7164_v8 = vmul.f32 0.5, %v7160_v20  ;;  %v7185_v47 = vmul.f32 %v10928_v29, %v7165_v56 }
0x1037   :  { %9768 = vmatprep.subr.bf16.mxu0 %v9767_v14 }
0x1038   :  { %9770 = vmatpush3.bf16.msra.mxu0 %v9767_v14  ;;  %v7184_v21 = vmul.f32 %v10930_v59, %v7164_v8 }
0x103a   :  { %v9771_v31 = vpack.c.bf16 %v7185_v47, %v7184_v21 }
0x103c   :  { %9772 = vmatprep.subr.bf16.mxu0 %v9771_v31 }
0x103d   :  { %9774 = vmatpush3.bf16.msra.mxu0 %v9771_v31 }
0x1040   :  { %9533 = vmatmul.mubr.msk.f32.vlgmr.msra.gmra.mrb[134].mxu0 %vm352_vm2, %v13768_v2 }
0x1113   :  { %v9534_v52 = vpop.f32.mrb[134].mxu0 }
0x1114   :  { %v7258_v58 = vadd.f32 %v9534_v52, %v14237_v46  ;;  %v7252_v24 = vpop.f32.mrb[135].mxu0 }
0x1115   :  { %v7253_v3 = vadd.f32 %v7252_v24, %v14238_v30 }
0x1116   :  { %7824 = vst.msk [vmem:[%s13880_s2 + $0x78] sm:$0xff] %vm634_vm3, %v7258_v58 }
0x1117   :  { %7823 = vst.msk [vmem:[%s13880_s2 + $0x70] sm:$0xff] %vm634_vm3, %v7253_v3 }

</bundles_post_ra>
